<compile_context>
chip_gen: v7x
topology: tpu7x:2x2x1
jax: 0.10.0
libtpu: 0.0.40
codegen_flags: <defaults>
</compile_context>

<pallas_src>
import math

import numpy as np
import jax
import jax.numpy as jnp
from jax.experimental import pallas as pl
from jax.experimental.pallas import tpu as pltpu

_BN_EPS = 1e-5
_NORM_EPS = 1e-12  # torch.nn.functional.normalize default eps
_MARGIN = 16       # >= WP + 1 = 14, kept 8-aligned for clean scratch stores


def _round_up(v, m):
    return (v + m - 1) // m * m


# --------------------------- in-kernel helpers -----------------------------

def _stage_padded(pad_ref, value, margin, rows):
    """Write `value` into the scratch with zeroed top/bottom row margins."""
    cols = value.shape[1]
    pad_ref[0:margin, :] = jnp.zeros((margin, cols), jnp.float32)
    pad_ref[margin + rows:margin + rows + margin, :] = jnp.zeros((margin, cols), jnp.float32)
    pad_ref[margin:margin + rows, :] = value


def _conv3x3_from_padded(pad_ref, w_ref, cin, rows, margin, wp):
    """3x3 conv (stride 1, pad 1) as 9 row-shifted bf16 MXU matmuls, f32 acc."""
    acc = None
    t = 0
    for a in (-1, 0, 1):
        for b in (-1, 0, 1):
            s = a * wp + b
            lhs = pad_ref[margin + s:margin + s + rows, :].astype(jnp.bfloat16)
            rhs = w_ref[t * cin:(t + 1) * cin, :]                 # (cin, cout) bf16
            d = jnp.dot(lhs, rhs, preferred_element_type=jnp.float32)
            acc = d if acc is None else acc + d
            t += 1
    return acc                                                     # (rows, cout) f32


def _bn_relu_masked(y, mask, inv_count):
    """Training-mode BatchNorm (single-pass masked batch stats) + ReLU,
    then re-zero border/pad rows (= zero padding for the next conv)."""
    s = jnp.sum(y * mask, axis=0, keepdims=True)
    ss = jnp.sum(y * y * mask, axis=0, keepdims=True)
    mean = s * inv_count
    var = ss * inv_count - mean * mean
    out = (y - mean) * jax.lax.rsqrt(var + _BN_EPS)
    return jnp.maximum(out, 0.0) * mask


# ------------------------------ parameters ---------------------------------

def init_params(key):
    k1, k2, k3, k4 = jax.random.split(key, 4)
    # Conv weights: kaiming_normal_(mode='fan_out', nonlinearity='relu'), bias=False
    w1 = jax.random.normal(k1, (128, 121, 3, 3), jnp.float32) * math.sqrt(2.0 / (128 * 9))
    w2 = jax.random.normal(k2, (64, 128, 3, 3), jnp.float32) * math.sqrt(2.0 / (64 * 9))
    # fc1: PyTorch default Linear init U(-1/sqrt(fan_in), 1/sqrt(fan_in))
    bound = 1.0 / math.sqrt(121 * 64)
    wfc = jax.random.uniform(k3, (2, 121 * 64), jnp.float32, -bound, bound)
    bfc = jax.random.uniform(k4, (2,), jnp.float32, -bound, bound)
    return {"w1": w1, "w2": w2, "wfc": wfc, "bfc": bfc}


# ------------------------------ fused forward ------------------------------

@jax.jit
def net_forward(x_nchw, params):
    n, cin, h, w = x_nchw.shape
    c1 = params["w1"].shape[0]            # 128
    c2 = params["w2"].shape[0]            # 64
    nout = params["wfc"].shape[0]         # 2
    hp, wp = h + 2, w + 2                 # zero-padded spatial grid (13 x 13)
    cp = _round_up(cin, 128)              # 121 -> 128 channel pad (lane aligned)
    c2p = _round_up(c2, 128)              # 64  -> 128 channel pad (lane aligned)
    img_rows = hp * wp
    r_real = n * img_rows                 # 338 rows on the padded grid
    r = _round_up(r_real, 8)              # 344 (sublane aligned)
    n_pad = max(8, _round_up(n, 8))       # sublane-aligned batch rows for output
    inv_cnt = 1.0 / float(n * h * w)      # BN divisor uses the 242 REAL positions
    mg = _MARGIN

    # ---- input: NCHW -> NHWC, channel pad, spatial zero pad, flatten rows ----
    x = jnp.transpose(x_nchw, (0, 2, 3, 1))
    x = jnp.pad(x, ((0, 0), (1, 1), (1, 1), (0, cp - cin)))
    x_rows = jnp.pad(x.reshape(r_real, cp), ((0, r - r_real), (0, 0)))

    # ---- interior masks (compile-time constants) -----------------------------
    bm = np.zeros((n, hp, wp), np.float32)
    bm[:, 1:1 + h, 1:1 + w] = 1.0
    bmt_np = np.zeros((n_pad, r), np.float32)          # per-batch mask, transposed
    for bi in range(n):
        bmt_np[bi, bi * img_rows:bi * img_rows + img_rows] = bm[bi].reshape(-1)
    msk_np = bmt_np[:n].sum(axis=0)[:, None]           # (r, 1) interior mask
    bmask_t = jnp.asarray(bmt_np)
    msk_rows = jnp.asarray(msk_np)

    # ---- conv weights -> tap-major im2col matrices (channel zero-pad), bf16 --
    w1 = jnp.pad(params["w1"], ((0, 0), (0, cp - cin), (0, 0), (0, 0)))
    w1 = jnp.transpose(w1, (2, 3, 1, 0)).reshape(9 * cp, c1).astype(jnp.bfloat16)
    w2 = jnp.pad(params["w2"], ((0, c2p - c2), (0, 0), (0, 0), (0, 0)))
    w2 = jnp.transpose(w2, (2, 3, 1, 0)).reshape(9 * c1, c2p).astype(jnp.bfloat16)

    # ---- fc1 weight permuted once onto the padded grid (no activation transpose)
    # torch.flatten(NCHW) feature index = c*H*W + h*W + w
    wfc = params["wfc"].reshape(nout, c2, h, w)
    wfc = jnp.transpose(wfc, (0, 2, 3, 1))                      # (nout, h, w, c2)
    wfc = jnp.pad(wfc, ((0, 0), (1, 1), (1, 1), (0, c2p - c2))) # zero border + chan pad
    wfc = jnp.tile(wfc.reshape(nout, 1, img_rows, c2p), (1, n, 1, 1)).reshape(nout, r_real, c2p)
    wfc = jnp.pad(wfc, ((0, 0), (0, r - r_real), (0, 0)))       # (nout, r, c2p)
    bfc_row = jnp.zeros((1, 128), jnp.float32).at[0, :nout].set(params["bfc"])

    def kernel(x_ref, msk_ref, bmt_ref, w1_ref, w2_ref, wfc_ref, bfc_ref, o_ref,
               pad1_ref, pad2_ref):
        msk = msk_ref[...]                                       # (r, 1) interior mask
        x_in = x_ref[...]                                        # (r, cp) f32

        # x = F.normalize(x, p=2, dim=channel); all-zero (border/pad) rows stay zero.
        # TODO(synk): `print(x.requires_grad)` in the torch forward is debug-only; no equivalent.
        nrm = jnp.sqrt(jnp.sum(x_in * x_in, axis=-1, keepdims=True))
        xn = x_in / jnp.maximum(nrm, _NORM_EPS)

        # conv1 + bn1 + relu   (in-kernel im2col via shifted windows of scratch)
        _stage_padded(pad1_ref, xn, mg, r)
        a1 = _conv3x3_from_padded(pad1_ref, w1_ref, cp, r, mg, wp)
        y1 = _bn_relu_masked(a1, msk, inv_cnt)                   # border rows zeroed

        # conv2 + bn2 + relu (cout zero-padded 64 -> 128; padded lanes stay zero)
        _stage_padded(pad2_ref, y1, mg, r)
        a2 = _conv3x3_from_padded(pad2_ref, w2_ref, c1, r, mg, wp)
        y2 = _bn_relu_masked(a2, msk, inv_cnt)                   # (r, c2p)

        # fc1: per-row multiply-reduce against the grid-scattered weight, then a
        # tiny (batch-mask)^T @ colsums matmul -> lane-dense (n_pad, 128) slab.
        lane_r = jax.lax.broadcasted_iota(jnp.int32, (r, 128), 1)
        cs = jnp.zeros((r, 128), jnp.float32)
        for k in range(nout):
            colsum = jnp.sum(y2 * wfc_ref[k], axis=1, keepdims=True)   # (r, 1)
            cs = jnp.where(lane_r == k, colsum, cs)
        res = jnp.dot(bmt_ref[...], cs, preferred_element_type=jnp.float32)  # (n_pad, 128)
        o_ref[...] = res + bfc_ref[...]

    out_padded = pl.pallas_call(
        kernel,
        out_shape=jax.ShapeDtypeStruct((n_pad, 128), jnp.float32),
        in_specs=[pl.BlockSpec(memory_space=pltpu.MemorySpace.VMEM) for _ in range(7)],
        out_specs=pl.BlockSpec(memory_space=pltpu.MemorySpace.VMEM),
        scratch_shapes=[
            pltpu.VMEM((r + 2 * mg, cp), jnp.float32),   # zero-margined normalized input
            pltpu.VMEM((r + 2 * mg, c1), jnp.float32),   # zero-margined conv1 activation
        ],
    )(x_rows, msk_rows, bmask_t, w1, w2, wfc, bfc_row)
    return out_padded[:n, :nout]


# Pure-JAX reference (for a correctness sanity check only).
def net_forward_ref(x_nchw, params):
    x = x_nchw / jnp.maximum(
        jnp.sqrt(jnp.sum(x_nchw * x_nchw, axis=1, keepdims=True)), _NORM_EPS)

    def conv(v, wgt):
        return jax.lax.conv_general_dilated(
            v, wgt, (1, 1), ((1, 1), (1, 1)),
            dimension_numbers=("NCHW", "OIHW", "NCHW"))

    def bn_relu(v):
        mean = jnp.mean(v, axis=(0, 2, 3), keepdims=True)
        var = jnp.mean((v - mean) ** 2, axis=(0, 2, 3), keepdims=True)
        return jnp.maximum((v - mean) * jax.lax.rsqrt(var + _BN_EPS), 0.0)

    x = bn_relu(conv(x, params["w1"]))
    x = bn_relu(conv(x, params["w2"]))
    x = x.reshape(x.shape[0], -1)
    return x @ params["wfc"].T + params["bfc"]


if __name__ == "__main__":
    M, W = 2, 11   # sim_matrix.view(M, W, W, -1).permute(0, 3, 1, 2) -> (M, 121, 11, 11)
    key = jax.random.PRNGKey(0)
    kx, kp = jax.random.split(key)
    x = jax.random.normal(kx, (M, 121, W, W), jnp.float32)
    params = init_params(kp)

    out = jax.block_until_ready(net_forward(x, params))
    ref = net_forward_ref(x, params)
    assert out.shape == (M, 2), out.shape
    # Kernel uses bf16 MXU operands with f32 accumulation, so allow a slightly
    # looser tolerance than a pure-f32 comparison.
    assert jnp.allclose(out, ref, atol=2.5e-2, rtol=2.5e-2), (out, ref)
    print("KERNEL_OK")
</pallas_src>

<mosaic_0001>
module attributes {stable_mosaic.version = 11 : i64} {
  func.func @kernel(%arg0: memref<344x128xf32, #tpu.memory_space<vmem>>, %arg1: memref<344x1xf32, #tpu.memory_space<vmem>>, %arg2: memref<8x344xf32, #tpu.memory_space<vmem>>, %arg3: memref<1152x128xbf16, #tpu.memory_space<vmem>>, %arg4: memref<1152x128xbf16, #tpu.memory_space<vmem>>, %arg5: memref<2x344x128xf32, #tpu.memory_space<vmem>>, %arg6: memref<1x128xf32, #tpu.memory_space<vmem>>, %arg7: memref<8x128xf32, #tpu.memory_space<vmem>>, %arg8: memref<376x128xf32, #tpu.memory_space<vmem>>, %arg9: memref<376x128xf32, #tpu.memory_space<vmem>>) attributes {dimension_semantics = [], scalar_prefetch = 0 : i64, scratch_operands = 2 : i64, tpu.core_type = #tpu.core_type<tc>} {
    %c0 = arith.constant 0 : index
    %c0_0 = arith.constant 0 : index
    %0 = vector.load %arg1[%c0, %c0_0] : memref<344x1xf32, #tpu.memory_space<vmem>>, vector<344x1xf32>
    %c0_1 = arith.constant 0 : index
    %c0_2 = arith.constant 0 : index
    %1 = vector.load %arg0[%c0_1, %c0_2] : memref<344x128xf32, #tpu.memory_space<vmem>>, vector<344x128xf32>
    %2 = arith.mulf %1, %1 : vector<344x128xf32>
    %cst = arith.constant dense<0.000000e+00> : vector<344xf32>
    %3 = vector.multi_reduction <add>, %2, %cst [1] : vector<344x128xf32> to vector<344xf32>
    %4 = vector.shape_cast %3 : vector<344xf32> to vector<344x1xf32>
    %5 = math.sqrt %4 : vector<344x1xf32>
    %cst_3 = arith.constant 9.99999996E-13 : f32
    %6 = vector.broadcast %cst_3 : f32 to vector<344x1xf32>
    %7 = arith.maximumf %5, %6 : vector<344x1xf32>
    %8 = vector.broadcast %7 : vector<344x1xf32> to vector<344x128xf32>
    %9 = arith.divf %1, %8 : vector<344x128xf32>
    %cst_4 = arith.constant 0.000000e+00 : f32
    %10 = vector.broadcast %cst_4 : f32 to vector<16x128xf32>
    %c0_5 = arith.constant 0 : index
    %c0_6 = arith.constant 0 : index
    %11 = vector.load %arg8[%c0_5, %c0_6] : memref<376x128xf32, #tpu.memory_space<vmem>>, vector<16x128xf32>
    tpu.vector_store %arg8[%c0_5, %c0_6], %10 {strides = array<i32>} : memref<376x128xf32, #tpu.memory_space<vmem>>, vector<16x128xf32>,
    %cst_7 = arith.constant 0.000000e+00 : f32
    %12 = vector.broadcast %cst_7 : f32 to vector<16x128xf32>
    %c360 = arith.constant 360 : index
    %c0_8 = arith.constant 0 : index
    %13 = vector.load %arg8[%c360, %c0_8] : memref<376x128xf32, #tpu.memory_space<vmem>>, vector<16x128xf32>
    tpu.vector_store %arg8[%c360, %c0_8], %12 {strides = array<i32>} : memref<376x128xf32, #tpu.memory_space<vmem>>, vector<16x128xf32>,
    %c16 = arith.constant 16 : index
    %c0_9 = arith.constant 0 : index
    %14 = vector.load %arg8[%c16, %c0_9] : memref<376x128xf32, #tpu.memory_space<vmem>>, vector<344x128xf32>
    tpu.vector_store %arg8[%c16, %c0_9], %9 {strides = array<i32>} : memref<376x128xf32, #tpu.memory_space<vmem>>, vector<344x128xf32>,
    %c2 = arith.constant 2 : index
    %c0_10 = arith.constant 0 : index
    %15 = vector.load %arg8[%c2, %c0_10] : memref<376x128xf32, #tpu.memory_space<vmem>>, vector<344x128xf32>
    %16 = arith.truncf %15 : vector<344x128xf32> to vector<344x128xbf16>
    %c0_11 = arith.constant 0 : index
    %c0_12 = arith.constant 0 : index
    %17 = vector.load %arg3[%c0_11, %c0_12] : memref<1152x128xbf16, #tpu.memory_space<vmem>>, vector<128x128xbf16>
    %cst_13 = arith.constant dense<0.000000e+00> : vector<344x128xf32>
    %18 = tpu.matmul %16, %17, %cst_13 {dimension_numbers = #tpu.dot_dimension_numbers<[1], [0], [0], [1], [0, 0, 1, 1], [], []>} : vector<344x128xbf16>, vector<128x128xbf16>, vector<344x128xf32> -> vector<344x128xf32>
    %c3 = arith.constant 3 : index
    %c0_14 = arith.constant 0 : index
    %19 = vector.load %arg8[%c3, %c0_14] : memref<376x128xf32, #tpu.memory_space<vmem>>, vector<344x128xf32>
    %20 = arith.truncf %19 : vector<344x128xf32> to vector<344x128xbf16>
    %c128 = arith.constant 128 : index
    %c0_15 = arith.constant 0 : index
    %21 = vector.load %arg3[%c128, %c0_15] : memref<1152x128xbf16, #tpu.memory_space<vmem>>, vector<128x128xbf16>
    %cst_16 = arith.constant dense<0.000000e+00> : vector<344x128xf32>
    %22 = tpu.matmul %20, %21, %cst_16 {dimension_numbers = #tpu.dot_dimension_numbers<[1], [0], [0], [1], [0, 0, 1, 1], [], []>} : vector<344x128xbf16>, vector<128x128xbf16>, vector<344x128xf32> -> vector<344x128xf32>
    %23 = arith.addf %18, %22 : vector<344x128xf32>
    %c4 = arith.constant 4 : index
    %c0_17 = arith.constant 0 : index
    %24 = vector.load %arg8[%c4, %c0_17] : memref<376x128xf32, #tpu.memory_space<vmem>>, vector<344x128xf32>
    %25 = arith.truncf %24 : vector<344x128xf32> to vector<344x128xbf16>
    %c256 = arith.constant 256 : index
    %c0_18 = arith.constant 0 : index
    %26 = vector.load %arg3[%c256, %c0_18] : memref<1152x128xbf16, #tpu.memory_space<vmem>>, vector<128x128xbf16>
    %cst_19 = arith.constant dense<0.000000e+00> : vector<344x128xf32>
    %27 = tpu.matmul %25, %26, %cst_19 {dimension_numbers = #tpu.dot_dimension_numbers<[1], [0], [0], [1], [0, 0, 1, 1], [], []>} : vector<344x128xbf16>, vector<128x128xbf16>, vector<344x128xf32> -> vector<344x128xf32>
    %28 = arith.addf %23, %27 : vector<344x128xf32>
    %c15 = arith.constant 15 : index
    %c0_20 = arith.constant 0 : index
    %29 = vector.load %arg8[%c15, %c0_20] : memref<376x128xf32, #tpu.memory_space<vmem>>, vector<344x128xf32>
    %30 = arith.truncf %29 : vector<344x128xf32> to vector<344x128xbf16>
    %c384 = arith.constant 384 : index
    %c0_21 = arith.constant 0 : index
    %31 = vector.load %arg3[%c384, %c0_21] : memref<1152x128xbf16, #tpu.memory_space<vmem>>, vector<128x128xbf16>
    %cst_22 = arith.constant dense<0.000000e+00> : vector<344x128xf32>
    %32 = tpu.matmul %30, %31, %cst_22 {dimension_numbers = #tpu.dot_dimension_numbers<[1], [0], [0], [1], [0, 0, 1, 1], [], []>} : vector<344x128xbf16>, vector<128x128xbf16>, vector<344x128xf32> -> vector<344x128xf32>
    %33 = arith.addf %28, %32 : vector<344x128xf32>
    %c16_23 = arith.constant 16 : index
    %c0_24 = arith.constant 0 : index
    %34 = vector.load %arg8[%c16_23, %c0_24] : memref<376x128xf32, #tpu.memory_space<vmem>>, vector<344x128xf32>
    %35 = arith.truncf %34 : vector<344x128xf32> to vector<344x128xbf16>
    %c512 = arith.constant 512 : index
    %c0_25 = arith.constant 0 : index
    %36 = vector.load %arg3[%c512, %c0_25] : memref<1152x128xbf16, #tpu.memory_space<vmem>>, vector<128x128xbf16>
    %cst_26 = arith.constant dense<0.000000e+00> : vector<344x128xf32>
    %37 = tpu.matmul %35, %36, %cst_26 {dimension_numbers = #tpu.dot_dimension_numbers<[1], [0], [0], [1], [0, 0, 1, 1], [], []>} : vector<344x128xbf16>, vector<128x128xbf16>, vector<344x128xf32> -> vector<344x128xf32>
    %38 = arith.addf %33, %37 : vector<344x128xf32>
    %c17 = arith.constant 17 : index
    %c0_27 = arith.constant 0 : index
    %39 = vector.load %arg8[%c17, %c0_27] : memref<376x128xf32, #tpu.memory_space<vmem>>, vector<344x128xf32>
    %40 = arith.truncf %39 : vector<344x128xf32> to vector<344x128xbf16>
    %c640 = arith.constant 640 : index
    %c0_28 = arith.constant 0 : index
    %41 = vector.load %arg3[%c640, %c0_28] : memref<1152x128xbf16, #tpu.memory_space<vmem>>, vector<128x128xbf16>
    %cst_29 = arith.constant dense<0.000000e+00> : vector<344x128xf32>
    %42 = tpu.matmul %40, %41, %cst_29 {dimension_numbers = #tpu.dot_dimension_numbers<[1], [0], [0], [1], [0, 0, 1, 1], [], []>} : vector<344x128xbf16>, vector<128x128xbf16>, vector<344x128xf32> -> vector<344x128xf32>
    %43 = arith.addf %38, %42 : vector<344x128xf32>
    %c28 = arith.constant 28 : index
    %c0_30 = arith.constant 0 : index
    %44 = vector.load %arg8[%c28, %c0_30] : memref<376x128xf32, #tpu.memory_space<vmem>>, vector<344x128xf32>
    %45 = arith.truncf %44 : vector<344x128xf32> to vector<344x128xbf16>
    %c768 = arith.constant 768 : index
    %c0_31 = arith.constant 0 : index
    %46 = vector.load %arg3[%c768, %c0_31] : memref<1152x128xbf16, #tpu.memory_space<vmem>>, vector<128x128xbf16>
    %cst_32 = arith.constant dense<0.000000e+00> : vector<344x128xf32>
    %47 = tpu.matmul %45, %46, %cst_32 {dimension_numbers = #tpu.dot_dimension_numbers<[1], [0], [0], [1], [0, 0, 1, 1], [], []>} : vector<344x128xbf16>, vector<128x128xbf16>, vector<344x128xf32> -> vector<344x128xf32>
    %48 = arith.addf %43, %47 : vector<344x128xf32>
    %c29 = arith.constant 29 : index
    %c0_33 = arith.constant 0 : index
    %49 = vector.load %arg8[%c29, %c0_33] : memref<376x128xf32, #tpu.memory_space<vmem>>, vector<344x128xf32>
    %50 = arith.truncf %49 : vector<344x128xf32> to vector<344x128xbf16>
    %c896 = arith.constant 896 : index
    %c0_34 = arith.constant 0 : index
    %51 = vector.load %arg3[%c896, %c0_34] : memref<1152x128xbf16, #tpu.memory_space<vmem>>, vector<128x128xbf16>
    %cst_35 = arith.constant dense<0.000000e+00> : vector<344x128xf32>
    %52 = tpu.matmul %50, %51, %cst_35 {dimension_numbers = #tpu.dot_dimension_numbers<[1], [0], [0], [1], [0, 0, 1, 1], [], []>} : vector<344x128xbf16>, vector<128x128xbf16>, vector<344x128xf32> -> vector<344x128xf32>
    %53 = arith.addf %48, %52 : vector<344x128xf32>
    %c30 = arith.constant 30 : index
    %c0_36 = arith.constant 0 : index
    %54 = vector.load %arg8[%c30, %c0_36] : memref<376x128xf32, #tpu.memory_space<vmem>>, vector<344x128xf32>
    %55 = arith.truncf %54 : vector<344x128xf32> to vector<344x128xbf16>
    %c1024 = arith.constant 1024 : index
    %c0_37 = arith.constant 0 : index
    %56 = vector.load %arg3[%c1024, %c0_37] : memref<1152x128xbf16, #tpu.memory_space<vmem>>, vector<128x128xbf16>
    %cst_38 = arith.constant dense<0.000000e+00> : vector<344x128xf32>
    %57 = tpu.matmul %55, %56, %cst_38 {dimension_numbers = #tpu.dot_dimension_numbers<[1], [0], [0], [1], [0, 0, 1, 1], [], []>} : vector<344x128xbf16>, vector<128x128xbf16>, vector<344x128xf32> -> vector<344x128xf32>
    %58 = arith.addf %53, %57 : vector<344x128xf32>
    %59 = vector.broadcast %0 : vector<344x1xf32> to vector<344x128xf32>
    %60 = arith.mulf %58, %59 : vector<344x128xf32>
    %cst_39 = arith.constant dense<0.000000e+00> : vector<128xf32>
    %61 = vector.multi_reduction <add>, %60, %cst_39 [0] : vector<344x128xf32> to vector<128xf32>
    %62 = vector.shape_cast %61 : vector<128xf32> to vector<1x128xf32>
    %63 = arith.mulf %58, %58 : vector<344x128xf32>
    %64 = vector.broadcast %0 : vector<344x1xf32> to vector<344x128xf32>
    %65 = arith.mulf %63, %64 : vector<344x128xf32>
    %cst_40 = arith.constant dense<0.000000e+00> : vector<128xf32>
    %66 = vector.multi_reduction <add>, %65, %cst_40 [0] : vector<344x128xf32> to vector<128xf32>
    %67 = vector.shape_cast %66 : vector<128xf32> to vector<1x128xf32>
    %cst_41 = arith.constant 0.00413223123 : f32
    %68 = vector.broadcast %cst_41 : f32 to vector<1x128xf32>
    %69 = arith.mulf %62, %68 : vector<1x128xf32>
    %cst_42 = arith.constant 0.00413223123 : f32
    %70 = vector.broadcast %cst_42 : f32 to vector<1x128xf32>
    %71 = arith.mulf %67, %70 : vector<1x128xf32>
    %72 = arith.mulf %69, %69 : vector<1x128xf32>
    %73 = arith.subf %71, %72 : vector<1x128xf32>
    %74 = vector.broadcast %69 : vector<1x128xf32> to vector<344x128xf32>
    %75 = arith.subf %58, %74 : vector<344x128xf32>
    %cst_43 = arith.constant 9.99999974E-6 : f32
    %76 = vector.broadcast %cst_43 : f32 to vector<1x128xf32>
    %77 = arith.addf %73, %76 : vector<1x128xf32>
    %78 = math.rsqrt %77 : vector<1x128xf32>
    %79 = vector.broadcast %78 : vector<1x128xf32> to vector<344x128xf32>
    %80 = arith.mulf %75, %79 : vector<344x128xf32>
    %cst_44 = arith.constant 0.000000e+00 : f32
    %81 = vector.broadcast %cst_44 : f32 to vector<344x128xf32>
    %82 = arith.maximumf %80, %81 : vector<344x128xf32>
    %83 = vector.broadcast %0 : vector<344x1xf32> to vector<344x128xf32>
    %84 = arith.mulf %82, %83 : vector<344x128xf32>
    %cst_45 = arith.constant 0.000000e+00 : f32
    %85 = vector.broadcast %cst_45 : f32 to vector<16x128xf32>
    %c0_46 = arith.constant 0 : index
    %c0_47 = arith.constant 0 : index
    %86 = vector.load %arg9[%c0_46, %c0_47] : memref<376x128xf32, #tpu.memory_space<vmem>>, vector<16x128xf32>
    tpu.vector_store %arg9[%c0_46, %c0_47], %85 {strides = array<i32>} : memref<376x128xf32, #tpu.memory_space<vmem>>, vector<16x128xf32>,
    %cst_48 = arith.constant 0.000000e+00 : f32
    %87 = vector.broadcast %cst_48 : f32 to vector<16x128xf32>
    %c360_49 = arith.constant 360 : index
    %c0_50 = arith.constant 0 : index
    %88 = vector.load %arg9[%c360_49, %c0_50] : memref<376x128xf32, #tpu.memory_space<vmem>>, vector<16x128xf32>
    tpu.vector_store %arg9[%c360_49, %c0_50], %87 {strides = array<i32>} : memref<376x128xf32, #tpu.memory_space<vmem>>, vector<16x128xf32>,
    %c16_51 = arith.constant 16 : index
    %c0_52 = arith.constant 0 : index
    %89 = vector.load %arg9[%c16_51, %c0_52] : memref<376x128xf32, #tpu.memory_space<vmem>>, vector<344x128xf32>
    tpu.vector_store %arg9[%c16_51, %c0_52], %84 {strides = array<i32>} : memref<376x128xf32, #tpu.memory_space<vmem>>, vector<344x128xf32>,
    %c2_53 = arith.constant 2 : index
    %c0_54 = arith.constant 0 : index
    %90 = vector.load %arg9[%c2_53, %c0_54] : memref<376x128xf32, #tpu.memory_space<vmem>>, vector<344x128xf32>
    %91 = arith.truncf %90 : vector<344x128xf32> to vector<344x128xbf16>
    %c0_55 = arith.constant 0 : index
    %c0_56 = arith.constant 0 : index
    %92 = vector.load %arg4[%c0_55, %c0_56] : memref<1152x128xbf16, #tpu.memory_space<vmem>>, vector<128x128xbf16>
    %cst_57 = arith.constant dense<0.000000e+00> : vector<344x128xf32>
    %93 = tpu.matmul %91, %92, %cst_57 {dimension_numbers = #tpu.dot_dimension_numbers<[1], [0], [0], [1], [0, 0, 1, 1], [], []>} : vector<344x128xbf16>, vector<128x128xbf16>, vector<344x128xf32> -> vector<344x128xf32>
    %c3_58 = arith.constant 3 : index
    %c0_59 = arith.constant 0 : index
    %94 = vector.load %arg9[%c3_58, %c0_59] : memref<376x128xf32, #tpu.memory_space<vmem>>, vector<344x128xf32>
    %95 = arith.truncf %94 : vector<344x128xf32> to vector<344x128xbf16>
    %c128_60 = arith.constant 128 : index
    %c0_61 = arith.constant 0 : index
    %96 = vector.load %arg4[%c128_60, %c0_61] : memref<1152x128xbf16, #tpu.memory_space<vmem>>, vector<128x128xbf16>
    %cst_62 = arith.constant dense<0.000000e+00> : vector<344x128xf32>
    %97 = tpu.matmul %95, %96, %cst_62 {dimension_numbers = #tpu.dot_dimension_numbers<[1], [0], [0], [1], [0, 0, 1, 1], [], []>} : vector<344x128xbf16>, vector<128x128xbf16>, vector<344x128xf32> -> vector<344x128xf32>
    %98 = arith.addf %93, %97 : vector<344x128xf32>
    %c4_63 = arith.constant 4 : index
    %c0_64 = arith.constant 0 : index
    %99 = vector.load %arg9[%c4_63, %c0_64] : memref<376x128xf32, #tpu.memory_space<vmem>>, vector<344x128xf32>
    %100 = arith.truncf %99 : vector<344x128xf32> to vector<344x128xbf16>
    %c256_65 = arith.constant 256 : index
    %c0_66 = arith.constant 0 : index
    %101 = vector.load %arg4[%c256_65, %c0_66] : memref<1152x128xbf16, #tpu.memory_space<vmem>>, vector<128x128xbf16>
    %cst_67 = arith.constant dense<0.000000e+00> : vector<344x128xf32>
    %102 = tpu.matmul %100, %101, %cst_67 {dimension_numbers = #tpu.dot_dimension_numbers<[1], [0], [0], [1], [0, 0, 1, 1], [], []>} : vector<344x128xbf16>, vector<128x128xbf16>, vector<344x128xf32> -> vector<344x128xf32>
    %103 = arith.addf %98, %102 : vector<344x128xf32>
    %c15_68 = arith.constant 15 : index
    %c0_69 = arith.constant 0 : index
    %104 = vector.load %arg9[%c15_68, %c0_69] : memref<376x128xf32, #tpu.memory_space<vmem>>, vector<344x128xf32>
    %105 = arith.truncf %104 : vector<344x128xf32> to vector<344x128xbf16>
    %c384_70 = arith.constant 384 : index
    %c0_71 = arith.constant 0 : index
    %106 = vector.load %arg4[%c384_70, %c0_71] : memref<1152x128xbf16, #tpu.memory_space<vmem>>, vector<128x128xbf16>
    %cst_72 = arith.constant dense<0.000000e+00> : vector<344x128xf32>
    %107 = tpu.matmul %105, %106, %cst_72 {dimension_numbers = #tpu.dot_dimension_numbers<[1], [0], [0], [1], [0, 0, 1, 1], [], []>} : vector<344x128xbf16>, vector<128x128xbf16>, vector<344x128xf32> -> vector<344x128xf32>
    %108 = arith.addf %103, %107 : vector<344x128xf32>
    %c16_73 = arith.constant 16 : index
    %c0_74 = arith.constant 0 : index
    %109 = vector.load %arg9[%c16_73, %c0_74] : memref<376x128xf32, #tpu.memory_space<vmem>>, vector<344x128xf32>
    %110 = arith.truncf %109 : vector<344x128xf32> to vector<344x128xbf16>
    %c512_75 = arith.constant 512 : index
    %c0_76 = arith.constant 0 : index
    %111 = vector.load %arg4[%c512_75, %c0_76] : memref<1152x128xbf16, #tpu.memory_space<vmem>>, vector<128x128xbf16>
    %cst_77 = arith.constant dense<0.000000e+00> : vector<344x128xf32>
    %112 = tpu.matmul %110, %111, %cst_77 {dimension_numbers = #tpu.dot_dimension_numbers<[1], [0], [0], [1], [0, 0, 1, 1], [], []>} : vector<344x128xbf16>, vector<128x128xbf16>, vector<344x128xf32> -> vector<344x128xf32>
    %113 = arith.addf %108, %112 : vector<344x128xf32>
    %c17_78 = arith.constant 17 : index
    %c0_79 = arith.constant 0 : index
    %114 = vector.load %arg9[%c17_78, %c0_79] : memref<376x128xf32, #tpu.memory_space<vmem>>, vector<344x128xf32>
    %115 = arith.truncf %114 : vector<344x128xf32> to vector<344x128xbf16>
    %c640_80 = arith.constant 640 : index
    %c0_81 = arith.constant 0 : index
    %116 = vector.load %arg4[%c640_80, %c0_81] : memref<1152x128xbf16, #tpu.memory_space<vmem>>, vector<128x128xbf16>
    %cst_82 = arith.constant dense<0.000000e+00> : vector<344x128xf32>
    %117 = tpu.matmul %115, %116, %cst_82 {dimension_numbers = #tpu.dot_dimension_numbers<[1], [0], [0], [1], [0, 0, 1, 1], [], []>} : vector<344x128xbf16>, vector<128x128xbf16>, vector<344x128xf32> -> vector<344x128xf32>
    %118 = arith.addf %113, %117 : vector<344x128xf32>
    %c28_83 = arith.constant 28 : index
    %c0_84 = arith.constant 0 : index
    %119 = vector.load %arg9[%c28_83, %c0_84] : memref<376x128xf32, #tpu.memory_space<vmem>>, vector<344x128xf32>
    %120 = arith.truncf %119 : vector<344x128xf32> to vector<344x128xbf16>
    %c768_85 = arith.constant 768 : index
    %c0_86 = arith.constant 0 : index
    %121 = vector.load %arg4[%c768_85, %c0_86] : memref<1152x128xbf16, #tpu.memory_space<vmem>>, vector<128x128xbf16>
    %cst_87 = arith.constant dense<0.000000e+00> : vector<344x128xf32>
    %122 = tpu.matmul %120, %121, %cst_87 {dimension_numbers = #tpu.dot_dimension_numbers<[1], [0], [0], [1], [0, 0, 1, 1], [], []>} : vector<344x128xbf16>, vector<128x128xbf16>, vector<344x128xf32> -> vector<344x128xf32>
    %123 = arith.addf %118, %122 : vector<344x128xf32>
    %c29_88 = arith.constant 29 : index
    %c0_89 = arith.constant 0 : index
    %124 = vector.load %arg9[%c29_88, %c0_89] : memref<376x128xf32, #tpu.memory_space<vmem>>, vector<344x128xf32>
    %125 = arith.truncf %124 : vector<344x128xf32> to vector<344x128xbf16>
    %c896_90 = arith.constant 896 : index
    %c0_91 = arith.constant 0 : index
    %126 = vector.load %arg4[%c896_90, %c0_91] : memref<1152x128xbf16, #tpu.memory_space<vmem>>, vector<128x128xbf16>
    %cst_92 = arith.constant dense<0.000000e+00> : vector<344x128xf32>
    %127 = tpu.matmul %125, %126, %cst_92 {dimension_numbers = #tpu.dot_dimension_numbers<[1], [0], [0], [1], [0, 0, 1, 1], [], []>} : vector<344x128xbf16>, vector<128x128xbf16>, vector<344x128xf32> -> vector<344x128xf32>
    %128 = arith.addf %123, %127 : vector<344x128xf32>
    %c30_93 = arith.constant 30 : index
    %c0_94 = arith.constant 0 : index
    %129 = vector.load %arg9[%c30_93, %c0_94] : memref<376x128xf32, #tpu.memory_space<vmem>>, vector<344x128xf32>
    %130 = arith.truncf %129 : vector<344x128xf32> to vector<344x128xbf16>
    %c1024_95 = arith.constant 1024 : index
    %c0_96 = arith.constant 0 : index
    %131 = vector.load %arg4[%c1024_95, %c0_96] : memref<1152x128xbf16, #tpu.memory_space<vmem>>, vector<128x128xbf16>
    %cst_97 = arith.constant dense<0.000000e+00> : vector<344x128xf32>
    %132 = tpu.matmul %130, %131, %cst_97 {dimension_numbers = #tpu.dot_dimension_numbers<[1], [0], [0], [1], [0, 0, 1, 1], [], []>} : vector<344x128xbf16>, vector<128x128xbf16>, vector<344x128xf32> -> vector<344x128xf32>
    %133 = arith.addf %128, %132 : vector<344x128xf32>
    %134 = vector.broadcast %0 : vector<344x1xf32> to vector<344x128xf32>
    %135 = arith.mulf %133, %134 : vector<344x128xf32>
    %cst_98 = arith.constant dense<0.000000e+00> : vector<128xf32>
    %136 = vector.multi_reduction <add>, %135, %cst_98 [0] : vector<344x128xf32> to vector<128xf32>
    %137 = vector.shape_cast %136 : vector<128xf32> to vector<1x128xf32>
    %138 = arith.mulf %133, %133 : vector<344x128xf32>
    %139 = vector.broadcast %0 : vector<344x1xf32> to vector<344x128xf32>
    %140 = arith.mulf %138, %139 : vector<344x128xf32>
    %cst_99 = arith.constant dense<0.000000e+00> : vector<128xf32>
    %141 = vector.multi_reduction <add>, %140, %cst_99 [0] : vector<344x128xf32> to vector<128xf32>
    %142 = vector.shape_cast %141 : vector<128xf32> to vector<1x128xf32>
    %cst_100 = arith.constant 0.00413223123 : f32
    %143 = vector.broadcast %cst_100 : f32 to vector<1x128xf32>
    %144 = arith.mulf %137, %143 : vector<1x128xf32>
    %cst_101 = arith.constant 0.00413223123 : f32
    %145 = vector.broadcast %cst_101 : f32 to vector<1x128xf32>
    %146 = arith.mulf %142, %145 : vector<1x128xf32>
    %147 = arith.mulf %144, %144 : vector<1x128xf32>
    %148 = arith.subf %146, %147 : vector<1x128xf32>
    %149 = vector.broadcast %144 : vector<1x128xf32> to vector<344x128xf32>
    %150 = arith.subf %133, %149 : vector<344x128xf32>
    %cst_102 = arith.constant 9.99999974E-6 : f32
    %151 = vector.broadcast %cst_102 : f32 to vector<1x128xf32>
    %152 = arith.addf %148, %151 : vector<1x128xf32>
    %153 = math.rsqrt %152 : vector<1x128xf32>
    %154 = vector.broadcast %153 : vector<1x128xf32> to vector<344x128xf32>
    %155 = arith.mulf %150, %154 : vector<344x128xf32>
    %cst_103 = arith.constant 0.000000e+00 : f32
    %156 = vector.broadcast %cst_103 : f32 to vector<344x128xf32>
    %157 = arith.maximumf %155, %156 : vector<344x128xf32>
    %158 = vector.broadcast %0 : vector<344x1xf32> to vector<344x128xf32>
    %159 = arith.mulf %157, %158 : vector<344x128xf32>
    %160 = tpu.iota {dimensions = array<i32: 1>} : vector<344x128xi32>
    %cst_104 = arith.constant 0.000000e+00 : f32
    %161 = vector.broadcast %cst_104 : f32 to vector<344x128xf32>
    %c0_105 = arith.constant 0 : index
    %c0_106 = arith.constant 0 : index
    %c0_107 = arith.constant 0 : index
    %162 = vector.load %arg5[%c0_105, %c0_106, %c0_107] : memref<2x344x128xf32, #tpu.memory_space<vmem>>, vector<1x344x128xf32>
    %163 = vector.shape_cast %162 : vector<1x344x128xf32> to vector<344x128xf32>
    %164 = arith.mulf %159, %163 : vector<344x128xf32>
    %cst_108 = arith.constant dense<0.000000e+00> : vector<344xf32>
    %165 = vector.multi_reduction <add>, %164, %cst_108 [1] : vector<344x128xf32> to vector<344xf32>
    %166 = vector.shape_cast %165 : vector<344xf32> to vector<344x1xf32>
    %c0_i32 = arith.constant 0 : i32
    %167 = vector.broadcast %c0_i32 : i32 to vector<344x128xi32>
    %168 = arith.cmpi eq, %160, %167 : vector<344x128xi32>
    %169 = vector.shape_cast %166 : vector<344x1xf32> to vector<344x1xf32>
    %170 = vector.broadcast %169 : vector<344x1xf32> to vector<344x128xf32>
    %171 = arith.select %168, %170, %161 : vector<344x128xi1>, vector<344x128xf32>
    %c1 = arith.constant 1 : index
    %c0_109 = arith.constant 0 : index
    %c0_110 = arith.constant 0 : index
    %172 = vector.load %arg5[%c1, %c0_109, %c0_110] : memref<2x344x128xf32, #tpu.memory_space<vmem>>, vector<1x344x128xf32>
    %173 = vector.shape_cast %172 : vector<1x344x128xf32> to vector<344x128xf32>
    %174 = arith.mulf %159, %173 : vector<344x128xf32>
    %cst_111 = arith.constant dense<0.000000e+00> : vector<344xf32>
    %175 = vector.multi_reduction <add>, %174, %cst_111 [1] : vector<344x128xf32> to vector<344xf32>
    %176 = vector.shape_cast %175 : vector<344xf32> to vector<344x1xf32>
    %c1_i32 = arith.constant 1 : i32
    %177 = vector.broadcast %c1_i32 : i32 to vector<344x128xi32>
    %178 = arith.cmpi eq, %160, %177 : vector<344x128xi32>
    %179 = vector.shape_cast %176 : vector<344x1xf32> to vector<344x1xf32>
    %180 = vector.broadcast %179 : vector<344x1xf32> to vector<344x128xf32>
    %181 = arith.select %178, %180, %171 : vector<344x128xi1>, vector<344x128xf32>
    %c0_112 = arith.constant 0 : index
    %c0_113 = arith.constant 0 : index
    %182 = vector.load %arg2[%c0_112, %c0_113] : memref<8x344xf32, #tpu.memory_space<vmem>>, vector<8x344xf32>
    %cst_114 = arith.constant dense<0.000000e+00> : vector<8x128xf32>
    %183 = tpu.matmul %182, %181, %cst_114 {dimension_numbers = #tpu.dot_dimension_numbers<[1], [0], [0], [1], [0, 0, 1, 1], [], []>} : vector<8x344xf32>, vector<344x128xf32>, vector<8x128xf32> -> vector<8x128xf32>
    %c0_115 = arith.constant 0 : index
    %c0_116 = arith.constant 0 : index
    %184 = vector.load %arg6[%c0_115, %c0_116] : memref<1x128xf32, #tpu.memory_space<vmem>>, vector<1x128xf32>
    %185 = vector.broadcast %184 : vector<1x128xf32> to vector<8x128xf32>
    %186 = arith.addf %183, %185 : vector<8x128xf32>
    %c0_117 = arith.constant 0 : index
    %c0_118 = arith.constant 0 : index
    %187 = vector.load %arg7[%c0_117, %c0_118] : memref<8x128xf32, #tpu.memory_space<vmem>>, vector<8x128xf32>
    tpu.vector_store %arg7[%c0_117, %c0_118], %186 {strides = array<i32>} : memref<8x128xf32, #tpu.memory_space<vmem>>, vector<8x128xf32>,
    return
  }
}

</mosaic_0001>

<bundles_post_ra>
// kernel: net_forward.1
= control target key start
LH: loop header
LB: loop body
LE: loop exit
PB: predicated region body
PF: predicated region fallthrough
CT: control target
= control target key end

     0   :  { %s15544_s0 = inlined_call_operand.vmem [shape: f32[344,128], index: 0, kind: input, shape index: {}]   ;;  %s15545_s3 = inlined_call_operand.vmem [shape: bf16[1152,128], index: 3, kind: input, shape index: {}]   ;;  %s15546_s1 = inlined_call_operand.vmem [shape: f32[344,1], index: 1, kind: input, shape index: {}]   ;;  %s15547_s4 = inlined_call_operand.vmem [shape: bf16[1152,128], index: 4, kind: input, shape index: {}]   ;;  %s15548_s5 = inlined_call_operand.vmem [shape: f32[2,344,128], index: 5, kind: input, shape index: {}]   ;;  %s15549_s2 = inlined_call_operand.vmem [shape: f32[8,344], index: 2, kind: input, shape index: {}]   ;;  %s15550_s6 = inlined_call_operand.vmem [shape: f32[1,128], index: 6, kind: input, shape index: {}]   ;;  %s15551_s7 = inlined_call_operand.vmem [shape: f32[8,128], index: 7, kind: output, shape index: {}]  }
   0x1   :  { %v12088_v0 = vld [vmem:[%s15544_s0 + $0x10] sm:$0xff]  ;;  %v12093_v1 = vld [vmem:[%s15544_s0] sm:$0xff]  ;;  %v12098_v2 = vld [vmem:[%s15544_s0 + $0x18] sm:$0xff] }
   0x2   :  { %v115_v3 = vmul.f32 %v12088_v0, %v12088_v0  ;;  %v113_v4 = vmul.f32 %v12093_v1, %v12093_v1  ;;  %v12107_v5 = vld [vmem:[%s15544_s0 + $0x8] sm:$0xff]  ;;  %v116_v6 = vmul.f32 %v12098_v2, %v12098_v2  ;;  %v12121_v9 = vld [vmem:[%s15544_s0 + $0x20] sm:$0xff]  ;;  %v12130_v12 = vld [vmem:[%s15544_s0 + $0x38] sm:$0xff] }
   0x3   :  { %v114_v7 = vmul.f32 %v12107_v5, %v12107_v5  ;;  %v12116_v8 = vld [vmem:[%s15544_s0 + $0x28] sm:$0xff]  ;;  %v117_v11 = vmul.f32 %v12121_v9, %v12121_v9  ;;  %v12135_v13 = vld [vmem:[%s15544_s0 + $0x30] sm:$0xff]  ;;  %v120_v14 = vmul.f32 %v12130_v12, %v12130_v12  ;;  %v12149_v17 = vld [vmem:[%s15544_s0 + $0x40] sm:$0xff] }
   0x4   :  { %160 = vadd.xlane.f32.xlu1 %v115_v3  ;;  %156 = vadd.xlane.f32.xlu0 %v113_v4  ;;  %v118_v10 = vmul.f32 %v12116_v8, %v12116_v8  ;;  %v119_v15 = vmul.f32 %v12135_v13, %v12135_v13  ;;  %v12144_v16 = vld [vmem:[%s15544_s0 + $0x48] sm:$0xff]  ;;  %v121_v19 = vmul.f32 %v12149_v17, %v12149_v17  ;;  %v81_v20 = vld [vmem:[%s15544_s0 + $0x58] sm:$0xff]  ;;  %v80_v21 = vld [vmem:[%s15544_s0 + $0x50] sm:$0xff] }
   0x5   :  { %v122_v18 = vmul.f32 %v12144_v16, %v12144_v16  ;;  %v124_v22 = vmul.f32 %v81_v20, %v81_v20  ;;  %v123_v23 = vmul.f32 %v80_v21, %v80_v21  ;;  %v83_v24 = vld [vmem:[%s15544_s0 + $0x68] sm:$0xff]  ;;  %v82_v25 = vld [vmem:[%s15544_s0 + $0x60] sm:$0xff]  ;;  %v85_v28 = vld [vmem:[%s15544_s0 + $0x78] sm:$0xff] }
   0x6   :  { %v126_v26 = vmul.f32 %v83_v24, %v83_v24  ;;  %v125_v27 = vmul.f32 %v82_v25, %v82_v25  ;;  %v84_v29 = vld [vmem:[%s15544_s0 + $0x70] sm:$0xff]  ;;  %v128_v30 = vmul.f32 %v85_v28, %v85_v28  ;;  %v87_v32 = vld [vmem:[%s15544_s0 + $0x88] sm:$0xff]  ;;  %v86_v33 = vld [vmem:[%s15544_s0 + $0x80] sm:$0xff] }
   0x7   :  { %v127_v31 = vmul.f32 %v84_v29, %v84_v29  ;;  %v11687_v34 = vld [vmem:[%s15545_s3 + $0x40] sm:$0xff]   ;;  %v89_v35 = vld [vmem:[%s15544_s0 + $0x98] sm:$0xff]  ;;  %v88_v36 = vld [vmem:[%s15544_s0 + $0x90] sm:$0xff]  ;;  %v130_v37 = vmul.f32 %v87_v32, %v87_v32  ;;  %v129_v38 = vmul.f32 %v86_v33, %v86_v33 }
   0x8   :  { %162 = vadd.xlane.f32.xlu1 %v116_v6  ;;  %158 = vadd.xlane.f32.xlu0 %v114_v7  ;;  %v91_v39 = vld [vmem:[%s15544_s0 + $0xa8] sm:$0xff]  ;;  %v90_v40 = vld [vmem:[%s15544_s0 + $0xa0] sm:$0xff]  ;;  %v132_v41 = vmul.f32 %v89_v35, %v89_v35  ;;  %v131_v42 = vmul.f32 %v88_v36, %v88_v36  ;;  %v93_v44 = vld [vmem:[%s15544_s0 + $0xb8] sm:$0xff] }
   0x9   :  { %9825 = vmatprep.subr.bf16.mxu0 %v11687_v34  ;;  %v11688_v43 = vld [vmem:[%s15545_s3 + $0x48] sm:$0xff]   ;;  %v92_v45 = vld [vmem:[%s15544_s0 + $0xb0] sm:$0xff]  ;;  %v134_v46 = vmul.f32 %v91_v39, %v91_v39  ;;  %v133_v47 = vmul.f32 %v90_v40, %v90_v40  ;;  %v94_v50 = vld [vmem:[%s15544_s0 + $0xc0] sm:$0xff]  ;;  %v136_v51 = vmul.f32 %v93_v44, %v93_v44 }
   0xa   :  { %9826 = vmatpush3.bf16.msra.mxu0 %v11687_v34  ;;  %v11689_v48 = vld [vmem:[%s15545_s3 + $0x50] sm:$0xff]   ;;  %v95_v49 = vld [vmem:[%s15544_s0 + $0xc8] sm:$0xff]  ;;  %v135_v52 = vmul.f32 %v92_v45, %v92_v45  ;;  %v97_v53 = vld [vmem:[%s15544_s0 + $0xd8] sm:$0xff]  ;;  %v137_v57 = vmul.f32 %v94_v50, %v94_v50 }
   0xb   :  { %9827 = vmatprep.subr.bf16.mxu0 %v11688_v43  ;;  %v96_v54 = vld [vmem:[%s15544_s0 + $0xd0] sm:$0xff]  ;;  %v11690_v55 = vld [vmem:[%s15545_s3 + $0x58] sm:$0xff]   ;;  %v138_v56 = vmul.f32 %v95_v49, %v95_v49  ;;  %v99_v58 = vld [vmem:[%s15544_s0 + $0xe8] sm:$0xff]  ;;  %v140_v61 = vmul.f32 %v97_v53, %v97_v53 }
   0xc   :  { %166 = vadd.xlane.f32.xlu1 %v118_v10  ;;  %164 = vadd.xlane.f32.xlu0 %v117_v11  ;;  %v98_v59 = vld [vmem:[%s15544_s0 + $0xe0] sm:$0xff]  ;;  %v139_v62 = vmul.f32 %v96_v54, %v96_v54  ;;  %v101_v63 = vld [vmem:[%s15544_s0 + $0xf8] sm:$0xff]  ;;  %v100_v3 = vld [vmem:[%s15544_s0 + $0xf0] sm:$0xff]  ;;  %v142_v4 = vmul.f32 %v99_v58, %v99_v58 }
   0xd   :  { %v11691_v60 = vld [vmem:[%s15545_s3 + $0x60] sm:$0xff]   ;;  %v141_v6 = vmul.f32 %v98_v59, %v98_v59  ;;  %v11692_v7 = vld [vmem:[%s15545_s3 + $0x68] sm:$0xff]   ;;  %v105_v20 = vld [vmem:[%s15544_s0 + $0x118] sm:$0xff] }
   0xe   :  { %9828 = vmatpush3.bf16.msra.mxu0 %v11688_v43  ;;  %v103_v10 = vld [vmem:[%s15544_s0 + $0x108] sm:$0xff]  ;;  %v102_v11 = vld [vmem:[%s15544_s0 + $0x100] sm:$0xff]  ;;  %v104_v21 = vld [vmem:[%s15544_s0 + $0x110] sm:$0xff] }
   0xf   :  { %9829 = vmatprep.subr.bf16.mxu0 %v11689_v48  ;;  %v107_v24 = vld [vmem:[%s15544_s0 + $0x128] sm:$0xff]  ;;  %v106_v25 = vld [vmem:[%s15544_s0 + $0x120] sm:$0xff]  ;;  %v147_v28 = vmul.f32 %v104_v21, %v104_v21  ;;  %v109_v29 = vld [vmem:[%s15544_s0 + $0x138] sm:$0xff] }
  0x10   :  { %170 = vadd.xlane.f32.xlu1 %v120_v14  ;;  %168 = vadd.xlane.f32.xlu0 %v119_v15  ;;  %v12041_v14 = vmov 0.0   ;;  %v144_v15 = vmul.f32 %v101_v63, %v101_v63  ;;  %v149_v32 = vmul.f32 %v106_v25, %v106_v25  ;;  %v111_v33 = vld [vmem:[%s15544_s0 + $0x148] sm:$0xff]  ;;  %v110_v34 = vld [vmem:[%s15544_s0 + $0x140] sm:$0xff]  ;;  %v152_v35 = vmul.f32 %v109_v29, %v109_v29  ;;  %v112_v39 = vld [vmem:[%s15544_s0 + $0x150] sm:$0xff] }
  0x11   :  { %672 = vst [vmem:[#allocation2] sm:$0xff] %v12041_v14  ;;  %673 = vst [vmem:[#allocation2 + $0x8] sm:$0xff] %v12041_v14  ;;  %v155_v40 = vmul.f32 %v112_v39, %v112_v39 }
  0x12   :  { %9830 = vmatpush3.bf16.msra.mxu0 %v11689_v48  ;;  %674 = vst [vmem:[#allocation2 + $0x168] sm:$0xff] %v12041_v14  ;;  %675 = vst [vmem:[#allocation2 + $0x170] sm:$0xff] %v12041_v14 }
  0x13   :  { %9831 = vmatprep.subr.bf16.mxu0 %v11690_v55  ;;  %4671 = vst [vmem:[#allocation3] sm:$0xff] %v12041_v14  ;;  %4672 = vst [vmem:[#allocation3 + $0x8] sm:$0xff] %v12041_v14 }
  0x14   :  { %174 = vadd.xlane.f32.xlu1 %v122_v18  ;;  %172 = vadd.xlane.f32.xlu0 %v121_v19  ;;  %4673 = vst [vmem:[#allocation3 + $0x168] sm:$0xff] %v12041_v14  ;;  %4674 = vst [vmem:[#allocation3 + $0x170] sm:$0xff] %v12041_v14  ;;  %v143_v18 = vmul.f32 %v100_v3, %v100_v3  ;;  %v11693_v19 = vld [vmem:[%s15545_s3 + $0x70] sm:$0xff]  }
  0x16   :  { %9832 = vmatpush3.bf16.msra.mxu0 %v11690_v55 }
  0x17   :  { %9833 = vmatprep.subr.bf16.mxu0 %v11691_v60 }
  0x18   :  { %178 = vadd.xlane.f32.xlu1 %v124_v22  ;;  %176 = vadd.xlane.f32.xlu0 %v123_v23  ;;  %v146_v22 = vmul.f32 %v103_v10, %v103_v10  ;;  %v145_v23 = vmul.f32 %v102_v11, %v102_v11 }
  0x1a   :  { %9834 = vmatpush3.bf16.msra.mxu0 %v11691_v60 }
  0x1b   :  { %9835 = vmatprep.subr.bf16.mxu0 %v11692_v7 }
  0x1c   :  { %182 = vadd.xlane.f32.xlu1 %v126_v26  ;;  %180 = vadd.xlane.f32.xlu0 %v125_v27  ;;  %v11694_v26 = vld [vmem:[%s15545_s3 + $0x78] sm:$0xff]   ;;  %v148_v27 = vmul.f32 %v105_v20, %v105_v20 }
  0x1e   :  { %9836 = vmatpush3.bf16.msra.mxu0 %v11692_v7 }
  0x1f   :  { %9837 = vmatprep.subr.bf16.mxu0 %v11693_v19 }
  0x20   :  { %186 = vadd.xlane.f32.xlu1 %v128_v30  ;;  %184 = vadd.xlane.f32.xlu0 %v127_v31  ;;  %v108_v30 = vld [vmem:[%s15544_s0 + $0x130] sm:$0xff]  ;;  %v150_v31 = vmul.f32 %v107_v24, %v107_v24 }
  0x21   :  { %v151_v36 = vmul.f32 %v108_v30, %v108_v30 }
  0x22   :  { %9838 = vmatpush3.bf16.msra.mxu0 %v11693_v19 }
  0x23   :  { %9839 = vmatprep.subr.bf16.mxu0 %v11694_v26 }
  0x24   :  { %190 = vadd.xlane.f32.xlu1 %v130_v37  ;;  %188 = vadd.xlane.f32.xlu0 %v129_v38  ;;  %v154_v37 = vmul.f32 %v111_v33, %v111_v33  ;;  %v153_v38 = vmul.f32 %v110_v34, %v110_v34 }
  0x26   :  { %9840 = vmatpush3.bf16.msra.mxu0 %v11694_v26 }
  0x28   :  { %194 = vadd.xlane.f32.xlu1 %v132_v41  ;;  %192 = vadd.xlane.f32.xlu0 %v131_v42  ;;  %v12281_v41 = vld [vmem:[%s15545_s3] sm:$0xff]  }
  0x29   :  { %9885 = vmatprep.subr.bf16.mxu0 %v12281_v41 }
  0x2c   :  { %198 = vadd.xlane.f32.xlu1 %v134_v46  ;;  %196 = vadd.xlane.f32.xlu0 %v133_v47 }
  0x30   :  { %202 = vadd.xlane.f32.xlu1 %v136_v51  ;;  %200 = vadd.xlane.f32.xlu0 %v135_v52 }
  0x34   :  { %206 = vadd.xlane.f32.xlu1 %v138_v56  ;;  %204 = vadd.xlane.f32.xlu0 %v137_v57 }
  0x38   :  { %210 = vadd.xlane.f32.xlu1 %v140_v61  ;;  %208 = vadd.xlane.f32.xlu0 %v139_v62 }
  0x3c   :  { %214 = vadd.xlane.f32.xlu1 %v142_v4  ;;  %212 = vadd.xlane.f32.xlu0 %v141_v6 }
  0x40   :  { %218 = vadd.xlane.f32.xlu1 %v144_v15  ;;  %216 = vadd.xlane.f32.xlu0 %v143_v18 }
  0x44   :  { %222 = vadd.xlane.f32.xlu1 %v146_v22  ;;  %220 = vadd.xlane.f32.xlu0 %v145_v23 }
  0x48   :  { %226 = vadd.xlane.f32.xlu1 %v148_v27  ;;  %224 = vadd.xlane.f32.xlu0 %v147_v28 }
  0x4c   :  { %230 = vadd.xlane.f32.xlu1 %v150_v31  ;;  %228 = vadd.xlane.f32.xlu0 %v149_v32 }
  0x50   :  { %234 = vadd.xlane.f32.xlu1 %v152_v35  ;;  %232 = vadd.xlane.f32.xlu0 %v151_v36 }
  0x54   :  { %238 = vadd.xlane.f32.xlu1 %v154_v37  ;;  %236 = vadd.xlane.f32.xlu0 %v153_v38 }
  0x58   :  { %240 = vadd.xlane.f32.xlu0 %v155_v40 }
  0x91   :  { %v161_v42 = vpop.xlane.xlu1 %160  ;;  %v157_v43 = vpop.xlane.xlu0 %156 }
  0x92   :  { %11831 = vrsqrt.f32 %v161_v42  ;;  %vm258_vm0 = vcmp.eq.f32.partialorder %v161_v42, inf  ;;  %vm260_vm1 = vcmp.eq.f32.partialorder %v161_v42, 0.0  ;;  %v261_v49 = vand.u32 2147483648, %v161_v42 }
  0x93   :  { %11833 = vrsqrt.f32 %v157_v43  ;;  %vm244_vm2 = vcmp.eq.f32.partialorder %v157_v43, inf  ;;  %vm246_vm3 = vcmp.eq.f32.partialorder %v157_v43, 0.0  ;;  %v247_v52 = vand.u32 2147483648, %v157_v43 }
  0x95   :  { %v163_v44 = vpop.xlane.xlu1 %162  ;;  %v159_v45 = vpop.xlane.xlu0 %158 }
  0x96   :  { %11835 = vrsqrt.f32 %v163_v44  ;;  %vm265_vm4 = vcmp.eq.f32.partialorder %v163_v44, inf  ;;  %vm267_vm5 = vcmp.eq.f32.partialorder %v163_v44, 0.0  ;;  %v268_v56 = vand.u32 2147483648, %v163_v44 }
  0x97   :  { %11837 = vrsqrt.f32 %v159_v45  ;;  %vm251_vm6 = vcmp.eq.f32.partialorder %v159_v45, inf  ;;  %vm253_vm7 = vcmp.eq.f32.partialorder %v159_v45, 0.0  ;;  %v254_v61 = vand.u32 2147483648, %v159_v45 }
  0x99   :  { %v12284_v46 = vpop.xlane.xlu1 %166  ;;  %v12286_v47 = vpop.xlane.xlu0 %164 }
  0x9a   :  { %11839 = vrsqrt.f32 %v12284_v46  ;;  %vm279_vm8 = vcmp.eq.f32.partialorder %v12284_v46, inf  ;;  %vm281_vm9 = vcmp.eq.f32.partialorder %v12284_v46, 0.0  ;;  %v282_v14 = vand.u32 2147483648, %v12284_v46 }
  0x9b   :  { %11841 = vrsqrt.f32 %v12286_v47  ;;  %vm272_vm10 = vcmp.eq.f32.partialorder %v12286_v47, inf  ;;  %vm274_vm11 = vcmp.eq.f32.partialorder %v12286_v47, 0.0  ;;  %v275_v21 = vand.u32 2147483648, %v12286_v47 }
  0x9c   :  { %v11832_v48 = vpop.eup %11831 }
  0x9d   :  { %v11834_v50 = vpop.eup %11833  ;;  %v257_v51 = vmul.f32 %v11832_v48, %v161_v42  ;;  %v12290_v53 = vpop.xlane.xlu1 %170 }
  0x9e   :  { %v12292_v54 = vpop.xlane.xlu0 %168  ;;  %v243_v55 = vmul.f32 %v11834_v50, %v157_v43  ;;  %11843 = vrsqrt.f32 %v12290_v53  ;;  %vm293_vm12 = vcmp.eq.f32.partialorder %v12290_v53, inf  ;;  %vm295_vm13 = vcmp.eq.f32.partialorder %v12290_v53, 0.0 }
  0x9f   :  { %v259_v57 = vsel %vm258_vm0, %v161_v42, %v257_v51  ;;  %11845 = vrsqrt.f32 %v12292_v54  ;;  %v296_v31 = vand.u32 2147483648, %v12290_v53  ;;  %vm286_vm14 = vcmp.eq.f32.partialorder %v12292_v54, inf }
  0xa0   :  { %v11836_v58 = vpop.eup %11835  ;;  %v262_v59 = vsel %vm260_vm1, %v261_v49, %v259_v57  ;;  %v245_v60 = vsel %vm244_vm2, %v157_v43, %v243_v55  ;;  %vm288_vm15 = vcmp.eq.f32.partialorder %v12292_v54, 0.0 }
  0xa1   :  { %v11838_v62 = vpop.eup %11837  ;;  %v545_v63 = vmax.f32 %v262_v59, 1e-12  ;;  %v248_v3 = vsel %vm246_vm3, %v247_v52, %v245_v60  ;;  %v264_v4 = vmul.f32 %v11836_v58, %v163_v44  ;;  %v12301_v6 = vpop.xlane.xlu1 %174 }
  0xa2   :  { %v12303_v7 = vpop.xlane.xlu0 %172  ;;  %v543_v10 = vmax.f32 %v248_v3, 1e-12  ;;  %v250_v11 = vmul.f32 %v11838_v62, %v159_v45  ;;  %11847 = vrsqrt.f32 %v12301_v6  ;;  %vm307_vm0 = vcmp.eq.f32.partialorder %v12301_v6, inf }
  0xa3   :  { %11849 = vrcp.f32 %v545_v63  ;;  %v266_v15 = vsel %vm265_vm4, %v163_v44, %v264_v4  ;;  %v289_v44 = vand.u32 2147483648, %v12292_v54  ;;  %vm309_vm1 = vcmp.eq.f32.partialorder %v12301_v6, 0.0 }
  0xa4   :  { %v11840_v18 = vpop.eup %11839  ;;  %11851 = vrcp.f32 %v543_v10  ;;  %v269_v19 = vsel %vm267_vm5, %v268_v56, %v266_v15  ;;  %v252_v20 = vsel %vm251_vm6, %v159_v45, %v250_v11  ;;  %v310_v49 = vand.u32 2147483648, %v12301_v6 }
  0xa5   :  { %v11842_v22 = vpop.eup %11841  ;;  %v546_v23 = vmax.f32 %v269_v19, 1e-12  ;;  %v255_v24 = vsel %vm253_vm7, %v254_v61, %v252_v20  ;;  %v278_v25 = vmul.f32 %v11840_v18, %v12284_v46  ;;  %11853 = vrsqrt.f32 %v12303_v7  ;;  %v12316_v26 = vpop.xlane.xlu1 %178 }
  0xa6   :  { %v12318_v27 = vpop.xlane.xlu0 %176  ;;  %v544_v28 = vmax.f32 %v255_v24, 1e-12  ;;  %v271_v29 = vmul.f32 %v11842_v22, %v12286_v47  ;;  %vm300_vm2 = vcmp.eq.f32.partialorder %v12303_v7, inf  ;;  %vm302_vm3 = vcmp.eq.f32.partialorder %v12303_v7, 0.0 }
  0xa7   :  { %11855 = vrcp.f32 %v546_v23  ;;  %v280_v30 = vsel %vm279_vm8, %v12284_v46, %v278_v25  ;;  %v303_v62 = vand.u32 2147483648, %v12303_v7  ;;  %vm321_vm4 = vcmp.eq.f32.partialorder %v12316_v26, inf }
  0xa8   :  { %v11844_v32 = vpop.eup %11843  ;;  %11857 = vrcp.f32 %v544_v28  ;;  %v283_v33 = vsel %vm281_vm9, %v282_v14, %v280_v30  ;;  %v273_v34 = vsel %vm272_vm10, %v12286_v47, %v271_v29  ;;  %vm323_vm5 = vcmp.eq.f32.partialorder %v12316_v26, 0.0 }
  0xa9   :  { %v11846_v35 = vpop.eup %11845  ;;  %v548_v36 = vmax.f32 %v283_v33, 1e-12  ;;  %v276_v37 = vsel %vm274_vm11, %v275_v21, %v273_v34  ;;  %v292_v38 = vmul.f32 %v11844_v32, %v12290_v53  ;;  %11859 = vrsqrt.f32 %v12316_v26  ;;  %v12338_v39 = vpop.xlane.xlu1 %182 }
  0xaa   :  { %v12340_v40 = vpop.xlane.xlu0 %180  ;;  %v547_v42 = vmax.f32 %v276_v37, 1e-12  ;;  %v285_v43 = vmul.f32 %v11846_v35, %v12292_v54  ;;  %11861 = vrsqrt.f32 %v12318_v27  ;;  %vm314_vm6 = vcmp.eq.f32.partialorder %v12318_v27, inf }
  0xab   :  { %11863 = vrcp.f32 %v548_v36  ;;  %v294_v45 = vsel %vm293_vm12, %v12290_v53, %v292_v38  ;;  %vm316_vm7 = vcmp.eq.f32.partialorder %v12318_v27, 0.0  ;;  %v317_v23 = vand.u32 2147483648, %v12318_v27 }
  0xac   :  { %v11848_v46 = vpop.eup %11847  ;;  %11865 = vrcp.f32 %v547_v42  ;;  %v297_v47 = vsel %vm295_vm13, %v296_v31, %v294_v45  ;;  %v287_v48 = vsel %vm286_vm14, %v12292_v54, %v285_v43  ;;  %vm335_vm8 = vcmp.eq.f32.partialorder %v12338_v39, inf }
  0xad   :  { %v11850_v50 = vpop.eup %11849  ;;  %v550_v51 = vmax.f32 %v297_v47, 1e-12  ;;  %v290_v52 = vsel %vm288_vm15, %v289_v44, %v287_v48  ;;  %v306_v55 = vmul.f32 %v11848_v46, %v12301_v6  ;;  %11867 = vrsqrt.f32 %v12338_v39  ;;  %v12360_v56 = vpop.xlane.xlu1 %186 }
  0xae   :  { %v12362_v57 = vpop.xlane.xlu0 %184  ;;  %v11852_v53 = vpop.eup %11851  ;;  %v591_v58 = vmul.f32 %v11850_v50, %v12088_v0  ;;  %v549_v59 = vmax.f32 %v290_v52, 1e-12  ;;  %vm337_vm9 = vcmp.eq.f32.partialorder %v12338_v39, 0.0  ;;  %v338_v31 = vand.u32 2147483648, %v12338_v39 }
  0xaf   :  { %v11854_v60 = vpop.eup %11853  ;;  %v587_v54 = vmul.f32 %v11852_v53, %v12093_v1  ;;  %11869 = vrcp.f32 %v550_v51  ;;  %v308_v61 = vsel %vm307_vm0, %v12301_v6, %v306_v55  ;;  %v324_v1 = vand.u32 2147483648, %v12316_v26 }
  0xb0   :  { %678 = vst [vmem:[#allocation2 + $0x20] sm:$0xff] %v591_v58  ;;  %11871 = vrcp.f32 %v549_v59  ;;  %v311_v0 = vsel %vm309_vm1, %v310_v49, %v308_v61  ;;  %v299_v63 = vmul.f32 %v11854_v60, %v12303_v7  ;;  %vm328_vm10 = vcmp.eq.f32.partialorder %v12340_v40, inf }
  0xb1   :  { %v11856_v3 = vpop.eup %11855  ;;  %676 = vst [vmem:[#allocation2 + $0x10] sm:$0xff] %v587_v54  ;;  %v552_v4 = vmax.f32 %v311_v0, 1e-12  ;;  %11873 = vrsqrt.f32 %v12340_v40  ;;  %v12379_v10 = vpop.xlane.xlu1 %190  ;;  %vm330_vm11 = vcmp.eq.f32.partialorder %v12340_v40, 0.0  ;;  %vm349_vm12 = vcmp.eq.f32.partialorder %v12360_v56, inf }
  0xb2   :  { %v12381_v11 = vpop.xlane.xlu0 %188  ;;  %v11858_v14 = vpop.eup %11857  ;;  %v593_v6 = vmul.f32 %v11856_v3, %v12098_v2  ;;  %v301_v15 = vsel %vm300_vm2, %v12303_v7, %v299_v63  ;;  %11875 = vrsqrt.f32 %v12360_v56  ;;  %vm351_vm13 = vcmp.eq.f32.partialorder %v12360_v56, 0.0 }
  0xb3   :  { %v11860_v18 = vpop.eup %11859  ;;  %v589_v19 = vmul.f32 %v11858_v14, %v12107_v5  ;;  %11877 = vrcp.f32 %v552_v4  ;;  %v304_v20 = vsel %vm302_vm3, %v303_v62, %v301_v15  ;;  %v352_v49 = vand.u32 2147483648, %v12360_v56 }
  0xb4   :  { %v11862_v21 = vpop.eup %11861  ;;  %679 = vst [vmem:[#allocation2 + $0x28] sm:$0xff] %v593_v6  ;;  %v551_v2 = vmax.f32 %v304_v20, 1e-12  ;;  %v320_v22 = vmul.f32 %v11860_v18, %v12316_v26  ;;  %11879 = vrsqrt.f32 %v12362_v57  ;;  %vm342_vm14 = vcmp.eq.f32.partialorder %v12362_v57, inf }
  0xb5   :  { %v11864_v24 = vpop.eup %11863  ;;  %677 = vst [vmem:[#allocation2 + $0x18] sm:$0xff] %v589_v19  ;;  %v313_v25 = vmul.f32 %v11862_v21, %v12318_v27  ;;  %11881 = vrsqrt.f32 %v12379_v10  ;;  %v12400_v5 = vpop.xlane.xlu1 %194  ;;  %vm344_vm15 = vcmp.eq.f32.partialorder %v12362_v57, 0.0  ;;  %vm363_vm0 = vcmp.eq.f32.partialorder %v12379_v10, inf  ;;  %v800_v21 = vld [vmem:[#allocation2 + $0x3] sm:$0xff] }
  0xb6   :  { %v12402_v7 = vpop.xlane.xlu0 %192  ;;  %v11866_v28 = vpop.eup %11865  ;;  %v597_v29 = vmul.f32 %v11864_v24, %v12116_v8  ;;  %11883 = vrcp.f32 %v551_v2  ;;  %v322_v30 = vsel %vm321_vm4, %v12316_v26, %v320_v22  ;;  %v331_v26 = vand.u32 2147483648, %v12340_v40 }
  0xb7   :  { %v11868_v32 = vpop.eup %11867  ;;  %v595_v33 = vmul.f32 %v11866_v28, %v12121_v9  ;;  %v325_v34 = vsel %vm323_vm5, %v324_v1, %v322_v30  ;;  %v315_v35 = vsel %vm314_vm6, %v12318_v27, %v313_v25  ;;  %11885 = vrsqrt.f32 %v12381_v11 }
  0xb8   :  { %681 = vst [vmem:[#allocation2 + $0x38] sm:$0xff] %v597_v29  ;;  %v554_v8 = vmax.f32 %v325_v34, 1e-12  ;;  %v318_v36 = vsel %vm316_vm7, %v317_v23, %v315_v35  ;;  %v334_v37 = vmul.f32 %v11868_v32, %v12338_v39  ;;  %vm365_vm1 = vcmp.eq.f32.partialorder %v12379_v10, 0.0 }
  0xb9   :  { %v11870_v38 = vpop.eup %11869  ;;  %680 = vst [vmem:[#allocation2 + $0x30] sm:$0xff] %v595_v33  ;;  %v553_v9 = vmax.f32 %v318_v36, 1e-12  ;;  %v12423_v42 = vpop.xlane.xlu1 %198  ;;  %v366_v6 = vand.u32 2147483648, %v12379_v10  ;;  %vm356_vm2 = vcmp.eq.f32.partialorder %v12381_v11, inf  ;;  %vm358_vm3 = vcmp.eq.f32.partialorder %v12381_v11, 0.0 }
  0xba   :  { %v12425_v43 = vpop.xlane.xlu0 %196  ;;  %v11872_v44 = vpop.eup %11871  ;;  %v601_v27 = vmul.f32 %v11870_v38, %v12130_v12  ;;  %11887 = vrcp.f32 %v554_v8  ;;  %v336_v45 = vsel %vm335_vm8, %v12338_v39, %v334_v37  ;;  %v359_v25 = vand.u32 2147483648, %v12381_v11 }
  0xbb   :  { %v11874_v46 = vpop.eup %11873  ;;  %v599_v47 = vmul.f32 %v11872_v44, %v12135_v13  ;;  %11889 = vrcp.f32 %v553_v9  ;;  %v339_v48 = vsel %vm337_vm9, %v338_v31, %v336_v45  ;;  %v345_v13 = vand.u32 2147483648, %v12362_v57  ;;  %v12008_v31 = vld [vmem:[%s15544_s0 + $0x50] sm:$0xff] }
  0xbc   :  { %v11876_v50 = vpop.eup %11875  ;;  %683 = vst [vmem:[#allocation2 + $0x48] sm:$0xff] %v601_v27  ;;  %v556_v51 = vmax.f32 %v339_v48, 1e-12  ;;  %v327_v12 = vmul.f32 %v11874_v46, %v12340_v40  ;;  %11891 = vrsqrt.f32 %v12400_v5  ;;  %vm377_vm4 = vcmp.eq.f32.partialorder %v12400_v5, inf  ;;  %v803_v48 = vld [vmem:[#allocation2 + $0x1b] sm:$0xff] }
  0xbd   :  { %v11878_v52 = vpop.eup %11877  ;;  %682 = vst [vmem:[#allocation2 + $0x40] sm:$0xff] %v599_v47  ;;  %v348_v55 = vmul.f32 %v11876_v50, %v12360_v56  ;;  %11893 = vrsqrt.f32 %v12402_v7  ;;  %v12443_v39 = vpop.xlane.xlu1 %202  ;;  %vm379_vm5 = vcmp.eq.f32.partialorder %v12400_v5, 0.0  ;;  %v380_v37 = vand.u32 2147483648, %v12400_v5  ;;  %v802_v47 = vld [vmem:[#allocation2 + $0x13] sm:$0xff] }
  0xbe   :  { %v12445_v53 = vpop.xlane.xlu0 %200  ;;  %v11880_v58 = vpop.eup %11879  ;;  %v605_v59 = vmul.f32 %v11878_v52, %v12144_v16  ;;  %11895 = vrcp.f32 %v556_v51  ;;  %v329_v60 = vsel %vm328_vm10, %v12340_v40, %v327_v12  ;;  %vm370_vm6 = vcmp.eq.f32.partialorder %v12402_v7, inf }
  0xbf   :  { %v11882_v54 = vpop.eup %11881  ;;  %v332_v61 = vsel %vm330_vm11, %v331_v26, %v329_v60  ;;  %v350_v62 = vsel %vm349_vm12, %v12360_v56, %v348_v55  ;;  %v341_v0 = vmul.f32 %v11880_v58, %v12362_v57  ;;  %11897 = vrsqrt.f32 %v12423_v42 }
  0xc0   :  { %v11884_v16 = vpop.eup %11883  ;;  %685 = vst [vmem:[#allocation2 + $0x58] sm:$0xff] %v605_v59  ;;  %v555_v63 = vmax.f32 %v332_v61, 1e-12  ;;  %v353_v3 = vsel %vm351_vm13, %v352_v49, %v350_v62  ;;  %v362_v4 = vmul.f32 %v11882_v54, %v12379_v10  ;;  %vm372_vm7 = vcmp.eq.f32.partialorder %v12402_v7, 0.0 }
  0xc1   :  { %v603_v40 = vmul.f32 %v11884_v16, %v12149_v17  ;;  %v558_v1 = vmax.f32 %v353_v3, 1e-12  ;;  %v343_v14 = vsel %vm342_vm14, %v12362_v57, %v341_v0  ;;  %v11886_v17 = vpop.eup %11885  ;;  %v801_v57 = vld [vmem:[#allocation2 + $0xb] sm:$0xff]  ;;  %v12479_v2 = vpop.xlane.xlu1 %206  ;;  %v373_v46 = vand.u32 2147483648, %v12402_v7  ;;  %v12011_v3 = vld [vmem:[%s15544_s0 + $0x78] sm:$0xff] }
  0xc2   :  { %11899 = vrcp.f32 %v555_v63  ;;  %v346_v15 = vsel %vm344_vm15, %v345_v13, %v343_v14  ;;  %v364_v56 = vsel %vm363_vm0, %v12379_v10, %v362_v4  ;;  %v12474_v18 = vpop.xlane.xlu0 %204  ;;  %v355_v24 = vmul.f32 %v11886_v17, %v12381_v11  ;;  %v12007_v10 = vld [vmem:[%s15544_s0 + $0x58] sm:$0xff]  ;;  %v805_v16 = vld [vmem:[#allocation2 + $0x2b] sm:$0xff]  ;;  %v804_v17 = vld [vmem:[#allocation2 + $0x23] sm:$0xff] }
  0xc3   :  { %684 = vst [vmem:[#allocation2 + $0x50] sm:$0xff] %v603_v40  ;;  %11901 = vrcp.f32 %v558_v1  ;;  %v557_v19 = vmax.f32 %v346_v15, 1e-12  ;;  %v367_v20 = vsel %vm365_vm1, %v366_v6, %v364_v56  ;;  %v843_v34 = vpack.c.bf16 %v801_v57, %v800_v21 }
  0xc4   :  { %v11888_v22 = vpop.eup %11887  ;;  %v560_v23 = vmax.f32 %v367_v20, 1e-12  ;;  %11903 = vrsqrt.f32 %v12425_v43  ;;  %v357_v33 = vsel %vm356_vm2, %v12381_v11, %v355_v24  ;;  %v12009_v11 = vld [vmem:[%s15544_s0 + $0x68] sm:$0xff]  ;;  %vm391_vm8 = vcmp.eq.f32.partialorder %v12423_v42, inf  ;;  %v12012_v20 = vld [vmem:[%s15544_s0 + $0x70] sm:$0xff] }
  0xc5   :  { %v11890_v28 = vpop.eup %11889  ;;  %v609_v29 = vmul.f32 %v12007_v10, %v11888_v22  ;;  %11905 = vrcp.f32 %v557_v19  ;;  %v360_v8 = vsel %vm358_vm3, %v359_v25, %v357_v33  ;;  %9841 = vmatprep.mubr.bf16.mxu0 %v843_v34  ;;  %v12513_v49 = vpop.xlane.xlu1 %210  ;;  %vm393_vm9 = vcmp.eq.f32.partialorder %v12423_v42, 0.0  ;;  %v11697_v22 = vld [vmem:[%s15545_s3 + $0x10] sm:$0xff]  }
  0xc6   :  { %v11892_v30 = vpop.eup %11891  ;;  %v607_v32 = vmul.f32 %v12008_v31, %v11890_v28  ;;  %11907 = vrcp.f32 %v560_v23  ;;  %v559_v9 = vmax.f32 %v360_v8, 1e-12  ;;  %v12503_v44 = vpop.xlane.xlu0 %208  ;;  %v394_v60 = vand.u32 2147483648, %v12423_v42  ;;  %v806_v8 = vld [vmem:[#allocation2 + $0x33] sm:$0xff] }
  0xc7   :  { %v11894_v35 = vpop.eup %11893  ;;  %687 = vst [vmem:[#allocation2 + $0x68] sm:$0xff] %v609_v29  ;;  %v376_v36 = vmul.f32 %v11892_v30, %v12400_v5  ;;  %11909 = vrsqrt.f32 %v12443_v39  ;;  %v844_v54 = vpack.c.bf16 %v803_v48, %v802_v47  ;;  %vm384_vm10 = vcmp.eq.f32.partialorder %v12425_v43, inf  ;;  %v807_v30 = vld [vmem:[#allocation2 + $0x3b] sm:$0xff] }
  0xc8   :  { %v11896_v38 = vpop.eup %11895  ;;  %686 = vst [vmem:[#allocation2 + $0x60] sm:$0xff] %v607_v32  ;;  %v369_v26 = vmul.f32 %v11894_v35, %v12402_v7  ;;  %11911 = vrsqrt.f32 %v12445_v53  ;;  %vm386_vm11 = vcmp.eq.f32.partialorder %v12425_v43, 0.0  ;;  %v387_v56 = vand.u32 2147483648, %v12425_v43 }
  0xc9   :  { %v613_v27 = vmul.f32 %v12009_v11, %v11896_v38  ;;  %v378_v45 = vsel %vm377_vm4, %v12400_v5, %v376_v36  ;;  %v11898_v50 = vpop.eup %11897  ;;  %11913 = vrcp.f32 %v559_v9  ;;  %v11696_v5 = vld [vmem:[%s15545_s3 + $0x8] sm:$0xff]   ;;  %9842 = vmatmul.mubr.bf16.vlgmr.msra.gmra.mrb[0].mxu0 %v844_v54  ;;  %v12546_v19 = vpop.xlane.xlu1 %214  ;;  %vm405_vm12 = vcmp.eq.f32.partialorder %v12443_v39, inf }
  0xca   :  { %v381_v51 = vsel %vm379_vm5, %v380_v37, %v378_v45  ;;  %v371_v12 = vsel %vm370_vm6, %v12402_v7, %v369_v26  ;;  %v390_v13 = vmul.f32 %v11898_v50, %v12423_v42  ;;  %11915 = vrsqrt.f32 %v12479_v2  ;;  %v12010_v7 = vld [vmem:[%s15544_s0 + $0x60] sm:$0xff]  ;;  %v12541_v1 = vpop.xlane.xlu0 %212  ;;  %9886 = vmatpush3.bf16.msra.mxu0 %v12281_v41  ;;  %v12013_v41 = vld [vmem:[%s15544_s0 + $0x88] sm:$0xff] }
  0xcb   :  { %689 = vst [vmem:[#allocation2 + $0x78] sm:$0xff] %v613_v27  ;;  %v562_v52 = vmax.f32 %v381_v51, 1e-12  ;;  %v374_v55 = vsel %vm372_vm7, %v373_v46, %v371_v12  ;;  %vm407_vm13 = vcmp.eq.f32.partialorder %v12443_v39, 0.0  ;;  %v845_v57 = vpack.c.bf16 %v805_v16, %v804_v17  ;;  %9887 = vmatprep.subr.bf16.mxu0 %v11696_v5  ;;  %v12014_v37 = vld [vmem:[%s15544_s0 + $0x80] sm:$0xff]  ;;  %v11698_v27 = vld [vmem:[%s15545_s3 + $0x18] sm:$0xff]  }
  0xcc   :  { %v11900_v58 = vpop.eup %11899  ;;  %v561_v59 = vmax.f32 %v374_v55, 1e-12  ;;  %v392_v0 = vsel %vm391_vm8, %v12423_v42, %v390_v13  ;;  %v408_v28 = vand.u32 2147483648, %v12443_v39  ;;  %vm398_vm14 = vcmp.eq.f32.partialorder %v12445_v53, inf }
  0xcd   :  { %v11902_v61 = vpop.eup %11901  ;;  %v611_v62 = vmul.f32 %v12010_v7, %v11900_v58  ;;  %11917 = vrcp.f32 %v562_v52  ;;  %v395_v40 = vsel %vm393_vm9, %v394_v60, %v392_v0  ;;  %9845 = vmatprep.mubr.bf16.mxu0 %v845_v57  ;;  %vm400_vm15 = vcmp.eq.f32.partialorder %v12445_v53, 0.0  ;;  %v12585_v11 = vpop.xlane.xlu1 %218  ;;  %v12015_v52 = vld [vmem:[%s15544_s0 + $0x98] sm:$0xff]  ;;  %v12016_v60 = vld [vmem:[%s15544_s0 + $0x90] sm:$0xff]  ;;  %v808_v0 = vld [vmem:[#allocation2 + $0x43] sm:$0xff] }
  0xce   :  { %v11904_v63 = vpop.eup %11903  ;;  %v617_v4 = vmul.f32 %v12011_v3, %v11902_v61  ;;  %11919 = vrcp.f32 %v561_v59  ;;  %v564_v6 = vmax.f32 %v395_v40, 1e-12  ;;  %v401_v33 = vand.u32 2147483648, %v12445_v53  ;;  %9888 = vmatpush3.bf16.msra.mxu0 %v11696_v5  ;;  %v12578_v36 = vpop.xlane.xlu0 %216  ;;  %v809_v59 = vld [vmem:[#allocation2 + $0x4b] sm:$0xff]  ;;  %v11699_v61 = vld [vmem:[%s15545_s3 + $0x20] sm:$0xff]  }
  0xcf   :  { %v11906_v14 = vpop.eup %11905  ;;  %688 = vst [vmem:[#allocation2 + $0x70] sm:$0xff] %v611_v62  ;;  %v383_v15 = vmul.f32 %v11904_v63, %v12425_v43  ;;  %11921 = vrsqrt.f32 %v12474_v18  ;;  %vm419_vm0 = vcmp.eq.f32.partialorder %v12479_v2, inf  ;;  %vm421_vm1 = vcmp.eq.f32.partialorder %v12479_v2, 0.0  ;;  %9889 = vmatprep.subr.bf16.mxu0 %v11697_v22  ;;  %v811_v17 = vld [vmem:[#allocation2 + $0x5b] sm:$0xff] }
  0xd0   :  { %v11908_v42 = vpop.eup %11907  ;;  %691 = vst [vmem:[#allocation2 + $0x88] sm:$0xff] %v617_v4  ;;  %v615_v21 = vmul.f32 %v12012_v20, %v11906_v14  ;;  %11923 = vrcp.f32 %v564_v6  ;;  %v846_v26 = vpack.c.bf16 %v807_v30, %v806_v8  ;;  %v422_v48 = vand.u32 2147483648, %v12479_v2 }
  0xd1   :  { %v11910_v23 = vpop.eup %11909  ;;  %v621_v24 = vmul.f32 %v12013_v41, %v11908_v42  ;;  %v385_v25 = vsel %vm384_vm10, %v12425_v43, %v383_v15  ;;  %11925 = vrsqrt.f32 %v12513_v49  ;;  %vm412_vm2 = vcmp.eq.f32.partialorder %v12474_v18, inf  ;;  %v12623_v14 = vpop.xlane.xlu1 %222 }
  0xd2   :  { %690 = vst [vmem:[#allocation2 + $0x80] sm:$0xff] %v615_v21  ;;  %v388_v10 = vsel %vm386_vm11, %v387_v56, %v385_v25  ;;  %v404_v29 = vmul.f32 %v11910_v23, %v12443_v39  ;;  %v11912_v31 = vpop.eup %11911  ;;  %11927 = vrsqrt.f32 %v12503_v44  ;;  %vm414_vm3 = vcmp.eq.f32.partialorder %v12474_v18, 0.0  ;;  %9846 = vmatmul.mubr.bf16.gmra.mrb[4].mxu0 %v846_v26  ;;  %v12619_v16 = vpop.xlane.xlu0 %220 }
  0xd3   :  { %693 = vst [vmem:[#allocation2 + $0x98] sm:$0xff] %v621_v24  ;;  %v563_v32 = vmax.f32 %v388_v10, 1e-12  ;;  %v11914_v43 = vpop.eup %11913  ;;  %v397_v35 = vmul.f32 %v11912_v31, %v12445_v53  ;;  %v415_v58 = vand.u32 2147483648, %v12474_v18  ;;  %9890 = vmatpush3.bf16.msra.mxu0 %v11697_v22  ;;  %vm433_vm4 = vcmp.eq.f32.partialorder %v12513_v49, inf  ;;  %v11700_v22 = vld [vmem:[%s15545_s3 + $0x28] sm:$0xff]  }
  0xd4   :  { %v406_v34 = vsel %vm405_vm12, %v12443_v39, %v404_v29  ;;  %v619_v38 = vmul.f32 %v12014_v37, %v11914_v43  ;;  %v11916_v45 = vpop.eup %11915  ;;  %9891 = vmatprep.subr.bf16.mxu0 %v11698_v27  ;;  %vm435_vm5 = vcmp.eq.f32.partialorder %v12513_v49, 0.0  ;;  %v436_v4 = vand.u32 2147483648, %v12513_v49  ;;  %v12018_v29 = vld [vmem:[%s15544_s0 + $0xa0] sm:$0xff] }
  0xd5   :  { %11929 = vrcp.f32 %v563_v32  ;;  %v409_v9 = vsel %vm407_vm13, %v408_v28, %v406_v34  ;;  %v399_v47 = vsel %vm398_vm14, %v12445_v53, %v397_v35  ;;  %v418_v51 = vmul.f32 %v11916_v45, %v12479_v2  ;;  %v12662_v37 = vpop.xlane.xlu1 %226 }
  0xd6   :  { %v566_v46 = vmax.f32 %v409_v9, 1e-12  ;;  %11931 = vrsqrt.f32 %v12546_v19  ;;  %692 = vst [vmem:[#allocation2 + $0x90] sm:$0xff] %v619_v38  ;;  %v402_v39 = vsel %vm400_vm15, %v401_v33, %v399_v47  ;;  %v847_v40 = vpack.c.bf16 %v809_v59, %v808_v0  ;;  %v12656_v33 = vpop.xlane.xlu0 %224  ;;  %v12021_v0 = vld [vmem:[%s15544_s0 + $0xc8] sm:$0xff] }
  0xd7   :  { %v11918_v50 = vpop.eup %11917  ;;  %v565_v13 = vmax.f32 %v402_v39, 1e-12  ;;  %v420_v5 = vsel %vm419_vm0, %v12479_v2, %v418_v51  ;;  %v12017_v2 = vld [vmem:[%s15544_s0 + $0xa8] sm:$0xff]  ;;  %vm426_vm6 = vcmp.eq.f32.partialorder %v12503_v44, inf  ;;  %vm428_vm7 = vcmp.eq.f32.partialorder %v12503_v44, 0.0  ;;  %9892 = vmatpush3.bf16.msra.mxu0 %v11698_v27  ;;  %v12019_v27 = vld [vmem:[%s15544_s0 + $0xb8] sm:$0xff] }
  0xd8   :  { %v11920_v12 = vpop.eup %11919  ;;  %v625_v55 = vmul.f32 %v12015_v52, %v11918_v50  ;;  %11933 = vrcp.f32 %v566_v46  ;;  %v423_v7 = vsel %vm421_vm1, %v422_v48, %v420_v5  ;;  %v429_v57 = vand.u32 2147483648, %v12503_v44  ;;  %9849 = vmatprep.mubr.bf16.mxu0 %v847_v40  ;;  %9893 = vmatprep.subr.bf16.mxu0 %v11699_v61  ;;  %v812_v51 = vld [vmem:[#allocation2 + $0x63] sm:$0xff]  ;;  %v12020_v52 = vld [vmem:[%s15544_s0 + $0xb0] sm:$0xff] }
  0xd9   :  { %v11922_v53 = vpop.eup %11921  ;;  %v623_v54 = vmul.f32 %v12016_v60, %v11920_v12  ;;  %11935 = vrsqrt.f32 %v12541_v1  ;;  %v568_v3 = vmax.f32 %v423_v7, 1e-12  ;;  %vm447_vm8 = vcmp.eq.f32.partialorder %v12546_v19, inf  ;;  %v12700_v7 = vpop.xlane.xlu1 %230 }
  0xda   :  { %695 = vst [vmem:[#allocation2 + $0xa8] sm:$0xff] %v625_v55  ;;  %11937 = vrcp.f32 %v565_v13  ;;  %v411_v62 = vmul.f32 %v11922_v53, %v12474_v18  ;;  %v11924_v63 = vpop.eup %11923  ;;  %vm449_vm9 = vcmp.eq.f32.partialorder %v12546_v19, 0.0  ;;  %v450_v8 = vand.u32 2147483648, %v12546_v19 }
  0xdb   :  { %694 = vst [vmem:[#allocation2 + $0xa0] sm:$0xff] %v623_v54  ;;  %11939 = vrsqrt.f32 %v12585_v11  ;;  %v11926_v6 = vpop.eup %11925  ;;  %v629_v15 = vmul.f32 %v12017_v2, %v11924_v63  ;;  %9894 = vmatpush3.bf16.msra.mxu0 %v11699_v61  ;;  %vm440_vm10 = vcmp.eq.f32.partialorder %v12541_v1, inf  ;;  %vm442_vm11 = vcmp.eq.f32.partialorder %v12541_v1, 0.0  ;;  %v12694_v54 = vpop.xlane.xlu0 %228 }
  0xdc   :  { %v413_v56 = vsel %vm412_vm2, %v12474_v18, %v411_v62  ;;  %v11928_v42 = vpop.eup %11927  ;;  %11941 = vrcp.f32 %v568_v3  ;;  %v432_v21 = vmul.f32 %v11926_v6, %v12513_v49  ;;  %v810_v18 = vld [vmem:[#allocation2 + $0x53] sm:$0xff]  ;;  %9895 = vmatprep.subr.bf16.mxu0 %v11700_v22  ;;  %v443_v47 = vand.u32 2147483648, %v12541_v1 }
  0xdd   :  { %v416_v20 = vsel %vm414_vm3, %v415_v58, %v413_v56  ;;  %697 = vst [vmem:[#allocation2 + $0xb8] sm:$0xff] %v629_v15  ;;  %v425_v41 = vmul.f32 %v11928_v42, %v12503_v44  ;;  %11943 = vrsqrt.f32 %v12578_v36  ;;  %v848_v28 = vpack.c.bf16 %v811_v17, %v810_v18  ;;  %v12717_v56 = vld [vmem:[%s15545_s3 + $0x80] sm:$0xff]  }
  0xde   :  { %v567_v23 = vmax.f32 %v416_v20, 1e-12  ;;  %v434_v25 = vsel %vm433_vm4, %v12513_v49, %v432_v21  ;;  %11945 = vrsqrt.f32 %v12623_v14  ;;  %v11701_v49 = vld [vmem:[%s15545_s3 + $0x30] sm:$0xff]   ;;  %vm461_vm12 = vcmp.eq.f32.partialorder %v12585_v11, inf }
  0xdf   :  { %v11930_v24 = vpop.eup %11929  ;;  %v437_v31 = vsel %vm435_vm5, %v436_v4, %v434_v25  ;;  %v427_v32 = vsel %vm426_vm6, %v12503_v44, %v425_v41  ;;  %9850 = vmatmul.mubr.bf16.gmra.mrb[8].mxu0 %v848_v28  ;;  %v813_v44 = vld [vmem:[#allocation2 + $0x6b] sm:$0xff]  ;;  %vm463_vm13 = vcmp.eq.f32.partialorder %v12585_v11, 0.0  ;;  %v464_v60 = vand.u32 2147483648, %v12585_v11  ;;  %v814_v21 = vld [vmem:[#allocation2 + $0x73] sm:$0xff]  ;;  %v12734_v28 = vpop.xlane.xlu0 %232 }
  0xe0   :  { %v11932_v10 = vpop.eup %11931  ;;  %v627_v30 = vmul.f32 %v12018_v29, %v11930_v24  ;;  %11947 = vrcp.f32 %v567_v23  ;;  %v570_v43 = vmax.f32 %v437_v31, 1e-12  ;;  %v430_v34 = vsel %vm428_vm7, %v429_v57, %v427_v32  ;;  %9896 = vmatpush3.bf16.msra.mxu0 %v11700_v22  ;;  %v12022_v57 = vld [vmem:[%s15544_s0 + $0xc0] sm:$0xff] }
  0xe1   :  { %v446_v35 = vmul.f32 %v11932_v10, %v12546_v19  ;;  %v569_v9 = vmax.f32 %v430_v34, 1e-12  ;;  %11949 = vrsqrt.f32 %v12619_v16  ;;  %v849_v58 = vpack.c.bf16 %v813_v44, %v812_v51  ;;  %9897 = vmatprep.subr.bf16.mxu0 %v11701_v49 }
  0xe2   :  { %v11934_v38 = vpop.eup %11933  ;;  %696 = vst [vmem:[#allocation2 + $0xb0] sm:$0xff] %v627_v30  ;;  %11951 = vrcp.f32 %v570_v43  ;;  %vm454_vm14 = vcmp.eq.f32.partialorder %v12578_v36, inf  ;;  %vm456_vm15 = vcmp.eq.f32.partialorder %v12578_v36, 0.0  ;;  %v457_v15 = vand.u32 2147483648, %v12578_v36 }
  0xe3   :  { %v11936_v26 = vpop.eup %11935  ;;  %v633_v45 = vmul.f32 %v12019_v27, %v11934_v38  ;;  %v448_v46 = vsel %vm447_vm8, %v12546_v19, %v446_v35  ;;  %11953 = vrcp.f32 %v569_v9  ;;  %v11702_v19 = vld [vmem:[%s15545_s3 + $0x38] sm:$0xff]   ;;  %9853 = vmatprep.mubr.bf16.mxu0 %v849_v58  ;;  %vm475_vm0 = vcmp.eq.f32.partialorder %v12623_v14, inf  ;;  %v816_v27 = vld [vmem:[#allocation2 + $0x83] sm:$0xff] }
  0xe4   :  { %v11938_v48 = vpop.eup %11937  ;;  %v451_v50 = vsel %vm449_vm9, %v450_v8, %v448_v46  ;;  %v439_v39 = vmul.f32 %v11936_v26, %v12541_v1  ;;  %11955 = vrsqrt.f32 %v12662_v37  ;;  %9898 = vmatpush3.bf16.msra.mxu0 %v11701_v49  ;;  %vm477_vm1 = vcmp.eq.f32.partialorder %v12623_v14, 0.0  ;;  %v817_v8 = vld [vmem:[#allocation2 + $0x8b] sm:$0xff] }
  0xe5   :  { %v11940_v12 = vpop.eup %11939  ;;  %699 = vst [vmem:[#allocation2 + $0xc8] sm:$0xff] %v633_v45  ;;  %v631_v55 = vmul.f32 %v12020_v52, %v11938_v48  ;;  %v572_v13 = vmax.f32 %v451_v50, 1e-12  ;;  %9899 = vmatprep.subr.bf16.mxu0 %v11702_v19  ;;  %vm468_vm2 = vcmp.eq.f32.partialorder %v12619_v16, inf  ;;  %v471_v35 = vand.u32 2147483648, %v12619_v16  ;;  %v12024_v49 = vld [vmem:[%s15544_s0 + $0xd0] sm:$0xff]  ;;  %v12759_v52 = vpop.xlane.xlu0 %236 }
  0xe6   :  { %v441_v59 = vsel %vm440_vm10, %v12541_v1, %v439_v39  ;;  %v460_v53 = vmul.f32 %v11940_v12, %v12585_v11  ;;  %v11942_v5 = vpop.eup %11941  ;;  %v815_v1 = vld [vmem:[#allocation2 + $0x7b] sm:$0xff]  ;;  %vm470_vm3 = vcmp.eq.f32.partialorder %v12619_v16, 0.0  ;;  %v851_v48 = vpack.c.bf16 %v817_v8, %v816_v27  ;;  %v12025_v39 = vld [vmem:[%s15544_s0 + $0xe8] sm:$0xff] }
  0xe7   :  { %698 = vst [vmem:[#allocation2 + $0xc0] sm:$0xff] %v631_v55  ;;  %11957 = vrcp.f32 %v572_v13  ;;  %v444_v61 = vsel %vm442_vm11, %v443_v47, %v441_v59  ;;  %v11944_v62 = vpop.eup %11943  ;;  %v637_v63 = vmul.f32 %v12021_v0, %v11942_v5  ;;  %v850_v41 = vpack.c.bf16 %v815_v1, %v814_v21  ;;  %v819_v12 = vld [vmem:[#allocation2 + $0x9b] sm:$0xff] }
  0xe8   :  { %v571_v3 = vmax.f32 %v444_v61, 1e-12  ;;  %v462_v4 = vsel %vm461_vm12, %v12585_v11, %v460_v53  ;;  %11959 = vrsqrt.f32 %v12656_v33  ;;  %v11946_v40 = vpop.eup %11945  ;;  %v453_v2 = vmul.f32 %v11944_v62, %v12578_v36  ;;  %9900 = vmatpush3.bf16.msra.mxu0 %v11702_v19 }
  0xe9   :  { %v465_v6 = vsel %vm463_vm13, %v464_v60, %v462_v4  ;;  %701 = vst [vmem:[#allocation2 + $0xd8] sm:$0xff] %v637_v63  ;;  %v474_v20 = vmul.f32 %v11946_v40, %v12623_v14  ;;  %v478_v11 = vand.u32 2147483648, %v12623_v14  ;;  %9854 = vmatmul.mubr.bf16.gmra.mrb[12].mxu0 %v850_v41  ;;  %9945 = vmatprep.subr.bf16.mxu0 %v12717_v56  ;;  %vm489_vm4 = vcmp.eq.f32.partialorder %v12662_v37, inf  ;;  %v818_v60 = vld [vmem:[#allocation2 + $0x93] sm:$0xff] }
  0xea   :  { %v11948_v17 = vpop.eup %11947  ;;  %11961 = vrcp.f32 %v571_v3  ;;  %v574_v42 = vmax.f32 %v465_v6, 1e-12  ;;  %v455_v23 = vsel %vm454_vm14, %v12578_v36, %v453_v2  ;;  %v12738_v36 = vpop.xlane.xlu1 %234  ;;  %vm491_vm5 = vcmp.eq.f32.partialorder %v12662_v37, 0.0  ;;  %9857 = vmatprep.mubr.bf16.mxu0 %v851_v48  ;;  %v12027_v40 = vld [vmem:[%s15544_s0 + $0xf8] sm:$0xff] }
  0xeb   :  { %v635_v22 = vmul.f32 %v12022_v57, %v11948_v17  ;;  %11963 = vrsqrt.f32 %v12700_v7  ;;  %v11950_v18 = vpop.eup %11949  ;;  %v458_v24 = vsel %vm456_vm15, %v457_v15, %v455_v23  ;;  %v476_v25 = vsel %vm475_vm0, %v12623_v14, %v474_v20  ;;  %v12023_v14 = vld [vmem:[%s15544_s0 + $0xd8] sm:$0xff]  ;;  %v12784_v20 = vpop.xlane.xlu0 %240 }
  0xec   :  { %11965 = vrcp.f32 %v574_v42  ;;  %v11952_v10 = vpop.eup %11951  ;;  %v573_v29 = vmax.f32 %v458_v24, 1e-12  ;;  %v479_v30 = vsel %vm477_vm1, %v478_v11, %v476_v25  ;;  %v467_v31 = vmul.f32 %v11950_v18, %v12619_v16 }
  0xed   :  { %700 = vst [vmem:[#allocation2 + $0xd0] sm:$0xff] %v635_v22  ;;  %v11954_v32 = vpop.eup %11953  ;;  %v641_v43 = vmul.f32 %v12023_v14, %v11952_v10  ;;  %v576_v34 = vmax.f32 %v479_v30, 1e-12  ;;  %11967 = vrsqrt.f32 %v12694_v54  ;;  %vm482_vm6 = vcmp.eq.f32.partialorder %v12656_v33, inf  ;;  %v820_v22 = vld [vmem:[#allocation2 + $0xa3] sm:$0xff] }
  0xee   :  { %v639_v38 = vmul.f32 %v12024_v49, %v11954_v32  ;;  %11969 = vrcp.f32 %v573_v29  ;;  %v469_v9 = vsel %vm468_vm2, %v12619_v16, %v467_v31  ;;  %v11956_v44 = vpop.eup %11955  ;;  %v492_v16 = vand.u32 2147483648, %v12662_v37  ;;  %v12764_v58 = vpop.xlane.xlu1 %238  ;;  %v823_v10 = vld [vmem:[#allocation2 + $0xbb] sm:$0xff]  ;;  %v12029_v31 = vld [vmem:[%s15544_s0 + $0x108] sm:$0xff] }
  0xef   :  { %703 = vst [vmem:[#allocation2 + $0xe8] sm:$0xff] %v641_v43  ;;  %11971 = vrcp.f32 %v576_v34  ;;  %v472_v26 = vsel %vm470_vm3, %v471_v35, %v469_v9  ;;  %v488_v47 = vmul.f32 %v11956_v44, %v12662_v37  ;;  %vm484_vm7 = vcmp.eq.f32.partialorder %v12656_v33, 0.0  ;;  %v822_v35 = vld [vmem:[#allocation2 + $0xb3] sm:$0xff]  ;;  %v824_v8 = vld [vmem:[#allocation2 + $0xc3] sm:$0xff] }
  0xf0   :  { %702 = vst [vmem:[#allocation2 + $0xe0] sm:$0xff] %v639_v38  ;;  %v575_v46 = vmax.f32 %v472_v26, 1e-12  ;;  %11973 = vrsqrt.f32 %v12738_v36  ;;  %v485_v53 = vand.u32 2147483648, %v12656_v33  ;;  %v852_v63 = vpack.c.bf16 %v819_v12, %v818_v60 }
  0xf1   :  { %v11958_v45 = vpop.eup %11957  ;;  %v490_v55 = vsel %vm489_vm4, %v12662_v37, %v488_v47  ;;  %v12026_v37 = vld [vmem:[%s15544_s0 + $0xe0] sm:$0xff]  ;;  %vm503_vm8 = vcmp.eq.f32.partialorder %v12700_v7, inf  ;;  %v506_v15 = vand.u32 2147483648, %v12700_v7  ;;  %vm505_vm9 = vcmp.eq.f32.partialorder %v12700_v7, 0.0 }
  0xf2   :  { %v11960_v50 = vpop.eup %11959  ;;  %v645_v51 = vmul.f32 %v12025_v39, %v11958_v45  ;;  %11975 = vrcp.f32 %v575_v46  ;;  %v493_v59 = vsel %vm491_vm5, %v492_v16, %v490_v55  ;;  %9858 = vmatmul.mubr.bf16.gmra.mrb[16].mxu0 %v852_v63  ;;  %vm496_vm10 = vcmp.eq.f32.partialorder %v12694_v54, inf }
  0xf3   :  { %v481_v13 = vmul.f32 %v11960_v50, %v12656_v33  ;;  %11977 = vrsqrt.f32 %v12734_v28  ;;  %v578_v62 = vmax.f32 %v493_v59, 1e-12  ;;  %vm498_vm11 = vcmp.eq.f32.partialorder %v12694_v54, 0.0 }
  0xf4   :  { %v11962_v19 = vpop.eup %11961  ;;  %705 = vst [vmem:[#allocation2 + $0xf8] sm:$0xff] %v645_v51  ;;  %11979 = vrsqrt.f32 %v12764_v58  ;;  %v499_v24 = vand.u32 2147483648, %v12694_v54  ;;  %v825_v29 = vld [vmem:[#allocation2 + $0xcb] sm:$0xff]  ;;  %vm517_vm12 = vcmp.eq.f32.partialorder %v12738_v36, inf  ;;  %vm519_vm13 = vcmp.eq.f32.partialorder %v12738_v36, 0.0 }
  0xf5   :  { %v11964_v5 = vpop.eup %11963  ;;  %v643_v61 = vmul.f32 %v12026_v37, %v11962_v19  ;;  %v483_v0 = vsel %vm482_vm6, %v12656_v33, %v481_v13  ;;  %11981 = vrcp.f32 %v578_v62  ;;  %v821_v33 = vld [vmem:[#allocation2 + $0xab] sm:$0xff]  ;;  %v520_v9 = vand.u32 2147483648, %v12738_v36 }
  0xf6   :  { %v11966_v3 = vpop.eup %11965  ;;  %v486_v4 = vsel %vm484_vm7, %v485_v53, %v483_v0  ;;  %v502_v1 = vmul.f32 %v11964_v5, %v12700_v7  ;;  %11983 = vrsqrt.f32 %v12759_v52  ;;  %v853_v25 = vpack.c.bf16 %v821_v33, %v820_v22  ;;  %v12031_v53 = vld [vmem:[%s15544_s0 + $0x118] sm:$0xff] }
  0xf7   :  { %704 = vst [vmem:[#allocation2 + $0xf0] sm:$0xff] %v643_v61  ;;  %v649_v6 = vmul.f32 %v12027_v40, %v11966_v3  ;;  %v577_v2 = vmax.f32 %v486_v4, 1e-12  ;;  %v11968_v17 = vpop.eup %11967  ;;  %v854_v44 = vpack.c.bf16 %v823_v10, %v822_v35  ;;  %v855_v26 = vpack.c.bf16 %v825_v29, %v824_v8  ;;  %v827_v12 = vld [vmem:[#allocation2 + $0xdb] sm:$0xff]  ;;  %v826_v61 = vld [vmem:[#allocation2 + $0xd3] sm:$0xff] }
  0xf8   :  { %v504_v42 = vsel %vm503_vm8, %v12700_v7, %v502_v1  ;;  %v11970_v11 = vpop.eup %11969  ;;  %v495_v57 = vmul.f32 %v11968_v17, %v12694_v54  ;;  %v12028_v7 = vld [vmem:[%s15544_s0 + $0xf0] sm:$0xff]  ;;  %9861 = vmatprep.mubr.bf16.mxu0 %v853_v25  ;;  %vm510_vm14 = vcmp.eq.f32.partialorder %v12734_v28, inf  ;;  %vm512_vm15 = vcmp.eq.f32.partialorder %v12734_v28, 0.0  ;;  %v828_v1 = vld [vmem:[#allocation2 + $0xe3] sm:$0xff] }
  0xf9   :  { %707 = vst [vmem:[#allocation2 + $0x108] sm:$0xff] %v649_v6  ;;  %11985 = vrcp.f32 %v577_v2  ;;  %v507_v21 = vsel %vm505_vm9, %v506_v15, %v504_v42  ;;  %v11972_v23 = vpop.eup %11971  ;;  %v647_v41 = vmul.f32 %v12028_v7, %v11970_v11  ;;  %v513_v50 = vand.u32 2147483648, %v12734_v28  ;;  %v12032_v40 = vld [vmem:[%s15544_s0 + $0x110] sm:$0xff]  ;;  %v12034_v25 = vld [vmem:[%s15544_s0 + $0x120] sm:$0xff] }
  0xfa   :  { %v580_v18 = vmax.f32 %v507_v21, 1e-12  ;;  %v11974_v30 = vpop.eup %11973  ;;  %v653_v32 = vmul.f32 %v12029_v31, %v11972_v23  ;;  %v497_v14 = vsel %vm496_vm10, %v12694_v54, %v495_v57  ;;  %11987 = vrsqrt.f32 %v12784_v20  ;;  %v12030_v54 = vld [vmem:[%s15544_s0 + $0x100] sm:$0xff]  ;;  %9862 = vmatmul.mubr.bf16.gmra.mrb[20].mxu0 %v854_v44  ;;  %v12033_v57 = vld [vmem:[%s15544_s0 + $0x128] sm:$0xff]  ;;  %v12036_v8 = vld [vmem:[%s15544_s0 + $0x130] sm:$0xff] }
  0xfb   :  { %706 = vst [vmem:[#allocation2 + $0x100] sm:$0xff] %v647_v41  ;;  %v500_v43 = vsel %vm498_vm11, %v499_v24, %v497_v14  ;;  %v516_v34 = vmul.f32 %v11974_v30, %v12738_v36  ;;  %vm531_vm0 = vcmp.eq.f32.partialorder %v12764_v58, inf  ;;  %vm533_vm1 = vcmp.eq.f32.partialorder %v12764_v58, 0.0  ;;  %9865 = vmatprep.mubr.bf16.mxu0 %v855_v26  ;;  %v12037_v44 = vld [vmem:[%s15544_s0 + $0x148] sm:$0xff] }
  0xfc   :  { %11989 = vrcp.f32 %v580_v18  ;;  %v11976_v49 = vpop.eup %11975  ;;  %709 = vst [vmem:[#allocation2 + $0x118] sm:$0xff] %v653_v32  ;;  %v579_v38 = vmax.f32 %v500_v43, 1e-12  ;;  %v534_v16 = vand.u32 2147483648, %v12764_v58  ;;  %vm524_vm2 = vcmp.eq.f32.partialorder %v12759_v52, inf  ;;  %v12035_v43 = vld [vmem:[%s15544_s0 + $0x138] sm:$0xff] }
  0xfd   :  { %v11978_v27 = vpop.eup %11977  ;;  %v651_v45 = vmul.f32 %v12030_v54, %v11976_v49  ;;  %v518_v46 = vsel %vm517_vm12, %v12738_v36, %v516_v34  ;;  %vm526_vm3 = vcmp.eq.f32.partialorder %v12759_v52, 0.0  ;;  %v527_v37 = vand.u32 2147483648, %v12759_v52 }
  0xfe   :  { %11991 = vrcp.f32 %v579_v38  ;;  %v521_v47 = vsel %vm519_vm13, %v520_v9, %v518_v46  ;;  %v509_v48 = vmul.f32 %v11978_v27, %v12734_v28  ;;  %v11980_v39 = vpop.eup %11979  ;;  %v829_v19 = vld [vmem:[#allocation2 + $0xeb] sm:$0xff]  ;;  %v856_v4 = vpack.c.bf16 %v827_v12, %v826_v61  ;;  %v830_v30 = vld [vmem:[#allocation2 + $0xf3] sm:$0xff] }
  0xff   :  { %708 = vst [vmem:[#allocation2 + $0x110] sm:$0xff] %v651_v45  ;;  %v582_v51 = vmax.f32 %v521_v47, 1e-12  ;;  %v11982_v55 = vpop.eup %11981  ;;  %v530_v13 = vmul.f32 %v11980_v39, %v12764_v58  ;;  %vm538_vm4 = vcmp.eq.f32.partialorder %v12784_v20, inf  ;;  %v857_v2 = vpack.c.bf16 %v829_v19, %v828_v1  ;;  %v12880_v61 = vld [vmem:[#allocation2 + $0x24] sm:$0xff]  ;;  %v12892_v1 = vld [vmem:[#allocation2 + $0x54] sm:$0xff] }
 0x100   :  { %v511_v36 = vsel %vm510_vm14, %v12734_v28, %v509_v48  ;;  %v11984_v59 = vpop.eup %11983  ;;  %v657_v60 = vmul.f32 %v12031_v53, %v11982_v55  ;;  %v541_v42 = vand.u32 2147483648, %v12784_v20  ;;  %vm540_vm5 = vcmp.eq.f32.partialorder %v12784_v20, 0.0  ;;  %v12038_v48 = vld [vmem:[%s15544_s0 + $0x140] sm:$0xff] }
 0x101   :  { %11993 = vrcp.f32 %v582_v51  ;;  %v514_v5 = vsel %vm512_vm15, %v513_v50, %v511_v36  ;;  %v532_v63 = vsel %vm531_vm0, %v12764_v58, %v530_v13  ;;  %v523_v3 = vmul.f32 %v11984_v59, %v12759_v52 }
 0x102   :  { %v581_v0 = vmax.f32 %v514_v5, 1e-12  ;;  %711 = vst [vmem:[#allocation2 + $0x128] sm:$0xff] %v657_v60  ;;  %v535_v6 = vsel %vm533_vm1, %v534_v16, %v532_v63  ;;  %9866 = vmatmul.mubr.bf16.gmra.mrb[24].mxu0 %v856_v4  ;;  %v831_v41 = vld [vmem:[#allocation2 + $0xfb] sm:$0xff]  ;;  %v832_v32 = vld [vmem:[#allocation2 + $0x103] sm:$0xff]  ;;  %v12039_v16 = vld [vmem:[%s15544_s0 + $0x150] sm:$0xff] }
 0x103   :  { %v11986_v62 = vpop.eup %11985  ;;  %v584_v33 = vmax.f32 %v535_v6, 1e-12  ;;  %v525_v17 = vsel %vm524_vm2, %v12759_v52, %v523_v3  ;;  %9869 = vmatprep.mubr.bf16.mxu0 %v857_v2  ;;  %v858_v31 = vpack.c.bf16 %v831_v41, %v830_v30  ;;  %v12874_v60 = vld [vmem:[#allocation2 + $0x2] sm:$0xff]  ;;  %v12876_v5 = vld [vmem:[#allocation2 + $0xa] sm:$0xff]  ;;  %vm12044_vm8 = vmmov 0  }
 0x104   :  { %v655_v28 = vmul.f32 %v12032_v40, %v11986_v62  ;;  %v11988_v15 = vpop.eup %11987  ;;  %11995 = vrcp.f32 %v581_v0  ;;  %v528_v21 = vsel %vm526_vm3, %v527_v37, %v525_v17  ;;  %v12878_v37 = vld [vmem:[#allocation2 + $0x1c] sm:$0xff]  ;;  %v12882_v62 = vld [vmem:[#allocation2 + $0x2c] sm:$0xff]  ;;  %v12884_v0 = vld [vmem:[#allocation2 + $0x34] sm:$0xff]  ;;  %vm8900_vm9 = vcmask 719872  }
 0x105   :  { %v537_v58 = vmul.f32 %v11988_v15, %v12784_v20  ;;  %11997 = vrcp.f32 %v584_v33  ;;  %v583_v23 = vmax.f32 %v528_v21, 1e-12  ;;  %v12886_v63 = vld [vmem:[#allocation2 + $0x3c] sm:$0xff]  ;;  %v12888_v3 = vld [vmem:[#allocation2 + $0x44] sm:$0xff]  ;;  %v12890_v4 = vld [vmem:[#allocation2 + $0x4c] sm:$0xff] }
 0x106   :  { %v11990_v11 = vpop.eup %11989  ;;  %710 = vst [vmem:[#allocation2 + $0x120] sm:$0xff] %v655_v28  ;;  %v833_v24 = vld [vmem:[#allocation2 + $0x10b] sm:$0xff]  ;;  %v834_v27 = vld [vmem:[#allocation2 + $0x113] sm:$0xff]  ;;  %v12894_v28 = vld [vmem:[#allocation2 + $0x5c] sm:$0xff] }
 0x107   :  { %v661_v22 = vmul.f32 %v12033_v57, %v11990_v11  ;;  %v539_v7 = vsel %vm538_vm4, %v12784_v20, %v537_v58  ;;  %11999 = vrcp.f32 %v583_v23  ;;  %v859_v20 = vpack.c.bf16 %v833_v24, %v832_v32  ;;  %v12896_v6 = vld [vmem:[#allocation2 + $0x64] sm:$0xff]  ;;  %v12898_v2 = vld [vmem:[#allocation2 + $0x6c] sm:$0xff]  ;;  %v12900_v15 = vld [vmem:[#allocation2 + $0x74] sm:$0xff] }
 0x108   :  { %v11992_v52 = vpop.eup %11991  ;;  %v542_v18 = vsel %vm540_vm5, %v541_v42, %v539_v7  ;;  %v12902_v33 = vld [vmem:[#allocation2 + $0x7c] sm:$0xff]  ;;  %v12904_v17 = vld [vmem:[#allocation2 + $0x84] sm:$0xff]  ;;  %v12906_v42 = vld [vmem:[#allocation2 + $0x8c] sm:$0xff] }
 0x109   :  { %713 = vst [vmem:[#allocation2 + $0x138] sm:$0xff] %v661_v22  ;;  %v659_v10 = vmul.f32 %v12034_v25, %v11992_v52  ;;  %v585_v29 = vmax.f32 %v542_v18, 1e-12  ;;  %v12908_v11 = vld [vmem:[#allocation2 + $0x94] sm:$0xff]  ;;  %v12910_v21 = vld [vmem:[#allocation2 + $0x9c] sm:$0xff]  ;;  %v12912_v58 = vld [vmem:[#allocation2 + $0xa4] sm:$0xff] }
 0x10a   :  { %9870 = vmatmul.mubr.bf16.gmra.mrb[28].mxu0 %v858_v31  ;;  %v12914_v57 = vld [vmem:[#allocation2 + $0xac] sm:$0xff]  ;;  %v12916_v22 = vld [vmem:[#allocation2 + $0xb4] sm:$0xff]  ;;  %v12918_v23 = vld [vmem:[#allocation2 + $0xbc] sm:$0xff] }
 0x10b   :  { %v11994_v14 = vpop.eup %11993  ;;  %712 = vst [vmem:[#allocation2 + $0x130] sm:$0xff] %v659_v10  ;;  %12001 = vrcp.f32 %v585_v29  ;;  %9873 = vmatprep.mubr.bf16.mxu0 %v859_v20  ;;  %v12920_v7 = vld [vmem:[#allocation2 + $0xc4] sm:$0xff]  ;;  %v12922_v41 = vld [vmem:[#allocation2 + $0xcc] sm:$0xff]  ;;  %v12924_v52 = vld [vmem:[#allocation2 + $0xd4] sm:$0xff] }
 0x10c   :  { %v665_v34 = vmul.f32 %v12035_v43, %v11994_v14  ;;  %v12926_v18 = vld [vmem:[#allocation2 + $0xdc] sm:$0xff]  ;;  %v12928_v24 = vld [vmem:[#allocation2 + $0xe4] sm:$0xff]  ;;  %v12930_v25 = vld [vmem:[#allocation2 + $0xec] sm:$0xff]  ;;  %v762_v14 = vpack.c.bf16 %v12876_v5, %v12874_v60 }
 0x10d   :  { %v835_v38 = vld [vmem:[#allocation2 + $0x11b] sm:$0xff]  ;;  %v836_v46 = vld [vmem:[#allocation2 + $0x123] sm:$0xff]  ;;  %v12938_v31 = vld [vmem:[#allocation2 + $0x10c] sm:$0xff] }
 0x10e   :  { %v11996_v35 = vpop.eup %11995  ;;  %715 = vst [vmem:[#allocation2 + $0x148] sm:$0xff] %v665_v34  ;;  %v860_v45 = vpack.c.bf16 %v835_v38, %v834_v27  ;;  %v12932_v10 = vld [vmem:[#allocation2 + $0xf4] sm:$0xff]  ;;  %v12934_v29 = vld [vmem:[#allocation2 + $0xfc] sm:$0xff]  ;;  %v12936_v30 = vld [vmem:[#allocation2 + $0x104] sm:$0xff]  ;;  %v2956_v38 = vpack.c.bf16 %v12880_v61, %v12878_v37 }
 0x10f   :  { %v663_v49 = vmul.f32 %v12036_v8, %v11996_v35  ;;  %v11998_v9 = vpop.eup %11997  ;;  %v12942_v20 = vld [vmem:[#allocation2 + $0x114] sm:$0xff]  ;;  %v12944_v43 = vld [vmem:[#allocation2 + $0x11c] sm:$0xff]  ;;  %v12946_v34 = vld [vmem:[#allocation2 + $0x124] sm:$0xff] }
 0x110   :  { %v669_v26 = vmul.f32 %v12037_v44, %v11998_v9  ;;  %v2957_v9 = vpack.c.bf16 %v12884_v0, %v12882_v62  ;;  %v2958_v44 = vpack.c.bf16 %v12888_v3, %v12886_v63  ;;  %v11705_v60 = vld [vmem:[%s15545_s3 + $0x90] sm:$0xff]   ;;  %v726_v5 = vld [vmem:[#allocation2 + $0x3a] sm:$0xff] }
 0x111   :  { %714 = vst [vmem:[#allocation2 + $0x140] sm:$0xff] %v663_v49  ;;  %v12000_v54 = vpop.eup %11999 }
 0x112   :  { %v837_v47 = vld [vmem:[#allocation2 + $0x12b] sm:$0xff]  ;;  %717 = vst [vmem:[#allocation2 + $0x158] sm:$0xff] %v669_v26  ;;  %v667_v50 = vmul.f32 %v12038_v48, %v12000_v54  ;;  %9874 = vmatmul.mubr.bf16.gmra.mrb[32].mxu0 %v860_v45  ;;  %v838_v36 = vld [vmem:[#allocation2 + $0x133] sm:$0xff]  ;;  %v2959_v26 = vpack.c.bf16 %v12892_v1, %v12890_v4 }
 0x113   :  { %v861_v39 = vpack.c.bf16 %v837_v47, %v836_v46  ;;  %v12948_v35 = vld [vmem:[#allocation2 + $0x12c] sm:$0xff]  ;;  %v12950_v8 = vld [vmem:[#allocation2 + $0x134] sm:$0xff]  ;;  %v2960_v46 = vpack.c.bf16 %v12896_v6, %v12894_v28 }
 0x114   :  { %716 = vst [vmem:[#allocation2 + $0x150] sm:$0xff] %v667_v50  ;;  %v745_v50 = vld [vmem:[#allocation2 + $0xd2] sm:$0xff] }
 0x115   :  { %v12002_v51 = vpop.eup %12001  ;;  %9877 = vmatprep.mubr.bf16.mxu0 %v861_v39  ;;  %v748_v39 = vld [vmem:[#allocation2 + $0xea] sm:$0xff] }
 0x116   :  { %v671_v12 = vmul.f32 %v12039_v16, %v12002_v51  ;;  %v746_v51 = vld [vmem:[#allocation2 + $0xda] sm:$0xff] }
 0x117   :  { %v775_v48 = vpack.c.bf16 %v746_v51, %v745_v50 }
 0x118   :  { %718 = vst [vmem:[#allocation2 + $0x160] sm:$0xff] %v671_v12  ;;  %v839_v55 = vld [vmem:[#allocation2 + $0x13b] sm:$0xff]  ;;  %v840_v19 = vld [vmem:[#allocation2 + $0x143] sm:$0xff]  ;;  %v729_v12 = vld [vmem:[#allocation2 + $0x52] sm:$0xff] }
 0x119   :  { %v862_v13 = vpack.c.bf16 %v839_v55, %v838_v36  ;;  %v12952_v49 = vld [vmem:[#allocation2 + $0x13c] sm:$0xff]  ;;  %v12962_v27 = vld [vmem:[#allocation2 + $0x144] sm:$0xff] }
 0x11a   :  { %v724_v36 = vld [vmem:[#allocation2 + $0x2a] sm:$0xff]  ;;  %v723_v55 = vld [vmem:[#allocation2 + $0x22] sm:$0xff]  ;;  %v758_v50 = vld [vmem:[#allocation2 + $0x13a] sm:$0xff] }
 0x11b   :  { %v841_v59 = vld [vmem:[#allocation2 + $0x14b] sm:$0xff]  ;;  %9878 = vmatmul.mubr.bf16.gmra.mrb[36].mxu0 %v862_v13  ;;  %v842_v40 = vld [vmem:[#allocation2 + $0x153] sm:$0xff] }
 0x11c   :  { %v863_v53 = vpack.c.bf16 %v841_v59, %v840_v19  ;;  %v864_v32 = vpack.c.bf16 %v842_v40, %v842_v40  ;;  %v12964_v54 = vld [vmem:[#allocation2 + $0x14c] sm:$0xff]  ;;  %v12966_v45 = vld [vmem:[#allocation2 + $0x154] sm:$0xff]  ;;  %v764_v19 = vpack.c.bf16 %v724_v36, %v723_v55 }
 0x11d   :  { %v721_v40 = vld [vmem:[#allocation2 + $0x12] sm:$0xff] }
 0x11e   :  { %9881 = vmatprep.mubr.bf16.mxu0 %v863_v53  ;;  %v728_v53 = vld [vmem:[#allocation2 + $0x4a] sm:$0xff]  ;;  %v725_v59 = vld [vmem:[#allocation2 + $0x32] sm:$0xff] }
 0x11f   :  { %v11706_v55 = vld [vmem:[%s15545_s3 + $0x98] sm:$0xff]  }
 0x123   :  { %9882 = vmatmul.mubr.bf16.gmra.mrb[40].mxu0 %v864_v32  ;;  %v722_v32 = vld [vmem:[#allocation2 + $0x1a] sm:$0xff] }
 0x124   :  { %9901 = vmatprep.mubr.bf16.mxu0 %v762_v14  ;;  %v763_v13 = vpack.c.bf16 %v722_v32, %v721_v40  ;;  %v11704_v14 = vld [vmem:[%s15545_s3 + $0x88] sm:$0xff]   ;;  %v765_v40 = vpack.c.bf16 %v726_v5, %v725_v59 }
 0x125   :  { %v727_v32 = vld [vmem:[#allocation2 + $0x42] sm:$0xff] }
 0x126   :  { %v766_v36 = vpack.c.bf16 %v728_v53, %v727_v32  ;;  %v731_v5 = vld [vmem:[#allocation2 + $0x62] sm:$0xff]  ;;  %v736_v32 = vld [vmem:[#allocation2 + $0x8a] sm:$0xff] }
 0x12b   :  { %9902 = vmatmul.mubr.bf16.vlgmr.msra.gmra.mrb[0].mxu0 %v763_v13  ;;  %v730_v13 = vld [vmem:[#allocation2 + $0x5a] sm:$0xff] }
 0x12c   :  { %9905 = vmatprep.mubr.bf16.mxu0 %v764_v19  ;;  %9946 = vmatpush3.bf16.msra.mxu0 %v12717_v56  ;;  %v11707_v56 = vld [vmem:[%s15545_s3 + $0xa0] sm:$0xff]   ;;  %v732_v19 = vld [vmem:[#allocation2 + $0x6a] sm:$0xff]  ;;  %v767_v59 = vpack.c.bf16 %v730_v13, %v729_v12  ;;  %v11710_v13 = vld [vmem:[%s15545_s3 + $0xb8] sm:$0xff]  }
 0x12d   :  { %9947 = vmatprep.subr.bf16.mxu0 %v11704_v14  ;;  %v768_v53 = vpack.c.bf16 %v732_v19, %v731_v5  ;;  %v740_v5 = vld [vmem:[#allocation2 + $0xaa] sm:$0xff] }
 0x130   :  { %9948 = vmatpush3.bf16.msra.mxu0 %v11704_v14  ;;  %v11708_v14 = vld [vmem:[%s15545_s3 + $0xa8] sm:$0xff]  }
 0x131   :  { %9949 = vmatprep.subr.bf16.mxu0 %v11705_v60 }
 0x133   :  { %9906 = vmatmul.mubr.bf16.gmra.mrb[4].mxu0 %v765_v40  ;;  %v734_v40 = vld [vmem:[#allocation2 + $0x7a] sm:$0xff] }
 0x134   :  { %9909 = vmatprep.mubr.bf16.mxu0 %v766_v36  ;;  %9950 = vmatpush3.bf16.msra.mxu0 %v11705_v60  ;;  %v11709_v60 = vld [vmem:[%s15545_s3 + $0xb0] sm:$0xff]  }
 0x135   :  { %9951 = vmatprep.subr.bf16.mxu0 %v11706_v55  ;;  %v733_v36 = vld [vmem:[#allocation2 + $0x72] sm:$0xff] }
 0x136   :  { %v769_v12 = vpack.c.bf16 %v734_v40, %v733_v36  ;;  %v739_v40 = vld [vmem:[#allocation2 + $0xa2] sm:$0xff] }
 0x137   :  { %v772_v36 = vpack.c.bf16 %v740_v5, %v739_v40  ;;  %v752_v5 = vld [vmem:[#allocation2 + $0x10a] sm:$0xff] }
 0x138   :  { %9952 = vmatpush3.bf16.msra.mxu0 %v11706_v55  ;;  %v735_v55 = vld [vmem:[#allocation2 + $0x82] sm:$0xff] }
 0x139   :  { %9953 = vmatprep.subr.bf16.mxu0 %v11707_v56  ;;  %v770_v19 = vpack.c.bf16 %v736_v32, %v735_v55  ;;  %v742_v32 = vld [vmem:[#allocation2 + $0xba] sm:$0xff] }
 0x13b   :  { %9910 = vmatmul.mubr.bf16.gmra.mrb[8].mxu0 %v767_v59  ;;  %v738_v59 = vld [vmem:[#allocation2 + $0x9a] sm:$0xff] }
 0x13c   :  { %9913 = vmatprep.mubr.bf16.mxu0 %v768_v53  ;;  %9954 = vmatpush3.bf16.msra.mxu0 %v11707_v56  ;;  %v13025_v56 = vld [vmem:[%s15545_s3 + $0xc0] sm:$0xff]  }
 0x13d   :  { %9955 = vmatprep.subr.bf16.mxu0 %v11708_v14 }
 0x140   :  { %9956 = vmatpush3.bf16.msra.mxu0 %v11708_v14  ;;  %v737_v14 = vld [vmem:[#allocation2 + $0x92] sm:$0xff] }
 0x141   :  { %9957 = vmatprep.subr.bf16.mxu0 %v11709_v60  ;;  %v771_v53 = vpack.c.bf16 %v738_v59, %v737_v14  ;;  %v750_v14 = vld [vmem:[#allocation2 + $0xfa] sm:$0xff] }
 0x143   :  { %9914 = vmatmul.mubr.bf16.gmra.mrb[12].mxu0 %v769_v12  ;;  %v744_v12 = vld [vmem:[#allocation2 + $0xca] sm:$0xff] }
 0x144   :  { %9917 = vmatprep.mubr.bf16.mxu0 %v770_v19  ;;  %9958 = vmatpush3.bf16.msra.mxu0 %v11709_v60  ;;  %v741_v60 = vld [vmem:[#allocation2 + $0xb2] sm:$0xff]  ;;  %v743_v19 = vld [vmem:[#allocation2 + $0xc2] sm:$0xff] }
 0x145   :  { %9959 = vmatprep.subr.bf16.mxu0 %v11710_v13  ;;  %v773_v55 = vpack.c.bf16 %v742_v32, %v741_v60  ;;  %v774_v16 = vpack.c.bf16 %v744_v12, %v743_v19  ;;  %v754_v32 = vld [vmem:[#allocation2 + $0x11a] sm:$0xff]  ;;  %v756_v12 = vld [vmem:[#allocation2 + $0x12a] sm:$0xff]  ;;  %v753_v60 = vld [vmem:[#allocation2 + $0x112] sm:$0xff] }
 0x148   :  { %9960 = vmatpush3.bf16.msra.mxu0 %v11710_v13  ;;  %v747_v13 = vld [vmem:[#allocation2 + $0xe2] sm:$0xff] }
 0x149   :  { %10005 = vmatprep.subr.bf16.mxu0 %v13025_v56  ;;  %v776_v59 = vpack.c.bf16 %v748_v39, %v747_v13  ;;  %v760_v39 = vld [vmem:[#allocation2 + $0x14a] sm:$0xff]  ;;  %v759_v13 = vld [vmem:[#allocation2 + $0x142] sm:$0xff] }
 0x14b   :  { %9918 = vmatmul.mubr.bf16.gmra.mrb[16].mxu0 %v771_v53  ;;  %v749_v53 = vld [vmem:[#allocation2 + $0xf2] sm:$0xff] }
 0x14c   :  { %9921 = vmatprep.mubr.bf16.mxu0 %v772_v36  ;;  %v777_v40 = vpack.c.bf16 %v750_v14, %v749_v53  ;;  %v751_v36 = vld [vmem:[#allocation2 + $0x102] sm:$0xff]  ;;  %v761_v14 = vld [vmem:[#allocation2 + $0x152] sm:$0xff] }
 0x14d   :  { %v778_v47 = vpack.c.bf16 %v752_v5, %v751_v36  ;;  %v1393_v5 = vld [vmem:[#allocation2 + $0x4] sm:$0xff]  ;;  %v1394_v53 = vld [vmem:[#allocation2 + $0xc] sm:$0xff]  ;;  %v1395_v36 = vld [vmem:[#allocation2 + $0x14] sm:$0xff] }
 0x153   :  { %9922 = vmatmul.mubr.bf16.gmra.mrb[20].mxu0 %v773_v55  ;;  %v755_v55 = vld [vmem:[#allocation2 + $0x122] sm:$0xff] }
 0x154   :  { %9925 = vmatprep.mubr.bf16.mxu0 %v774_v16  ;;  %v779_v16 = vpack.c.bf16 %v754_v32, %v753_v60  ;;  %v780_v19 = vpack.c.bf16 %v756_v12, %v755_v55  ;;  %v1437_v32 = vpack.c.bf16 %v12878_v37, %v1395_v36  ;;  %v11712_v12 = vld [vmem:[%s15545_s3 + $0xc8] sm:$0xff]   ;;  %v1438_v60 = vpack.c.bf16 %v12882_v62, %v12880_v61  ;;  %v11746_v37 = vld [vmem:[%s15545_s3 + $0x1d8] sm:$0xff]   ;;  %v11747_v61 = vld [vmem:[%s15545_s3 + $0x1e0] sm:$0xff]  }
 0x155   :  { %v1439_v55 = vpack.c.bf16 %v12886_v63, %v12884_v0  ;;  %v1447_v36 = vpack.c.bf16 %v12918_v23, %v12916_v22  ;;  %v11748_v62 = vld [vmem:[%s15545_s3 + $0x1e8] sm:$0xff]   ;;  %v15692_v0 = vpack.c.bf16 %v12900_v15, %v12898_v2  ;;  %v15693_v63 = vpack.c.bf16 %v12904_v17, %v12902_v33 }
 0x15b   :  { %9926 = vmatmul.mubr.bf16.gmra.mrb[24].mxu0 %v775_v48  ;;  %v757_v48 = vld [vmem:[#allocation2 + $0x132] sm:$0xff] }
 0x15c   :  { %9929 = vmatprep.mubr.bf16.mxu0 %v776_v59  ;;  %v781_v51 = vpack.c.bf16 %v758_v50, %v757_v48  ;;  %v782_v59 = vpack.c.bf16 %v760_v39, %v759_v13  ;;  %v1440_v50 = vpack.c.bf16 %v12890_v4, %v12888_v3  ;;  %v1441_v39 = vpack.c.bf16 %v12894_v28, %v12892_v1  ;;  %v11716_v48 = vld [vmem:[%s15545_s3 + $0xe8] sm:$0xff]   ;;  %v11717_v13 = vld [vmem:[%s15545_s3 + $0xf0] sm:$0xff]   ;;  %v27_v1 = vld [vmem:[%s15546_s1] sm:$0xff] }
 0x15d   :  { %v11749_v3 = vld [vmem:[%s15545_s3 + $0x1f0] sm:$0xff]   ;;  %v12042_v4 = vmov 0   ;;  %v11750_v28 = vld [vmem:[%s15545_s3 + $0x1f8] sm:$0xff]  }
 0x15e   :  { %11685 = vset.pattern.permute.xlu1 %v12042_v4  ;;  %11686 = vset.pattern.permute.xlu0 %v12042_v4  ;;  %v11754_v4 = vld [vmem:[%s15545_s3 + $0x218] sm:$0xff]  }
 0x15f   :  { %4055 = vperm.xlu1 %11685, %v27_v1  }
 0x163   :  { %9930 = vmatmul.mubr.bf16.gmra.mrb[28].mxu0 %v777_v40  ;;  %v1436_v40 = vpack.c.bf16 %v1394_v53, %v1393_v5  ;;  %v1444_v5 = vpack.c.bf16 %v12906_v42, %v12904_v17  ;;  %v11719_v53 = vld [vmem:[%s15545_s3 + $0x100] sm:$0xff]   ;;  %v30_v17 = vld [vmem:[%s15546_s1 + $0x18] sm:$0xff] }
 0x164   :  { %9933 = vmatprep.mubr.bf16.mxu0 %v778_v47  ;;  %v783_v47 = vpack.c.bf16 %v761_v14, %v761_v14  ;;  %v11718_v14 = vld [vmem:[%s15545_s3 + $0xf8] sm:$0xff]  }
 0x16b   :  { %9934 = vmatmul.mubr.bf16.gmra.mrb[32].mxu0 %v779_v16  ;;  %v11713_v16 = vld [vmem:[%s15545_s3 + $0xd0] sm:$0xff]  }
 0x16c   :  { %9937 = vmatprep.mubr.bf16.mxu0 %v780_v19  ;;  %v11714_v19 = vld [vmem:[%s15545_s3 + $0xd8] sm:$0xff]  }
 0x173   :  { %9938 = vmatmul.mubr.bf16.gmra.mrb[36].mxu0 %v781_v51  ;;  %v1442_v51 = vpack.c.bf16 %v12898_v2, %v12896_v6  ;;  %v15694_v6 = vpack.c.bf16 %v12908_v11, %v12906_v42  ;;  %v15695_v2 = vpack.c.bf16 %v12912_v58, %v12910_v21  ;;  %v15696_v42 = vpack.c.bf16 %v12916_v22, %v12914_v57  ;;  %v33_v22 = vld [vmem:[%s15546_s1 + $0x30] sm:$0xff] }
 0x174   :  { %9941 = vmatprep.mubr.bf16.mxu0 %v782_v59  ;;  %v1443_v59 = vpack.c.bf16 %v12902_v33, %v12900_v15  ;;  %v29_v15 = vld [vmem:[%s15546_s1 + $0x10] sm:$0xff]  ;;  %v13231_v33 = vld [vmem:[%s15545_s3 + $0x200] sm:$0xff]  }
 0x175   :  { %4065 = vperm.xlu1 %11685, %v29_v15   ;;  %v3303_v15 = vld [vmem:[#allocation2 + $0x6d] sm:$0xff] }
 0x179   :  { %4070 = vperm.xlu1 %11685, %v30_v17   ;;  %v60_v17 = vld [vmem:[%s15546_s1 + $0x108] sm:$0xff] }
 0x17b   :  { %9942 = vmatmul.mubr.bf16.gmra.mrb[40].mxu0 %v783_v47  ;;  %v1445_v47 = vpack.c.bf16 %v12910_v21, %v12908_v11  ;;  %v15697_v11 = vpack.c.bf16 %v12920_v7, %v12918_v23  ;;  %v31_v21 = vld [vmem:[%s15546_s1 + $0x20] sm:$0xff]  ;;  %v34_v23 = vld [vmem:[%s15546_s1 + $0x38] sm:$0xff] }
 0x17c   :  { %9961 = vmatprep.mubr.bf16.mxu0 %v1436_v40  ;;  %v1446_v40 = vpack.c.bf16 %v12914_v57, %v12912_v58  ;;  %v32_v58 = vld [vmem:[%s15546_s1 + $0x28] sm:$0xff]  ;;  %v15699_v57 = vpack.c.bf16 %v12928_v24, %v12926_v18 }
 0x17d   :  { %4075 = vperm.xlu1 %11685, %v31_v21   ;;  %v53_v21 = vld [vmem:[%s15546_s1 + $0xd0] sm:$0xff] }
 0x181   :  { %4080 = vperm.xlu1 %11685, %v32_v58  }
 0x183   :  { %9962 = vmatmul.mubr.bf16.vlgmr.msra.gmra.mrb[0].mxu0 %v1437_v32  ;;  %v1448_v32 = vpack.c.bf16 %v12922_v41, %v12920_v7  ;;  %v15700_v7 = vpack.c.bf16 %v12932_v10, %v12930_v25 }
 0x184   :  { %9965 = vmatprep.mubr.bf16.mxu0 %v1438_v60  ;;  %10006 = vmatpush3.bf16.msra.mxu0 %v13025_v56  ;;  %v11715_v56 = vld [vmem:[%s15545_s3 + $0xe0] sm:$0xff]   ;;  %v1450_v60 = vpack.c.bf16 %v12930_v25, %v12928_v24  ;;  %v15702_v24 = vpack.c.bf16 %v12942_v20, %v12938_v31  ;;  %v15703_v25 = vpack.c.bf16 %v12946_v34, %v12944_v43 }
 0x185   :  { %10007 = vmatprep.subr.bf16.mxu0 %v11712_v12  ;;  %4085 = vperm.xlu1 %11685, %v33_v22   ;;  %v62_v22 = vld [vmem:[%s15546_s1 + $0x118] sm:$0xff] }
 0x188   :  { %10008 = vmatpush3.bf16.msra.mxu0 %v11712_v12  ;;  %v1449_v12 = vpack.c.bf16 %v12926_v18, %v12924_v52  ;;  %v36_v18 = vld [vmem:[%s15546_s1 + $0x48] sm:$0xff] }
 0x189   :  { %10009 = vmatprep.subr.bf16.mxu0 %v11713_v16  ;;  %4090 = vperm.xlu1 %11685, %v34_v23   ;;  %v55_v23 = vld [vmem:[%s15546_s1 + $0xe0] sm:$0xff] }
 0x18b   :  { %9966 = vmatmul.mubr.bf16.gmra.mrb[4].mxu0 %v1439_v55  ;;  %v1452_v55 = vpack.c.bf16 %v12938_v31, %v12936_v30  ;;  %v15705_v31 = vpack.c.bf16 %v12962_v27, %v12952_v49 }
 0x18c   :  { %9969 = vmatprep.mubr.bf16.mxu0 %v1440_v50  ;;  %10010 = vmatpush3.bf16.msra.mxu0 %v11713_v16  ;;  %v1451_v16 = vpack.c.bf16 %v12934_v29, %v12932_v10  ;;  %v1454_v50 = vpack.c.bf16 %v12948_v35, %v12946_v34  ;;  %v38_v10 = vld [vmem:[%s15546_s1 + $0x58] sm:$0xff]  ;;  %v44_v34 = vld [vmem:[%s15546_s1 + $0x88] sm:$0xff] }
 0x18d   :  { %10011 = vmatprep.subr.bf16.mxu0 %v11714_v19 }
 0x190   :  { %10012 = vmatpush3.bf16.msra.mxu0 %v11714_v19  ;;  %v1453_v19 = vpack.c.bf16 %v12944_v43, %v12942_v20  ;;  %v42_v20 = vld [vmem:[%s15546_s1 + $0x78] sm:$0xff]  ;;  %v28_v43 = vld [vmem:[%s15546_s1 + $0x8] sm:$0xff] }
 0x191   :  { %10013 = vmatprep.subr.bf16.mxu0 %v11715_v56  ;;  %4060 = vperm.xlu0 %11686, %v28_v43   ;;  %v59_v43 = vld [vmem:[%s15546_s1 + $0x100] sm:$0xff] }
 0x193   :  { %9970 = vmatmul.mubr.bf16.gmra.mrb[8].mxu0 %v1441_v39  ;;  %v1456_v39 = vpack.c.bf16 %v12964_v54, %v12962_v27  ;;  %v46_v27 = vld [vmem:[%s15546_s1 + $0x98] sm:$0xff] }
 0x194   :  { %9973 = vmatprep.mubr.bf16.mxu0 %v1442_v51  ;;  %10014 = vmatpush3.bf16.msra.mxu0 %v11715_v56  ;;  %v1455_v56 = vpack.c.bf16 %v12952_v49, %v12950_v8  ;;  %v1457_v51 = vpack.c.bf16 %v12966_v45, %v12966_v45  ;;  %v2954_v49 = vld [vmem:[#allocation2 + $0x164] sm:$0xff] }
 0x195   :  { %10015 = vmatprep.subr.bf16.mxu0 %v11716_v48 }
 0x198   :  { %10016 = vmatpush3.bf16.msra.mxu0 %v11716_v48  ;;  %v1774_v48 = vld [vmem:[#allocation2 + $0x17] sm:$0xff] }
 0x199   :  { %10017 = vmatprep.subr.bf16.mxu0 %v11717_v13 }
 0x19b   :  { %9974 = vmatmul.mubr.bf16.gmra.mrb[12].mxu0 %v1443_v59 }
 0x19c   :  { %9977 = vmatprep.mubr.bf16.mxu0 %v1444_v5  ;;  %10018 = vmatpush3.bf16.msra.mxu0 %v11717_v13  ;;  %v1773_v13 = vld [vmem:[#allocation2 + $0xf] sm:$0xff]  ;;  %v1776_v5 = vld [vmem:[#allocation2 + $0x27] sm:$0xff] }
 0x19d   :  { %10019 = vmatprep.subr.bf16.mxu0 %v11718_v14  ;;  %v1816_v59 = vpack.c.bf16 %v1774_v48, %v1773_v13  ;;  %v1784_v13 = vld [vmem:[#allocation2 + $0x67] sm:$0xff] }
 0x1a0   :  { %10020 = vmatpush3.bf16.msra.mxu0 %v11718_v14  ;;  %v1775_v14 = vld [vmem:[#allocation2 + $0x1f] sm:$0xff] }
 0x1a1   :  { %10065 = vmatprep.subr.bf16.mxu0 %v11719_v53 }
 0x1a3   :  { %9978 = vmatmul.mubr.bf16.gmra.mrb[16].mxu0 %v1445_v47  ;;  %v1777_v47 = vld [vmem:[#allocation2 + $0x2f] sm:$0xff] }
 0x1a4   :  { %9981 = vmatprep.mubr.bf16.mxu0 %v1446_v40  ;;  %v1778_v40 = vld [vmem:[#allocation2 + $0x37] sm:$0xff] }
 0x1ab   :  { %9982 = vmatmul.mubr.bf16.gmra.mrb[20].mxu0 %v1447_v36  ;;  %v1817_v36 = vpack.c.bf16 %v1776_v5, %v1775_v14  ;;  %v1786_v14 = vld [vmem:[#allocation2 + $0x77] sm:$0xff] }
 0x1ac   :  { %9985 = vmatprep.mubr.bf16.mxu0 %v1448_v32  ;;  %v11720_v32 = vld [vmem:[%s15545_s3 + $0x108] sm:$0xff]  }
 0x1b3   :  { %9986 = vmatmul.mubr.bf16.gmra.mrb[24].mxu0 %v1449_v12  ;;  %v1818_v12 = vpack.c.bf16 %v1778_v40, %v1777_v47  ;;  %v11724_v47 = vld [vmem:[%s15545_s3 + $0x128] sm:$0xff]  }
 0x1b4   :  { %9989 = vmatprep.mubr.bf16.mxu0 %v1450_v60  ;;  %v11721_v60 = vld [vmem:[%s15545_s3 + $0x110] sm:$0xff]  }
 0x1bb   :  { %9990 = vmatmul.mubr.bf16.gmra.mrb[28].mxu0 %v1451_v16  ;;  %v1779_v16 = vld [vmem:[#allocation2 + $0x3f] sm:$0xff] }
 0x1bc   :  { %9993 = vmatprep.mubr.bf16.mxu0 %v1452_v55  ;;  %v1780_v55 = vld [vmem:[#allocation2 + $0x47] sm:$0xff] }
 0x1c3   :  { %9994 = vmatmul.mubr.bf16.gmra.mrb[32].mxu0 %v1453_v19  ;;  %v1781_v19 = vld [vmem:[#allocation2 + $0x4f] sm:$0xff] }
 0x1c4   :  { %9997 = vmatprep.mubr.bf16.mxu0 %v1454_v50  ;;  %v1782_v50 = vld [vmem:[#allocation2 + $0x57] sm:$0xff] }
 0x1c5   :  { %v1820_v48 = vpack.c.bf16 %v1782_v50, %v1781_v19  ;;  %v11726_v19 = vld [vmem:[%s15545_s3 + $0x138] sm:$0xff]  }
 0x1cb   :  { %9998 = vmatmul.mubr.bf16.gmra.mrb[36].mxu0 %v1455_v56  ;;  %v1819_v56 = vpack.c.bf16 %v1780_v55, %v1779_v16  ;;  %v1790_v16 = vld [vmem:[#allocation2 + $0x97] sm:$0xff] }
 0x1cc   :  { %10001 = vmatprep.mubr.bf16.mxu0 %v1456_v39  ;;  %v11722_v39 = vld [vmem:[%s15545_s3 + $0x118] sm:$0xff]  }
 0x1d3   :  { %10002 = vmatmul.mubr.bf16.gmra.mrb[40].mxu0 %v1457_v51  ;;  %v1783_v51 = vld [vmem:[#allocation2 + $0x5f] sm:$0xff] }
 0x1d4   :  { %10021 = vmatprep.mubr.bf16.mxu0 %v1816_v59  ;;  %v1785_v59 = vld [vmem:[#allocation2 + $0x6f] sm:$0xff]  ;;  %v1821_v5 = vpack.c.bf16 %v1784_v13, %v1783_v51  ;;  %v1794_v51 = vld [vmem:[#allocation2 + $0xb7] sm:$0xff] }
 0x1d5   :  { %v1822_v40 = vpack.c.bf16 %v1786_v14, %v1785_v59  ;;  %v1795_v14 = vld [vmem:[#allocation2 + $0xbf] sm:$0xff] }
 0x1db   :  { %10022 = vmatmul.mubr.bf16.vlgmr.msra.gmra.mrb[0].mxu0 %v1817_v36  ;;  %v11725_v36 = vld [vmem:[%s15545_s3 + $0x130] sm:$0xff]  }
 0x1dc   :  { %10025 = vmatprep.mubr.bf16.mxu0 %v1818_v12  ;;  %10066 = vmatpush3.bf16.msra.mxu0 %v11719_v53  ;;  %v11723_v53 = vld [vmem:[%s15545_s3 + $0x120] sm:$0xff]  }
 0x1dd   :  { %10067 = vmatprep.subr.bf16.mxu0 %v11720_v32  ;;  %v1788_v12 = vld [vmem:[#allocation2 + $0x87] sm:$0xff] }
 0x1e0   :  { %10068 = vmatpush3.bf16.msra.mxu0 %v11720_v32  ;;  %v1787_v32 = vld [vmem:[#allocation2 + $0x7f] sm:$0xff] }
 0x1e1   :  { %10069 = vmatprep.subr.bf16.mxu0 %v11721_v60  ;;  %v1823_v55 = vpack.c.bf16 %v1788_v12, %v1787_v32  ;;  %v1799_v12 = vld [vmem:[#allocation2 + $0xdf] sm:$0xff] }
 0x1e3   :  { %10026 = vmatmul.mubr.bf16.gmra.mrb[4].mxu0 %v1819_v56  ;;  %v13118_v56 = vld [vmem:[%s15545_s3 + $0x140] sm:$0xff]  }
 0x1e4   :  { %10029 = vmatprep.mubr.bf16.mxu0 %v1820_v48  ;;  %10070 = vmatpush3.bf16.msra.mxu0 %v11721_v60  ;;  %v1789_v60 = vld [vmem:[#allocation2 + $0x8f] sm:$0xff]  ;;  %v1792_v48 = vld [vmem:[#allocation2 + $0xa7] sm:$0xff] }
 0x1e5   :  { %10071 = vmatprep.subr.bf16.mxu0 %v11722_v39  ;;  %v1824_v50 = vpack.c.bf16 %v1790_v16, %v1789_v60  ;;  %v1800_v60 = vld [vmem:[#allocation2 + $0xe7] sm:$0xff]  ;;  %v1801_v16 = vld [vmem:[#allocation2 + $0xef] sm:$0xff] }
 0x1e8   :  { %10072 = vmatpush3.bf16.msra.mxu0 %v11722_v39  ;;  %v1791_v39 = vld [vmem:[#allocation2 + $0x9f] sm:$0xff] }
 0x1e9   :  { %10073 = vmatprep.subr.bf16.mxu0 %v11723_v53  ;;  %v1825_v13 = vpack.c.bf16 %v1792_v48, %v1791_v39  ;;  %v1803_v39 = vld [vmem:[#allocation2 + $0xff] sm:$0xff]  ;;  %v1804_v48 = vld [vmem:[#allocation2 + $0x107] sm:$0xff] }
 0x1eb   :  { %10030 = vmatmul.mubr.bf16.gmra.mrb[8].mxu0 %v1821_v5  ;;  %v1796_v5 = vld [vmem:[#allocation2 + $0xc7] sm:$0xff] }
 0x1ec   :  { %10033 = vmatprep.mubr.bf16.mxu0 %v1822_v40  ;;  %10074 = vmatpush3.bf16.msra.mxu0 %v11723_v53  ;;  %v1793_v53 = vld [vmem:[#allocation2 + $0xaf] sm:$0xff]  ;;  %v1798_v40 = vld [vmem:[#allocation2 + $0xd7] sm:$0xff] }
 0x1ed   :  { %10075 = vmatprep.subr.bf16.mxu0 %v11724_v47  ;;  %v1826_v59 = vpack.c.bf16 %v1794_v51, %v1793_v53  ;;  %v1805_v53 = vld [vmem:[#allocation2 + $0x10f] sm:$0xff]  ;;  %v1806_v51 = vld [vmem:[#allocation2 + $0x117] sm:$0xff] }
 0x1f0   :  { %10076 = vmatpush3.bf16.msra.mxu0 %v11724_v47  ;;  %v1797_v47 = vld [vmem:[#allocation2 + $0xcf] sm:$0xff] }
 0x1f1   :  { %10077 = vmatprep.subr.bf16.mxu0 %v11725_v36  ;;  %v1828_v32 = vpack.c.bf16 %v1798_v40, %v1797_v47  ;;  %v1809_v47 = vld [vmem:[#allocation2 + $0x12f] sm:$0xff]  ;;  %v1810_v40 = vld [vmem:[#allocation2 + $0x137] sm:$0xff] }
 0x1f3   :  { %10034 = vmatmul.mubr.bf16.gmra.mrb[12].mxu0 %v1823_v55  ;;  %v1802_v55 = vld [vmem:[#allocation2 + $0xf7] sm:$0xff] }
 0x1f4   :  { %10037 = vmatprep.mubr.bf16.mxu0 %v1824_v50  ;;  %10078 = vmatpush3.bf16.msra.mxu0 %v11725_v36  ;;  %v1827_v36 = vpack.c.bf16 %v1796_v5, %v1795_v14  ;;  %v1829_v50 = vpack.c.bf16 %v1800_v60, %v1799_v12  ;;  %v1807_v14 = vld [vmem:[#allocation2 + $0x11f] sm:$0xff]  ;;  %v1808_v5 = vld [vmem:[#allocation2 + $0x127] sm:$0xff] }
 0x1f5   :  { %10079 = vmatprep.subr.bf16.mxu0 %v11726_v19  ;;  %v1811_v12 = vld [vmem:[#allocation2 + $0x13f] sm:$0xff]  ;;  %v1812_v60 = vld [vmem:[#allocation2 + $0x147] sm:$0xff] }
 0x1f8   :  { %10080 = vmatpush3.bf16.msra.mxu0 %v11726_v19  ;;  %v1830_v19 = vpack.c.bf16 %v1802_v55, %v1801_v16  ;;  %v1813_v16 = vld [vmem:[#allocation2 + $0x14f] sm:$0xff]  ;;  %v1814_v55 = vld [vmem:[#allocation2 + $0x157] sm:$0xff] }
 0x1f9   :  { %10125 = vmatprep.subr.bf16.mxu0 %v13118_v56 }
 0x1fb   :  { %10038 = vmatmul.mubr.bf16.gmra.mrb[16].mxu0 %v1825_v13  ;;  %v1831_v13 = vpack.c.bf16 %v1804_v48, %v1803_v39  ;;  %v1815_v39 = vld [vmem:[#allocation2 + $0x15f] sm:$0xff] }
 0x1fc   :  { %10041 = vmatprep.mubr.bf16.mxu0 %v1826_v59  ;;  %v1832_v59 = vpack.c.bf16 %v1806_v51, %v1805_v53  ;;  %v2154_v48 = vld [vmem:[#allocation2 + $0x18] sm:$0xff]  ;;  %v1837_v53 = vpack.c.bf16 %v1815_v39, %v1815_v39  ;;  %v2153_v51 = vld [vmem:[#allocation2 + $0x10] sm:$0xff] }
 0x1fd   :  { %v11730_v39 = vld [vmem:[%s15545_s3 + $0x158] sm:$0xff]  }
 0x203   :  { %10042 = vmatmul.mubr.bf16.gmra.mrb[20].mxu0 %v1827_v36  ;;  %v1833_v36 = vpack.c.bf16 %v1808_v5, %v1807_v14  ;;  %v2157_v14 = vld [vmem:[#allocation2 + $0x30] sm:$0xff]  ;;  %v2158_v5 = vld [vmem:[#allocation2 + $0x38] sm:$0xff] }
 0x204   :  { %10045 = vmatprep.mubr.bf16.mxu0 %v1828_v32  ;;  %v1834_v32 = vpack.c.bf16 %v1810_v40, %v1809_v47  ;;  %v2155_v47 = vld [vmem:[#allocation2 + $0x20] sm:$0xff] }
 0x20b   :  { %10046 = vmatmul.mubr.bf16.gmra.mrb[24].mxu0 %v1829_v50  ;;  %v1835_v50 = vpack.c.bf16 %v1812_v60, %v1811_v12  ;;  %v11729_v12 = vld [vmem:[%s15545_s3 + $0x150] sm:$0xff]   ;;  %v2159_v60 = vld [vmem:[#allocation2 + $0x40] sm:$0xff] }
 0x20c   :  { %10049 = vmatprep.mubr.bf16.mxu0 %v1830_v19  ;;  %v1836_v19 = vpack.c.bf16 %v1814_v55, %v1813_v16  ;;  %v2160_v16 = vld [vmem:[#allocation2 + $0x48] sm:$0xff]  ;;  %v2161_v55 = vld [vmem:[#allocation2 + $0x50] sm:$0xff] }
 0x213   :  { %10050 = vmatmul.mubr.bf16.gmra.mrb[28].mxu0 %v1831_v13  ;;  %v2196_v13 = vpack.c.bf16 %v2154_v48, %v2153_v51  ;;  %v2164_v51 = vld [vmem:[#allocation2 + $0x68] sm:$0xff] }
 0x214   :  { %10053 = vmatprep.mubr.bf16.mxu0 %v1832_v59  ;;  %v2156_v59 = vld [vmem:[#allocation2 + $0x28] sm:$0xff] }
 0x215   :  { %v2197_v40 = vpack.c.bf16 %v2156_v59, %v2155_v47  ;;  %v2166_v59 = vld [vmem:[#allocation2 + $0x78] sm:$0xff] }
 0x21b   :  { %10054 = vmatmul.mubr.bf16.gmra.mrb[32].mxu0 %v1833_v36  ;;  %v11728_v36 = vld [vmem:[%s15545_s3 + $0x148] sm:$0xff]  }
 0x21c   :  { %10057 = vmatprep.mubr.bf16.mxu0 %v1834_v32  ;;  %v2198_v32 = vpack.c.bf16 %v2158_v5, %v2157_v14  ;;  %v11732_v5 = vld [vmem:[%s15545_s3 + $0x168] sm:$0xff]  }
 0x223   :  { %10058 = vmatmul.mubr.bf16.gmra.mrb[36].mxu0 %v1835_v50  ;;  %v2162_v50 = vld [vmem:[#allocation2 + $0x58] sm:$0xff] }
 0x224   :  { %10061 = vmatprep.mubr.bf16.mxu0 %v1836_v19  ;;  %v2199_v19 = vpack.c.bf16 %v2160_v16, %v2159_v60  ;;  %v2200_v48 = vpack.c.bf16 %v2162_v50, %v2161_v55  ;;  %v2170_v60 = vld [vmem:[#allocation2 + $0x98] sm:$0xff] }
 0x225   :  { %v11734_v55 = vld [vmem:[%s15545_s3 + $0x178] sm:$0xff]  }
 0x22b   :  { %10062 = vmatmul.mubr.bf16.gmra.mrb[40].mxu0 %v1837_v53  ;;  %v2163_v53 = vld [vmem:[#allocation2 + $0x60] sm:$0xff] }
 0x22c   :  { %10081 = vmatprep.mubr.bf16.mxu0 %v2196_v13  ;;  %v2165_v13 = vld [vmem:[#allocation2 + $0x70] sm:$0xff]  ;;  %v2201_v14 = vpack.c.bf16 %v2164_v51, %v2163_v53  ;;  %v2174_v53 = vld [vmem:[#allocation2 + $0xb8] sm:$0xff] }
 0x22d   :  { %v2202_v47 = vpack.c.bf16 %v2166_v59, %v2165_v13  ;;  %v2175_v59 = vld [vmem:[#allocation2 + $0xc0] sm:$0xff] }
 0x233   :  { %10082 = vmatmul.mubr.bf16.vlgmr.msra.gmra.mrb[0].mxu0 %v2197_v40  ;;  %v11733_v40 = vld [vmem:[%s15545_s3 + $0x170] sm:$0xff]  }
 0x234   :  { %10085 = vmatprep.mubr.bf16.mxu0 %v2198_v32  ;;  %10126 = vmatpush3.bf16.msra.mxu0 %v13118_v56  ;;  %v11731_v56 = vld [vmem:[%s15545_s3 + $0x160] sm:$0xff]   ;;  %v2168_v32 = vld [vmem:[#allocation2 + $0x88] sm:$0xff] }
 0x235   :  { %10127 = vmatprep.subr.bf16.mxu0 %v11728_v36 }
 0x238   :  { %10128 = vmatpush3.bf16.msra.mxu0 %v11728_v36  ;;  %v2167_v36 = vld [vmem:[#allocation2 + $0x80] sm:$0xff] }
 0x239   :  { %10129 = vmatprep.subr.bf16.mxu0 %v11729_v12  ;;  %v2203_v16 = vpack.c.bf16 %v2168_v32, %v2167_v36  ;;  %v2179_v32 = vld [vmem:[#allocation2 + $0xe0] sm:$0xff] }
 0x23b   :  { %10086 = vmatmul.mubr.bf16.gmra.mrb[4].mxu0 %v2199_v19  ;;  %v13146_v19 = vld [vmem:[%s15545_s3 + $0x180] sm:$0xff]  }
 0x23c   :  { %10089 = vmatprep.mubr.bf16.mxu0 %v2200_v48  ;;  %10130 = vmatpush3.bf16.msra.mxu0 %v11729_v12  ;;  %v2169_v12 = vld [vmem:[#allocation2 + $0x90] sm:$0xff]  ;;  %v2172_v48 = vld [vmem:[#allocation2 + $0xa8] sm:$0xff] }
 0x23d   :  { %10131 = vmatprep.subr.bf16.mxu0 %v11730_v39  ;;  %v2204_v50 = vpack.c.bf16 %v2170_v60, %v2169_v12  ;;  %v2180_v12 = vld [vmem:[#allocation2 + $0xe8] sm:$0xff]  ;;  %v2181_v60 = vld [vmem:[#allocation2 + $0xf0] sm:$0xff] }
 0x240   :  { %10132 = vmatpush3.bf16.msra.mxu0 %v11730_v39  ;;  %v2171_v39 = vld [vmem:[#allocation2 + $0xa0] sm:$0xff] }
 0x241   :  { %10133 = vmatprep.subr.bf16.mxu0 %v11731_v56  ;;  %v2205_v51 = vpack.c.bf16 %v2172_v48, %v2171_v39  ;;  %v2183_v39 = vld [vmem:[#allocation2 + $0x100] sm:$0xff]  ;;  %v2184_v48 = vld [vmem:[#allocation2 + $0x108] sm:$0xff] }
 0x243   :  { %10090 = vmatmul.mubr.bf16.gmra.mrb[8].mxu0 %v2201_v14  ;;  %v2176_v14 = vld [vmem:[#allocation2 + $0xc8] sm:$0xff] }
 0x244   :  { %10093 = vmatprep.mubr.bf16.mxu0 %v2202_v47  ;;  %10134 = vmatpush3.bf16.msra.mxu0 %v11731_v56  ;;  %v2173_v56 = vld [vmem:[#allocation2 + $0xb0] sm:$0xff]  ;;  %v2178_v47 = vld [vmem:[#allocation2 + $0xd8] sm:$0xff] }
 0x245   :  { %10135 = vmatprep.subr.bf16.mxu0 %v11732_v5  ;;  %v2206_v13 = vpack.c.bf16 %v2174_v53, %v2173_v56  ;;  %v2185_v56 = vld [vmem:[#allocation2 + $0x110] sm:$0xff]  ;;  %v2186_v53 = vld [vmem:[#allocation2 + $0x118] sm:$0xff] }
 0x248   :  { %10136 = vmatpush3.bf16.msra.mxu0 %v11732_v5  ;;  %v2177_v5 = vld [vmem:[#allocation2 + $0xd0] sm:$0xff] }
 0x249   :  { %10137 = vmatprep.subr.bf16.mxu0 %v11733_v40  ;;  %v2208_v36 = vpack.c.bf16 %v2178_v47, %v2177_v5  ;;  %v2189_v5 = vld [vmem:[#allocation2 + $0x130] sm:$0xff]  ;;  %v2190_v47 = vld [vmem:[#allocation2 + $0x138] sm:$0xff] }
 0x24b   :  { %10094 = vmatmul.mubr.bf16.gmra.mrb[12].mxu0 %v2203_v16  ;;  %v2182_v16 = vld [vmem:[#allocation2 + $0xf8] sm:$0xff] }
 0x24c   :  { %10097 = vmatprep.mubr.bf16.mxu0 %v2204_v50  ;;  %10138 = vmatpush3.bf16.msra.mxu0 %v11733_v40  ;;  %v2207_v40 = vpack.c.bf16 %v2176_v14, %v2175_v59  ;;  %v2209_v50 = vpack.c.bf16 %v2180_v12, %v2179_v32  ;;  %v2187_v59 = vld [vmem:[#allocation2 + $0x120] sm:$0xff]  ;;  %v2188_v14 = vld [vmem:[#allocation2 + $0x128] sm:$0xff] }
 0x24d   :  { %10139 = vmatprep.subr.bf16.mxu0 %v11734_v55  ;;  %v2191_v32 = vld [vmem:[#allocation2 + $0x140] sm:$0xff]  ;;  %v2192_v12 = vld [vmem:[#allocation2 + $0x148] sm:$0xff] }
 0x250   :  { %10140 = vmatpush3.bf16.msra.mxu0 %v11734_v55  ;;  %v2210_v55 = vpack.c.bf16 %v2182_v16, %v2181_v60  ;;  %v2193_v60 = vld [vmem:[#allocation2 + $0x150] sm:$0xff]  ;;  %v2194_v16 = vld [vmem:[#allocation2 + $0x158] sm:$0xff] }
 0x251   :  { %10185 = vmatprep.subr.bf16.mxu0 %v13146_v19 }
 0x253   :  { %10098 = vmatmul.mubr.bf16.gmra.mrb[16].mxu0 %v2205_v51  ;;  %v2211_v51 = vpack.c.bf16 %v2184_v48, %v2183_v39  ;;  %v2195_v39 = vld [vmem:[#allocation2 + $0x160] sm:$0xff]  ;;  %v2533_v48 = vld [vmem:[#allocation2 + $0x11] sm:$0xff] }
 0x254   :  { %10101 = vmatprep.mubr.bf16.mxu0 %v2206_v13  ;;  %v2212_v13 = vpack.c.bf16 %v2186_v53, %v2185_v56  ;;  %v2534_v56 = vld [vmem:[#allocation2 + $0x19] sm:$0xff]  ;;  %v2217_v53 = vpack.c.bf16 %v2195_v39, %v2195_v39 }
 0x255   :  { %v11738_v39 = vld [vmem:[%s15545_s3 + $0x198] sm:$0xff]  }
 0x25b   :  { %10102 = vmatmul.mubr.bf16.gmra.mrb[20].mxu0 %v2207_v40  ;;  %v2213_v40 = vpack.c.bf16 %v2188_v14, %v2187_v59  ;;  %v2538_v59 = vld [vmem:[#allocation2 + $0x39] sm:$0xff]  ;;  %v2535_v14 = vld [vmem:[#allocation2 + $0x21] sm:$0xff] }
 0x25c   :  { %10105 = vmatprep.mubr.bf16.mxu0 %v2208_v36  ;;  %v2214_v36 = vpack.c.bf16 %v2190_v47, %v2189_v5  ;;  %v2537_v47 = vld [vmem:[#allocation2 + $0x31] sm:$0xff] }
 0x263   :  { %10106 = vmatmul.mubr.bf16.gmra.mrb[24].mxu0 %v2209_v50  ;;  %v2215_v50 = vpack.c.bf16 %v2192_v12, %v2191_v32  ;;  %v11737_v32 = vld [vmem:[%s15545_s3 + $0x190] sm:$0xff]  }
 0x264   :  { %10109 = vmatprep.mubr.bf16.mxu0 %v2210_v55  ;;  %v2216_v55 = vpack.c.bf16 %v2194_v16, %v2193_v60  ;;  %v2540_v12 = vld [vmem:[#allocation2 + $0x49] sm:$0xff]  ;;  %v2542_v60 = vld [vmem:[#allocation2 + $0x59] sm:$0xff]  ;;  %v2539_v16 = vld [vmem:[#allocation2 + $0x41] sm:$0xff] }
 0x26b   :  { %10110 = vmatmul.mubr.bf16.gmra.mrb[28].mxu0 %v2211_v51  ;;  %v2576_v51 = vpack.c.bf16 %v2534_v56, %v2533_v48  ;;  %v2544_v56 = vld [vmem:[#allocation2 + $0x69] sm:$0xff] }
 0x26c   :  { %10113 = vmatprep.mubr.bf16.mxu0 %v2212_v13  ;;  %v2536_v13 = vld [vmem:[#allocation2 + $0x29] sm:$0xff] }
 0x26d   :  { %v2577_v5 = vpack.c.bf16 %v2536_v13, %v2535_v14  ;;  %v11740_v14 = vld [vmem:[%s15545_s3 + $0x1a8] sm:$0xff]  }
 0x273   :  { %10114 = vmatmul.mubr.bf16.gmra.mrb[32].mxu0 %v2213_v40  ;;  %v11736_v40 = vld [vmem:[%s15545_s3 + $0x188] sm:$0xff]  }
 0x274   :  { %10117 = vmatprep.mubr.bf16.mxu0 %v2214_v36  ;;  %v2578_v36 = vpack.c.bf16 %v2538_v59, %v2537_v47  ;;  %v2545_v59 = vld [vmem:[#allocation2 + $0x71] sm:$0xff] }
 0x275   :  { %v11741_v47 = vld [vmem:[%s15545_s3 + $0x1b0] sm:$0xff]  }
 0x27b   :  { %10118 = vmatmul.mubr.bf16.gmra.mrb[36].mxu0 %v2215_v50  ;;  %v2579_v50 = vpack.c.bf16 %v2540_v12, %v2539_v16  ;;  %v11742_v16 = vld [vmem:[%s15545_s3 + $0x1b8] sm:$0xff]  }
 0x27c   :  { %10121 = vmatprep.mubr.bf16.mxu0 %v2216_v55  ;;  %v2541_v55 = vld [vmem:[#allocation2 + $0x51] sm:$0xff] }
 0x27d   :  { %v2580_v48 = vpack.c.bf16 %v2542_v60, %v2541_v55  ;;  %v2549_v60 = vld [vmem:[#allocation2 + $0x91] sm:$0xff]  ;;  %v11743_v55 = vld [vmem:[%s15545_s3 + $0x1c0] sm:$0xff]  }
 0x283   :  { %10122 = vmatmul.mubr.bf16.gmra.mrb[40].mxu0 %v2217_v53  ;;  %v2546_v53 = vld [vmem:[#allocation2 + $0x79] sm:$0xff] }
 0x284   :  { %10141 = vmatprep.mubr.bf16.mxu0 %v2576_v51  ;;  %v2543_v51 = vld [vmem:[#allocation2 + $0x61] sm:$0xff] }
 0x285   :  { %v2581_v13 = vpack.c.bf16 %v2544_v56, %v2543_v51 }
 0x28b   :  { %10142 = vmatmul.mubr.bf16.vlgmr.msra.gmra.mrb[0].mxu0 %v2577_v5  ;;  %v2582_v5 = vpack.c.bf16 %v2546_v53, %v2545_v59  ;;  %v2553_v53 = vld [vmem:[#allocation2 + $0xb1] sm:$0xff]  ;;  %v2558_v59 = vld [vmem:[#allocation2 + $0xd9] sm:$0xff] }
 0x28c   :  { %10145 = vmatprep.mubr.bf16.mxu0 %v2578_v36  ;;  %10186 = vmatpush3.bf16.msra.mxu0 %v13146_v19  ;;  %v11739_v19 = vld [vmem:[%s15545_s3 + $0x1a0] sm:$0xff]  }
 0x28d   :  { %10187 = vmatprep.subr.bf16.mxu0 %v11736_v40  ;;  %v2550_v36 = vld [vmem:[#allocation2 + $0x99] sm:$0xff] }
 0x290   :  { %10188 = vmatpush3.bf16.msra.mxu0 %v11736_v40  ;;  %v2548_v40 = vld [vmem:[#allocation2 + $0x89] sm:$0xff] }
 0x291   :  { %10189 = vmatprep.subr.bf16.mxu0 %v11737_v32 }
 0x293   :  { %10146 = vmatmul.mubr.bf16.gmra.mrb[4].mxu0 %v2579_v50  ;;  %v2584_v50 = vpack.c.bf16 %v2550_v36, %v2549_v60  ;;  %v2560_v36 = vld [vmem:[#allocation2 + $0xe9] sm:$0xff] }
 0x294   :  { %10149 = vmatprep.mubr.bf16.mxu0 %v2580_v48  ;;  %10190 = vmatpush3.bf16.msra.mxu0 %v11737_v32  ;;  %v2547_v32 = vld [vmem:[#allocation2 + $0x81] sm:$0xff]  ;;  %v2554_v48 = vld [vmem:[#allocation2 + $0xb9] sm:$0xff] }
 0x295   :  { %10191 = vmatprep.subr.bf16.mxu0 %v11738_v39  ;;  %v2583_v12 = vpack.c.bf16 %v2548_v40, %v2547_v32  ;;  %v2586_v51 = vpack.c.bf16 %v2554_v48, %v2553_v53  ;;  %v2562_v32 = vld [vmem:[#allocation2 + $0xf9] sm:$0xff]  ;;  %v2565_v53 = vld [vmem:[#allocation2 + $0x111] sm:$0xff] }
 0x296   :  { %v2566_v48 = vld [vmem:[#allocation2 + $0x119] sm:$0xff] }
 0x298   :  { %10192 = vmatpush3.bf16.msra.mxu0 %v11738_v39  ;;  %v2552_v39 = vld [vmem:[#allocation2 + $0xa9] sm:$0xff] }
 0x299   :  { %10193 = vmatprep.subr.bf16.mxu0 %v11739_v19 }
 0x29b   :  { %10150 = vmatmul.mubr.bf16.gmra.mrb[8].mxu0 %v2581_v13  ;;  %v2556_v13 = vld [vmem:[#allocation2 + $0xc9] sm:$0xff] }
 0x29c   :  { %10153 = vmatprep.mubr.bf16.mxu0 %v2582_v5  ;;  %10194 = vmatpush3.bf16.msra.mxu0 %v11739_v19  ;;  %v2551_v19 = vld [vmem:[#allocation2 + $0xa1] sm:$0xff] }
 0x29d   :  { %10195 = vmatprep.subr.bf16.mxu0 %v11740_v14  ;;  %v2585_v56 = vpack.c.bf16 %v2552_v39, %v2551_v19  ;;  %v2564_v39 = vld [vmem:[#allocation2 + $0x109] sm:$0xff]  ;;  %v2563_v19 = vld [vmem:[#allocation2 + $0x101] sm:$0xff] }
 0x2a0   :  { %10196 = vmatpush3.bf16.msra.mxu0 %v11740_v14  ;;  %v2555_v14 = vld [vmem:[#allocation2 + $0xc1] sm:$0xff] }
 0x2a1   :  { %10197 = vmatprep.subr.bf16.mxu0 %v11741_v47  ;;  %v2587_v5 = vpack.c.bf16 %v2556_v13, %v2555_v14  ;;  %v2568_v13 = vld [vmem:[#allocation2 + $0x129] sm:$0xff]  ;;  %v2567_v14 = vld [vmem:[#allocation2 + $0x121] sm:$0xff] }
 0x2a3   :  { %10154 = vmatmul.mubr.bf16.gmra.mrb[12].mxu0 %v2583_v12  ;;  %v2559_v12 = vld [vmem:[#allocation2 + $0xe1] sm:$0xff] }
 0x2a4   :  { %10157 = vmatprep.mubr.bf16.mxu0 %v2584_v50  ;;  %10198 = vmatpush3.bf16.msra.mxu0 %v11741_v47  ;;  %v2557_v47 = vld [vmem:[#allocation2 + $0xd1] sm:$0xff]  ;;  %v2589_v60 = vpack.c.bf16 %v2560_v36, %v2559_v12  ;;  %v2572_v36 = vld [vmem:[#allocation2 + $0x149] sm:$0xff]  ;;  %v2571_v12 = vld [vmem:[#allocation2 + $0x141] sm:$0xff] }
 0x2a5   :  { %10199 = vmatprep.subr.bf16.mxu0 %v11742_v16  ;;  %v2588_v40 = vpack.c.bf16 %v2558_v59, %v2557_v47  ;;  %v2561_v50 = vld [vmem:[#allocation2 + $0xf1] sm:$0xff]  ;;  %v2570_v59 = vld [vmem:[#allocation2 + $0x139] sm:$0xff] }
 0x2a6   :  { %v2569_v47 = vld [vmem:[#allocation2 + $0x131] sm:$0xff] }
 0x2a8   :  { %10200 = vmatpush3.bf16.msra.mxu0 %v11742_v16  ;;  %v2590_v16 = vpack.c.bf16 %v2562_v32, %v2561_v50  ;;  %v2574_v32 = vld [vmem:[#allocation2 + $0x159] sm:$0xff]  ;;  %v2573_v50 = vld [vmem:[#allocation2 + $0x151] sm:$0xff] }
 0x2a9   :  { %10245 = vmatprep.subr.bf16.mxu0 %v11743_v55 }
 0x2ab   :  { %10158 = vmatmul.mubr.bf16.gmra.mrb[16].mxu0 %v2585_v56  ;;  %v2591_v56 = vpack.c.bf16 %v2564_v39, %v2563_v19  ;;  %v2575_v39 = vld [vmem:[#allocation2 + $0x161] sm:$0xff] }
 0x2ac   :  { %10161 = vmatprep.mubr.bf16.mxu0 %v2586_v51  ;;  %v2592_v51 = vpack.c.bf16 %v2566_v48, %v2565_v53  ;;  %v2597_v48 = vpack.c.bf16 %v2575_v39, %v2575_v39  ;;  %v11744_v19 = vld [vmem:[%s15545_s3 + $0x1c8] sm:$0xff]   ;;  %v3293_v53 = vld [vmem:[#allocation2 + $0x1d] sm:$0xff] }
 0x2ad   :  { %v54_v39 = vld [vmem:[%s15546_s1 + $0xd8] sm:$0xff] }
 0x2b3   :  { %10162 = vmatmul.mubr.bf16.gmra.mrb[20].mxu0 %v2587_v5  ;;  %v2593_v5 = vpack.c.bf16 %v2568_v13, %v2567_v14  ;;  %v43_v14 = vld [vmem:[%s15546_s1 + $0x80] sm:$0xff] }
 0x2b4   :  { %10165 = vmatprep.mubr.bf16.mxu0 %v2588_v40  ;;  %v2594_v40 = vpack.c.bf16 %v2570_v59, %v2569_v47  ;;  %v50_v59 = vld [vmem:[%s15546_s1 + $0xb8] sm:$0xff] }
 0x2b5   :  { %v3296_v47 = vld [vmem:[#allocation2 + $0x35] sm:$0xff] }
 0x2bb   :  { %10166 = vmatmul.mubr.bf16.gmra.mrb[24].mxu0 %v2589_v60  ;;  %v2595_v60 = vpack.c.bf16 %v2572_v36, %v2571_v12  ;;  %v45_v36 = vld [vmem:[%s15546_s1 + $0x90] sm:$0xff]  ;;  %v3298_v12 = vld [vmem:[#allocation2 + $0x45] sm:$0xff] }
 0x2bc   :  { %10169 = vmatprep.mubr.bf16.mxu0 %v2590_v16  ;;  %v2596_v16 = vpack.c.bf16 %v2574_v32, %v2573_v50  ;;  %v3297_v32 = vld [vmem:[#allocation2 + $0x3d] sm:$0xff]  ;;  %v11752_v50 = vld [vmem:[%s15545_s3 + $0x208] sm:$0xff]  }
 0x2c3   :  { %10170 = vmatmul.mubr.bf16.gmra.mrb[28].mxu0 %v2591_v56  ;;  %v11745_v56 = vld [vmem:[%s15545_s3 + $0x1d0] sm:$0xff]  }
 0x2c4   :  { %10173 = vmatprep.mubr.bf16.mxu0 %v2592_v51  ;;  %v3294_v51 = vld [vmem:[#allocation2 + $0x25] sm:$0xff] }
 0x2c5   :  { %v3336_v13 = vpack.c.bf16 %v3294_v51, %v3293_v53  ;;  %v3318_v53 = vld [vmem:[#allocation2 + $0xe5] sm:$0xff]  ;;  %v65_v51 = vld [vmem:[%s15546_s1 + $0x130] sm:$0xff] }
 0x2cb   :  { %10174 = vmatmul.mubr.bf16.gmra.mrb[32].mxu0 %v2593_v5  ;;  %v3295_v5 = vld [vmem:[#allocation2 + $0x2d] sm:$0xff] }
 0x2cc   :  { %10177 = vmatprep.mubr.bf16.mxu0 %v2594_v40  ;;  %v52_v40 = vld [vmem:[%s15546_s1 + $0xc8] sm:$0xff] }
 0x2d3   :  { %10178 = vmatmul.mubr.bf16.gmra.mrb[36].mxu0 %v2595_v60  ;;  %v3337_v60 = vpack.c.bf16 %v3296_v47, %v3295_v5  ;;  %v3319_v5 = vld [vmem:[#allocation2 + $0xed] sm:$0xff]  ;;  %v3320_v47 = vld [vmem:[#allocation2 + $0xf5] sm:$0xff] }
 0x2d4   :  { %10181 = vmatprep.mubr.bf16.mxu0 %v2596_v16  ;;  %v3338_v16 = vpack.c.bf16 %v3298_v12, %v3297_v32  ;;  %v69_v32 = vld [vmem:[%s15546_s1 + $0x150] sm:$0xff]  ;;  %v3349_v12 = vpack.c.bf16 %v3320_v47, %v3319_v5 }
 0x2db   :  { %10182 = vmatmul.mubr.bf16.gmra.mrb[40].mxu0 %v2597_v48  ;;  %v47_v48 = vld [vmem:[%s15546_s1 + $0xa0] sm:$0xff] }
 0x2dc   :  { %10201 = vmatprep.mubr.bf16.mxu0 %v2956_v38  ;;  %v15698_v38 = vpack.c.bf16 %v12924_v52, %v12922_v41  ;;  %v15701_v41 = vpack.c.bf16 %v12936_v30, %v12934_v29  ;;  %v35_v52 = vld [vmem:[%s15546_s1 + $0x40] sm:$0xff]  ;;  %v40_v29 = vld [vmem:[%s15546_s1 + $0x68] sm:$0xff]  ;;  %v15704_v30 = vpack.c.bf16 %v12950_v8, %v12948_v35  ;;  %v37_v35 = vld [vmem:[%s15546_s1 + $0x50] sm:$0xff] }
 0x2dd   :  { %4095 = vperm.xlu1 %11685, %v35_v52   ;;  %v2953_v8 = vld [vmem:[#allocation2 + $0x15c] sm:$0xff]  ;;  %4105 = vperm.xlu0 %11686, %v37_v35  }
 0x2de   :  { %v3308_v52 = vld [vmem:[#allocation2 + $0x95] sm:$0xff] }
 0x2df   :  { %v3312_v35 = vld [vmem:[#allocation2 + $0xb5] sm:$0xff] }
 0x2e1   :  { %4100 = vperm.xlu1 %11685, %v36_v18   ;;  %v64_v18 = vld [vmem:[%s15546_s1 + $0x128] sm:$0xff] }
 0x2e3   :  { %10202 = vmatmul.mubr.bf16.vlgmr.msra.gmra.mrb[0].mxu0 %v2957_v9  ;;  %v2976_v9 = vpack.c.bf16 %v2954_v49, %v2953_v8  ;;  %v68_v8 = vld [vmem:[%s15546_s1 + $0x148] sm:$0xff]  ;;  %v3313_v49 = vld [vmem:[#allocation2 + $0xbd] sm:$0xff] }
 0x2e4   :  { %10205 = vmatprep.mubr.bf16.mxu0 %v2958_v44  ;;  %10246 = vmatpush3.bf16.msra.mxu0 %v11743_v55  ;;  %v15706_v44 = vpack.c.bf16 %v12966_v45, %v12964_v54  ;;  %v48_v55 = vld [vmem:[%s15546_s1 + $0xa8] sm:$0xff]  ;;  %v41_v54 = vld [vmem:[%s15546_s1 + $0x70] sm:$0xff] }
 0x2e5   :  { %10247 = vmatprep.subr.bf16.mxu0 %v11744_v19  ;;  %4110 = vperm.xlu1 %11685, %v38_v10   ;;  %v57_v10 = vld [vmem:[%s15546_s1 + $0xf0] sm:$0xff] }
 0x2e8   :  { %10248 = vmatpush3.bf16.msra.mxu0 %v11744_v19  ;;  %v11753_v19 = vld [vmem:[%s15545_s3 + $0x210] sm:$0xff]  }
 0x2e9   :  { %10249 = vmatprep.subr.bf16.mxu0 %v11745_v56  ;;  %4120 = vperm.xlu1 %11685, %v40_v29  }
 0x2eb   :  { %10206 = vmatmul.mubr.bf16.gmra.mrb[4].mxu0 %v2959_v26  ;;  %v2955_v26 = vld [vmem:[#allocation2 + $0x16c] sm:$0xff] }
 0x2ec   :  { %10209 = vmatprep.mubr.bf16.mxu0 %v2960_v46  ;;  %10250 = vmatpush3.bf16.msra.mxu0 %v11745_v56  ;;  %v39_v46 = vld [vmem:[%s15546_s1 + $0x60] sm:$0xff]  ;;  %v2977_v45 = vpack.c.bf16 %v2955_v26, %v2955_v26  ;;  %v3299_v56 = vld [vmem:[#allocation2 + $0x4d] sm:$0xff] }
 0x2ed   :  { %10251 = vmatprep.subr.bf16.mxu0 %v11746_v37  ;;  %4130 = vperm.xlu1 %11685, %v42_v20   ;;  %v66_v20 = vld [vmem:[%s15546_s1 + $0x138] sm:$0xff] }
 0x2ee   :  { %4115 = vperm.xlu0 %11686, %v39_v46   ;;  %v63_v46 = vld [vmem:[%s15546_s1 + $0x120] sm:$0xff] }
 0x2f0   :  { %10252 = vmatpush3.bf16.msra.mxu0 %v11746_v37  ;;  %v3300_v37 = vld [vmem:[#allocation2 + $0x55] sm:$0xff] }
 0x2f1   :  { %10253 = vmatprep.subr.bf16.mxu0 %v11747_v61  ;;  %4140 = vperm.xlu1 %11685, %v44_v34   ;;  %v3311_v34 = vld [vmem:[#allocation2 + $0xad] sm:$0xff] }
 0x2f2   :  { %4125 = vperm.xlu0 %11686, %v41_v54   ;;  %v3345_v26 = vpack.c.bf16 %v3312_v35, %v3311_v34  ;;  %v3316_v54 = vld [vmem:[#allocation2 + $0xd5] sm:$0xff] }
 0x2f3   :  { %10210 = vmatmul.mubr.bf16.gmra.mrb[8].mxu0 %v15692_v0  ;;  %v3302_v0 = vld [vmem:[#allocation2 + $0x65] sm:$0xff]  ;;  %v3687_v35 = vld [vmem:[#allocation2 + $0x8e] sm:$0xff] }
 0x2f4   :  { %10213 = vmatprep.mubr.bf16.mxu0 %v15693_v63  ;;  %10254 = vmatpush3.bf16.msra.mxu0 %v11747_v61  ;;  %v56_v61 = vld [vmem:[%s15546_s1 + $0xe8] sm:$0xff]  ;;  %v49_v63 = vld [vmem:[%s15546_s1 + $0xb0] sm:$0xff] }
 0x2f5   :  { %10255 = vmatprep.subr.bf16.mxu0 %v11748_v62  ;;  %4150 = vperm.xlu1 %11685, %v46_v27  }
 0x2f6   :  { %4135 = vperm.xlu0 %11686, %v43_v14   ;;  %v67_v14 = vld [vmem:[%s15546_s1 + $0x140] sm:$0xff] }
 0x2f8   :  { %10256 = vmatpush3.bf16.msra.mxu0 %v11748_v62  ;;  %v3301_v62 = vld [vmem:[#allocation2 + $0x5d] sm:$0xff] }
 0x2f9   :  { %10257 = vmatprep.subr.bf16.mxu0 %v11749_v3  ;;  %4160 = vperm.xlu1 %11685, %v48_v55   ;;  %v3340_v1 = vpack.c.bf16 %v3302_v0, %v3301_v62  ;;  %v3315_v55 = vld [vmem:[#allocation2 + $0xcd] sm:$0xff]  ;;  %v3329_v62 = vld [vmem:[#allocation2 + $0x13d] sm:$0xff]  ;;  %v3330_v0 = vld [vmem:[#allocation2 + $0x145] sm:$0xff] }
 0x2fa   :  { %4145 = vperm.xlu0 %11686, %v45_v36   ;;  %v3322_v36 = vld [vmem:[#allocation2 + $0x105] sm:$0xff] }
 0x2fb   :  { %10214 = vmatmul.mubr.bf16.gmra.mrb[12].mxu0 %v15694_v6  ;;  %v51_v6 = vld [vmem:[%s15546_s1 + $0xc0] sm:$0xff] }
 0x2fc   :  { %10217 = vmatprep.mubr.bf16.mxu0 %v15695_v2  ;;  %10258 = vmatpush3.bf16.msra.mxu0 %v11749_v3  ;;  %v3339_v3 = vpack.c.bf16 %v3300_v37, %v3299_v56  ;;  %v11755_v2 = vld [vmem:[%s15545_s3 + $0x220] sm:$0xff]   ;;  %v3327_v37 = vld [vmem:[#allocation2 + $0x12d] sm:$0xff] }
 0x2fd   :  { %10259 = vmatprep.subr.bf16.mxu0 %v11750_v28  ;;  %4170 = vperm.xlu1 %11685, %v50_v59  }
 0x2fe   :  { %4155 = vperm.xlu0 %11686, %v47_v48   ;;  %v3326_v48 = vld [vmem:[#allocation2 + $0x125] sm:$0xff] }
 0x300   :  { %10260 = vmatpush3.bf16.msra.mxu0 %v11750_v28  ;;  %v58_v28 = vld [vmem:[%s15546_s1 + $0xf8] sm:$0xff] }
 0x301   :  { %10305 = vmatprep.subr.bf16.mxu0 %v13231_v33  ;;  %4180 = vperm.xlu1 %11685, %v52_v40   ;;  %v3321_v40 = vld [vmem:[#allocation2 + $0xfd] sm:$0xff] }
 0x302   :  { %4165 = vperm.xlu0 %11686, %v49_v63  }
 0x303   :  { %10218 = vmatmul.mubr.bf16.gmra.mrb[16].mxu0 %v15696_v42  ;;  %v3305_v42 = vld [vmem:[#allocation2 + $0x7d] sm:$0xff] }
 0x304   :  { %10221 = vmatprep.mubr.bf16.mxu0 %v15697_v11  ;;  %v3306_v11 = vld [vmem:[#allocation2 + $0x85] sm:$0xff] }
 0x305   :  { %4190 = vperm.xlu1 %11685, %v54_v39   ;;  %v3325_v39 = vld [vmem:[#allocation2 + $0x11d] sm:$0xff] }
 0x306   :  { %4175 = vperm.xlu0 %11686, %v51_v6   ;;  %v3352_v56 = vpack.c.bf16 %v3326_v48, %v3325_v39  ;;  %v3334_v6 = vld [vmem:[#allocation2 + $0x165] sm:$0xff]  ;;  %v3704_v39 = vld [vmem:[#allocation2 + $0x116] sm:$0xff] }
 0x307   :  { %v3705_v48 = vld [vmem:[#allocation2 + $0x11e] sm:$0xff] }
 0x309   :  { %4200 = vperm.xlu1 %11685, %v56_v61   ;;  %v3328_v61 = vld [vmem:[#allocation2 + $0x135] sm:$0xff] }
 0x30a   :  { %4185 = vperm.xlu0 %11686, %v53_v21   ;;  %v3353_v63 = vpack.c.bf16 %v3328_v61, %v3327_v37  ;;  %v3707_v61 = vld [vmem:[#allocation2 + $0x12e] sm:$0xff] }
 0x30b   :  { %10222 = vmatmul.mubr.bf16.gmra.mrb[20].mxu0 %v15698_v38  ;;  %v11756_v38 = vld [vmem:[%s15545_s3 + $0x228] sm:$0xff]  }
 0x30c   :  { %10225 = vmatprep.mubr.bf16.mxu0 %v15699_v57  ;;  %v3342_v57 = vpack.c.bf16 %v3306_v11, %v3305_v42  ;;  %v3673_v42 = vld [vmem:[#allocation2 + $0x1e] sm:$0xff]  ;;  %v3674_v11 = vld [vmem:[#allocation2 + $0x26] sm:$0xff] }
 0x30d   :  { %4210 = vperm.xlu1 %11685, %v58_v28   ;;  %v3333_v28 = vld [vmem:[#allocation2 + $0x15d] sm:$0xff]  ;;  %v3716_v21 = vpack.c.bf16 %v3674_v11, %v3673_v42  ;;  %v13412_v11 = vpop.permute.xlu1 %4055 }
 0x30e   :  { %4195 = vperm.xlu0 %11686, %v55_v23   ;;  %15707 = vst [vmem:[#allocation4_spill] sm:$0xff] %v13412_v11 }
 0x311   :  { %4220 = vperm.xlu1 %11685, %v60_v17  }
 0x312   :  { %4205 = vperm.xlu0 %11686, %v57_v10  }
 0x313   :  { %10226 = vmatmul.mubr.bf16.gmra.mrb[24].mxu0 %v15700_v7  ;;  %v11757_v7 = vld [vmem:[%s15545_s3 + $0x230] sm:$0xff]  }
 0x314   :  { %10229 = vmatprep.mubr.bf16.mxu0 %v15701_v41  ;;  %v3307_v41 = vld [vmem:[#allocation2 + $0x8d] sm:$0xff] }
 0x315   :  { %4230 = vperm.xlu1 %11685, %v62_v22   ;;  %v3343_v29 = vpack.c.bf16 %v3308_v52, %v3307_v41  ;;  %v3678_v22 = vld [vmem:[#allocation2 + $0x46] sm:$0xff]  ;;  %v3679_v41 = vld [vmem:[#allocation2 + $0x4e] sm:$0xff]  ;;  %v3680_v52 = vld [vmem:[#allocation2 + $0x56] sm:$0xff] }
 0x316   :  { %4215 = vperm.xlu0 %11686, %v59_v43  }
 0x319   :  { %4240 = vperm.xlu1 %11685, %v64_v18   ;;  %v3681_v18 = vld [vmem:[#allocation2 + $0x5e] sm:$0xff] }
 0x31b   :  { %10230 = vmatmul.mubr.bf16.gmra.mrb[28].mxu0 %v15702_v24  ;;  %v3309_v24 = vld [vmem:[#allocation2 + $0x9d] sm:$0xff] }
 0x31c   :  { %10233 = vmatprep.mubr.bf16.mxu0 %v15703_v25  ;;  %v3310_v25 = vld [vmem:[#allocation2 + $0xa5] sm:$0xff] }
 0x31d   :  { %4250 = vperm.xlu1 %11685, %v66_v20   ;;  %v3686_v20 = vld [vmem:[#allocation2 + $0x86] sm:$0xff] }
 0x321   :  { %4260 = vperm.xlu1 %11685, %v68_v8   ;;  %v3688_v8 = vld [vmem:[#allocation2 + $0x96] sm:$0xff] }
 0x323   :  { %10234 = vmatmul.mubr.bf16.gmra.mrb[32].mxu0 %v15704_v30  ;;  %v11758_v30 = vld [vmem:[%s15545_s3 + $0x238] sm:$0xff]  }
 0x324   :  { %10237 = vmatprep.mubr.bf16.mxu0 %v15705_v31  ;;  %v3344_v31 = vpack.c.bf16 %v3310_v25, %v3309_v24  ;;  %v3682_v24 = vld [vmem:[#allocation2 + $0x66] sm:$0xff]  ;;  %v3719_v25 = vpack.c.bf16 %v3680_v52, %v3679_v41  ;;  %v13428_v41 = vpop.permute.xlu0 %4060 }
 0x325   :  { %v3720_v10 = vpack.c.bf16 %v3682_v24, %v3681_v18  ;;  %15715 = vst [vmem:[#allocation12_spill] sm:$0xff] %v13428_v41 }
 0x32b   :  { %10238 = vmatmul.mubr.bf16.gmra.mrb[36].mxu0 %v15706_v44  ;;  %v61_v44 = vld [vmem:[%s15546_s1 + $0x110] sm:$0xff] }
 0x32c   :  { %10241 = vmatprep.mubr.bf16.mxu0 %v2976_v9  ;;  %v3314_v9 = vld [vmem:[#allocation2 + $0xc5] sm:$0xff]  ;;  %4225 = vperm.xlu0 %11686, %v61_v44   ;;  %v3723_v44 = vpack.c.bf16 %v3688_v8, %v3687_v35 }
 0x32d   :  { %v3346_v27 = vpack.c.bf16 %v3314_v9, %v3313_v49  ;;  %v3689_v49 = vld [vmem:[#allocation2 + $0x9e] sm:$0xff]  ;;  %v3690_v9 = vld [vmem:[#allocation2 + $0xa6] sm:$0xff] }
 0x330   :  { %4235 = vperm.xlu0 %11686, %v63_v46   ;;  %v3692_v46 = vld [vmem:[#allocation2 + $0xb6] sm:$0xff] }
 0x333   :  { %10242 = vmatmul.mubr.bf16.gmra.mrb[40].mxu0 %v2977_v45  ;;  %v3317_v45 = vld [vmem:[#allocation2 + $0xdd] sm:$0xff] }
 0x334   :  { %10261 = vmatprep.mubr.bf16.mxu0 %v3336_v13  ;;  %v3347_v13 = vpack.c.bf16 %v3316_v54, %v3315_v55  ;;  %v3348_v59 = vpack.c.bf16 %v3318_v53, %v3317_v45  ;;  %4245 = vperm.xlu0 %11686, %v65_v51   ;;  %v3693_v55 = vld [vmem:[#allocation2 + $0xbe] sm:$0xff]  ;;  %v3694_v54 = vld [vmem:[#allocation2 + $0xc6] sm:$0xff]  ;;  %v3695_v51 = vld [vmem:[#allocation2 + $0xce] sm:$0xff] }
 0x335   :  { %v3726_v53 = vpack.c.bf16 %v3694_v54, %v3693_v55 }
 0x338   :  { %4255 = vperm.xlu0 %11686, %v67_v14   ;;  %v3698_v14 = vld [vmem:[#allocation2 + $0xe6] sm:$0xff] }
 0x33b   :  { %10262 = vmatmul.mubr.bf16.vlgmr.msra.gmra.mrb[0].mxu0 %v3337_v60  ;;  %v3350_v60 = vpack.c.bf16 %v3322_v36, %v3321_v40  ;;  %v3699_v40 = vld [vmem:[#allocation2 + $0xee] sm:$0xff]  ;;  %v3700_v36 = vld [vmem:[#allocation2 + $0xf6] sm:$0xff] }
 0x33c   :  { %10265 = vmatprep.mubr.bf16.mxu0 %v3338_v16  ;;  %10306 = vmatpush3.bf16.msra.mxu0 %v13231_v33  ;;  %v3304_v33 = vld [vmem:[#allocation2 + $0x75] sm:$0xff] }
 0x33d   :  { %10307 = vmatprep.subr.bf16.mxu0 %v11752_v50  ;;  %v3341_v58 = vpack.c.bf16 %v3304_v33, %v3303_v15  ;;  %4265 = vperm.xlu0 %11686, %v69_v32   ;;  %v3324_v16 = vld [vmem:[#allocation2 + $0x115] sm:$0xff]  ;;  %v3356_v15 = vpack.c.bf16 %v3334_v6, %v3333_v28  ;;  %v3335_v33 = vld [vmem:[#allocation2 + $0x16d] sm:$0xff]  ;;  %v3701_v32 = vld [vmem:[#allocation2 + $0xfe] sm:$0xff] }
 0x33e   :  { %v3357_v17 = vpack.c.bf16 %v3335_v33, %v3335_v33  ;;  %v3712_v28 = vld [vmem:[#allocation2 + $0x156] sm:$0xff]  ;;  %v3713_v6 = vld [vmem:[#allocation2 + $0x15e] sm:$0xff] }
 0x340   :  { %10308 = vmatpush3.bf16.msra.mxu0 %v11752_v50  ;;  %v3323_v50 = vld [vmem:[#allocation2 + $0x10d] sm:$0xff] }
 0x341   :  { %10309 = vmatprep.subr.bf16.mxu0 %v11753_v19 }
 0x343   :  { %10266 = vmatmul.mubr.bf16.gmra.mrb[4].mxu0 %v3339_v3  ;;  %v3354_v3 = vpack.c.bf16 %v3330_v0, %v3329_v62  ;;  %v3708_v62 = vld [vmem:[#allocation2 + $0x136] sm:$0xff]  ;;  %v3709_v0 = vld [vmem:[#allocation2 + $0x13e] sm:$0xff] }
 0x344   :  { %10269 = vmatprep.mubr.bf16.mxu0 %v3340_v1  ;;  %10310 = vmatpush3.bf16.msra.mxu0 %v11753_v19  ;;  %v3351_v19 = vpack.c.bf16 %v3324_v16, %v3323_v50  ;;  %v3332_v1 = vld [vmem:[#allocation2 + $0x155] sm:$0xff] }
 0x345   :  { %10311 = vmatprep.subr.bf16.mxu0 %v11754_v4  ;;  %v3703_v16 = vld [vmem:[#allocation2 + $0x10e] sm:$0xff] }
 0x348   :  { %10312 = vmatpush3.bf16.msra.mxu0 %v11754_v4  ;;  %v3331_v4 = vld [vmem:[#allocation2 + $0x14d] sm:$0xff] }
 0x349   :  { %10313 = vmatprep.subr.bf16.mxu0 %v11755_v2 }
 0x34b   :  { %10270 = vmatmul.mubr.bf16.gmra.mrb[8].mxu0 %v3341_v58  ;;  %v3675_v58 = vld [vmem:[#allocation2 + $0x2e] sm:$0xff] }
 0x34c   :  { %10273 = vmatprep.mubr.bf16.mxu0 %v3342_v57  ;;  %10314 = vmatpush3.bf16.msra.mxu0 %v11755_v2  ;;  %v3355_v2 = vpack.c.bf16 %v3332_v1, %v3331_v4  ;;  %v3677_v57 = vld [vmem:[#allocation2 + $0x3e] sm:$0xff]  ;;  %v3711_v1 = vld [vmem:[#allocation2 + $0x14e] sm:$0xff] }
 0x34d   :  { %10315 = vmatprep.subr.bf16.mxu0 %v11756_v38 }
 0x350   :  { %10316 = vmatpush3.bf16.msra.mxu0 %v11756_v38  ;;  %v3676_v38 = vld [vmem:[#allocation2 + $0x36] sm:$0xff] }
 0x351   :  { %10317 = vmatprep.subr.bf16.mxu0 %v11757_v7  ;;  %v3717_v23 = vpack.c.bf16 %v3676_v38, %v3675_v58 }
 0x353   :  { %10274 = vmatmul.mubr.bf16.gmra.mrb[12].mxu0 %v3343_v29  ;;  %v3683_v29 = vld [vmem:[#allocation2 + $0x6e] sm:$0xff] }
 0x354   :  { %10277 = vmatprep.mubr.bf16.mxu0 %v3344_v31  ;;  %10318 = vmatpush3.bf16.msra.mxu0 %v11757_v7  ;;  %v3718_v7 = vpack.c.bf16 %v3678_v22, %v3677_v57  ;;  %v3685_v31 = vld [vmem:[#allocation2 + $0x7e] sm:$0xff] }
 0x355   :  { %10319 = vmatprep.subr.bf16.mxu0 %v11758_v30  ;;  %v3722_v34 = vpack.c.bf16 %v3686_v20, %v3685_v31 }
 0x358   :  { %10320 = vmatpush3.bf16.msra.mxu0 %v11758_v30  ;;  %v3684_v30 = vld [vmem:[#allocation2 + $0x76] sm:$0xff] }
 0x359   :  { %v3721_v43 = vpack.c.bf16 %v3684_v30, %v3683_v29 }
 0x35b   :  { %10278 = vmatmul.mubr.bf16.gmra.mrb[16].mxu0 %v3345_v26  ;;  %v3724_v26 = vpack.c.bf16 %v3690_v9, %v3689_v49 }
 0x35c   :  { %10281 = vmatprep.mubr.bf16.mxu0 %v3346_v27  ;;  %v3691_v27 = vld [vmem:[#allocation2 + $0xae] sm:$0xff]  ;;  %v13432_v18 = vpop.permute.xlu0 %4105 }
 0x35d   :  { %v3725_v45 = vpack.c.bf16 %v3692_v46, %v3691_v27  ;;  %15717 = vst [vmem:[#allocation14_spill] sm:$0xff] %v13432_v18 }
 0x363   :  { %10282 = vmatmul.mubr.bf16.gmra.mrb[20].mxu0 %v3347_v13  ;;  %v3696_v13 = vld [vmem:[#allocation2 + $0xd6] sm:$0xff] }
 0x364   :  { %10285 = vmatprep.mubr.bf16.mxu0 %v3348_v59  ;;  %v3697_v59 = vld [vmem:[#allocation2 + $0xde] sm:$0xff]  ;;  %v3727_v5 = vpack.c.bf16 %v3696_v13, %v3695_v51 }
 0x365   :  { %v3728_v47 = vpack.c.bf16 %v3698_v14, %v3697_v59 }
 0x36b   :  { %10286 = vmatmul.mubr.bf16.gmra.mrb[24].mxu0 %v3349_v12  ;;  %v3702_v12 = vld [vmem:[#allocation2 + $0x106] sm:$0xff] }
 0x36c   :  { %10289 = vmatprep.mubr.bf16.mxu0 %v3350_v60  ;;  %v3729_v60 = vpack.c.bf16 %v3700_v36, %v3699_v40  ;;  %v3730_v50 = vpack.c.bf16 %v3702_v12, %v3701_v32 }
 0x373   :  { %10290 = vmatmul.mubr.bf16.gmra.mrb[28].mxu0 %v3351_v19  ;;  %v3706_v19 = vld [vmem:[#allocation2 + $0x126] sm:$0xff] }
 0x374   :  { %10293 = vmatprep.mubr.bf16.mxu0 %v3352_v56  ;;  %v3731_v56 = vpack.c.bf16 %v3704_v39, %v3703_v16  ;;  %v3732_v37 = vpack.c.bf16 %v3706_v19, %v3705_v48 }
 0x37b   :  { %10294 = vmatmul.mubr.bf16.gmra.mrb[32].mxu0 %v3353_v63  ;;  %v3710_v63 = vld [vmem:[#allocation2 + $0x146] sm:$0xff] }
 0x37c   :  { %10297 = vmatprep.mubr.bf16.mxu0 %v3354_v3  ;;  %v3733_v3 = vpack.c.bf16 %v3708_v62, %v3707_v61  ;;  %v3734_v4 = vpack.c.bf16 %v3710_v63, %v3709_v0 }
 0x383   :  { %10298 = vmatmul.mubr.bf16.gmra.mrb[36].mxu0 %v3355_v2  ;;  %v3714_v2 = vld [vmem:[#allocation2 + $0x166] sm:$0xff] }
 0x384   :  { %10301 = vmatprep.mubr.bf16.mxu0 %v3356_v15  ;;  %v3735_v15 = vpack.c.bf16 %v3712_v28, %v3711_v1  ;;  %v3736_v33 = vpack.c.bf16 %v3714_v2, %v3713_v6 }
 0x38b   :  { %10302 = vmatmul.mubr.bf16.gmra.mrb[40].mxu0 %v3357_v17  ;;  %v3715_v17 = vld [vmem:[#allocation2 + $0x16e] sm:$0xff] }
 0x38c   :  { %10321 = vmatprep.mubr.bf16.mxu0 %v3716_v21  ;;  %v3737_v42 = vpack.c.bf16 %v3715_v17, %v3715_v17  ;;  %v13414_v21 = vpop.permute.xlu1 %4065 }
 0x38d   :  { %15708 = vst [vmem:[#allocation5_spill] sm:$0xff] %v13414_v21 }
 0x390   :  { %v13416_v58 = vpop.permute.xlu1 %4070 }
 0x391   :  { %15709 = vst [vmem:[#allocation6_spill] sm:$0xff] %v13416_v58 }
 0x393   :  { %10322 = vmatmul.mubr.bf16.vlgmr.msra.gmra.mrb[0].mxu0 %v3717_v23 }
 0x394   :  { %10325 = vmatprep.mubr.bf16.mxu0 %v3718_v7  ;;  %v13418_v38 = vpop.permute.xlu1 %4075 }
 0x395   :  { %15710 = vst [vmem:[#allocation7_spill] sm:$0xff] %v13418_v38 }
 0x398   :  { %v13420_v57 = vpop.permute.xlu1 %4080 }
 0x399   :  { %15711 = vst [vmem:[#allocation8_spill] sm:$0xff] %v13420_v57 }
 0x39b   :  { %10326 = vmatmul.mubr.bf16.gmra.mrb[4].mxu0 %v3719_v25  ;;  %v13436_v25 = vpop.permute.xlu0 %4115 }
 0x39c   :  { %10329 = vmatprep.mubr.bf16.mxu0 %v3720_v10  ;;  %v13422_v22 = vpop.permute.xlu1 %4085  ;;  %15719 = vst [vmem:[#allocation16_spill] sm:$0xff] %v13436_v25 }
 0x39d   :  { %15712 = vst [vmem:[#allocation9_spill] sm:$0xff] %v13422_v22 }
 0x39f   :  { %v13442_v30 = vpop.permute.xlu0 %4125 }
 0x3a0   :  { %v13424_v23 = vpop.permute.xlu1 %4090  ;;  %15721 = vst [vmem:[#allocation18_spill] sm:$0xff] %v13442_v30 }
 0x3a1   :  { %15713 = vst [vmem:[#allocation10_spill] sm:$0xff] %v13424_v23 }
 0x3a3   :  { %10330 = vmatmul.mubr.bf16.gmra.mrb[8].mxu0 %v3721_v43 }
 0x3a4   :  { %10333 = vmatprep.mubr.bf16.mxu0 %v3722_v34  ;;  %v13426_v7 = vpop.permute.xlu1 %4095 }
 0x3a5   :  { %15714 = vst [vmem:[#allocation11_spill] sm:$0xff] %v13426_v7 }
 0x3a8   :  { %v13430_v52 = vpop.permute.xlu1 %4100 }
 0x3a9   :  { %15716 = vst [vmem:[#allocation13_spill] sm:$0xff] %v13430_v52 }
 0x3ab   :  { %10334 = vmatmul.mubr.bf16.gmra.mrb[12].mxu0 %v3723_v44 }
 0x3ac   :  { %10337 = vmatprep.mubr.bf16.mxu0 %v3724_v26  ;;  %v13434_v24 = vpop.permute.xlu1 %4110 }
 0x3ad   :  { %15718 = vst [vmem:[#allocation15_spill] sm:$0xff] %v13434_v24 }
 0x3b0   :  { %v13438_v10 = vpop.permute.xlu1 %4120 }
 0x3b1   :  { %15720 = vst [vmem:[#allocation17_spill] sm:$0xff] %v13438_v10 }
 0x3b3   :  { %10338 = vmatmul.mubr.bf16.gmra.mrb[16].mxu0 %v3725_v45  ;;  %v13468_v45 = vpop.permute.xlu0 %4135 }
 0x3b4   :  { %10341 = vmatprep.mubr.bf16.mxu0 %v3726_v53  ;;  %v13460_v44 = vpop.permute.xlu1 %4130  ;;  %15723 = vst [vmem:[#allocation20_spill] sm:$0xff] %v13468_v45 }
 0x3b5   :  { %15722 = vst [vmem:[#allocation19_spill] sm:$0xff] %v13460_v44 }
 0x3bb   :  { %10342 = vmatmul.mubr.bf16.gmra.mrb[20].mxu0 %v3727_v5 }
 0x3bc   :  { %10345 = vmatprep.mubr.bf16.mxu0 %v3728_v47 }
 0x3c3   :  { %10346 = vmatmul.mubr.bf16.gmra.mrb[24].mxu0 %v3729_v60 }
 0x3c4   :  { %10349 = vmatprep.mubr.bf16.mxu0 %v3730_v50  ;;  %v13484_v50 = vpop.permute.xlu1 %4140 }
 0x3c5   :  { %15724 = vst [vmem:[#allocation21_spill] sm:$0xff] %v13484_v50 }
 0x3cb   :  { %10350 = vmatmul.mubr.bf16.gmra.mrb[28].mxu0 %v3731_v56 }
 0x3cc   :  { %10353 = vmatprep.mubr.bf16.mxu0 %v3732_v37  ;;  %v13491_v37 = vpop.permute.xlu0 %4145 }
 0x3cd   :  { %15725 = vst [vmem:[#allocation22_spill] sm:$0xff] %v13491_v37 }
 0x3d3   :  { %10354 = vmatmul.mubr.bf16.gmra.mrb[32].mxu0 %v3733_v3 }
 0x3d4   :  { %10357 = vmatprep.mubr.bf16.mxu0 %v3734_v4 }
 0x3db   :  { %10358 = vmatmul.mubr.bf16.gmra.mrb[36].mxu0 %v3735_v15  ;;  %v13506_v15 = vpop.permute.xlu1 %4150 }
 0x3dc   :  { %10361 = vmatprep.mubr.bf16.mxu0 %v3736_v33  ;;  %15726 = vst [vmem:[#allocation23_spill] sm:$0xff] %v13506_v15 }
 0x3e3   :  { %10362 = vmatmul.mubr.bf16.gmra.mrb[40].mxu0 %v3737_v42 }
 0x466   :  { %v13440_v29 = vpop.f32.mrb[0].mxu0 }
 0x467   :  { %v13444_v31 = vpop.f32.mrb[1].mxu0  ;;  %v4361_v35 = vmul.f32 %v13440_v29, %v13440_v29  ;;  %v4270_v27 = vmul.f32 %v13440_v29, %v13414_v21 }
 0x468   :  { %v4359_v20 = vmul.f32 %v13444_v31, %v13444_v31  ;;  %v13448_v43 = vpop.f32.mrb[2].mxu0  ;;  %v4268_v8 = vmul.f32 %v13412_v11, %v13444_v31 }
 0x469   :  { %v13450_v34 = vpop.f32.mrb[3].mxu0  ;;  %v4362_v26 = vmul.f32 %v13448_v43, %v13448_v43  ;;  %v4404_v53 = vmul.f32 %v4361_v35, %v13414_v21  ;;  %v4271_v51 = vmul.f32 %v13448_v43, %v13416_v58 }
 0x46a   :  { %v4269_v49 = vmul.f32 %v13428_v41, %v13450_v34  ;;  %v4360_v9 = vmul.f32 %v13450_v34, %v13450_v34  ;;  %v4402_v46 = vmul.f32 %v4359_v20, %v13412_v11 }
 0x46b   :  { %v4405_v5 = vmul.f32 %v4362_v26, %v13416_v58 }
 0x46c   :  { %v4311_v55 = vadd.f32 %v4269_v49, %v4268_v8  ;;  %v4403_v54 = vmul.f32 %v4360_v9, %v13428_v41  ;;  %v13517_v9 = vpop.permute.xlu0 %4155 }
 0x46d   :  { %15727 = vst [vmem:[#allocation24_spill] sm:$0xff] %v13517_v9 }
 0x46e   :  { %v4312_v13 = vadd.f32 %v4311_v55, %v4270_v27  ;;  %v4445_v59 = vadd.f32 %v4403_v54, %v4402_v46  ;;  %v13473_v14 = vpop.f32.mrb[4].mxu0 }
 0x46f   :  { %v13476_v47 = vpop.f32.mrb[5].mxu0  ;;  %v4365_v61 = vmul.f32 %v13473_v14, %v13473_v14  ;;  %v4274_v0 = vmul.f32 %v13473_v14, %v13422_v22 }
 0x470   :  { %v4446_v40 = vadd.f32 %v4445_v59, %v4404_v53  ;;  %v4272_v36 = vmul.f32 %v13418_v38, %v13476_v47  ;;  %v4313_v32 = vadd.f32 %v4312_v13, %v4271_v51  ;;  %v4363_v12 = vmul.f32 %v13476_v47, %v13476_v47  ;;  %v13482_v60 = vpop.f32.mrb[6].mxu0 }
 0x471   :  { %v13486_v16 = vpop.f32.mrb[7].mxu0  ;;  %v4366_v4 = vmul.f32 %v13482_v60, %v13482_v60  ;;  %v4275_v28 = vmul.f32 %v13482_v60, %v13424_v23  ;;  %v4408_v33 = vmul.f32 %v4365_v61, %v13422_v22  ;;  %v13540_v61 = vpop.permute.xlu0 %4165 }
 0x472   :  { %v4314_v39 = vadd.f32 %v4313_v32, %v4272_v36  ;;  %v4406_v48 = vmul.f32 %v4363_v12, %v13418_v38  ;;  %v4447_v19 = vadd.f32 %v4446_v40, %v4405_v5  ;;  %v4273_v56 = vmul.f32 %v13420_v57, %v13486_v16  ;;  %v13532_v32 = vpop.permute.xlu1 %4160  ;;  %15729 = vst [vmem:[#allocation26_spill] sm:$0xff] %v13540_v61 }
 0x473   :  { %v4364_v62 = vmul.f32 %v13486_v16, %v13486_v16  ;;  %v4409_v26 = vmul.f32 %v4366_v4, %v13424_v23  ;;  %15728 = vst [vmem:[#allocation25_spill] sm:$0xff] %v13532_v32 }
 0x474   :  { %v4448_v63 = vadd.f32 %v4447_v19, %v4406_v48  ;;  %v4315_v3 = vadd.f32 %v4314_v39, %v4273_v56 }
 0x475   :  { %v4407_v1 = vmul.f32 %v4364_v62, %v13420_v57 }
 0x476   :  { %v4316_v6 = vadd.f32 %v4315_v3, %v4274_v0  ;;  %v13504_v2 = vpop.f32.mrb[8].mxu0 }
 0x477   :  { %v4449_v17 = vadd.f32 %v4448_v63, %v4407_v1  ;;  %v13509_v42 = vpop.f32.mrb[9].mxu0  ;;  %v4369_v13 = vmul.f32 %v13504_v2, %v13504_v2  ;;  %v4278_v5 = vmul.f32 %v13504_v2, %v13432_v18 }
 0x478   :  { %v4276_v20 = vmul.f32 %v13426_v7, %v13509_v42  ;;  %v4317_v35 = vadd.f32 %v4316_v6, %v4275_v28  ;;  %v4367_v8 = vmul.f32 %v13509_v42, %v13509_v42  ;;  %v13515_v49 = vpop.f32.mrb[10].mxu0 }
 0x479   :  { %v4450_v27 = vadd.f32 %v4449_v17, %v4408_v33  ;;  %v13520_v46 = vpop.f32.mrb[11].mxu0  ;;  %v4370_v39 = vmul.f32 %v13515_v49, %v13515_v49  ;;  %v4279_v48 = vmul.f32 %v13515_v49, %v13434_v24  ;;  %v4412_v62 = vmul.f32 %v4369_v13, %v13432_v18 }
 0x47a   :  { %v4318_v55 = vadd.f32 %v4317_v35, %v4276_v20  ;;  %v4410_v54 = vmul.f32 %v4367_v8, %v13426_v7  ;;  %v4277_v53 = vmul.f32 %v13430_v52, %v13520_v46  ;;  %v4368_v51 = vmul.f32 %v13520_v46, %v13520_v46 }
 0x47b   :  { %v4451_v59 = vadd.f32 %v4450_v27, %v4409_v26  ;;  %v4413_v6 = vmul.f32 %v4370_v39, %v13434_v24  ;;  %v11759_v27 = vld [vmem:[%s15547_s4 + $0x40] sm:$0xff]  }
 0x47c   :  { %v4319_v40 = vadd.f32 %v4318_v55, %v4277_v53  ;;  %v4411_v36 = vmul.f32 %v4368_v51, %v13430_v52  ;;  %v11760_v55 = vld [vmem:[%s15547_s4 + $0x48] sm:$0xff]   ;;  %10365 = vmatprep.subr.bf16.mxu1 %v11759_v27 }
 0x47d   :  { %v4452_v12 = vadd.f32 %v4451_v59, %v4410_v54  ;;  %v13565_v54 = vpop.permute.xlu1 %4170  ;;  %10366 = vmatpush3.bf16.msra.mxu1 %v11759_v27 }
 0x47e   :  { %v4320_v19 = vadd.f32 %v4319_v40, %v4278_v5  ;;  %v13538_v56 = vpop.f32.mrb[12].mxu0  ;;  %15730 = vst [vmem:[#allocation27_spill] sm:$0xff] %v13565_v54  ;;  %v13572_v40 = vpop.permute.xlu0 %4175  ;;  %10367 = vmatprep.subr.bf16.mxu1 %v11760_v55 }
 0x47f   :  { %v4453_v0 = vadd.f32 %v4452_v12, %v4411_v36  ;;  %v13543_v63 = vpop.f32.mrb[13].mxu0  ;;  %v4373_v53 = vmul.f32 %v13538_v56, %v13538_v56  ;;  %v4282_v13 = vmul.f32 %v13538_v56, %v13442_v30  ;;  %15731 = vst [vmem:[#allocation28_spill] sm:$0xff] %v13572_v40 }
 0x480   :  { %v4280_v3 = vmul.f32 %v13436_v25, %v13543_v63  ;;  %v4321_v4 = vadd.f32 %v4320_v19, %v4279_v48  ;;  %v4371_v1 = vmul.f32 %v13543_v63, %v13543_v63  ;;  %v13549_v28 = vpop.f32.mrb[14].mxu0 }
 0x481   :  { %v4454_v33 = vadd.f32 %v4453_v0, %v4412_v62  ;;  %v13552_v17 = vpop.f32.mrb[15].mxu0  ;;  %v4374_v12 = vmul.f32 %v13549_v28, %v13549_v28  ;;  %v4283_v39 = vmul.f32 %v13549_v28, %v13460_v44  ;;  %v11761_v62 = vld [vmem:[%s15547_s4 + $0x50] sm:$0xff]   ;;  %v4416_v0 = vmul.f32 %v4373_v53, %v13442_v30  ;;  %10368 = vmatpush3.bf16.msra.mxu1 %v11760_v55  ;;  %v11762_v53 = vld [vmem:[%s15547_s4 + $0x58] sm:$0xff]  }
 0x482   :  { %v4322_v20 = vadd.f32 %v4321_v4, %v4280_v3  ;;  %v4414_v35 = vmul.f32 %v4371_v1, %v13436_v25  ;;  %v4281_v8 = vmul.f32 %v13438_v10, %v13552_v17  ;;  %v4372_v26 = vmul.f32 %v13552_v17, %v13552_v17  ;;  %10369 = vmatprep.subr.bf16.mxu1 %v11761_v62 }
 0x483   :  { %v4455_v51 = vadd.f32 %v4454_v33, %v4413_v6 }
 0x484   :  { %v4323_v59 = vadd.f32 %v4322_v20, %v4281_v8  ;;  %v4415_v5 = vmul.f32 %v4372_v26, %v13438_v10  ;;  %v4417_v8 = vmul.f32 %v4374_v12, %v13460_v44 }
 0x485   :  { %v4456_v36 = vadd.f32 %v4455_v51, %v4414_v35  ;;  %v13592_v35 = vpop.permute.xlu1 %4180  ;;  %10370 = vmatpush3.bf16.msra.mxu1 %v11761_v62 }
 0x486   :  { %v4324_v48 = vadd.f32 %v4323_v59, %v4282_v13  ;;  %v13578_v19 = vpop.f32.mrb[16].mxu0  ;;  %15732 = vst [vmem:[#allocation29_spill] sm:$0xff] %v13592_v35  ;;  %10371 = vmatprep.subr.bf16.mxu1 %v11762_v53 }
 0x487   :  { %v4457_v3 = vadd.f32 %v4456_v36, %v4415_v5  ;;  %v13584_v4 = vpop.f32.mrb[17].mxu0  ;;  %v13605_v36 = vpop.permute.xlu0 %4185  ;;  %v4377_v12 = vmul.f32 %v13578_v19, %v13578_v19 }
 0x488   :  { %v4284_v1 = vmul.f32 %v13468_v45, %v13584_v4  ;;  %v4325_v6 = vadd.f32 %v4324_v48, %v4283_v39  ;;  %v4375_v33 = vmul.f32 %v13584_v4, %v13584_v4  ;;  %v13590_v20 = vpop.f32.mrb[18].mxu0  ;;  %15733 = vst [vmem:[#allocation30_spill] sm:$0xff] %v13605_v36  ;;  %v4286_v39 = vmul.f32 %v13578_v19, %v13491_v37 }
 0x489   :  { %v4458_v26 = vadd.f32 %v4457_v3, %v4416_v0  ;;  %v13595_v27 = vpop.f32.mrb[19].mxu0  ;;  %10372 = vmatpush3.bf16.msra.mxu1 %v11762_v53 }
 0x48a   :  { %v4326_v51 = vadd.f32 %v4325_v6, %v4284_v1  ;;  %v4418_v13 = vmul.f32 %v4375_v33, %v13468_v45  ;;  %v4285_v59 = vmul.f32 %v13484_v50, %v13595_v27  ;;  %v4376_v5 = vmul.f32 %v13595_v27, %v13595_v27 }
 0x48b   :  { %v4459_v55 = vadd.f32 %v4458_v26, %v4417_v8  ;;  %v4378_v1 = vmul.f32 %v13590_v20, %v13590_v20  ;;  %v4287_v6 = vmul.f32 %v13590_v20, %v13506_v15  ;;  %v11763_v8 = vld [vmem:[%s15547_s4 + $0x60] sm:$0xff]   ;;  %v13621_v26 = vpop.permute.xlu1 %4190 }
 0x48c   :  { %v4327_v48 = vadd.f32 %v4326_v51, %v4285_v59  ;;  %v4419_v0 = vmul.f32 %v4376_v5, %v13484_v50  ;;  %15734 = vst [vmem:[#allocation31_spill] sm:$0xff] %v13621_v26  ;;  %v4420_v51 = vmul.f32 %v4377_v12, %v13491_v37  ;;  %v11764_v12 = vld [vmem:[%s15547_s4 + $0x68] sm:$0xff]   ;;  %10373 = vmatprep.subr.bf16.mxu1 %v11763_v8 }
 0x48d   :  { %v4460_v3 = vadd.f32 %v4459_v55, %v4418_v13  ;;  %v4421_v50 = vmul.f32 %v4378_v1, %v13506_v15  ;;  %10374 = vmatpush3.bf16.msra.mxu1 %v11763_v8 }
 0x48e   :  { %v4328_v33 = vadd.f32 %v4327_v48, %v4286_v39  ;;  %v13616_v45 = vpop.f32.mrb[20].mxu0  ;;  %v13632_v48 = vpop.permute.xlu0 %4195  ;;  %10375 = vmatprep.subr.bf16.mxu1 %v11764_v12 }
 0x48f   :  { %v4461_v13 = vadd.f32 %v4460_v3, %v4419_v0  ;;  %v13624_v59 = vpop.f32.mrb[21].mxu0  ;;  %15735 = vst [vmem:[#allocation32_spill] sm:$0xff] %v13632_v48  ;;  %v4381_v1 = vmul.f32 %v13616_v45, %v13616_v45  ;;  %v4290_v53 = vmul.f32 %v13616_v45, %v13540_v61 }
 0x490   :  { %v4288_v62 = vmul.f32 %v13517_v9, %v13624_v59  ;;  %v4329_v5 = vadd.f32 %v4328_v33, %v4287_v6  ;;  %v4379_v55 = vmul.f32 %v13624_v59, %v13624_v59  ;;  %v13630_v39 = vpop.f32.mrb[22].mxu0 }
 0x491   :  { %v4462_v44 = vadd.f32 %v4461_v13, %v4420_v51  ;;  %v13635_v30 = vpop.f32.mrb[23].mxu0  ;;  %10376 = vmatpush3.bf16.msra.mxu1 %v11764_v12 }
 0x492   :  { %v4330_v0 = vadd.f32 %v4329_v5, %v4288_v62  ;;  %v4422_v3 = vmul.f32 %v4379_v55, %v13517_v9  ;;  %v4289_v6 = vmul.f32 %v13532_v32, %v13635_v30  ;;  %v4380_v33 = vmul.f32 %v13635_v30, %v13635_v30  ;;  %v13650_v62 = vpop.permute.xlu1 %4200 }
 0x493   :  { %v4463_v51 = vadd.f32 %v4462_v44, %v4421_v50  ;;  %15736 = vst [vmem:[#allocation33_spill] sm:$0xff] %v13650_v62  ;;  %v4382_v55 = vmul.f32 %v13630_v39, %v13630_v39  ;;  %v4291_v9 = vmul.f32 %v13630_v39, %v13565_v54  ;;  %v11765_v44 = vld [vmem:[%s15547_s4 + $0x70] sm:$0xff]   ;;  %v13661_v50 = vpop.permute.xlu0 %4205 }
 0x494   :  { %v4331_v13 = vadd.f32 %v4330_v0, %v4289_v6  ;;  %v4423_v15 = vmul.f32 %v4380_v33, %v13532_v32  ;;  %15737 = vst [vmem:[#allocation34_spill] sm:$0xff] %v13661_v50  ;;  %v4424_v0 = vmul.f32 %v4381_v1, %v13540_v61  ;;  %10377 = vmatprep.subr.bf16.mxu1 %v11765_v44 }
 0x495   :  { %v4464_v5 = vadd.f32 %v4463_v51, %v4422_v3  ;;  %10378 = vmatpush3.bf16.msra.mxu1 %v11765_v44 }
 0x496   :  { %v4332_v37 = vadd.f32 %v4331_v13, %v4290_v53  ;;  %v13656_v10 = vpop.f32.mrb[24].mxu0  ;;  %v4425_v13 = vmul.f32 %v4382_v55, %v13565_v54  ;;  %v13683_v61 = vpop.permute.xlu1 %4210 }
 0x497   :  { %v4465_v3 = vadd.f32 %v4464_v5, %v4423_v15  ;;  %v13664_v6 = vpop.f32.mrb[25].mxu0  ;;  %v11766_v15 = vld [vmem:[%s15547_s4 + $0x78] sm:$0xff]   ;;  %15738 = vst [vmem:[#allocation35_spill] sm:$0xff] %v13683_v61  ;;  %v4385_v55 = vmul.f32 %v13656_v10, %v13656_v10 }
 0x498   :  { %v4292_v8 = vmul.f32 %v13572_v40, %v13664_v6  ;;  %v4333_v33 = vadd.f32 %v4332_v37, %v4291_v9  ;;  %v4383_v51 = vmul.f32 %v13664_v6, %v13664_v6  ;;  %v13670_v53 = vpop.f32.mrb[26].mxu0  ;;  %10379 = vmatprep.subr.bf16.mxu1 %v11766_v15 }
 0x499   :  { %v4466_v32 = vadd.f32 %v4465_v3, %v4424_v0  ;;  %v13673_v25 = vpop.f32.mrb[27].mxu0  ;;  %v4294_v0 = vmul.f32 %v13656_v10, %v13605_v36  ;;  %v4295_v54 = vmul.f32 %v13670_v53, %v13621_v26  ;;  %10380 = vmatpush3.bf16.msra.mxu1 %v11766_v15 }
 0x49a   :  { %v4334_v1 = vadd.f32 %v4333_v33, %v4292_v8  ;;  %v4426_v5 = vmul.f32 %v4383_v51, %v13572_v40  ;;  %v4293_v37 = vmul.f32 %v13592_v35, %v13673_v25  ;;  %v4384_v9 = vmul.f32 %v13673_v25, %v13673_v25  ;;  %v13690_v33 = vpop.permute.xlu0 %4215 }
 0x49b   :  { %v4467_v12 = vadd.f32 %v4466_v32, %v4425_v13  ;;  %15739 = vst [vmem:[#allocation36_spill] sm:$0xff] %v13690_v33  ;;  %v4386_v40 = vmul.f32 %v13670_v53, %v13670_v53  ;;  %v13701_v32 = vld [vmem:[%s15547_s4] sm:$0xff]   ;;  %v4428_v13 = vmul.f32 %v4385_v55, %v13605_v36 }
 0x49c   :  { %v4335_v3 = vadd.f32 %v4334_v1, %v4293_v37  ;;  %v4427_v8 = vmul.f32 %v4384_v9, %v13592_v35  ;;  %15740 = vst [vmem:[#allocation37_spill] sm:$0xff] %v13701_v32  ;;  %10425 = vmatprep.subr.bf16.mxu1 %v13701_v32 }
 0x49d   :  { %v4468_v51 = vadd.f32 %v4467_v12, %v4426_v5 }
 0x49e   :  { %v4336_v24 = vadd.f32 %v4335_v3, %v4294_v0  ;;  %v13696_v18 = vpop.f32.mrb[28].mxu0  ;;  %v13712_v0 = vpop.permute.xlu1 %4220  ;;  %v4429_v3 = vmul.f32 %v4386_v40, %v13621_v26 }
 0x49f   :  { %v4469_v1 = vadd.f32 %v4468_v51, %v4427_v8  ;;  %v13704_v5 = vpop.f32.mrb[29].mxu0  ;;  %15741 = vst [vmem:[#allocation38_spill] sm:$0xff] %v13712_v0  ;;  %v4389_v40 = vmul.f32 %v13696_v18, %v13696_v18  ;;  %v4298_v15 = vmul.f32 %v13696_v18, %v13661_v50 }
 0x4a0   :  { %v4296_v44 = vmul.f32 %v13632_v48, %v13704_v5  ;;  %v4337_v37 = vadd.f32 %v4336_v24, %v4295_v54  ;;  %v4387_v9 = vmul.f32 %v13704_v5, %v13704_v5  ;;  %v13710_v12 = vpop.f32.mrb[30].mxu0  ;;  %v13723_v54 = vpop.permute.xlu0 %4225 }
 0x4a1   :  { %v4470_v35 = vadd.f32 %v4469_v1, %v4428_v13  ;;  %v13715_v52 = vpop.f32.mrb[31].mxu0  ;;  %15742 = vst [vmem:[#allocation39_spill] sm:$0xff] %v13723_v54 }
 0x4a2   :  { %v4338_v55 = vadd.f32 %v4337_v37, %v4296_v44  ;;  %v4430_v8 = vmul.f32 %v4387_v9, %v13632_v48  ;;  %v4297_v51 = vmul.f32 %v13650_v62, %v13715_v52  ;;  %v4388_v24 = vmul.f32 %v13715_v52, %v13715_v52  ;;  %v13736_v36 = vpop.permute.xlu1 %4230 }
 0x4a3   :  { %v4471_v13 = vadd.f32 %v4470_v35, %v4429_v3  ;;  %v4390_v9 = vmul.f32 %v13710_v12, %v13710_v12  ;;  %v4299_v48 = vmul.f32 %v13710_v12, %v13683_v61  ;;  %15743 = vst [vmem:[#allocation40_spill] sm:$0xff] %v13736_v36  ;;  %v4432_v35 = vmul.f32 %v4389_v40, %v13661_v50 }
 0x4a4   :  { %v4339_v1 = vadd.f32 %v4338_v55, %v4297_v51  ;;  %v4431_v44 = vmul.f32 %v4388_v24, %v13650_v62 }
 0x4a5   :  { %v4472_v37 = vadd.f32 %v4471_v13, %v4430_v8  ;;  %v13747_v13 = vpop.permute.xlu0 %4235 }
 0x4a6   :  { %v4340_v32 = vadd.f32 %v4339_v1, %v4298_v15  ;;  %v13734_v26 = vpop.f32.mrb[32].mxu0  ;;  %15744 = vst [vmem:[#allocation41_spill] sm:$0xff] %v13747_v13  ;;  %v4433_v15 = vmul.f32 %v4390_v9, %v13683_v61 }
 0x4a7   :  { %v4473_v3 = vadd.f32 %v4472_v37, %v4431_v44  ;;  %v13739_v7 = vpop.f32.mrb[33].mxu0  ;;  %v4302_v23 = vmul.f32 %v13734_v26, %v13723_v54 }
 0x4a8   :  { %v4300_v55 = vmul.f32 %v13690_v33, %v13739_v7  ;;  %v4341_v8 = vadd.f32 %v4340_v32, %v4299_v48  ;;  %v4391_v51 = vmul.f32 %v13739_v7, %v13739_v7  ;;  %v13745_v24 = vpop.f32.mrb[34].mxu0  ;;  %v4393_v32 = vmul.f32 %v13734_v26, %v13734_v26 }
 0x4a9   :  { %v4474_v1 = vadd.f32 %v4473_v3, %v4432_v35  ;;  %v13750_v62 = vpop.f32.mrb[35].mxu0  ;;  %v13762_v3 = vpop.permute.xlu1 %4240 }
 0x4aa   :  { %v4342_v40 = vadd.f32 %v4341_v8, %v4300_v55  ;;  %v4434_v44 = vmul.f32 %v4391_v51, %v13690_v33  ;;  %v4301_v37 = vmul.f32 %v13712_v0, %v13750_v62  ;;  %v4392_v48 = vmul.f32 %v13750_v62, %v13750_v62  ;;  %15745 = vst [vmem:[#allocation42_spill] sm:$0xff] %v13762_v3  ;;  %v13770_v22 = vpop.permute.xlu0 %4245 }
 0x4ab   :  { %v4475_v50 = vadd.f32 %v4474_v1, %v4433_v15  ;;  %v4394_v8 = vmul.f32 %v13745_v24, %v13745_v24  ;;  %v4303_v51 = vmul.f32 %v13745_v24, %v13736_v36  ;;  %15747 = vst [vmem:[#allocation44_spill] sm:$0xff] %v13770_v22  ;;  %v4436_v15 = vmul.f32 %v4393_v32, %v13723_v54 }
 0x4ac   :  { %v4343_v9 = vadd.f32 %v4342_v40, %v4301_v37  ;;  %v4435_v35 = vmul.f32 %v4392_v48, %v13712_v0 }
 0x4ad   :  { %v4476_v55 = vadd.f32 %v4475_v50, %v4434_v44 }
 0x4ae   :  { %v4344_v33 = vadd.f32 %v4343_v9, %v4302_v23  ;;  %v13768_v61 = vpop.f32.mrb[36].mxu0  ;;  %v4437_v23 = vmul.f32 %v4394_v8, %v13736_v36 }
 0x4af   :  { %15746 = vst [vmem:[#allocation43_spill] sm:$0xff] %v13768_v61  ;;  %v4477_v1 = vadd.f32 %v4476_v55, %v4435_v35  ;;  %v13773_v40 = vpop.f32.mrb[37].mxu0  ;;  %v4306_v8 = vmul.f32 %v13768_v61, %v13770_v22 }
 0x4b0   :  { %15748 = vst [vmem:[#allocation45_spill] sm:$0xff] %v13773_v40  ;;  %v4304_v37 = vmul.f32 %v13747_v13, %v13773_v40  ;;  %v4345_v50 = vadd.f32 %v4344_v33, %v4303_v51  ;;  %v4395_v44 = vmul.f32 %v13773_v40, %v13773_v40  ;;  %v13779_v48 = vpop.f32.mrb[38].mxu0  ;;  %v13789_v33 = vpop.permute.xlu1 %4250  ;;  %v4397_v51 = vmul.f32 %v13768_v61, %v13768_v61 }
 0x4b1   :  { %15749 = vst [vmem:[#allocation46_spill] sm:$0xff] %v13779_v48  ;;  %v4478_v9 = vadd.f32 %v4477_v1, %v4436_v15  ;;  %v13782_v0 = vpop.f32.mrb[39].mxu0  ;;  %15751 = vst [vmem:[#allocation48_spill] sm:$0xff] %v13789_v33 }
 0x4b2   :  { %15750 = vst [vmem:[#allocation47_spill] sm:$0xff] %v13782_v0  ;;  %v4346_v57 = vadd.f32 %v4345_v50, %v4304_v37  ;;  %v4438_v32 = vmul.f32 %v4395_v44, %v13747_v13  ;;  %v4305_v35 = vmul.f32 %v13762_v3, %v13782_v0  ;;  %v4396_v55 = vmul.f32 %v13782_v0, %v13782_v0  ;;  %v13796_v37 = vpop.permute.xlu0 %4255 }
 0x4b3   :  { %v4479_v54 = vadd.f32 %v4478_v9, %v4437_v23  ;;  %15752 = vst [vmem:[#allocation49_spill] sm:$0xff] %v13796_v37  ;;  %v4398_v44 = vmul.f32 %v13779_v48, %v13779_v48  ;;  %v4307_v13 = vmul.f32 %v13779_v48, %v13789_v33  ;;  %v4440_v23 = vmul.f32 %v4397_v51, %v13770_v22 }
 0x4b4   :  { %v4347_v15 = vadd.f32 %v4346_v57, %v4305_v35  ;;  %v4439_v1 = vmul.f32 %v4396_v55, %v13762_v3  ;;  %v13811_v55 = vpop.permute.xlu1 %4260 }
 0x4b5   :  { %v4480_v50 = vadd.f32 %v4479_v54, %v4438_v32  ;;  %15755 = vst [vmem:[#allocation52_spill] sm:$0xff] %v13811_v55  ;;  %v4441_v3 = vmul.f32 %v4398_v44, %v13789_v33 }
 0x4b6   :  { %v4348_v36 = vadd.f32 %v4347_v15, %v4306_v8  ;;  %v13802_v38 = vpop.f32.mrb[40].mxu0 }
 0x4b7   :  { %15753 = vst [vmem:[#allocation50_spill] sm:$0xff] %v13802_v38  ;;  %v4481_v9 = vadd.f32 %v4480_v50, %v4439_v1  ;;  %v13805_v58 = vpop.f32.mrb[41].mxu0  ;;  %v4401_v50 = vmul.f32 %v13802_v38, %v13802_v38 }
 0x4b8   :  { %15754 = vst [vmem:[#allocation51_spill] sm:$0xff] %v13805_v58  ;;  %v4308_v57 = vmul.f32 %v13796_v37, %v13805_v58  ;;  %v4349_v35 = vadd.f32 %v4348_v36, %v4307_v13  ;;  %v4399_v54 = vmul.f32 %v13805_v58, %v13805_v58  ;;  %v10364_v32 = vpop.f32.mrb[42].mxu0  ;;  %v13821_v13 = vpop.permute.xlu0 %4265 }
 0x4b9   :  { %v4482_v8 = vadd.f32 %v4481_v9, %v4440_v23  ;;  %v13814_v15 = vpop.f32.mrb[43].mxu0  ;;  %15756 = vst [vmem:[#allocation53_spill] sm:$0xff] %v13821_v13  ;;  %v4310_v44 = vmul.f32 %v13802_v38, %v13821_v13 }
 0x4ba   :  { %v4350_v21 = vadd.f32 %v4349_v35, %v4308_v57  ;;  %v4442_v51 = vmul.f32 %v4399_v54, %v13796_v37  ;;  %v4309_v1 = vmul.f32 %v13811_v55, %v13814_v15  ;;  %v4400_v36 = vmul.f32 %v13814_v15, %v13814_v15 }
 0x4bb   :  { %v4483_v32 = vadd.f32 %v4482_v8, %v4441_v3  ;;  %v4444_v54 = vmul.f32 %v4401_v50, %v13821_v13 }
 0x4bc   :  { %v4351_v23 = vadd.f32 %v4350_v21, %v4309_v1  ;;  %v4443_v9 = vmul.f32 %v4400_v36, %v13811_v55 }
 0x4bd   :  { %v4484_v57 = vadd.f32 %v4483_v32, %v4442_v51 }
 0x4be   :  { %v4352_v35 = vadd.f32 %v4351_v23, %v4310_v44 }
 0x4bf   :  { %v4485_v37 = vadd.f32 %v4484_v57, %v4443_v9 }
 0x4c0   :  { %v4353_v33 = vrot.slane %v4352_v35, 4 }
 0x4c1   :  { %v4486_v22 = vadd.f32 %v4485_v37, %v4444_v54 }
 0x4c2   :  { %v4354_v41 = vadd.f32 %v4353_v33, %v4352_v35 }
 0x4c3   :  { %v4487_v11 = vrot.slane %v4486_v22, 4 }
 0x4c4   :  { %v4355_v58 = vrot.slane %v4354_v41, 2 }
 0x4c5   :  { %v4488_v48 = vadd.f32 %v4487_v11, %v4486_v22 }
 0x4c6   :  { %v4356_v61 = vadd.f32 %v4355_v58, %v4354_v41 }
 0x4c7   :  { %v4489_v0 = vrot.slane %v4488_v48, 2 }
 0x4c8   :  { %v4357_v3 = vrot.slane %v4356_v61, 1 }
 0x4c9   :  { %v4490_v8 = vadd.f32 %v4489_v0, %v4488_v48 }
 0x4ca   :  { %v4358_v40 = vadd.f32 %v4357_v3, %v4356_v61 }
 0x4cb   :  { %v4491_v38 = vrot.slane %v4490_v8, 1 }
 0x4cc   :  { %v13829_v21 = vmul.f32 0.004132231, %v4358_v40 }
 0x4cd   :  { %v4492_v1 = vadd.f32 %v4491_v38, %v4490_v8 }
 0x4ce   :  { %v4495_v51 = vmul.f32 %v13829_v21, %v13829_v21  ;;  %v4538_v36 = vsub.f32 %v13814_v15, %v13829_v21  ;;  %v4497_v33 = vsub.f32 %v13444_v31, %v13829_v21  ;;  %v4498_v11 = vsub.f32 %v13450_v34, %v13829_v21 }
 0x4cf   :  { %v4494_v58 = vmul.f32 0.004132231, %v4492_v1  ;;  %v4499_v22 = vsub.f32 %v13440_v29, %v13829_v21  ;;  %v4500_v41 = vsub.f32 %v13448_v43, %v13829_v21  ;;  %v4501_v38 = vsub.f32 %v13476_v47, %v13829_v21 }
 0x4d0   :  { %v4502_v61 = vsub.f32 %v13486_v16, %v13829_v21  ;;  %v4503_v0 = vsub.f32 %v13473_v14, %v13829_v21  ;;  %v4504_v31 = vsub.f32 %v13482_v60, %v13829_v21  ;;  %v4505_v34 = vsub.f32 %v13509_v42, %v13829_v21 }
 0x4d1   :  { %v4496_v40 = vsub.f32 %v4494_v58, %v4495_v51  ;;  %v4506_v29 = vsub.f32 %v13520_v46, %v13829_v21  ;;  %v4507_v43 = vsub.f32 %v13504_v2, %v13829_v21  ;;  %v4508_v47 = vsub.f32 %v13515_v49, %v13829_v21 }
 0x4d2   :  { %v4509_v16 = vsub.f32 %v13543_v63, %v13829_v21  ;;  %v4510_v14 = vsub.f32 %v13552_v17, %v13829_v21  ;;  %v4511_v60 = vsub.f32 %v13538_v56, %v13829_v21  ;;  %v4512_v42 = vsub.f32 %v13549_v28, %v13829_v21 }
 0x4d3   :  { %v4540_v48 = vadd.f32 1e-05, %v4496_v40  ;;  %v4513_v46 = vsub.f32 %v13584_v4, %v13829_v21  ;;  %v4514_v2 = vsub.f32 %v13595_v27, %v13829_v21  ;;  %v4515_v49 = vsub.f32 %v13578_v19, %v13829_v21 }
 0x4d4   :  { %v4516_v63 = vsub.f32 %v13590_v20, %v13829_v21  ;;  %v4517_v17 = vsub.f32 %v13624_v59, %v13829_v21  ;;  %v4518_v56 = vsub.f32 %v13635_v30, %v13829_v21  ;;  %v4519_v28 = vsub.f32 %v13616_v45, %v13829_v21 }
 0x4d5   :  { %12003 = vrsqrt.f32 %v4540_v48  ;;  %v4520_v4 = vsub.f32 %v13630_v39, %v13829_v21  ;;  %v4521_v27 = vsub.f32 %v13664_v6, %v13829_v21  ;;  %v4522_v19 = vsub.f32 %v13673_v25, %v13829_v21 }
 0x4d6   :  { %v4523_v20 = vsub.f32 %v13656_v10, %v13829_v21  ;;  %v4524_v59 = vsub.f32 %v13670_v53, %v13829_v21  ;;  %v4525_v30 = vsub.f32 %v13704_v5, %v13829_v21  ;;  %v4526_v45 = vsub.f32 %v13715_v52, %v13829_v21  ;;  %v15757_v52 = vld [vmem:[#allocation45_spill] sm:$0xff] }
 0x4d7   :  { %v4527_v39 = vsub.f32 %v13696_v18, %v13829_v21  ;;  %v4528_v6 = vsub.f32 %v13710_v12, %v13829_v21  ;;  %v4529_v25 = vsub.f32 %v13739_v7, %v13829_v21  ;;  %v4530_v10 = vsub.f32 %v13750_v62, %v13829_v21  ;;  %v15758_v18 = vld [vmem:[#allocation47_spill] sm:$0xff]  ;;  %v15760_v7 = vld [vmem:[#allocation46_spill] sm:$0xff] }
 0x4d8   :  { %v4531_v53 = vsub.f32 %v13734_v26, %v13829_v21  ;;  %v4532_v5 = vsub.f32 %v13745_v24, %v13829_v21  ;;  %v4533_v37 = vsub.f32 %v15757_v52, %v13829_v21  ;;  %v4534_v15 = vsub.f32 %v15758_v18, %v13829_v21  ;;  %v15759_v12 = vld [vmem:[#allocation43_spill] sm:$0xff]  ;;  %v15762_v26 = vld [vmem:[#allocation50_spill] sm:$0xff] }
 0x4d9   :  { %v4535_v50 = vsub.f32 %v15759_v12, %v13829_v21  ;;  %v4536_v32 = vsub.f32 %v15760_v7, %v13829_v21  ;;  %v15761_v62 = vld [vmem:[#allocation51_spill] sm:$0xff]  ;;  %v4539_v23 = vsub.f32 %v15762_v26, %v13829_v21 }
 0x4da   :  { %v4537_v44 = vsub.f32 %v15761_v62, %v13829_v21 }
 0x4df   :  { %v12004_v9 = vpop.eup %12003 }
 0x4e0   :  { %v4583_v24 = vmul.f32 %v12004_v9, %v4538_v36  ;;  %v13919_v57 = vmul.f32 %v12004_v9, %v4497_v33  ;;  %v13921_v35 = vmul.f32 %v12004_v9, %v4498_v11  ;;  %v13923_v54 = vmul.f32 %v12004_v9, %v4499_v22 }
 0x4e1   :  { %v13925_v3 = vmul.f32 %v12004_v9, %v4500_v41  ;;  %v13927_v8 = vmul.f32 %v12004_v9, %v4501_v38  ;;  %v13929_v1 = vmul.f32 %v12004_v9, %v4502_v61  ;;  %v13931_v51 = vmul.f32 %v12004_v9, %v4503_v0 }
 0x4e2   :  { %v4626_v58 = vmax.f32 %v4583_v24, 0.0  ;;  %v13933_v40 = vmul.f32 %v12004_v9, %v4504_v31  ;;  %v13935_v21 = vmul.f32 %v12004_v9, %v4505_v34  ;;  %v13937_v36 = vmul.f32 %v12004_v9, %v4506_v29 }
 0x4e3   :  { %v13939_v33 = vmul.f32 %v12004_v9, %v4507_v43  ;;  %v13941_v11 = vmul.f32 %v12004_v9, %v4508_v47  ;;  %v13943_v22 = vmul.f32 %v12004_v9, %v4509_v16  ;;  %v13945_v41 = vmul.f32 %v12004_v9, %v4510_v14 }
 0x4e4   :  { %v4669_v38 = vmul.f32 %v4626_v58, %v13811_v55  ;;  %v13948_v61 = vmul.f32 %v12004_v9, %v4511_v60  ;;  %v13950_v0 = vmul.f32 %v12004_v9, %v4512_v42  ;;  %v13952_v31 = vmul.f32 %v12004_v9, %v4513_v46 }
 0x4e5   :  { %v13954_v34 = vmul.f32 %v12004_v9, %v4514_v2  ;;  %v13956_v29 = vmul.f32 %v12004_v9, %v4515_v49  ;;  %v13958_v43 = vmul.f32 %v12004_v9, %v4516_v63  ;;  %v13960_v47 = vmul.f32 %v12004_v9, %v4517_v17 }
 0x4e6   :  { %4716 = vst [vmem:[#allocation3 + $0x158] sm:$0xff] %v4669_v38  ;;  %v13962_v16 = vmul.f32 %v12004_v9, %v4518_v56  ;;  %v13964_v14 = vmul.f32 %v12004_v9, %v4519_v28  ;;  %v13966_v48 = vmul.f32 %v12004_v9, %v4520_v4  ;;  %v13968_v60 = vmul.f32 %v12004_v9, %v4521_v27  ;;  %v15768_v38 = vld [vmem:[#allocation8_spill] sm:$0xff] }
 0x4e7   :  { %v13970_v42 = vmul.f32 %v12004_v9, %v4522_v19  ;;  %v13972_v46 = vmul.f32 %v12004_v9, %v4523_v20  ;;  %v13974_v2 = vmul.f32 %v12004_v9, %v4524_v59  ;;  %v13976_v49 = vmul.f32 %v12004_v9, %v4525_v30 }
 0x4e8   :  { %v13978_v63 = vmul.f32 %v12004_v9, %v4526_v45  ;;  %v13980_v17 = vmul.f32 %v12004_v9, %v4527_v39  ;;  %v13982_v56 = vmul.f32 %v12004_v9, %v4528_v6  ;;  %v13984_v28 = vmul.f32 %v12004_v9, %v4529_v25 }
 0x4e9   :  { %v13986_v4 = vmul.f32 %v12004_v9, %v4530_v10  ;;  %v13988_v27 = vmul.f32 %v12004_v9, %v4531_v53  ;;  %v13990_v19 = vmul.f32 %v12004_v9, %v4532_v5  ;;  %v13992_v20 = vmul.f32 %v12004_v9, %v4533_v37 }
 0x4ea   :  { %v13994_v59 = vmul.f32 %v12004_v9, %v4534_v15  ;;  %v13996_v30 = vmul.f32 %v12004_v9, %v4535_v50  ;;  %v13998_v45 = vmul.f32 %v12004_v9, %v4536_v32  ;;  %v14000_v39 = vmul.f32 %v12004_v9, %v4537_v44 }
 0x4eb   :  { %v14002_v6 = vmul.f32 %v12004_v9, %v4539_v23  ;;  %v4585_v25 = vmax.f32 %v13919_v57, 0.0  ;;  %v4586_v10 = vmax.f32 %v13921_v35, 0.0  ;;  %v4587_v53 = vmax.f32 %v13923_v54, 0.0 }
 0x4ec   :  { %v4588_v5 = vmax.f32 %v13925_v3, 0.0  ;;  %v4589_v52 = vmax.f32 %v13927_v8, 0.0  ;;  %v4590_v37 = vmax.f32 %v13929_v1, 0.0  ;;  %v4591_v18 = vmax.f32 %v13931_v51, 0.0 }
 0x4ed   :  { %v4592_v15 = vmax.f32 %v13933_v40, 0.0  ;;  %v4593_v12 = vmax.f32 %v13935_v21, 0.0  ;;  %v4594_v50 = vmax.f32 %v13937_v36, 0.0  ;;  %v4595_v7 = vmax.f32 %v13939_v33, 0.0 }
 0x4ee   :  { %v4596_v32 = vmax.f32 %v13941_v11, 0.0  ;;  %v4597_v62 = vmax.f32 %v13943_v22, 0.0  ;;  %v4598_v44 = vmax.f32 %v13945_v41, 0.0  ;;  %v4599_v26 = vmax.f32 %v13948_v61, 0.0  ;;  %v15767_v61 = vld [vmem:[#allocation7_spill] sm:$0xff]  ;;  %v15769_v41 = vld [vmem:[#allocation9_spill] sm:$0xff] }
 0x4ef   :  { %v4600_v23 = vmax.f32 %v13950_v0, 0.0  ;;  %v4601_v9 = vmax.f32 %v13952_v31, 0.0  ;;  %v4602_v24 = vmax.f32 %v13954_v34, 0.0  ;;  %v4603_v57 = vmax.f32 %v13956_v29, 0.0  ;;  %v15770_v22 = vld [vmem:[#allocation10_spill] sm:$0xff]  ;;  %v15771_v11 = vld [vmem:[#allocation11_spill] sm:$0xff] }
 0x4f0   :  { %v4604_v35 = vmax.f32 %v13958_v43, 0.0  ;;  %v4605_v54 = vmax.f32 %v13960_v47, 0.0  ;;  %v4606_v3 = vmax.f32 %v13962_v16, 0.0  ;;  %v4607_v8 = vmax.f32 %v13964_v14, 0.0  ;;  %v15763_v14 = vld [vmem:[#allocation4_spill] sm:$0xff]  ;;  %v15772_v16 = vld [vmem:[#allocation13_spill] sm:$0xff] }
 0x4f1   :  { %v4608_v1 = vmax.f32 %v13966_v48, 0.0  ;;  %v4609_v51 = vmax.f32 %v13968_v60, 0.0  ;;  %v4610_v58 = vmax.f32 %v13970_v42, 0.0  ;;  %v4611_v40 = vmax.f32 %v13972_v46, 0.0  ;;  %v15764_v60 = vld [vmem:[#allocation12_spill] sm:$0xff]  ;;  %v15765_v46 = vld [vmem:[#allocation5_spill] sm:$0xff] }
 0x4f2   :  { %v4612_v21 = vmax.f32 %v13974_v2, 0.0  ;;  %v4613_v36 = vmax.f32 %v13976_v49, 0.0  ;;  %v4628_v48 = vmul.f32 %v4585_v25, %v15763_v14  ;;  %v4629_v42 = vmul.f32 %v4586_v10, %v15764_v60  ;;  %v15766_v49 = vld [vmem:[#allocation6_spill] sm:$0xff]  ;;  %v15774_v10 = vld [vmem:[#allocation15_spill] sm:$0xff] }
 0x4f3   :  { %v4630_v2 = vmul.f32 %v4587_v53, %v15765_v46  ;;  %v4631_v0 = vmul.f32 %v4588_v5, %v15766_v49  ;;  %v4632_v31 = vmul.f32 %v4589_v52, %v15767_v61  ;;  %v4633_v34 = vmul.f32 %v4590_v37, %v15768_v38  ;;  %v15773_v25 = vld [vmem:[#allocation14_spill] sm:$0xff]  ;;  %v15775_v53 = vld [vmem:[#allocation16_spill] sm:$0xff]  ;;  %v15776_v5 = vld [vmem:[#allocation17_spill] sm:$0xff] }
 0x4f4   :  { %v4634_v29 = vmul.f32 %v4591_v18, %v15769_v41  ;;  %v4635_v43 = vmul.f32 %v4592_v15, %v15770_v22  ;;  %v4636_v47 = vmul.f32 %v4593_v12, %v15771_v11  ;;  %4675 = vst [vmem:[#allocation3 + $0x10] sm:$0xff] %v4628_v48  ;;  %v4637_v33 = vmul.f32 %v4594_v50, %v15772_v16  ;;  %v15777_v37 = vld [vmem:[#allocation18_spill] sm:$0xff]  ;;  %v15778_v15 = vld [vmem:[#allocation19_spill] sm:$0xff]  ;;  %v15779_v12 = vld [vmem:[#allocation20_spill] sm:$0xff] }
 0x4f5   :  { %v4638_v55 = vmul.f32 %v4595_v7, %v15773_v25  ;;  %v4639_v60 = vmul.f32 %v4596_v32, %v15774_v10  ;;  %v4640_v46 = vmul.f32 %v4597_v62, %v15775_v53  ;;  %4676 = vst [vmem:[#allocation3 + $0x18] sm:$0xff] %v4629_v42  ;;  %4677 = vst [vmem:[#allocation3 + $0x20] sm:$0xff] %v4630_v2  ;;  %v15780_v50 = vld [vmem:[#allocation21_spill] sm:$0xff]  ;;  %v15781_v32 = vld [vmem:[#allocation22_spill] sm:$0xff] }
 0x4f6   :  { %4678 = vst [vmem:[#allocation3 + $0x28] sm:$0xff] %v4631_v0  ;;  %4679 = vst [vmem:[#allocation3 + $0x30] sm:$0xff] %v4632_v31  ;;  %v4641_v52 = vmul.f32 %v4598_v44, %v15776_v5  ;;  %v4642_v18 = vmul.f32 %v4599_v26, %v15777_v37  ;;  %v4643_v22 = vmul.f32 %v4600_v23, %v15778_v15  ;;  %v15782_v42 = vld [vmem:[#allocation23_spill] sm:$0xff]  ;;  %v15783_v0 = vld [vmem:[#allocation24_spill] sm:$0xff] }
 0x4f7   :  { %v4644_v48 = vmul.f32 %v4601_v9, %v15779_v12  ;;  %4680 = vst [vmem:[#allocation3 + $0x38] sm:$0xff] %v4633_v34  ;;  %4681 = vst [vmem:[#allocation3 + $0x40] sm:$0xff] %v4634_v29  ;;  %v4645_v7 = vmul.f32 %v4602_v24, %v15780_v50  ;;  %v4646_v62 = vmul.f32 %v4603_v57, %v15781_v32  ;;  %v15784_v44 = vld [vmem:[#allocation25_spill] sm:$0xff]  ;;  %v15785_v23 = vld [vmem:[#allocation26_spill] sm:$0xff] }
 0x4f8   :  { %4682 = vst [vmem:[#allocation3 + $0x48] sm:$0xff] %v4635_v43  ;;  %4683 = vst [vmem:[#allocation3 + $0x50] sm:$0xff] %v4636_v47  ;;  %v4647_v2 = vmul.f32 %v4604_v35, %v15782_v42  ;;  %v4648_v31 = vmul.f32 %v4605_v54, %v15783_v0  ;;  %v4649_v26 = vmul.f32 %v4606_v3, %v15784_v44  ;;  %v15786_v34 = vld [vmem:[#allocation27_spill] sm:$0xff]  ;;  %v15787_v43 = vld [vmem:[#allocation28_spill] sm:$0xff] }
 0x4f9   :  { %4684 = vst [vmem:[#allocation3 + $0x58] sm:$0xff] %v4637_v33  ;;  %4685 = vst [vmem:[#allocation3 + $0x60] sm:$0xff] %v4638_v55  ;;  %v4650_v9 = vmul.f32 %v4607_v8, %v15785_v23  ;;  %v4651_v29 = vmul.f32 %v4608_v1, %v15786_v34  ;;  %v4652_v47 = vmul.f32 %v4609_v51, %v15787_v43  ;;  %v15788_v24 = vld [vmem:[#allocation29_spill] sm:$0xff]  ;;  %v15789_v35 = vld [vmem:[#allocation30_spill] sm:$0xff]  ;;  %v15793_v8 = vmax.f32 %v13978_v63, 0.0 }
 0x4fa   :  { %4686 = vst [vmem:[#allocation3 + $0x68] sm:$0xff] %v4639_v60  ;;  %4687 = vst [vmem:[#allocation3 + $0x70] sm:$0xff] %v4640_v46  ;;  %v4653_v57 = vmul.f32 %v4610_v58, %v15788_v24  ;;  %v4654_v54 = vmul.f32 %v4611_v40, %v15789_v35  ;;  %v15790_v33 = vld [vmem:[#allocation31_spill] sm:$0xff]  ;;  %v15791_v60 = vld [vmem:[#allocation32_spill] sm:$0xff]  ;;  %v15797_v58 = vmax.f32 %v13982_v56, 0.0  ;;  %v15801_v63 = vmax.f32 %v13986_v4, 0.0 }
 0x4fb   :  { %4688 = vst [vmem:[#allocation3 + $0x78] sm:$0xff] %v4641_v52  ;;  %4689 = vst [vmem:[#allocation3 + $0x80] sm:$0xff] %v4642_v18  ;;  %v4655_v55 = vmul.f32 %v4612_v21, %v15790_v33  ;;  %v4656_v46 = vmul.f32 %v4613_v36, %v15791_v60  ;;  %v15792_v3 = vld [vmem:[#allocation33_spill] sm:$0xff]  ;;  %v15794_v51 = vld [vmem:[#allocation34_spill] sm:$0xff]  ;;  %v15799_v21 = vmax.f32 %v13984_v28, 0.0  ;;  %v15805_v56 = vmax.f32 %v13990_v19, 0.0 }
 0x4fc   :  { %4690 = vst [vmem:[#allocation3 + $0x88] sm:$0xff] %v4643_v22  ;;  %4691 = vst [vmem:[#allocation3 + $0x90] sm:$0xff] %v4644_v48  ;;  %v4657_v1 = vmul.f32 %v15793_v8, %v15792_v3  ;;  %v15795_v22 = vmax.f32 %v13980_v17, 0.0  ;;  %v15796_v18 = vld [vmem:[#allocation35_spill] sm:$0xff]  ;;  %v15798_v48 = vld [vmem:[#allocation36_spill] sm:$0xff]  ;;  %v15803_v17 = vmax.f32 %v13988_v27, 0.0 }
 0x4fd   :  { %4692 = vst [vmem:[#allocation3 + $0x98] sm:$0xff] %v4645_v7  ;;  %4693 = vst [vmem:[#allocation3 + $0xa0] sm:$0xff] %v4646_v62  ;;  %v4659_v40 = vmul.f32 %v15797_v58, %v15796_v18  ;;  %v4660_v36 = vmul.f32 %v15799_v21, %v15798_v48  ;;  %v4799_v7 = vld [vmem:[#allocation3 + $0x3] sm:$0xff]  ;;  %v15807_v28 = vmax.f32 %v13992_v20, 0.0  ;;  %v15809_v4 = vmax.f32 %v13994_v59, 0.0  ;;  %v15810_v21 = vld [vmem:[#allocation44_spill] sm:$0xff] }
 0x4fe   :  { %4694 = vst [vmem:[#allocation3 + $0xa8] sm:$0xff] %v4647_v2  ;;  %4695 = vst [vmem:[#allocation3 + $0xb0] sm:$0xff] %v4648_v31  ;;  %v4658_v52 = vmul.f32 %v15795_v22, %v15794_v51  ;;  %v15800_v62 = vld [vmem:[#allocation38_spill] sm:$0xff]  ;;  %v15802_v31 = vld [vmem:[#allocation39_spill] sm:$0xff]  ;;  %v15811_v27 = vmax.f32 %v13996_v30, 0.0  ;;  %v15813_v19 = vmax.f32 %v13998_v45, 0.0 }
 0x4ff   :  { %4696 = vst [vmem:[#allocation3 + $0xb8] sm:$0xff] %v4649_v26  ;;  %4697 = vst [vmem:[#allocation3 + $0xc0] sm:$0xff] %v4650_v9  ;;  %v4661_v2 = vmul.f32 %v15801_v63, %v15800_v62  ;;  %v4662_v8 = vmul.f32 %v15803_v17, %v15802_v31  ;;  %v15804_v22 = vld [vmem:[#allocation40_spill] sm:$0xff]  ;;  %v15806_v18 = vld [vmem:[#allocation41_spill] sm:$0xff]  ;;  %v15815_v20 = vmax.f32 %v14000_v39, 0.0 }
 0x500   :  { %4698 = vst [vmem:[#allocation3 + $0xc8] sm:$0xff] %v4651_v29  ;;  %4699 = vst [vmem:[#allocation3 + $0xd0] sm:$0xff] %v4652_v47  ;;  %v4663_v58 = vmul.f32 %v15805_v56, %v15804_v22  ;;  %v4664_v26 = vmul.f32 %v15807_v28, %v15806_v18  ;;  %v4800_v9 = vld [vmem:[#allocation3 + $0xb] sm:$0xff]  ;;  %v4666_v63 = vmul.f32 %v15811_v27, %v15810_v21  ;;  %v15812_v17 = vld [vmem:[#allocation48_spill] sm:$0xff] }
 0x501   :  { %4700 = vst [vmem:[#allocation3 + $0xd8] sm:$0xff] %v4653_v57  ;;  %4701 = vst [vmem:[#allocation3 + $0xe0] sm:$0xff] %v4654_v54  ;;  %v15808_v29 = vld [vmem:[#allocation42_spill] sm:$0xff]  ;;  %v4667_v56 = vmul.f32 %v15813_v19, %v15812_v17  ;;  %v15814_v22 = vld [vmem:[#allocation49_spill] sm:$0xff]  ;;  %v4842_v45 = vpack.c.bf16 %v4800_v9, %v4799_v7 }
 0x502   :  { %4702 = vst [vmem:[#allocation3 + $0xe8] sm:$0xff] %v4655_v55  ;;  %4703 = vst [vmem:[#allocation3 + $0xf0] sm:$0xff] %v4656_v46  ;;  %v4665_v47 = vmul.f32 %v15809_v4, %v15808_v29  ;;  %v4668_v57 = vmul.f32 %v15815_v20, %v15814_v22  ;;  %v4801_v54 = vld [vmem:[#allocation3 + $0x13] sm:$0xff]  ;;  %v4802_v55 = vld [vmem:[#allocation3 + $0x1b] sm:$0xff]  ;;  %v15816_v46 = vmax.f32 %v14002_v6, 0.0 }
 0x503   :  { %4704 = vst [vmem:[#allocation3 + $0xf8] sm:$0xff] %v4657_v1  ;;  %4705 = vst [vmem:[#allocation3 + $0x100] sm:$0xff] %v4658_v52  ;;  %v4803_v59 = vld [vmem:[#allocation3 + $0x23] sm:$0xff]  ;;  %v4843_v28 = vpack.c.bf16 %v4802_v55, %v4801_v54  ;;  %v4804_v4 = vld [vmem:[#allocation3 + $0x2b] sm:$0xff]  ;;  %10381 = vmatprep.mubr.bf16.mxu1 %v4842_v45 }
 0x504   :  { %4706 = vst [vmem:[#allocation3 + $0x108] sm:$0xff] %v4659_v40  ;;  %4707 = vst [vmem:[#allocation3 + $0x110] sm:$0xff] %v4660_v36  ;;  %v4670_v30 = vmul.f32 %v15816_v46, %v13821_v13  ;;  %v11768_v39 = vld [vmem:[%s15547_s4 + $0x8] sm:$0xff]   ;;  %v4844_v1 = vpack.c.bf16 %v4804_v4, %v4803_v59  ;;  %v15817_v6 = vld [vmem:[#allocation37_spill] sm:$0xff] }
 0x505   :  { %4708 = vst [vmem:[#allocation3 + $0x118] sm:$0xff] %v4661_v2  ;;  %4709 = vst [vmem:[#allocation3 + $0x120] sm:$0xff] %v4662_v8  ;;  %10382 = vmatmul.mubr.bf16.vlgmr.msra.gmra.mrb[0].mxu1 %v4843_v28  ;;  %v11769_v52 = vld [vmem:[%s15547_s4 + $0x10] sm:$0xff]   ;;  %v4807_v7 = vld [vmem:[#allocation3 + $0x43] sm:$0xff] }
 0x506   :  { %4710 = vst [vmem:[#allocation3 + $0x128] sm:$0xff] %v4663_v58  ;;  %4711 = vst [vmem:[#allocation3 + $0x130] sm:$0xff] %v4664_v26  ;;  %10385 = vmatprep.mubr.bf16.mxu1 %v4844_v1  ;;  %10426 = vmatpush3.bf16.msra.mxu1 %v15817_v6  ;;  %v4805_v40 = vld [vmem:[#allocation3 + $0x33] sm:$0xff]  ;;  %v4806_v36 = vld [vmem:[#allocation3 + $0x3b] sm:$0xff] }
 0x507   :  { %4712 = vst [vmem:[#allocation3 + $0x138] sm:$0xff] %v4665_v47  ;;  %4713 = vst [vmem:[#allocation3 + $0x140] sm:$0xff] %v4666_v63  ;;  %10427 = vmatprep.subr.bf16.mxu1 %v11768_v39  ;;  %v4808_v2 = vld [vmem:[#allocation3 + $0x4b] sm:$0xff]  ;;  %v4845_v8 = vpack.c.bf16 %v4806_v36, %v4805_v40  ;;  %v11770_v58 = vld [vmem:[%s15547_s4 + $0x18] sm:$0xff]  }
 0x508   :  { %4714 = vst [vmem:[#allocation3 + $0x148] sm:$0xff] %v4667_v56  ;;  %4715 = vst [vmem:[#allocation3 + $0x150] sm:$0xff] %v4668_v57  ;;  %v4846_v26 = vpack.c.bf16 %v4808_v2, %v4807_v7  ;;  %v11771_v9 = vld [vmem:[%s15547_s4 + $0x20] sm:$0xff]   ;;  %v4809_v47 = vld [vmem:[#allocation3 + $0x53] sm:$0xff] }
 0x509   :  { %4717 = vst [vmem:[#allocation3 + $0x160] sm:$0xff] %v4670_v30  ;;  %v4810_v27 = vld [vmem:[#allocation3 + $0x5b] sm:$0xff]  ;;  %v4811_v63 = vld [vmem:[#allocation3 + $0x63] sm:$0xff]  ;;  %v4812_v19 = vld [vmem:[#allocation3 + $0x6b] sm:$0xff] }
 0x50a   :  { %10428 = vmatpush3.bf16.msra.mxu1 %v11768_v39  ;;  %v4847_v56 = vpack.c.bf16 %v4810_v27, %v4809_v47  ;;  %v11772_v20 = vld [vmem:[%s15547_s4 + $0x28] sm:$0xff]   ;;  %v4848_v57 = vpack.c.bf16 %v4812_v19, %v4811_v63  ;;  %v11773_v54 = vld [vmem:[%s15547_s4 + $0x30] sm:$0xff]   ;;  %v4815_v46 = vld [vmem:[#allocation3 + $0x83] sm:$0xff] }
 0x50b   :  { %10429 = vmatprep.subr.bf16.mxu1 %v11769_v52  ;;  %v4813_v55 = vld [vmem:[#allocation3 + $0x73] sm:$0xff]  ;;  %v4814_v59 = vld [vmem:[#allocation3 + $0x7b] sm:$0xff]  ;;  %v4816_v30 = vld [vmem:[#allocation3 + $0x8b] sm:$0xff] }
 0x50c   :  { %v4849_v45 = vpack.c.bf16 %v4814_v59, %v4813_v55  ;;  %v11774_v28 = vld [vmem:[%s15547_s4 + $0x38] sm:$0xff]   ;;  %v4850_v4 = vpack.c.bf16 %v4816_v30, %v4815_v46  ;;  %v14139_v39 = vld [vmem:[%s15547_s4 + $0x80] sm:$0xff]   ;;  %v14147_v7 = vld [vmem:[#allocation3 + $0x34] sm:$0xff] }
 0x50d   :  { %10386 = vmatmul.mubr.bf16.gmra.mrb[4].mxu1 %v4845_v8  ;;  %v14141_v1 = vld [vmem:[#allocation3 + $0x1c] sm:$0xff]  ;;  %v14143_v6 = vld [vmem:[#allocation3 + $0x24] sm:$0xff]  ;;  %v14145_v36 = vld [vmem:[#allocation3 + $0x2c] sm:$0xff] }
 0x50e   :  { %10389 = vmatprep.mubr.bf16.mxu1 %v4846_v26  ;;  %10430 = vmatpush3.bf16.msra.mxu1 %v11769_v52  ;;  %v4817_v52 = vld [vmem:[#allocation3 + $0x93] sm:$0xff]  ;;  %v4818_v40 = vld [vmem:[#allocation3 + $0x9b] sm:$0xff]  ;;  %v4819_v8 = vld [vmem:[#allocation3 + $0xa3] sm:$0xff] }
 0x50f   :  { %10431 = vmatprep.subr.bf16.mxu1 %v11770_v58  ;;  %v14151_v26 = vld [vmem:[#allocation3 + $0x3c] sm:$0xff]  ;;  %v14155_v47 = vld [vmem:[#allocation3 + $0x4c] sm:$0xff]  ;;  %v14159_v63 = vld [vmem:[#allocation3 + $0x54] sm:$0xff]  ;;  %v4851_v27 = vpack.c.bf16 %v4818_v40, %v4817_v52 }
 0x510   :  { %v14161_v19 = vld [vmem:[#allocation3 + $0x5c] sm:$0xff]  ;;  %v14177_v30 = vld [vmem:[#allocation3 + $0x84] sm:$0xff]  ;;  %v14190_v59 = vld [vmem:[#allocation3 + $0xac] sm:$0xff] }
 0x511   :  { %v14171_v55 = vld [vmem:[#allocation3 + $0x7c] sm:$0xff]  ;;  %v14188_v13 = vld [vmem:[#allocation3 + $0xa4] sm:$0xff]  ;;  %v14196_v17 = vld [vmem:[#allocation3 + $0xb4] sm:$0xff] }
 0x512   :  { %10432 = vmatpush3.bf16.msra.mxu1 %v11770_v58  ;;  %v4820_v58 = vld [vmem:[#allocation3 + $0xab] sm:$0xff]  ;;  %v14186_v2 = vld [vmem:[#allocation3 + $0x9c] sm:$0xff]  ;;  %v14206_v29 = vld [vmem:[#allocation3 + $0xd4] sm:$0xff] }
 0x513   :  { %10433 = vmatprep.subr.bf16.mxu1 %v11771_v9  ;;  %v4852_v22 = vpack.c.bf16 %v4820_v58, %v4819_v8  ;;  %v14198_v21 = vld [vmem:[#allocation3 + $0xbc] sm:$0xff]  ;;  %v14200_v52 = vld [vmem:[#allocation3 + $0xc4] sm:$0xff]  ;;  %v4821_v58 = vld [vmem:[#allocation3 + $0xb3] sm:$0xff] }
 0x514   :  { %v14208_v18 = vld [vmem:[#allocation3 + $0xdc] sm:$0xff]  ;;  %v14214_v31 = vld [vmem:[#allocation3 + $0xe4] sm:$0xff]  ;;  %v14216_v62 = vld [vmem:[#allocation3 + $0xec] sm:$0xff] }
 0x515   :  { %10390 = vmatmul.mubr.bf16.gmra.mrb[8].mxu1 %v4847_v56  ;;  %v14163_v56 = vld [vmem:[#allocation3 + $0x64] sm:$0xff]  ;;  %v14220_v51 = vld [vmem:[#allocation3 + $0xf4] sm:$0xff]  ;;  %v14222_v3 = vld [vmem:[#allocation3 + $0xfc] sm:$0xff] }
 0x516   :  { %10393 = vmatprep.mubr.bf16.mxu1 %v4848_v57  ;;  %10434 = vmatpush3.bf16.msra.mxu1 %v11771_v9  ;;  %v14153_v9 = vld [vmem:[#allocation3 + $0x44] sm:$0xff]  ;;  %v14167_v57 = vld [vmem:[#allocation3 + $0x6c] sm:$0xff]  ;;  %v14230_v60 = vld [vmem:[#allocation3 + $0x114] sm:$0xff] }
 0x517   :  { %10435 = vmatprep.subr.bf16.mxu1 %v11772_v20  ;;  %v4823_v40 = vld [vmem:[#allocation3 + $0xc3] sm:$0xff]  ;;  %v4824_v48 = vld [vmem:[#allocation3 + $0xcb] sm:$0xff]  ;;  %v14242_v34 = vld [vmem:[#allocation3 + $0x134] sm:$0xff] }
 0x518   :  { %v14224_v46 = vld [vmem:[#allocation3 + $0x104] sm:$0xff]  ;;  %v14228_v8 = vld [vmem:[#allocation3 + $0x10c] sm:$0xff]  ;;  %v14232_v33 = vld [vmem:[#allocation3 + $0x11c] sm:$0xff]  ;;  %v4854_v12 = vpack.c.bf16 %v4824_v48, %v4823_v40 }
 0x519   :  { %v14238_v24 = vld [vmem:[#allocation3 + $0x124] sm:$0xff]  ;;  %v14240_v43 = vld [vmem:[#allocation3 + $0x12c] sm:$0xff]  ;;  %v14246_v23 = vld [vmem:[#allocation3 + $0x13c] sm:$0xff] }
 0x51a   :  { %10436 = vmatpush3.bf16.msra.mxu1 %v11772_v20  ;;  %v14204_v20 = vld [vmem:[#allocation3 + $0xcc] sm:$0xff]  ;;  %v14248_v44 = vld [vmem:[#allocation3 + $0x144] sm:$0xff]  ;;  %v14256_v32 = vld [vmem:[#allocation3 + $0x154] sm:$0xff] }
 0x51b   :  { %10437 = vmatprep.subr.bf16.mxu1 %v11773_v54  ;;  %v14250_v0 = vld [vmem:[#allocation3 + $0x14c] sm:$0xff]  ;;  %v4826_v37 = vld [vmem:[#allocation3 + $0xdb] sm:$0xff]  ;;  %v4827_v5 = vld [vmem:[#allocation3 + $0xe3] sm:$0xff] }
 0x51c   :  { %v4825_v15 = vld [vmem:[#allocation3 + $0xd3] sm:$0xff]  ;;  %v4828_v53 = vld [vmem:[#allocation3 + $0xeb] sm:$0xff]  ;;  %v4831_v35 = vld [vmem:[#allocation3 + $0x103] sm:$0xff] }
 0x51d   :  { %10394 = vmatmul.mubr.bf16.gmra.mrb[12].mxu1 %v4849_v45  ;;  %v14179_v45 = vld [vmem:[#allocation3 + $0x8c] sm:$0xff]  ;;  %v4856_v10 = vpack.c.bf16 %v4828_v53, %v4827_v5  ;;  %v4834_v40 = vld [vmem:[#allocation3 + $0x11b] sm:$0xff]  ;;  %v4839_v5 = vld [vmem:[#allocation3 + $0x143] sm:$0xff] }
 0x51e   :  { %10397 = vmatprep.mubr.bf16.mxu1 %v4850_v4  ;;  %10438 = vmatpush3.bf16.msra.mxu1 %v11773_v54  ;;  %v14169_v54 = vld [vmem:[#allocation3 + $0x74] sm:$0xff]  ;;  %v4832_v25 = vld [vmem:[#allocation3 + $0x10b] sm:$0xff] }
 0x51f   :  { %10439 = vmatprep.subr.bf16.mxu1 %v11774_v28  ;;  %v14181_v4 = vld [vmem:[#allocation3 + $0x94] sm:$0xff]  ;;  %v4858_v50 = vpack.c.bf16 %v4832_v25, %v4831_v35  ;;  %v4718_v25 = vld [vmem:[#allocation3 + $0x2] sm:$0xff] }
 0x520   :  { %v4833_v48 = vld [vmem:[#allocation3 + $0x113] sm:$0xff]  ;;  %v4838_v53 = vld [vmem:[#allocation3 + $0x13b] sm:$0xff] }
 0x522   :  { %10440 = vmatpush3.bf16.msra.mxu1 %v11774_v28  ;;  %v4822_v28 = vld [vmem:[#allocation3 + $0xbb] sm:$0xff] }
 0x523   :  { %10485 = vmatprep.subr.bf16.mxu1 %v14139_v39  ;;  %v4853_v42 = vpack.c.bf16 %v4822_v28, %v4821_v58  ;;  %v4829_v28 = vld [vmem:[#allocation3 + $0xf3] sm:$0xff]  ;;  %v4830_v58 = vld [vmem:[#allocation3 + $0xfb] sm:$0xff] }
 0x524   :  { %v4857_v16 = vpack.c.bf16 %v4830_v58, %v4829_v28  ;;  %v4841_v28 = vld [vmem:[#allocation3 + $0x153] sm:$0xff] }
 0x525   :  { %10398 = vmatmul.mubr.bf16.gmra.mrb[16].mxu1 %v4851_v27  ;;  %v4855_v27 = vpack.c.bf16 %v4826_v37, %v4825_v15  ;;  %v4837_v37 = vld [vmem:[#allocation3 + $0x133] sm:$0xff] }
 0x526   :  { %10401 = vmatprep.mubr.bf16.mxu1 %v4852_v22  ;;  %v4859_v22 = vpack.c.bf16 %v4834_v40, %v4833_v48  ;;  %v4861_v15 = vpack.c.bf16 %v4838_v53, %v4837_v37  ;;  %v4720_v58 = vld [vmem:[#allocation3 + $0x12] sm:$0xff]  ;;  %v4721_v48 = vld [vmem:[#allocation3 + $0x1a] sm:$0xff]  ;;  %v4722_v40 = vld [vmem:[#allocation3 + $0x22] sm:$0xff] }
 0x527   :  { %v11777_v37 = vld [vmem:[%s15547_s4 + $0x90] sm:$0xff]  }
 0x528   :  { %v4724_v53 = vld [vmem:[#allocation3 + $0x32] sm:$0xff] }
 0x52d   :  { %10402 = vmatmul.mubr.bf16.gmra.mrb[20].mxu1 %v4853_v42  ;;  %v4835_v42 = vld [vmem:[#allocation3 + $0x123] sm:$0xff] }
 0x52e   :  { %10405 = vmatprep.mubr.bf16.mxu1 %v4854_v12  ;;  %v4836_v12 = vld [vmem:[#allocation3 + $0x12b] sm:$0xff] }
 0x52f   :  { %v4860_v11 = vpack.c.bf16 %v4836_v12, %v4835_v42  ;;  %v11776_v42 = vld [vmem:[%s15547_s4 + $0x88] sm:$0xff]  }
 0x535   :  { %10406 = vmatmul.mubr.bf16.gmra.mrb[24].mxu1 %v4855_v27 }
 0x536   :  { %10409 = vmatprep.mubr.bf16.mxu1 %v4856_v10  ;;  %v4840_v10 = vld [vmem:[#allocation3 + $0x14b] sm:$0xff] }
 0x537   :  { %v4862_v27 = vpack.c.bf16 %v4840_v10, %v4839_v5  ;;  %v4725_v5 = vld [vmem:[#allocation3 + $0x3a] sm:$0xff]  ;;  %v4726_v10 = vld [vmem:[#allocation3 + $0x42] sm:$0xff] }
 0x53d   :  { %10410 = vmatmul.mubr.bf16.gmra.mrb[28].mxu1 %v4857_v16  ;;  %v4719_v16 = vld [vmem:[#allocation3 + $0xa] sm:$0xff] }
 0x53e   :  { %10413 = vmatprep.mubr.bf16.mxu1 %v4858_v50  ;;  %v4863_v50 = vpack.c.bf16 %v4841_v28, %v4841_v28  ;;  %v4761_v35 = vpack.c.bf16 %v4719_v16, %v4718_v25  ;;  %v11778_v28 = vld [vmem:[%s15547_s4 + $0x98] sm:$0xff]   ;;  %v4728_v16 = vld [vmem:[#allocation3 + $0x52] sm:$0xff] }
 0x545   :  { %10414 = vmatmul.mubr.bf16.gmra.mrb[32].mxu1 %v4859_v22  ;;  %v4723_v22 = vld [vmem:[#allocation3 + $0x2a] sm:$0xff] }
 0x546   :  { %10417 = vmatprep.mubr.bf16.mxu1 %v4860_v11  ;;  %v4762_v11 = vpack.c.bf16 %v4721_v48, %v4720_v58  ;;  %v4763_v12 = vpack.c.bf16 %v4723_v22, %v4722_v40  ;;  %v4731_v58 = vld [vmem:[#allocation3 + $0x6a] sm:$0xff] }
 0x547   :  { %v11780_v40 = vld [vmem:[%s15547_s4 + $0xa8] sm:$0xff]  }
 0x54d   :  { %10418 = vmatmul.mubr.bf16.gmra.mrb[36].mxu1 %v4861_v15  ;;  %v4727_v15 = vld [vmem:[#allocation3 + $0x4a] sm:$0xff] }
 0x54e   :  { %10421 = vmatprep.mubr.bf16.mxu1 %v4862_v27  ;;  %v4764_v27 = vpack.c.bf16 %v4725_v5, %v4724_v53  ;;  %v4765_v25 = vpack.c.bf16 %v4727_v15, %v4726_v10  ;;  %v4735_v53 = vld [vmem:[#allocation3 + $0x8a] sm:$0xff]  ;;  %v11782_v10 = vld [vmem:[%s15547_s4 + $0xb8] sm:$0xff]  }
 0x555   :  { %10422 = vmatmul.mubr.bf16.gmra.mrb[40].mxu1 %v4863_v50  ;;  %v4729_v50 = vld [vmem:[#allocation3 + $0x5a] sm:$0xff] }
 0x556   :  { %10441 = vmatprep.mubr.bf16.mxu1 %v4761_v35  ;;  %v4730_v35 = vld [vmem:[#allocation3 + $0x62] sm:$0xff]  ;;  %v4766_v48 = vpack.c.bf16 %v4729_v50, %v4728_v16  ;;  %v4739_v16 = vld [vmem:[#allocation3 + $0xaa] sm:$0xff] }
 0x557   :  { %v4767_v22 = vpack.c.bf16 %v4731_v58, %v4730_v35  ;;  %v4740_v58 = vld [vmem:[#allocation3 + $0xb2] sm:$0xff] }
 0x55d   :  { %10442 = vmatmul.mubr.bf16.vlgmr.msra.gmra.mrb[0].mxu1 %v4762_v11  ;;  %v11781_v11 = vld [vmem:[%s15547_s4 + $0xb0] sm:$0xff]  }
 0x55e   :  { %10445 = vmatprep.mubr.bf16.mxu1 %v4763_v12  ;;  %10486 = vmatpush3.bf16.msra.mxu1 %v14139_v39  ;;  %v11779_v39 = vld [vmem:[%s15547_s4 + $0xa0] sm:$0xff]   ;;  %v4733_v12 = vld [vmem:[#allocation3 + $0x7a] sm:$0xff] }
 0x55f   :  { %10487 = vmatprep.subr.bf16.mxu1 %v11776_v42 }
 0x562   :  { %10488 = vmatpush3.bf16.msra.mxu1 %v11776_v42  ;;  %v4732_v42 = vld [vmem:[#allocation3 + $0x72] sm:$0xff] }
 0x563   :  { %10489 = vmatprep.subr.bf16.mxu1 %v11777_v37  ;;  %v4768_v5 = vpack.c.bf16 %v4733_v12, %v4732_v42  ;;  %v4744_v12 = vld [vmem:[#allocation3 + $0xd2] sm:$0xff] }
 0x565   :  { %10446 = vmatmul.mubr.bf16.gmra.mrb[4].mxu1 %v4764_v27  ;;  %v14287_v27 = vld [vmem:[%s15547_s4 + $0xc0] sm:$0xff]  }
 0x566   :  { %10449 = vmatprep.mubr.bf16.mxu1 %v4765_v25  ;;  %10490 = vmatpush3.bf16.msra.mxu1 %v11777_v37  ;;  %v4734_v37 = vld [vmem:[#allocation3 + $0x82] sm:$0xff]  ;;  %v4737_v25 = vld [vmem:[#allocation3 + $0x9a] sm:$0xff] }
 0x567   :  { %10491 = vmatprep.subr.bf16.mxu1 %v11778_v28  ;;  %v4769_v15 = vpack.c.bf16 %v4735_v53, %v4734_v37  ;;  %v4745_v37 = vld [vmem:[#allocation3 + $0xda] sm:$0xff]  ;;  %v4746_v53 = vld [vmem:[#allocation3 + $0xe2] sm:$0xff] }
 0x56a   :  { %10492 = vmatpush3.bf16.msra.mxu1 %v11778_v28  ;;  %v4736_v28 = vld [vmem:[#allocation3 + $0x92] sm:$0xff] }
 0x56b   :  { %10493 = vmatprep.subr.bf16.mxu1 %v11779_v39  ;;  %v4770_v50 = vpack.c.bf16 %v4737_v25, %v4736_v28  ;;  %v4748_v28 = vld [vmem:[#allocation3 + $0xf2] sm:$0xff]  ;;  %v4749_v25 = vld [vmem:[#allocation3 + $0xfa] sm:$0xff] }
 0x56d   :  { %10450 = vmatmul.mubr.bf16.gmra.mrb[8].mxu1 %v4766_v48  ;;  %v4741_v48 = vld [vmem:[#allocation3 + $0xba] sm:$0xff] }
 0x56e   :  { %10453 = vmatprep.mubr.bf16.mxu1 %v4767_v22  ;;  %10494 = vmatpush3.bf16.msra.mxu1 %v11779_v39  ;;  %v4738_v39 = vld [vmem:[#allocation3 + $0xa2] sm:$0xff]  ;;  %v4743_v22 = vld [vmem:[#allocation3 + $0xca] sm:$0xff] }
 0x56f   :  { %10495 = vmatprep.subr.bf16.mxu1 %v11780_v40  ;;  %v4771_v35 = vpack.c.bf16 %v4739_v16, %v4738_v39  ;;  %v4750_v39 = vld [vmem:[#allocation3 + $0x102] sm:$0xff]  ;;  %v4751_v16 = vld [vmem:[#allocation3 + $0x10a] sm:$0xff] }
 0x572   :  { %10496 = vmatpush3.bf16.msra.mxu1 %v11780_v40  ;;  %v4742_v40 = vld [vmem:[#allocation3 + $0xc2] sm:$0xff] }
 0x573   :  { %10497 = vmatprep.subr.bf16.mxu1 %v11781_v11  ;;  %v4773_v42 = vpack.c.bf16 %v4743_v22, %v4742_v40  ;;  %v4754_v40 = vld [vmem:[#allocation3 + $0x122] sm:$0xff]  ;;  %v4755_v22 = vld [vmem:[#allocation3 + $0x12a] sm:$0xff] }
 0x575   :  { %10454 = vmatmul.mubr.bf16.gmra.mrb[12].mxu1 %v4768_v5  ;;  %v4747_v5 = vld [vmem:[#allocation3 + $0xea] sm:$0xff] }
 0x576   :  { %10457 = vmatprep.mubr.bf16.mxu1 %v4769_v15  ;;  %10498 = vmatpush3.bf16.msra.mxu1 %v11781_v11  ;;  %v4772_v11 = vpack.c.bf16 %v4741_v48, %v4740_v58  ;;  %v4774_v15 = vpack.c.bf16 %v4745_v37, %v4744_v12  ;;  %v4752_v58 = vld [vmem:[#allocation3 + $0x112] sm:$0xff]  ;;  %v4753_v48 = vld [vmem:[#allocation3 + $0x11a] sm:$0xff] }
 0x577   :  { %10499 = vmatprep.subr.bf16.mxu1 %v11782_v10  ;;  %v4756_v12 = vld [vmem:[#allocation3 + $0x132] sm:$0xff]  ;;  %v4757_v37 = vld [vmem:[#allocation3 + $0x13a] sm:$0xff] }
 0x57a   :  { %10500 = vmatpush3.bf16.msra.mxu1 %v11782_v10  ;;  %v4775_v10 = vpack.c.bf16 %v4747_v5, %v4746_v53  ;;  %v4758_v53 = vld [vmem:[#allocation3 + $0x142] sm:$0xff]  ;;  %v4759_v5 = vld [vmem:[#allocation3 + $0x14a] sm:$0xff] }
 0x57b   :  { %10545 = vmatprep.subr.bf16.mxu1 %v14287_v27 }
 0x57d   :  { %10458 = vmatmul.mubr.bf16.gmra.mrb[16].mxu1 %v4770_v50  ;;  %v4776_v50 = vpack.c.bf16 %v4749_v25, %v4748_v28  ;;  %v4760_v28 = vld [vmem:[#allocation3 + $0x152] sm:$0xff]  ;;  %v5392_v25 = vld [vmem:[#allocation3 + $0x4] sm:$0xff] }
 0x57e   :  { %10461 = vmatprep.mubr.bf16.mxu1 %v4771_v35  ;;  %v4777_v35 = vpack.c.bf16 %v4751_v16, %v4750_v39  ;;  %v5393_v39 = vld [vmem:[#allocation3 + $0xc] sm:$0xff]  ;;  %v4782_v16 = vpack.c.bf16 %v4760_v28, %v4760_v28  ;;  %v11790_v28 = vld [vmem:[%s15547_s4 + $0xf8] sm:$0xff]  }
 0x585   :  { %10462 = vmatmul.mubr.bf16.gmra.mrb[20].mxu1 %v4772_v11  ;;  %v4778_v11 = vpack.c.bf16 %v4753_v48, %v4752_v58  ;;  %v11784_v48 = vld [vmem:[%s15547_s4 + $0xc8] sm:$0xff]  }
 0x586   :  { %10465 = vmatprep.mubr.bf16.mxu1 %v4773_v42  ;;  %v4779_v42 = vpack.c.bf16 %v4755_v22, %v4754_v40  ;;  %v5437_v40 = vpack.c.bf16 %v14145_v36, %v14143_v6  ;;  %v11785_v22 = vld [vmem:[%s15547_s4 + $0xd0] sm:$0xff]  }
 0x58d   :  { %10466 = vmatmul.mubr.bf16.gmra.mrb[24].mxu1 %v4774_v15  ;;  %v4780_v15 = vpack.c.bf16 %v4757_v37, %v4756_v12  ;;  %v5439_v12 = vpack.c.bf16 %v14155_v47, %v14153_v9  ;;  %v5440_v37 = vpack.c.bf16 %v14161_v19, %v14159_v63 }
 0x58e   :  { %10469 = vmatprep.mubr.bf16.mxu1 %v4775_v10  ;;  %v4781_v10 = vpack.c.bf16 %v4759_v5, %v4758_v53  ;;  %v11788_v53 = vld [vmem:[%s15547_s4 + $0xe8] sm:$0xff]   ;;  %v5441_v5 = vpack.c.bf16 %v14167_v57, %v14163_v56 }
 0x595   :  { %10470 = vmatmul.mubr.bf16.gmra.mrb[28].mxu1 %v4776_v50  ;;  %v5435_v50 = vpack.c.bf16 %v5393_v39, %v5392_v25  ;;  %v5443_v25 = vpack.c.bf16 %v14179_v45, %v14177_v30  ;;  %v11791_v39 = vld [vmem:[%s15547_s4 + $0x100] sm:$0xff]  }
 0x596   :  { %10473 = vmatprep.mubr.bf16.mxu1 %v4777_v35  ;;  %v5394_v35 = vld [vmem:[#allocation3 + $0x14] sm:$0xff] }
 0x597   :  { %v5436_v58 = vpack.c.bf16 %v14141_v1, %v5394_v35  ;;  %v5446_v35 = vpack.c.bf16 %v14198_v21, %v14196_v17 }
 0x59d   :  { %10474 = vmatmul.mubr.bf16.gmra.mrb[32].mxu1 %v4778_v11  ;;  %v5438_v11 = vpack.c.bf16 %v14151_v26, %v14147_v7 }
 0x59e   :  { %10477 = vmatprep.mubr.bf16.mxu1 %v4779_v42  ;;  %v11786_v42 = vld [vmem:[%s15547_s4 + $0xd8] sm:$0xff]  }
 0x5a5   :  { %10478 = vmatmul.mubr.bf16.gmra.mrb[36].mxu1 %v4780_v15  ;;  %v11789_v15 = vld [vmem:[%s15547_s4 + $0xf0] sm:$0xff]  }
 0x5a6   :  { %10481 = vmatprep.mubr.bf16.mxu1 %v4781_v10  ;;  %v5442_v10 = vpack.c.bf16 %v14171_v55, %v14169_v54 }
 0x5ad   :  { %10482 = vmatmul.mubr.bf16.gmra.mrb[40].mxu1 %v4782_v16  ;;  %v5444_v16 = vpack.c.bf16 %v14186_v2, %v14181_v4 }
 0x5ae   :  { %10501 = vmatprep.mubr.bf16.mxu1 %v5435_v50  ;;  %v5445_v50 = vpack.c.bf16 %v14190_v59, %v14188_v13 }
 0x5b5   :  { %10502 = vmatmul.mubr.bf16.vlgmr.msra.gmra.mrb[0].mxu1 %v5436_v58  ;;  %v5447_v58 = vpack.c.bf16 %v14204_v20, %v14200_v52 }
 0x5b6   :  { %10505 = vmatprep.mubr.bf16.mxu1 %v5437_v40  ;;  %10546 = vmatpush3.bf16.msra.mxu1 %v14287_v27  ;;  %v11787_v27 = vld [vmem:[%s15547_s4 + $0xe0] sm:$0xff]   ;;  %v5449_v40 = vpack.c.bf16 %v14216_v62, %v14214_v31 }
 0x5b7   :  { %10547 = vmatprep.subr.bf16.mxu1 %v11784_v48 }
 0x5ba   :  { %10548 = vmatpush3.bf16.msra.mxu1 %v11784_v48  ;;  %v5448_v48 = vpack.c.bf16 %v14208_v18, %v14206_v29 }
 0x5bb   :  { %10549 = vmatprep.subr.bf16.mxu1 %v11785_v22 }
 0x5bd   :  { %10506 = vmatmul.mubr.bf16.gmra.mrb[4].mxu1 %v5438_v11  ;;  %v5451_v11 = vpack.c.bf16 %v14228_v8, %v14224_v46 }
 0x5be   :  { %10509 = vmatprep.mubr.bf16.mxu1 %v5439_v12  ;;  %10550 = vmatpush3.bf16.msra.mxu1 %v11785_v22  ;;  %v5450_v22 = vpack.c.bf16 %v14222_v3, %v14220_v51  ;;  %v5453_v12 = vpack.c.bf16 %v14240_v43, %v14238_v24 }
 0x5bf   :  { %10551 = vmatprep.subr.bf16.mxu1 %v11786_v42 }
 0x5c2   :  { %10552 = vmatpush3.bf16.msra.mxu1 %v11786_v42  ;;  %v5452_v42 = vpack.c.bf16 %v14232_v33, %v14230_v60 }
 0x5c3   :  { %10553 = vmatprep.subr.bf16.mxu1 %v11787_v27 }
 0x5c5   :  { %10510 = vmatmul.mubr.bf16.gmra.mrb[8].mxu1 %v5440_v37  ;;  %v5455_v37 = vpack.c.bf16 %v14250_v0, %v14248_v44 }
 0x5c6   :  { %10513 = vmatprep.mubr.bf16.mxu1 %v5441_v5  ;;  %10554 = vmatpush3.bf16.msra.mxu1 %v11787_v27  ;;  %v5454_v27 = vpack.c.bf16 %v14246_v23, %v14242_v34  ;;  %v5773_v5 = vld [vmem:[#allocation3 + $0x17] sm:$0xff] }
 0x5c7   :  { %10555 = vmatprep.subr.bf16.mxu1 %v11788_v53 }
 0x5ca   :  { %10556 = vmatpush3.bf16.msra.mxu1 %v11788_v53  ;;  %v5772_v53 = vld [vmem:[#allocation3 + $0xf] sm:$0xff] }
 0x5cb   :  { %10557 = vmatprep.subr.bf16.mxu1 %v11789_v15 }
 0x5cd   :  { %10514 = vmatmul.mubr.bf16.gmra.mrb[12].mxu1 %v5442_v10  ;;  %v5815_v10 = vpack.c.bf16 %v5773_v5, %v5772_v53  ;;  %v5782_v5 = vld [vmem:[#allocation3 + $0x5f] sm:$0xff] }
 0x5ce   :  { %10517 = vmatprep.mubr.bf16.mxu1 %v5443_v25  ;;  %10558 = vmatpush3.bf16.msra.mxu1 %v11789_v15  ;;  %v5456_v15 = vpack.c.bf16 %v14256_v32, %v14256_v32  ;;  %v5775_v25 = vld [vmem:[#allocation3 + $0x27] sm:$0xff] }
 0x5cf   :  { %10559 = vmatprep.subr.bf16.mxu1 %v11790_v28 }
 0x5d2   :  { %10560 = vmatpush3.bf16.msra.mxu1 %v11790_v28  ;;  %v5774_v28 = vld [vmem:[#allocation3 + $0x1f] sm:$0xff] }
 0x5d3   :  { %10605 = vmatprep.subr.bf16.mxu1 %v11791_v39 }
 0x5d5   :  { %10518 = vmatmul.mubr.bf16.gmra.mrb[16].mxu1 %v5444_v16  ;;  %v5776_v16 = vld [vmem:[#allocation3 + $0x2f] sm:$0xff] }
 0x5d6   :  { %10521 = vmatprep.mubr.bf16.mxu1 %v5445_v50  ;;  %v5777_v50 = vld [vmem:[#allocation3 + $0x37] sm:$0xff] }
 0x5dd   :  { %10522 = vmatmul.mubr.bf16.gmra.mrb[20].mxu1 %v5446_v35  ;;  %v5816_v35 = vpack.c.bf16 %v5775_v25, %v5774_v28  ;;  %v5785_v28 = vld [vmem:[#allocation3 + $0x77] sm:$0xff] }
 0x5de   :  { %10525 = vmatprep.mubr.bf16.mxu1 %v5447_v58  ;;  %v11792_v58 = vld [vmem:[%s15547_s4 + $0x108] sm:$0xff]  }
 0x5e5   :  { %10526 = vmatmul.mubr.bf16.gmra.mrb[24].mxu1 %v5448_v48  ;;  %v5817_v48 = vpack.c.bf16 %v5777_v50, %v5776_v16  ;;  %v11796_v16 = vld [vmem:[%s15547_s4 + $0x128] sm:$0xff]  }
 0x5e6   :  { %10529 = vmatprep.mubr.bf16.mxu1 %v5449_v40  ;;  %v11793_v40 = vld [vmem:[%s15547_s4 + $0x110] sm:$0xff]  }
 0x5ed   :  { %10530 = vmatmul.mubr.bf16.gmra.mrb[28].mxu1 %v5450_v22  ;;  %v5778_v22 = vld [vmem:[#allocation3 + $0x3f] sm:$0xff] }
 0x5ee   :  { %10533 = vmatprep.mubr.bf16.mxu1 %v5451_v11  ;;  %v5779_v11 = vld [vmem:[#allocation3 + $0x47] sm:$0xff] }
 0x5f5   :  { %10534 = vmatmul.mubr.bf16.gmra.mrb[32].mxu1 %v5452_v42  ;;  %v5780_v42 = vld [vmem:[#allocation3 + $0x4f] sm:$0xff] }
 0x5f6   :  { %10537 = vmatprep.mubr.bf16.mxu1 %v5453_v12  ;;  %v5781_v12 = vld [vmem:[#allocation3 + $0x57] sm:$0xff] }
 0x5f7   :  { %v5819_v53 = vpack.c.bf16 %v5781_v12, %v5780_v42  ;;  %v11798_v42 = vld [vmem:[%s15547_s4 + $0x138] sm:$0xff]  }
 0x5fd   :  { %10538 = vmatmul.mubr.bf16.gmra.mrb[36].mxu1 %v5454_v27  ;;  %v5818_v27 = vpack.c.bf16 %v5779_v11, %v5778_v22  ;;  %v5789_v22 = vld [vmem:[#allocation3 + $0x97] sm:$0xff] }
 0x5fe   :  { %10541 = vmatprep.mubr.bf16.mxu1 %v5455_v37  ;;  %v11794_v37 = vld [vmem:[%s15547_s4 + $0x118] sm:$0xff]  }
 0x605   :  { %10542 = vmatmul.mubr.bf16.gmra.mrb[40].mxu1 %v5456_v15  ;;  %v5783_v15 = vld [vmem:[#allocation3 + $0x67] sm:$0xff] }
 0x606   :  { %10561 = vmatprep.mubr.bf16.mxu1 %v5815_v10  ;;  %v5784_v10 = vld [vmem:[#allocation3 + $0x6f] sm:$0xff]  ;;  %v5820_v25 = vpack.c.bf16 %v5783_v15, %v5782_v5  ;;  %v5793_v5 = vld [vmem:[#allocation3 + $0xb7] sm:$0xff] }
 0x607   :  { %v5821_v50 = vpack.c.bf16 %v5785_v28, %v5784_v10  ;;  %v5794_v28 = vld [vmem:[#allocation3 + $0xbf] sm:$0xff] }
 0x60d   :  { %10562 = vmatmul.mubr.bf16.vlgmr.msra.gmra.mrb[0].mxu1 %v5816_v35  ;;  %v11797_v35 = vld [vmem:[%s15547_s4 + $0x130] sm:$0xff]  }
 0x60e   :  { %10565 = vmatprep.mubr.bf16.mxu1 %v5817_v48  ;;  %10606 = vmatpush3.bf16.msra.mxu1 %v11791_v39  ;;  %v11795_v39 = vld [vmem:[%s15547_s4 + $0x120] sm:$0xff]  }
 0x60f   :  { %10607 = vmatprep.subr.bf16.mxu1 %v11792_v58  ;;  %v5787_v48 = vld [vmem:[#allocation3 + $0x87] sm:$0xff] }
 0x612   :  { %10608 = vmatpush3.bf16.msra.mxu1 %v11792_v58  ;;  %v5786_v58 = vld [vmem:[#allocation3 + $0x7f] sm:$0xff] }
 0x613   :  { %10609 = vmatprep.subr.bf16.mxu1 %v11793_v40  ;;  %v5822_v11 = vpack.c.bf16 %v5787_v48, %v5786_v58  ;;  %v5798_v48 = vld [vmem:[#allocation3 + $0xdf] sm:$0xff] }
 0x615   :  { %10566 = vmatmul.mubr.bf16.gmra.mrb[4].mxu1 %v5818_v27  ;;  %v14380_v27 = vld [vmem:[%s15547_s4 + $0x140] sm:$0xff]  }
 0x616   :  { %10569 = vmatprep.mubr.bf16.mxu1 %v5819_v53  ;;  %10610 = vmatpush3.bf16.msra.mxu1 %v11793_v40  ;;  %v5788_v40 = vld [vmem:[#allocation3 + $0x8f] sm:$0xff]  ;;  %v5791_v53 = vld [vmem:[#allocation3 + $0xa7] sm:$0xff] }
 0x617   :  { %10611 = vmatprep.subr.bf16.mxu1 %v11794_v37  ;;  %v5823_v12 = vpack.c.bf16 %v5789_v22, %v5788_v40  ;;  %v5799_v40 = vld [vmem:[#allocation3 + $0xe7] sm:$0xff]  ;;  %v5800_v22 = vld [vmem:[#allocation3 + $0xef] sm:$0xff] }
 0x61a   :  { %10612 = vmatpush3.bf16.msra.mxu1 %v11794_v37  ;;  %v5790_v37 = vld [vmem:[#allocation3 + $0x9f] sm:$0xff] }
 0x61b   :  { %10613 = vmatprep.subr.bf16.mxu1 %v11795_v39  ;;  %v5824_v15 = vpack.c.bf16 %v5791_v53, %v5790_v37  ;;  %v5802_v37 = vld [vmem:[#allocation3 + $0xff] sm:$0xff]  ;;  %v5803_v53 = vld [vmem:[#allocation3 + $0x107] sm:$0xff] }
 0x61d   :  { %10570 = vmatmul.mubr.bf16.gmra.mrb[8].mxu1 %v5820_v25  ;;  %v5795_v25 = vld [vmem:[#allocation3 + $0xc7] sm:$0xff] }
 0x61e   :  { %10573 = vmatprep.mubr.bf16.mxu1 %v5821_v50  ;;  %10614 = vmatpush3.bf16.msra.mxu1 %v11795_v39  ;;  %v5792_v39 = vld [vmem:[#allocation3 + $0xaf] sm:$0xff]  ;;  %v5797_v50 = vld [vmem:[#allocation3 + $0xd7] sm:$0xff] }
 0x61f   :  { %10615 = vmatprep.subr.bf16.mxu1 %v11796_v16  ;;  %v5825_v10 = vpack.c.bf16 %v5793_v5, %v5792_v39  ;;  %v5804_v39 = vld [vmem:[#allocation3 + $0x10f] sm:$0xff]  ;;  %v5805_v5 = vld [vmem:[#allocation3 + $0x117] sm:$0xff] }
 0x622   :  { %10616 = vmatpush3.bf16.msra.mxu1 %v11796_v16  ;;  %v5796_v16 = vld [vmem:[#allocation3 + $0xcf] sm:$0xff] }
 0x623   :  { %10617 = vmatprep.subr.bf16.mxu1 %v11797_v35  ;;  %v5827_v58 = vpack.c.bf16 %v5797_v50, %v5796_v16  ;;  %v5808_v16 = vld [vmem:[#allocation3 + $0x12f] sm:$0xff]  ;;  %v5809_v50 = vld [vmem:[#allocation3 + $0x137] sm:$0xff] }
 0x625   :  { %10574 = vmatmul.mubr.bf16.gmra.mrb[12].mxu1 %v5822_v11  ;;  %v5801_v11 = vld [vmem:[#allocation3 + $0xf7] sm:$0xff] }
 0x626   :  { %10577 = vmatprep.mubr.bf16.mxu1 %v5823_v12  ;;  %10618 = vmatpush3.bf16.msra.mxu1 %v11797_v35  ;;  %v5826_v35 = vpack.c.bf16 %v5795_v25, %v5794_v28  ;;  %v5828_v12 = vpack.c.bf16 %v5799_v40, %v5798_v48  ;;  %v5806_v28 = vld [vmem:[#allocation3 + $0x11f] sm:$0xff]  ;;  %v5807_v25 = vld [vmem:[#allocation3 + $0x127] sm:$0xff] }
 0x627   :  { %10619 = vmatprep.subr.bf16.mxu1 %v11798_v42  ;;  %v5810_v48 = vld [vmem:[#allocation3 + $0x13f] sm:$0xff]  ;;  %v5811_v40 = vld [vmem:[#allocation3 + $0x147] sm:$0xff] }
 0x62a   :  { %10620 = vmatpush3.bf16.msra.mxu1 %v11798_v42  ;;  %v5829_v42 = vpack.c.bf16 %v5801_v11, %v5800_v22  ;;  %v5812_v22 = vld [vmem:[#allocation3 + $0x14f] sm:$0xff]  ;;  %v5813_v11 = vld [vmem:[#allocation3 + $0x157] sm:$0xff] }
 0x62b   :  { %10665 = vmatprep.subr.bf16.mxu1 %v14380_v27 }
 0x62d   :  { %10578 = vmatmul.mubr.bf16.gmra.mrb[16].mxu1 %v5824_v15  ;;  %v5830_v15 = vpack.c.bf16 %v5803_v53, %v5802_v37  ;;  %v5814_v37 = vld [vmem:[#allocation3 + $0x15f] sm:$0xff]  ;;  %v6152_v53 = vld [vmem:[#allocation3 + $0x10] sm:$0xff] }
 0x62e   :  { %10581 = vmatprep.mubr.bf16.mxu1 %v5825_v10  ;;  %v5831_v10 = vpack.c.bf16 %v5805_v5, %v5804_v39  ;;  %v6153_v39 = vld [vmem:[#allocation3 + $0x18] sm:$0xff]  ;;  %v5836_v5 = vpack.c.bf16 %v5814_v37, %v5814_v37  ;;  %v11802_v37 = vld [vmem:[%s15547_s4 + $0x158] sm:$0xff]  }
 0x635   :  { %10582 = vmatmul.mubr.bf16.gmra.mrb[20].mxu1 %v5826_v35  ;;  %v5832_v35 = vpack.c.bf16 %v5807_v25, %v5806_v28  ;;  %v6155_v28 = vld [vmem:[#allocation3 + $0x28] sm:$0xff]  ;;  %v6156_v25 = vld [vmem:[#allocation3 + $0x30] sm:$0xff] }
 0x636   :  { %10585 = vmatprep.mubr.bf16.mxu1 %v5827_v58  ;;  %v5833_v58 = vpack.c.bf16 %v5809_v50, %v5808_v16  ;;  %v6157_v16 = vld [vmem:[#allocation3 + $0x38] sm:$0xff] }
 0x63d   :  { %10586 = vmatmul.mubr.bf16.gmra.mrb[24].mxu1 %v5828_v12  ;;  %v5834_v12 = vpack.c.bf16 %v5811_v40, %v5810_v48  ;;  %v11801_v48 = vld [vmem:[%s15547_s4 + $0x150] sm:$0xff]   ;;  %v6158_v40 = vld [vmem:[#allocation3 + $0x40] sm:$0xff] }
 0x63e   :  { %10589 = vmatprep.mubr.bf16.mxu1 %v5829_v42  ;;  %v5835_v42 = vpack.c.bf16 %v5813_v11, %v5812_v22  ;;  %v6159_v22 = vld [vmem:[#allocation3 + $0x48] sm:$0xff]  ;;  %v6160_v11 = vld [vmem:[#allocation3 + $0x50] sm:$0xff] }
 0x645   :  { %10590 = vmatmul.mubr.bf16.gmra.mrb[28].mxu1 %v5830_v15  ;;  %v6195_v15 = vpack.c.bf16 %v6153_v39, %v6152_v53  ;;  %v6162_v39 = vld [vmem:[#allocation3 + $0x60] sm:$0xff] }
 0x646   :  { %10593 = vmatprep.mubr.bf16.mxu1 %v5831_v10  ;;  %v6154_v10 = vld [vmem:[#allocation3 + $0x20] sm:$0xff] }
 0x647   :  { %v6196_v50 = vpack.c.bf16 %v6155_v28, %v6154_v10  ;;  %v6165_v10 = vld [vmem:[#allocation3 + $0x78] sm:$0xff] }
 0x64d   :  { %10594 = vmatmul.mubr.bf16.gmra.mrb[32].mxu1 %v5832_v35  ;;  %v11800_v35 = vld [vmem:[%s15547_s4 + $0x148] sm:$0xff]  }
 0x64e   :  { %10597 = vmatprep.mubr.bf16.mxu1 %v5833_v58  ;;  %v6197_v58 = vpack.c.bf16 %v6157_v16, %v6156_v25  ;;  %v11804_v25 = vld [vmem:[%s15547_s4 + $0x168] sm:$0xff]  }
 0x655   :  { %10598 = vmatmul.mubr.bf16.gmra.mrb[36].mxu1 %v5834_v12  ;;  %v6161_v12 = vld [vmem:[#allocation3 + $0x58] sm:$0xff] }
 0x656   :  { %10601 = vmatprep.mubr.bf16.mxu1 %v5835_v42  ;;  %v6198_v42 = vpack.c.bf16 %v6159_v22, %v6158_v40  ;;  %v6199_v53 = vpack.c.bf16 %v6161_v12, %v6160_v11  ;;  %v6169_v40 = vld [vmem:[#allocation3 + $0x98] sm:$0xff]  ;;  %v11806_v11 = vld [vmem:[%s15547_s4 + $0x178] sm:$0xff]  }
 0x65d   :  { %10602 = vmatmul.mubr.bf16.gmra.mrb[40].mxu1 %v5836_v5  ;;  %v6163_v5 = vld [vmem:[#allocation3 + $0x68] sm:$0xff] }
 0x65e   :  { %10621 = vmatprep.mubr.bf16.mxu1 %v6195_v15  ;;  %v6164_v15 = vld [vmem:[#allocation3 + $0x70] sm:$0xff]  ;;  %v6200_v28 = vpack.c.bf16 %v6163_v5, %v6162_v39  ;;  %v6173_v39 = vld [vmem:[#allocation3 + $0xb8] sm:$0xff] }
 0x65f   :  { %v6201_v16 = vpack.c.bf16 %v6165_v10, %v6164_v15  ;;  %v6174_v10 = vld [vmem:[#allocation3 + $0xc0] sm:$0xff] }
 0x665   :  { %10622 = vmatmul.mubr.bf16.vlgmr.msra.gmra.mrb[0].mxu1 %v6196_v50  ;;  %v11805_v50 = vld [vmem:[%s15547_s4 + $0x170] sm:$0xff]  }
 0x666   :  { %10625 = vmatprep.mubr.bf16.mxu1 %v6197_v58  ;;  %10666 = vmatpush3.bf16.msra.mxu1 %v14380_v27  ;;  %v11803_v27 = vld [vmem:[%s15547_s4 + $0x160] sm:$0xff]  }
 0x667   :  { %10667 = vmatprep.subr.bf16.mxu1 %v11800_v35  ;;  %v6167_v58 = vld [vmem:[#allocation3 + $0x88] sm:$0xff] }
 0x66a   :  { %10668 = vmatpush3.bf16.msra.mxu1 %v11800_v35  ;;  %v6166_v35 = vld [vmem:[#allocation3 + $0x80] sm:$0xff] }
 0x66b   :  { %10669 = vmatprep.subr.bf16.mxu1 %v11801_v48  ;;  %v6202_v22 = vpack.c.bf16 %v6167_v58, %v6166_v35  ;;  %v6178_v58 = vld [vmem:[#allocation3 + $0xe0] sm:$0xff] }
 0x66d   :  { %10626 = vmatmul.mubr.bf16.gmra.mrb[4].mxu1 %v6198_v42  ;;  %v14408_v42 = vld [vmem:[%s15547_s4 + $0x180] sm:$0xff]  }
 0x66e   :  { %10629 = vmatprep.mubr.bf16.mxu1 %v6199_v53  ;;  %10670 = vmatpush3.bf16.msra.mxu1 %v11801_v48  ;;  %v6168_v48 = vld [vmem:[#allocation3 + $0x90] sm:$0xff]  ;;  %v6171_v53 = vld [vmem:[#allocation3 + $0xa8] sm:$0xff] }
 0x66f   :  { %10671 = vmatprep.subr.bf16.mxu1 %v11802_v37  ;;  %v6203_v12 = vpack.c.bf16 %v6169_v40, %v6168_v48  ;;  %v6179_v48 = vld [vmem:[#allocation3 + $0xe8] sm:$0xff]  ;;  %v6180_v40 = vld [vmem:[#allocation3 + $0xf0] sm:$0xff] }
 0x672   :  { %10672 = vmatpush3.bf16.msra.mxu1 %v11802_v37  ;;  %v6170_v37 = vld [vmem:[#allocation3 + $0xa0] sm:$0xff] }
 0x673   :  { %10673 = vmatprep.subr.bf16.mxu1 %v11803_v27  ;;  %v6204_v5 = vpack.c.bf16 %v6171_v53, %v6170_v37  ;;  %v6182_v37 = vld [vmem:[#allocation3 + $0x100] sm:$0xff]  ;;  %v6183_v53 = vld [vmem:[#allocation3 + $0x108] sm:$0xff] }
 0x675   :  { %10630 = vmatmul.mubr.bf16.gmra.mrb[8].mxu1 %v6200_v28  ;;  %v6175_v28 = vld [vmem:[#allocation3 + $0xc8] sm:$0xff] }
 0x676   :  { %10633 = vmatprep.mubr.bf16.mxu1 %v6201_v16  ;;  %10674 = vmatpush3.bf16.msra.mxu1 %v11803_v27  ;;  %v6172_v27 = vld [vmem:[#allocation3 + $0xb0] sm:$0xff]  ;;  %v6177_v16 = vld [vmem:[#allocation3 + $0xd8] sm:$0xff] }
 0x677   :  { %10675 = vmatprep.subr.bf16.mxu1 %v11804_v25  ;;  %v6205_v15 = vpack.c.bf16 %v6173_v39, %v6172_v27  ;;  %v6184_v27 = vld [vmem:[#allocation3 + $0x110] sm:$0xff]  ;;  %v6185_v39 = vld [vmem:[#allocation3 + $0x118] sm:$0xff] }
 0x67a   :  { %10676 = vmatpush3.bf16.msra.mxu1 %v11804_v25  ;;  %v6176_v25 = vld [vmem:[#allocation3 + $0xd0] sm:$0xff] }
 0x67b   :  { %10677 = vmatprep.subr.bf16.mxu1 %v11805_v50  ;;  %v6207_v35 = vpack.c.bf16 %v6177_v16, %v6176_v25  ;;  %v6188_v25 = vld [vmem:[#allocation3 + $0x130] sm:$0xff]  ;;  %v6189_v16 = vld [vmem:[#allocation3 + $0x138] sm:$0xff] }
 0x67d   :  { %10634 = vmatmul.mubr.bf16.gmra.mrb[12].mxu1 %v6202_v22  ;;  %v6181_v22 = vld [vmem:[#allocation3 + $0xf8] sm:$0xff] }
 0x67e   :  { %10637 = vmatprep.mubr.bf16.mxu1 %v6203_v12  ;;  %10678 = vmatpush3.bf16.msra.mxu1 %v11805_v50  ;;  %v6206_v50 = vpack.c.bf16 %v6175_v28, %v6174_v10  ;;  %v6208_v12 = vpack.c.bf16 %v6179_v48, %v6178_v58  ;;  %v6186_v10 = vld [vmem:[#allocation3 + $0x120] sm:$0xff]  ;;  %v6187_v28 = vld [vmem:[#allocation3 + $0x128] sm:$0xff] }
 0x67f   :  { %10679 = vmatprep.subr.bf16.mxu1 %v11806_v11  ;;  %v6190_v58 = vld [vmem:[#allocation3 + $0x140] sm:$0xff]  ;;  %v6191_v48 = vld [vmem:[#allocation3 + $0x148] sm:$0xff] }
 0x682   :  { %10680 = vmatpush3.bf16.msra.mxu1 %v11806_v11  ;;  %v6209_v11 = vpack.c.bf16 %v6181_v22, %v6180_v40  ;;  %v6192_v40 = vld [vmem:[#allocation3 + $0x150] sm:$0xff]  ;;  %v6193_v22 = vld [vmem:[#allocation3 + $0x158] sm:$0xff] }
 0x683   :  { %10725 = vmatprep.subr.bf16.mxu1 %v14408_v42 }
 0x685   :  { %10638 = vmatmul.mubr.bf16.gmra.mrb[16].mxu1 %v6204_v5  ;;  %v6210_v5 = vpack.c.bf16 %v6183_v53, %v6182_v37  ;;  %v6194_v37 = vld [vmem:[#allocation3 + $0x160] sm:$0xff]  ;;  %v6532_v53 = vld [vmem:[#allocation3 + $0x11] sm:$0xff] }
 0x686   :  { %10641 = vmatprep.mubr.bf16.mxu1 %v6205_v15  ;;  %v6211_v15 = vpack.c.bf16 %v6185_v39, %v6184_v27  ;;  %v6533_v27 = vld [vmem:[#allocation3 + $0x19] sm:$0xff]  ;;  %v6216_v39 = vpack.c.bf16 %v6194_v37, %v6194_v37 }
 0x687   :  { %v11810_v37 = vld [vmem:[%s15547_s4 + $0x198] sm:$0xff]  }
 0x68d   :  { %10642 = vmatmul.mubr.bf16.gmra.mrb[20].mxu1 %v6206_v50  ;;  %v6212_v50 = vpack.c.bf16 %v6187_v28, %v6186_v10  ;;  %v6535_v10 = vld [vmem:[#allocation3 + $0x29] sm:$0xff]  ;;  %v6536_v28 = vld [vmem:[#allocation3 + $0x31] sm:$0xff] }
 0x68e   :  { %10645 = vmatprep.mubr.bf16.mxu1 %v6207_v35  ;;  %v6213_v35 = vpack.c.bf16 %v6189_v16, %v6188_v25  ;;  %v6537_v25 = vld [vmem:[#allocation3 + $0x39] sm:$0xff] }
 0x695   :  { %10646 = vmatmul.mubr.bf16.gmra.mrb[24].mxu1 %v6208_v12  ;;  %v6214_v12 = vpack.c.bf16 %v6191_v48, %v6190_v58  ;;  %v11809_v58 = vld [vmem:[%s15547_s4 + $0x190] sm:$0xff]   ;;  %v6538_v48 = vld [vmem:[#allocation3 + $0x41] sm:$0xff] }
 0x696   :  { %10649 = vmatprep.mubr.bf16.mxu1 %v6209_v11  ;;  %v6215_v11 = vpack.c.bf16 %v6193_v22, %v6192_v40  ;;  %v6539_v40 = vld [vmem:[#allocation3 + $0x49] sm:$0xff]  ;;  %v6540_v22 = vld [vmem:[#allocation3 + $0x51] sm:$0xff] }
 0x69d   :  { %10650 = vmatmul.mubr.bf16.gmra.mrb[28].mxu1 %v6210_v5  ;;  %v6575_v5 = vpack.c.bf16 %v6533_v27, %v6532_v53  ;;  %v6542_v27 = vld [vmem:[#allocation3 + $0x61] sm:$0xff] }
 0x69e   :  { %10653 = vmatprep.mubr.bf16.mxu1 %v6211_v15  ;;  %v6534_v15 = vld [vmem:[#allocation3 + $0x21] sm:$0xff] }
 0x69f   :  { %v6576_v16 = vpack.c.bf16 %v6535_v10, %v6534_v15  ;;  %v6545_v15 = vld [vmem:[#allocation3 + $0x79] sm:$0xff] }
 0x6a5   :  { %10654 = vmatmul.mubr.bf16.gmra.mrb[32].mxu1 %v6212_v50  ;;  %v11808_v50 = vld [vmem:[%s15547_s4 + $0x188] sm:$0xff]  }
 0x6a6   :  { %10657 = vmatprep.mubr.bf16.mxu1 %v6213_v35  ;;  %v6577_v35 = vpack.c.bf16 %v6537_v25, %v6536_v28  ;;  %v11812_v28 = vld [vmem:[%s15547_s4 + $0x1a8] sm:$0xff]  }
 0x6ad   :  { %10658 = vmatmul.mubr.bf16.gmra.mrb[36].mxu1 %v6214_v12  ;;  %v6541_v12 = vld [vmem:[#allocation3 + $0x59] sm:$0xff] }
 0x6ae   :  { %10661 = vmatprep.mubr.bf16.mxu1 %v6215_v11  ;;  %v6578_v11 = vpack.c.bf16 %v6539_v40, %v6538_v48  ;;  %v6579_v53 = vpack.c.bf16 %v6541_v12, %v6540_v22  ;;  %v6549_v48 = vld [vmem:[#allocation3 + $0x99] sm:$0xff] }
 0x6af   :  { %v11814_v22 = vld [vmem:[%s15547_s4 + $0x1b8] sm:$0xff]  }
 0x6b5   :  { %10662 = vmatmul.mubr.bf16.gmra.mrb[40].mxu1 %v6216_v39  ;;  %v6543_v39 = vld [vmem:[#allocation3 + $0x69] sm:$0xff] }
 0x6b6   :  { %10681 = vmatprep.mubr.bf16.mxu1 %v6575_v5  ;;  %v6544_v5 = vld [vmem:[#allocation3 + $0x71] sm:$0xff]  ;;  %v6580_v10 = vpack.c.bf16 %v6543_v39, %v6542_v27  ;;  %v6553_v27 = vld [vmem:[#allocation3 + $0xb9] sm:$0xff] }
 0x6b7   :  { %v6581_v25 = vpack.c.bf16 %v6545_v15, %v6544_v5  ;;  %v6554_v15 = vld [vmem:[#allocation3 + $0xc1] sm:$0xff] }
 0x6bd   :  { %10682 = vmatmul.mubr.bf16.vlgmr.msra.gmra.mrb[0].mxu1 %v6576_v16  ;;  %v11813_v16 = vld [vmem:[%s15547_s4 + $0x1b0] sm:$0xff]  }
 0x6be   :  { %10685 = vmatprep.mubr.bf16.mxu1 %v6577_v35  ;;  %10726 = vmatpush3.bf16.msra.mxu1 %v14408_v42  ;;  %v11811_v42 = vld [vmem:[%s15547_s4 + $0x1a0] sm:$0xff]  }
 0x6bf   :  { %10727 = vmatprep.subr.bf16.mxu1 %v11808_v50  ;;  %v6547_v35 = vld [vmem:[#allocation3 + $0x89] sm:$0xff] }
 0x6c2   :  { %10728 = vmatpush3.bf16.msra.mxu1 %v11808_v50  ;;  %v6546_v50 = vld [vmem:[#allocation3 + $0x81] sm:$0xff] }
 0x6c3   :  { %10729 = vmatprep.subr.bf16.mxu1 %v11809_v58  ;;  %v6582_v40 = vpack.c.bf16 %v6547_v35, %v6546_v50  ;;  %v6558_v35 = vld [vmem:[#allocation3 + $0xe1] sm:$0xff] }
 0x6c5   :  { %10686 = vmatmul.mubr.bf16.gmra.mrb[4].mxu1 %v6578_v11  ;;  %v11815_v11 = vld [vmem:[%s15547_s4 + $0x1c0] sm:$0xff]  }
 0x6c6   :  { %10689 = vmatprep.mubr.bf16.mxu1 %v6579_v53  ;;  %10730 = vmatpush3.bf16.msra.mxu1 %v11809_v58  ;;  %v6548_v58 = vld [vmem:[#allocation3 + $0x91] sm:$0xff]  ;;  %v6551_v53 = vld [vmem:[#allocation3 + $0xa9] sm:$0xff] }
 0x6c7   :  { %10731 = vmatprep.subr.bf16.mxu1 %v11810_v37  ;;  %v6583_v12 = vpack.c.bf16 %v6549_v48, %v6548_v58  ;;  %v6559_v58 = vld [vmem:[#allocation3 + $0xe9] sm:$0xff]  ;;  %v6560_v48 = vld [vmem:[#allocation3 + $0xf1] sm:$0xff] }
 0x6ca   :  { %10732 = vmatpush3.bf16.msra.mxu1 %v11810_v37  ;;  %v6550_v37 = vld [vmem:[#allocation3 + $0xa1] sm:$0xff] }
 0x6cb   :  { %10733 = vmatprep.subr.bf16.mxu1 %v11811_v42  ;;  %v6584_v39 = vpack.c.bf16 %v6551_v53, %v6550_v37  ;;  %v6563_v37 = vld [vmem:[#allocation3 + $0x109] sm:$0xff]  ;;  %v6564_v53 = vld [vmem:[#allocation3 + $0x111] sm:$0xff] }
 0x6cd   :  { %10690 = vmatmul.mubr.bf16.gmra.mrb[8].mxu1 %v6580_v10  ;;  %v6555_v10 = vld [vmem:[#allocation3 + $0xc9] sm:$0xff] }
 0x6ce   :  { %10693 = vmatprep.mubr.bf16.mxu1 %v6581_v25  ;;  %10734 = vmatpush3.bf16.msra.mxu1 %v11811_v42  ;;  %v6552_v42 = vld [vmem:[#allocation3 + $0xb1] sm:$0xff]  ;;  %v6557_v25 = vld [vmem:[#allocation3 + $0xd9] sm:$0xff] }
 0x6cf   :  { %10735 = vmatprep.subr.bf16.mxu1 %v11812_v28  ;;  %v6585_v5 = vpack.c.bf16 %v6553_v27, %v6552_v42  ;;  %v6565_v42 = vld [vmem:[#allocation3 + $0x119] sm:$0xff] }
 0x6d2   :  { %10736 = vmatpush3.bf16.msra.mxu1 %v11812_v28  ;;  %v6556_v28 = vld [vmem:[#allocation3 + $0xd1] sm:$0xff] }
 0x6d3   :  { %10737 = vmatprep.subr.bf16.mxu1 %v11813_v16  ;;  %v6587_v50 = vpack.c.bf16 %v6557_v25, %v6556_v28  ;;  %v6569_v28 = vld [vmem:[#allocation3 + $0x139] sm:$0xff] }
 0x6d5   :  { %10694 = vmatmul.mubr.bf16.gmra.mrb[12].mxu1 %v6582_v40  ;;  %v6561_v40 = vld [vmem:[#allocation3 + $0xf9] sm:$0xff] }
 0x6d6   :  { %10697 = vmatprep.mubr.bf16.mxu1 %v6583_v12  ;;  %10738 = vmatpush3.bf16.msra.mxu1 %v11813_v16  ;;  %v6586_v16 = vpack.c.bf16 %v6555_v10, %v6554_v15  ;;  %v6588_v12 = vpack.c.bf16 %v6559_v58, %v6558_v35  ;;  %v6589_v41 = vpack.c.bf16 %v6561_v40, %v6560_v48  ;;  %v6567_v15 = vld [vmem:[#allocation3 + $0x129] sm:$0xff]  ;;  %v6568_v10 = vld [vmem:[#allocation3 + $0x131] sm:$0xff] }
 0x6d7   :  { %10739 = vmatprep.subr.bf16.mxu1 %v11814_v22  ;;  %v6571_v35 = vld [vmem:[#allocation3 + $0x149] sm:$0xff]  ;;  %v6572_v58 = vld [vmem:[#allocation3 + $0x151] sm:$0xff] }
 0x6da   :  { %10740 = vmatpush3.bf16.msra.mxu1 %v11814_v22  ;;  %v6562_v22 = vld [vmem:[#allocation3 + $0x101] sm:$0xff] }
 0x6db   :  { %10785 = vmatprep.subr.bf16.mxu1 %v11815_v11  ;;  %v6590_v27 = vpack.c.bf16 %v6563_v37, %v6562_v22  ;;  %v15818_v37 = vpack.c.bf16 %v14143_v6, %v14141_v1  ;;  %v11818_v1 = vld [vmem:[%s15547_s4 + $0x1d8] sm:$0xff]   ;;  %v15821_v6 = vpack.c.bf16 %v14159_v63, %v14155_v47  ;;  %v15824_v47 = vpack.c.bf16 %v14177_v30, %v14171_v55  ;;  %v11821_v63 = vld [vmem:[%s15547_s4 + $0x1f0] sm:$0xff]  }
 0x6dc   :  { %v15827_v55 = vpack.c.bf16 %v14196_v17, %v14190_v59  ;;  %v15828_v30 = vpack.c.bf16 %v14200_v52, %v14198_v21  ;;  %v15832_v17 = vpack.c.bf16 %v14224_v46, %v14222_v3  ;;  %v15833_v21 = vpack.c.bf16 %v14230_v60, %v14228_v8  ;;  %v6954_v60 = vld [vmem:[#allocation3 + $0x16c] sm:$0xff] }
 0x6dd   :  { %10698 = vmatmul.mubr.bf16.gmra.mrb[16].mxu1 %v6584_v39  ;;  %v6591_v39 = vpack.c.bf16 %v6565_v42, %v6564_v53  ;;  %v11816_v53 = vld [vmem:[%s15547_s4 + $0x1c8] sm:$0xff]   ;;  %v15819_v42 = vpack.c.bf16 %v14147_v7, %v14145_v36  ;;  %v15822_v36 = vpack.c.bf16 %v14163_v56, %v14161_v19  ;;  %v11819_v7 = vld [vmem:[%s15547_s4 + $0x1e0] sm:$0xff]   ;;  %v11822_v19 = vld [vmem:[%s15547_s4 + $0x1f8] sm:$0xff]   ;;  %v15825_v56 = vpack.c.bf16 %v14181_v4, %v14179_v45 }
 0x6de   :  { %10701 = vmatprep.mubr.bf16.mxu1 %v6585_v5  ;;  %v6566_v5 = vld [vmem:[#allocation3 + $0x121] sm:$0xff]  ;;  %v15831_v45 = vpack.c.bf16 %v14220_v51, %v14216_v62  ;;  %v15836_v51 = vpack.c.bf16 %v14248_v44, %v14246_v23  ;;  %v6976_v59 = vpack.c.bf16 %v6954_v60, %v6954_v60  ;;  %v11824_v52 = vld [vmem:[%s15547_s4 + $0x208] sm:$0xff]  }
 0x6df   :  { %v6592_v25 = vpack.c.bf16 %v6567_v15, %v6566_v5  ;;  %v6952_v62 = vld [vmem:[#allocation3 + $0x15c] sm:$0xff]  ;;  %v7297_v44 = vld [vmem:[#allocation3 + $0x45] sm:$0xff]  ;;  %v7326_v60 = vld [vmem:[#allocation3 + $0x12d] sm:$0xff] }
 0x6e0   :  { %v7296_v4 = vld [vmem:[#allocation3 + $0x3d] sm:$0xff]  ;;  %v7301_v15 = vld [vmem:[#allocation3 + $0x65] sm:$0xff] }
 0x6e1   :  { %v7337_v8 = vpack.c.bf16 %v7297_v44, %v7296_v4  ;;  %v7300_v5 = vld [vmem:[#allocation3 + $0x5d] sm:$0xff]  ;;  %v7331_v4 = vld [vmem:[#allocation3 + $0x155] sm:$0xff] }
 0x6e2   :  { %v7332_v44 = vld [vmem:[#allocation3 + $0x15d] sm:$0xff] }
 0x6e5   :  { %10702 = vmatmul.mubr.bf16.gmra.mrb[20].mxu1 %v6586_v16  ;;  %v6593_v16 = vpack.c.bf16 %v6569_v28, %v6568_v10  ;;  %v11826_v28 = vld [vmem:[%s15547_s4 + $0x218] sm:$0xff]  }
 0x6e6   :  { %10705 = vmatprep.mubr.bf16.mxu1 %v6587_v50  ;;  %v6570_v50 = vld [vmem:[#allocation3 + $0x141] sm:$0xff] }
 0x6e7   :  { %v6594_v48 = vpack.c.bf16 %v6571_v35, %v6570_v50  ;;  %v7302_v50 = vld [vmem:[#allocation3 + $0x6d] sm:$0xff]  ;;  %v7303_v35 = vld [vmem:[#allocation3 + $0x75] sm:$0xff] }
 0x6ed   :  { %10706 = vmatmul.mubr.bf16.gmra.mrb[24].mxu1 %v6588_v12  ;;  %v6574_v12 = vld [vmem:[#allocation3 + $0x161] sm:$0xff] }
 0x6ee   :  { %10709 = vmatprep.mubr.bf16.mxu1 %v6589_v41  ;;  %v6573_v41 = vld [vmem:[#allocation3 + $0x159] sm:$0xff]  ;;  %v6596_v22 = vpack.c.bf16 %v6574_v12, %v6574_v12 }
 0x6ef   :  { %v6595_v40 = vpack.c.bf16 %v6573_v41, %v6572_v58  ;;  %v7304_v58 = vld [vmem:[#allocation3 + $0x7d] sm:$0xff]  ;;  %v7305_v41 = vld [vmem:[#allocation3 + $0x85] sm:$0xff] }
 0x6f0   :  { %v7341_v12 = vpack.c.bf16 %v7305_v41, %v7304_v58  ;;  %v7678_v58 = vld [vmem:[#allocation3 + $0x4e] sm:$0xff]  ;;  %v7679_v41 = vld [vmem:[#allocation3 + $0x56] sm:$0xff] }
 0x6f5   :  { %10710 = vmatmul.mubr.bf16.gmra.mrb[28].mxu1 %v6590_v27  ;;  %v15820_v27 = vpack.c.bf16 %v14153_v9, %v14151_v26  ;;  %v11820_v26 = vld [vmem:[%s15547_s4 + $0x1e8] sm:$0xff]   ;;  %v15823_v9 = vpack.c.bf16 %v14169_v54, %v14167_v57  ;;  %v15826_v57 = vpack.c.bf16 %v14188_v13, %v14186_v2  ;;  %v11823_v54 = vld [vmem:[%s15547_s4 + $0x200] sm:$0xff]   ;;  %v15829_v13 = vpack.c.bf16 %v14206_v29, %v14204_v20 }
 0x6f6   :  { %10713 = vmatprep.mubr.bf16.mxu1 %v6591_v39  ;;  %v11817_v39 = vld [vmem:[%s15547_s4 + $0x1d0] sm:$0xff]   ;;  %v15830_v2 = vpack.c.bf16 %v14214_v31, %v14208_v18  ;;  %v15834_v29 = vpack.c.bf16 %v14238_v24, %v14232_v33  ;;  %v15835_v18 = vpack.c.bf16 %v14242_v34, %v14240_v43  ;;  %v6953_v31 = vld [vmem:[#allocation3 + $0x164] sm:$0xff]  ;;  %v15837_v20 = vpack.c.bf16 %v14256_v32, %v14250_v0  ;;  %v7294_v34 = vld [vmem:[#allocation3 + $0x2d] sm:$0xff] }
 0x6f7   :  { %v6975_v3 = vpack.c.bf16 %v6953_v31, %v6952_v62  ;;  %v7292_v24 = vld [vmem:[#allocation3 + $0x1d] sm:$0xff]  ;;  %v7293_v33 = vld [vmem:[#allocation3 + $0x25] sm:$0xff]  ;;  %v7295_v43 = vld [vmem:[#allocation3 + $0x35] sm:$0xff] }
 0x6f8   :  { %v7335_v46 = vpack.c.bf16 %v7293_v33, %v7292_v24  ;;  %v7336_v23 = vpack.c.bf16 %v7295_v43, %v7294_v34  ;;  %v11825_v32 = vld [vmem:[%s15547_s4 + $0x210] sm:$0xff]   ;;  %v7298_v0 = vld [vmem:[#allocation3 + $0x4d] sm:$0xff]  ;;  %v7325_v31 = vld [vmem:[#allocation3 + $0x125] sm:$0xff] }
 0x6f9   :  { %v7324_v62 = vld [vmem:[#allocation3 + $0x11d] sm:$0xff]  ;;  %v7329_v33 = vld [vmem:[#allocation3 + $0x145] sm:$0xff]  ;;  %v7330_v43 = vld [vmem:[#allocation3 + $0x14d] sm:$0xff] }
 0x6fa   :  { %v7328_v24 = vld [vmem:[#allocation3 + $0x13d] sm:$0xff] }
 0x6fb   :  { %v7353_v34 = vpack.c.bf16 %v7329_v33, %v7328_v24  ;;  %v7705_v24 = vld [vmem:[#allocation3 + $0x126] sm:$0xff] }
 0x6fd   :  { %10714 = vmatmul.mubr.bf16.gmra.mrb[32].mxu1 %v6592_v25  ;;  %v7339_v25 = vpack.c.bf16 %v7301_v15, %v7300_v5  ;;  %v7673_v5 = vld [vmem:[#allocation3 + $0x26] sm:$0xff] }
 0x6fe   :  { %10717 = vmatprep.mubr.bf16.mxu1 %v6593_v16  ;;  %v11827_v16 = vld [vmem:[%s15547_s4 + $0x220] sm:$0xff]  }
 0x705   :  { %10718 = vmatmul.mubr.bf16.gmra.mrb[36].mxu1 %v6594_v48  ;;  %v7340_v48 = vpack.c.bf16 %v7303_v35, %v7302_v50 }
 0x706   :  { %10721 = vmatprep.mubr.bf16.mxu1 %v6595_v40  ;;  %v11828_v40 = vld [vmem:[%s15547_s4 + $0x228] sm:$0xff]  }
 0x70d   :  { %10722 = vmatmul.mubr.bf16.gmra.mrb[40].mxu1 %v6596_v22  ;;  %v11829_v22 = vld [vmem:[%s15547_s4 + $0x230] sm:$0xff]  }
 0x70e   :  { %10741 = vmatprep.mubr.bf16.mxu1 %v15818_v37  ;;  %v7306_v37 = vld [vmem:[#allocation3 + $0x8d] sm:$0xff] }
 0x715   :  { %10742 = vmatmul.mubr.bf16.vlgmr.msra.gmra.mrb[0].mxu1 %v15819_v42  ;;  %v7308_v42 = vld [vmem:[#allocation3 + $0x9d] sm:$0xff] }
 0x716   :  { %10745 = vmatprep.mubr.bf16.mxu1 %v15820_v27  ;;  %10786 = vmatpush3.bf16.msra.mxu1 %v11815_v11  ;;  %v7299_v11 = vld [vmem:[#allocation3 + $0x55] sm:$0xff]  ;;  %v7309_v27 = vld [vmem:[#allocation3 + $0xa5] sm:$0xff] }
 0x717   :  { %10787 = vmatprep.subr.bf16.mxu1 %v11816_v53  ;;  %v7338_v10 = vpack.c.bf16 %v7299_v11, %v7298_v0  ;;  %v7672_v11 = vld [vmem:[#allocation3 + $0x1e] sm:$0xff] }
 0x718   :  { %v7715_v15 = vpack.c.bf16 %v7673_v5, %v7672_v11  ;;  %v7713_v11 = vld [vmem:[#allocation3 + $0x166] sm:$0xff] }
 0x71a   :  { %10788 = vmatpush3.bf16.msra.mxu1 %v11816_v53  ;;  %v7307_v53 = vld [vmem:[#allocation3 + $0x95] sm:$0xff] }
 0x71b   :  { %10789 = vmatprep.subr.bf16.mxu1 %v11817_v39 }
 0x71d   :  { %10746 = vmatmul.mubr.bf16.gmra.mrb[4].mxu1 %v15821_v6  ;;  %v7343_v6 = vpack.c.bf16 %v7309_v27, %v7308_v42  ;;  %v7684_v42 = vld [vmem:[#allocation3 + $0x7e] sm:$0xff]  ;;  %v7685_v27 = vld [vmem:[#allocation3 + $0x86] sm:$0xff] }
 0x71e   :  { %10749 = vmatprep.mubr.bf16.mxu1 %v15822_v36  ;;  %10790 = vmatpush3.bf16.msra.mxu1 %v11817_v39  ;;  %v7342_v39 = vpack.c.bf16 %v7307_v53, %v7306_v37  ;;  %v7310_v36 = vld [vmem:[#allocation3 + $0xad] sm:$0xff]  ;;  %v7683_v53 = vld [vmem:[#allocation3 + $0x76] sm:$0xff] }
 0x71f   :  { %10791 = vmatprep.subr.bf16.mxu1 %v11818_v1  ;;  %v7682_v37 = vld [vmem:[#allocation3 + $0x6e] sm:$0xff] }
 0x722   :  { %10792 = vmatpush3.bf16.msra.mxu1 %v11818_v1  ;;  %v11830_v1 = vld [vmem:[%s15547_s4 + $0x238] sm:$0xff]  }
 0x723   :  { %10793 = vmatprep.subr.bf16.mxu1 %v11819_v7 }
 0x725   :  { %10750 = vmatmul.mubr.bf16.gmra.mrb[8].mxu1 %v15823_v9  ;;  %v7313_v9 = vld [vmem:[#allocation3 + $0xc5] sm:$0xff] }
 0x726   :  { %10753 = vmatprep.mubr.bf16.mxu1 %v15824_v47  ;;  %10794 = vmatpush3.bf16.msra.mxu1 %v11819_v7  ;;  %v7311_v7 = vld [vmem:[#allocation3 + $0xb5] sm:$0xff] }
 0x727   :  { %10795 = vmatprep.subr.bf16.mxu1 %v11820_v26  ;;  %v7344_v47 = vpack.c.bf16 %v7311_v7, %v7310_v36  ;;  %v7687_v36 = vld [vmem:[#allocation3 + $0x96] sm:$0xff]  ;;  %v7688_v7 = vld [vmem:[#allocation3 + $0x9e] sm:$0xff] }
 0x72a   :  { %10796 = vmatpush3.bf16.msra.mxu1 %v11820_v26  ;;  %v7312_v26 = vld [vmem:[#allocation3 + $0xbd] sm:$0xff] }
 0x72b   :  { %10797 = vmatprep.subr.bf16.mxu1 %v11821_v63 }
 0x72d   :  { %10754 = vmatmul.mubr.bf16.gmra.mrb[12].mxu1 %v15825_v56  ;;  %v7315_v56 = vld [vmem:[#allocation3 + $0xd5] sm:$0xff] }
 0x72e   :  { %10757 = vmatprep.mubr.bf16.mxu1 %v15826_v57  ;;  %10798 = vmatpush3.bf16.msra.mxu1 %v11821_v63  ;;  %v7345_v63 = vpack.c.bf16 %v7313_v9, %v7312_v26  ;;  %v7316_v57 = vld [vmem:[#allocation3 + $0xdd] sm:$0xff]  ;;  %v7689_v26 = vld [vmem:[#allocation3 + $0xa6] sm:$0xff] }
 0x72f   :  { %10799 = vmatprep.subr.bf16.mxu1 %v11822_v19 }
 0x732   :  { %10800 = vmatpush3.bf16.msra.mxu1 %v11822_v19  ;;  %v7314_v19 = vld [vmem:[#allocation3 + $0xcd] sm:$0xff] }
 0x733   :  { %10845 = vmatprep.subr.bf16.mxu1 %v11823_v54 }
 0x735   :  { %10758 = vmatmul.mubr.bf16.gmra.mrb[16].mxu1 %v15827_v55  ;;  %v7346_v55 = vpack.c.bf16 %v7315_v56, %v7314_v19  ;;  %v7691_v19 = vld [vmem:[#allocation3 + $0xb6] sm:$0xff]  ;;  %v7692_v56 = vld [vmem:[#allocation3 + $0xbe] sm:$0xff] }
 0x736   :  { %10761 = vmatprep.mubr.bf16.mxu1 %v15828_v30 }
 0x73d   :  { %10762 = vmatmul.mubr.bf16.gmra.mrb[20].mxu1 %v15829_v13  ;;  %v7318_v13 = vld [vmem:[#allocation3 + $0xed] sm:$0xff] }
 0x73e   :  { %10765 = vmatprep.mubr.bf16.mxu1 %v15830_v2  ;;  %v7319_v2 = vld [vmem:[#allocation3 + $0xf5] sm:$0xff] }
 0x745   :  { %10766 = vmatmul.mubr.bf16.gmra.mrb[24].mxu1 %v15831_v45  ;;  %v7320_v45 = vld [vmem:[#allocation3 + $0xfd] sm:$0xff] }
 0x746   :  { %10769 = vmatprep.mubr.bf16.mxu1 %v15832_v17  ;;  %v7321_v17 = vld [vmem:[#allocation3 + $0x105] sm:$0xff] }
 0x74d   :  { %10770 = vmatmul.mubr.bf16.gmra.mrb[28].mxu1 %v15833_v21  ;;  %v7348_v21 = vpack.c.bf16 %v7319_v2, %v7318_v13  ;;  %v7695_v13 = vld [vmem:[#allocation3 + $0xd6] sm:$0xff]  ;;  %v7696_v2 = vld [vmem:[#allocation3 + $0xde] sm:$0xff] }
 0x74e   :  { %10773 = vmatprep.mubr.bf16.mxu1 %v15834_v29  ;;  %v7349_v29 = vpack.c.bf16 %v7321_v17, %v7320_v45  ;;  %v7697_v45 = vld [vmem:[#allocation3 + $0xe6] sm:$0xff] }
 0x755   :  { %10774 = vmatmul.mubr.bf16.gmra.mrb[32].mxu1 %v15835_v18  ;;  %v7322_v18 = vld [vmem:[#allocation3 + $0x10d] sm:$0xff] }
 0x756   :  { %10777 = vmatprep.mubr.bf16.mxu1 %v15836_v51  ;;  %v7323_v51 = vld [vmem:[#allocation3 + $0x115] sm:$0xff] }
 0x75d   :  { %10778 = vmatmul.mubr.bf16.gmra.mrb[36].mxu1 %v15837_v20  ;;  %v7351_v20 = vpack.c.bf16 %v7325_v31, %v7324_v62  ;;  %v7701_v62 = vld [vmem:[#allocation3 + $0x106] sm:$0xff] }
 0x75e   :  { %10781 = vmatprep.mubr.bf16.mxu1 %v6975_v3  ;;  %v7350_v3 = vpack.c.bf16 %v7323_v51, %v7322_v18  ;;  %v7699_v18 = vld [vmem:[#allocation3 + $0xf6] sm:$0xff]  ;;  %v7700_v51 = vld [vmem:[#allocation3 + $0xfe] sm:$0xff] }
 0x765   :  { %10782 = vmatmul.mubr.bf16.gmra.mrb[40].mxu1 %v6976_v59  ;;  %v7327_v59 = vld [vmem:[#allocation3 + $0x135] sm:$0xff] }
 0x766   :  { %10801 = vmatprep.mubr.bf16.mxu1 %v7335_v46  ;;  %v7352_v46 = vpack.c.bf16 %v7327_v59, %v7326_v60  ;;  %v7703_v60 = vld [vmem:[#allocation3 + $0x116] sm:$0xff]  ;;  %v7704_v59 = vld [vmem:[#allocation3 + $0x11e] sm:$0xff] }
 0x76d   :  { %10802 = vmatmul.mubr.bf16.vlgmr.msra.gmra.mrb[0].mxu1 %v7336_v23  ;;  %v7333_v23 = vld [vmem:[#allocation3 + $0x165] sm:$0xff] }
 0x76e   :  { %10805 = vmatprep.mubr.bf16.mxu1 %v7337_v8  ;;  %10846 = vmatpush3.bf16.msra.mxu1 %v11823_v54  ;;  %v7317_v54 = vld [vmem:[#allocation3 + $0xe5] sm:$0xff]  ;;  %v7355_v8 = vpack.c.bf16 %v7333_v23, %v7332_v44 }
 0x76f   :  { %10847 = vmatprep.subr.bf16.mxu1 %v11824_v52  ;;  %v7347_v30 = vpack.c.bf16 %v7317_v54, %v7316_v57  ;;  %v7693_v57 = vld [vmem:[#allocation3 + $0xc6] sm:$0xff] }
 0x770   :  { %v7709_v44 = vld [vmem:[#allocation3 + $0x146] sm:$0xff] }
 0x772   :  { %10848 = vmatpush3.bf16.msra.mxu1 %v11824_v52  ;;  %v7354_v52 = vpack.c.bf16 %v7331_v4, %v7330_v43  ;;  %v7707_v43 = vld [vmem:[#allocation3 + $0x136] sm:$0xff]  ;;  %v7708_v4 = vld [vmem:[#allocation3 + $0x13e] sm:$0xff] }
 0x773   :  { %10849 = vmatprep.subr.bf16.mxu1 %v11825_v32 }
 0x775   :  { %10806 = vmatmul.mubr.bf16.gmra.mrb[4].mxu1 %v7338_v10  ;;  %v7674_v10 = vld [vmem:[#allocation3 + $0x2e] sm:$0xff] }
 0x776   :  { %10809 = vmatprep.mubr.bf16.mxu1 %v7339_v25  ;;  %10850 = vmatpush3.bf16.msra.mxu1 %v11825_v32  ;;  %v7334_v32 = vld [vmem:[#allocation3 + $0x16d] sm:$0xff]  ;;  %v7676_v25 = vld [vmem:[#allocation3 + $0x3e] sm:$0xff] }
 0x777   :  { %10851 = vmatprep.subr.bf16.mxu1 %v11826_v28  ;;  %v7356_v0 = vpack.c.bf16 %v7334_v32, %v7334_v32  ;;  %v7711_v32 = vld [vmem:[#allocation3 + $0x156] sm:$0xff] }
 0x77a   :  { %10852 = vmatpush3.bf16.msra.mxu1 %v11826_v28  ;;  %v7675_v28 = vld [vmem:[#allocation3 + $0x36] sm:$0xff] }
 0x77b   :  { %10853 = vmatprep.subr.bf16.mxu1 %v11827_v16  ;;  %v7716_v50 = vpack.c.bf16 %v7675_v28, %v7674_v10  ;;  %v7714_v10 = vld [vmem:[#allocation3 + $0x16e] sm:$0xff] }
 0x77c   :  { %v7736_v28 = vpack.c.bf16 %v7714_v10, %v7714_v10  ;;  %v15843_v10 = vld [vmem:[#allocation13_spill] sm:$0xff] }
 0x77d   :  { %10810 = vmatmul.mubr.bf16.gmra.mrb[8].mxu1 %v7340_v48  ;;  %v7680_v48 = vld [vmem:[#allocation3 + $0x5e] sm:$0xff] }
 0x77e   :  { %10813 = vmatprep.mubr.bf16.mxu1 %v7341_v12  ;;  %10854 = vmatpush3.bf16.msra.mxu1 %v11827_v16  ;;  %v7677_v16 = vld [vmem:[#allocation3 + $0x46] sm:$0xff]  ;;  %v7718_v12 = vpack.c.bf16 %v7679_v41, %v7678_v58 }
 0x77f   :  { %10855 = vmatprep.subr.bf16.mxu1 %v11828_v40  ;;  %v7717_v35 = vpack.c.bf16 %v7677_v16, %v7676_v25 }
 0x782   :  { %10856 = vmatpush3.bf16.msra.mxu1 %v11828_v40  ;;  %v7681_v40 = vld [vmem:[#allocation3 + $0x66] sm:$0xff] }
 0x783   :  { %10857 = vmatprep.subr.bf16.mxu1 %v11829_v22 }
 0x785   :  { %10814 = vmatmul.mubr.bf16.gmra.mrb[12].mxu1 %v7342_v39  ;;  %v7720_v39 = vpack.c.bf16 %v7683_v53, %v7682_v37  ;;  %v15839_v53 = vld [vmem:[#allocation5_spill] sm:$0xff] }
 0x786   :  { %10817 = vmatprep.mubr.bf16.mxu1 %v7343_v6  ;;  %10858 = vmatpush3.bf16.msra.mxu1 %v11829_v22  ;;  %v7719_v22 = vpack.c.bf16 %v7681_v40, %v7680_v48  ;;  %v7686_v6 = vld [vmem:[#allocation3 + $0x8e] sm:$0xff]  ;;  %v15838_v40 = vld [vmem:[#allocation12_spill] sm:$0xff] }
 0x787   :  { %10859 = vmatprep.subr.bf16.mxu1 %v11830_v1  ;;  %v7722_v9 = vpack.c.bf16 %v7687_v36, %v7686_v6 }
 0x78a   :  { %10860 = vmatpush3.bf16.msra.mxu1 %v11830_v1  ;;  %v7721_v1 = vpack.c.bf16 %v7685_v27, %v7684_v42 }
 0x78d   :  { %10818 = vmatmul.mubr.bf16.gmra.mrb[16].mxu1 %v7344_v47  ;;  %v7723_v47 = vpack.c.bf16 %v7689_v26, %v7688_v7 }
 0x78e   :  { %10821 = vmatprep.mubr.bf16.mxu1 %v7345_v63  ;;  %v7690_v63 = vld [vmem:[#allocation3 + $0xae] sm:$0xff] }
 0x78f   :  { %v7724_v54 = vpack.c.bf16 %v7691_v19, %v7690_v63 }
 0x795   :  { %10822 = vmatmul.mubr.bf16.gmra.mrb[20].mxu1 %v7346_v55  ;;  %v7725_v55 = vpack.c.bf16 %v7693_v57, %v7692_v56 }
 0x796   :  { %10825 = vmatprep.mubr.bf16.mxu1 %v7347_v30  ;;  %v7694_v30 = vld [vmem:[#allocation3 + $0xce] sm:$0xff] }
 0x797   :  { %v7726_v17 = vpack.c.bf16 %v7695_v13, %v7694_v30 }
 0x79d   :  { %10826 = vmatmul.mubr.bf16.gmra.mrb[24].mxu1 %v7348_v21  ;;  %v7727_v21 = vpack.c.bf16 %v7697_v45, %v7696_v2 }
 0x79e   :  { %10829 = vmatprep.mubr.bf16.mxu1 %v7349_v29  ;;  %v7698_v29 = vld [vmem:[#allocation3 + $0xee] sm:$0xff] }
 0x79f   :  { %v7728_v31 = vpack.c.bf16 %v7699_v18, %v7698_v29  ;;  %v15840_v18 = vld [vmem:[#allocation9_spill] sm:$0xff] }
 0x7a5   :  { %10830 = vmatmul.mubr.bf16.gmra.mrb[28].mxu1 %v7350_v3  ;;  %v7729_v3 = vpack.c.bf16 %v7701_v62, %v7700_v51 }
 0x7a6   :  { %10833 = vmatprep.mubr.bf16.mxu1 %v7351_v20  ;;  %v7702_v20 = vld [vmem:[#allocation3 + $0x10e] sm:$0xff] }
 0x7a7   :  { %v7730_v33 = vpack.c.bf16 %v7703_v60, %v7702_v20  ;;  %v15841_v60 = vld [vmem:[#allocation10_spill] sm:$0xff] }
 0x7ad   :  { %10834 = vmatmul.mubr.bf16.gmra.mrb[32].mxu1 %v7352_v46  ;;  %v7731_v46 = vpack.c.bf16 %v7705_v24, %v7704_v59 }
 0x7ae   :  { %10837 = vmatprep.mubr.bf16.mxu1 %v7353_v34  ;;  %v7706_v34 = vld [vmem:[#allocation3 + $0x12e] sm:$0xff] }
 0x7af   :  { %v7732_v23 = vpack.c.bf16 %v7707_v43, %v7706_v34 }
 0x7b5   :  { %10838 = vmatmul.mubr.bf16.gmra.mrb[36].mxu1 %v7354_v52  ;;  %v7733_v52 = vpack.c.bf16 %v7709_v44, %v7708_v4  ;;  %v15842_v4 = vld [vmem:[#allocation11_spill] sm:$0xff] }
 0x7b6   :  { %10841 = vmatprep.mubr.bf16.mxu1 %v7355_v8  ;;  %v7710_v8 = vld [vmem:[#allocation3 + $0x14e] sm:$0xff] }
 0x7b7   :  { %v7734_v5 = vpack.c.bf16 %v7711_v32, %v7710_v8 }
 0x7bd   :  { %10842 = vmatmul.mubr.bf16.gmra.mrb[40].mxu1 %v7356_v0  ;;  %v7712_v0 = vld [vmem:[#allocation3 + $0x15e] sm:$0xff] }
 0x7be   :  { %10861 = vmatprep.mubr.bf16.mxu1 %v7715_v15  ;;  %v7735_v15 = vpack.c.bf16 %v7713_v11, %v7712_v0 }
 0x7c5   :  { %10862 = vmatmul.mubr.bf16.vlgmr.msra.gmra.mrb[0].mxu1 %v7716_v50 }
 0x7c6   :  { %10865 = vmatprep.mubr.bf16.mxu1 %v7717_v35 }
 0x7cd   :  { %10866 = vmatmul.mubr.bf16.gmra.mrb[4].mxu1 %v7718_v12 }
 0x7ce   :  { %10869 = vmatprep.mubr.bf16.mxu1 %v7719_v22 }
 0x7d5   :  { %10870 = vmatmul.mubr.bf16.gmra.mrb[8].mxu1 %v7720_v39 }
 0x7d6   :  { %10873 = vmatprep.mubr.bf16.mxu1 %v7721_v1 }
 0x7dd   :  { %10874 = vmatmul.mubr.bf16.gmra.mrb[12].mxu1 %v7722_v9 }
 0x7de   :  { %10877 = vmatprep.mubr.bf16.mxu1 %v7723_v47 }
 0x7e5   :  { %10878 = vmatmul.mubr.bf16.gmra.mrb[16].mxu1 %v7724_v54 }
 0x7e6   :  { %10881 = vmatprep.mubr.bf16.mxu1 %v7725_v55 }
 0x7ed   :  { %10882 = vmatmul.mubr.bf16.gmra.mrb[20].mxu1 %v7726_v17 }
 0x7ee   :  { %10885 = vmatprep.mubr.bf16.mxu1 %v7727_v21 }
 0x7f5   :  { %10886 = vmatmul.mubr.bf16.gmra.mrb[24].mxu1 %v7728_v31 }
 0x7f6   :  { %10889 = vmatprep.mubr.bf16.mxu1 %v7729_v3 }
 0x7fd   :  { %10890 = vmatmul.mubr.bf16.gmra.mrb[28].mxu1 %v7730_v33 }
 0x7fe   :  { %10893 = vmatprep.mubr.bf16.mxu1 %v7731_v46 }
 0x805   :  { %10894 = vmatmul.mubr.bf16.gmra.mrb[32].mxu1 %v7732_v23 }
 0x806   :  { %10897 = vmatprep.mubr.bf16.mxu1 %v7733_v52 }
 0x80d   :  { %10898 = vmatmul.mubr.bf16.gmra.mrb[36].mxu1 %v7734_v5 }
 0x80e   :  { %10901 = vmatprep.mubr.bf16.mxu1 %v7735_v15 }
 0x815   :  { %10902 = vmatmul.mubr.bf16.gmra.mrb[40].mxu1 %v7736_v28 }
 0x898   :  { %v14541_v25 = vpop.f32.mrb[0].mxu1 }
 0x899   :  { %v14543_v16 = vpop.f32.mrb[1].mxu1  ;;  %v8145_v41 = vmul.f32 %v14541_v25, %v14541_v25  ;;  %v8054_v42 = vmul.f32 %v14541_v25, %v15839_v53 }
 0x89a   :  { %v8143_v50 = vmul.f32 %v14543_v16, %v14543_v16  ;;  %v14547_v35 = vpop.f32.mrb[2].mxu1  ;;  %v8052_v48 = vmul.f32 %v14543_v16, %v15763_v14 }
 0x89b   :  { %v14549_v58 = vpop.f32.mrb[3].mxu1  ;;  %v8146_v37 = vmul.f32 %v14547_v35, %v14547_v35  ;;  %v8188_v6 = vmul.f32 %v8145_v41, %v15839_v53  ;;  %v8055_v36 = vmul.f32 %v14547_v35, %v15766_v49 }
 0x89c   :  { %v8053_v12 = vmul.f32 %v14549_v58, %v15838_v40  ;;  %v8144_v22 = vmul.f32 %v14549_v58, %v14549_v58  ;;  %v8186_v27 = vmul.f32 %v8143_v50, %v15763_v14 }
 0x89d   :  { %v8189_v47 = vmul.f32 %v8146_v37, %v15766_v49  ;;  %v15876_v49 = vld [vmem:[#allocation44_spill] sm:$0xff] }
 0x89e   :  { %v8095_v39 = vadd.f32 %v8053_v12, %v8052_v48  ;;  %v8187_v1 = vmul.f32 %v8144_v22, %v15838_v40  ;;  %v15844_v12 = vld [vmem:[#allocation14_spill] sm:$0xff] }
 0x8a0   :  { %v8096_v7 = vadd.f32 %v8095_v39, %v8054_v42  ;;  %v8229_v26 = vadd.f32 %v8187_v1, %v8186_v27  ;;  %v14568_v9 = vpop.f32.mrb[4].mxu1  ;;  %v15845_v1 = vld [vmem:[#allocation15_spill] sm:$0xff] }
 0x8a1   :  { %v14571_v63 = vpop.f32.mrb[5].mxu1  ;;  %v8149_v21 = vmul.f32 %v14568_v9, %v14568_v9  ;;  %v8058_v51 = vmul.f32 %v14568_v9, %v15840_v18 }
 0x8a2   :  { %v8230_v19 = vadd.f32 %v8229_v26, %v8188_v6  ;;  %v8056_v56 = vmul.f32 %v14571_v63, %v15767_v61  ;;  %v8097_v57 = vadd.f32 %v8096_v7, %v8055_v36  ;;  %v8147_v54 = vmul.f32 %v14571_v63, %v14571_v63  ;;  %v14577_v55 = vpop.f32.mrb[6].mxu1 }
 0x8a3   :  { %v14579_v30 = vpop.f32.mrb[7].mxu1  ;;  %v8150_v3 = vmul.f32 %v14577_v55, %v14577_v55  ;;  %v8059_v59 = vmul.f32 %v14577_v55, %v15841_v60  ;;  %v8192_v46 = vmul.f32 %v8149_v21, %v15840_v18 }
 0x8a4   :  { %v8098_v13 = vadd.f32 %v8097_v57, %v8056_v56  ;;  %v8190_v2 = vmul.f32 %v8147_v54, %v15767_v61  ;;  %v8231_v45 = vadd.f32 %v8230_v19, %v8189_v47  ;;  %v8057_v17 = vmul.f32 %v14579_v30, %v15768_v38  ;;  %v15846_v56 = vld [vmem:[#allocation16_spill] sm:$0xff] }
 0x8a5   :  { %v8148_v29 = vmul.f32 %v14579_v30, %v14579_v30  ;;  %v8193_v32 = vmul.f32 %v8150_v3, %v15841_v60  ;;  %v15864_v60 = vld [vmem:[#allocation34_spill] sm:$0xff] }
 0x8a6   :  { %v8232_v62 = vadd.f32 %v8231_v45, %v8190_v2  ;;  %v8099_v31 = vadd.f32 %v8098_v13, %v8057_v17 }
 0x8a7   :  { %v8191_v20 = vmul.f32 %v8148_v29, %v15768_v38  ;;  %v15868_v38 = vld [vmem:[#allocation39_spill] sm:$0xff] }
 0x8a8   :  { %v8100_v24 = vadd.f32 %v8099_v31, %v8058_v51  ;;  %v14595_v33 = vpop.f32.mrb[8].mxu1 }
 0x8a9   :  { %v8233_v34 = vadd.f32 %v8232_v62, %v8191_v20  ;;  %v14598_v43 = vpop.f32.mrb[9].mxu1  ;;  %v8153_v41 = vmul.f32 %v14595_v33, %v14595_v33  ;;  %v8062_v22 = vmul.f32 %v14595_v33, %v15844_v12  ;;  %v15847_v62 = vld [vmem:[#allocation17_spill] sm:$0xff] }
 0x8aa   :  { %v8060_v44 = vmul.f32 %v14598_v43, %v15842_v4  ;;  %v8101_v23 = vadd.f32 %v8100_v24, %v8059_v59  ;;  %v8151_v52 = vmul.f32 %v14598_v43, %v14598_v43  ;;  %v14604_v8 = vpop.f32.mrb[10].mxu1  ;;  %v15848_v24 = vld [vmem:[#allocation18_spill] sm:$0xff] }
 0x8ab   :  { %v8234_v0 = vadd.f32 %v8233_v34, %v8192_v46  ;;  %v14607_v11 = vpop.f32.mrb[11].mxu1  ;;  %v8154_v39 = vmul.f32 %v14604_v8, %v14604_v8  ;;  %v8063_v6 = vmul.f32 %v14604_v8, %v15845_v1  ;;  %v8196_v26 = vmul.f32 %v8153_v41, %v15844_v12  ;;  %v15860_v12 = vld [vmem:[#allocation30_spill] sm:$0xff] }
 0x8ac   :  { %v8102_v5 = vadd.f32 %v8101_v23, %v8060_v44  ;;  %v8194_v15 = vmul.f32 %v8151_v52, %v15842_v4  ;;  %v8061_v28 = vmul.f32 %v14607_v11, %v15843_v10  ;;  %v8152_v50 = vmul.f32 %v14607_v11, %v14607_v11 }
 0x8ad   :  { %v8235_v48 = vadd.f32 %v8234_v0, %v8193_v32  ;;  %v8197_v45 = vmul.f32 %v8154_v39, %v15845_v1  ;;  %v15849_v32 = vld [vmem:[#allocation19_spill] sm:$0xff] }
 0x8ae   :  { %v8103_v37 = vadd.f32 %v8102_v5, %v8061_v28  ;;  %v8195_v42 = vmul.f32 %v8152_v50, %v15843_v10 }
 0x8af   :  { %v8236_v27 = vadd.f32 %v8235_v48, %v8194_v15  ;;  %v15850_v48 = vld [vmem:[#allocation20_spill] sm:$0xff] }
 0x8b0   :  { %v8104_v36 = vadd.f32 %v8103_v37, %v8062_v22  ;;  %v14623_v7 = vpop.f32.mrb[12].mxu1 }
 0x8b1   :  { %v8237_v47 = vadd.f32 %v8236_v27, %v8195_v42  ;;  %v14626_v19 = vpop.f32.mrb[13].mxu1  ;;  %v8157_v20 = vmul.f32 %v14623_v7, %v14623_v7  ;;  %v8066_v46 = vmul.f32 %v14623_v7, %v15848_v24 }
 0x8b2   :  { %v8064_v57 = vmul.f32 %v14626_v19, %v15846_v56  ;;  %v8105_v54 = vadd.f32 %v8104_v36, %v8063_v6  ;;  %v8155_v13 = vmul.f32 %v14626_v19, %v14626_v19  ;;  %v14632_v2 = vpop.f32.mrb[14].mxu1 }
 0x8b3   :  { %v8238_v17 = vadd.f32 %v8237_v47, %v8196_v26  ;;  %v14635_v21 = vpop.f32.mrb[15].mxu1  ;;  %v8158_v52 = vmul.f32 %v14632_v2, %v14632_v2  ;;  %v8067_v0 = vmul.f32 %v14632_v2, %v15849_v32  ;;  %v8200_v28 = vmul.f32 %v8157_v20, %v15848_v24 }
 0x8b4   :  { %v8106_v29 = vadd.f32 %v8105_v54, %v8064_v57  ;;  %v8198_v51 = vmul.f32 %v8155_v13, %v15846_v56  ;;  %v8065_v31 = vmul.f32 %v14635_v21, %v15847_v62  ;;  %v8156_v3 = vmul.f32 %v14635_v21, %v14635_v21  ;;  %v15851_v57 = vld [vmem:[#allocation21_spill] sm:$0xff] }
 0x8b5   :  { %v8239_v59 = vadd.f32 %v8238_v17, %v8197_v45  ;;  %v8201_v39 = vmul.f32 %v8158_v52, %v15849_v32 }
 0x8b6   :  { %v8107_v34 = vadd.f32 %v8106_v29, %v8065_v31  ;;  %v8199_v44 = vmul.f32 %v8156_v3, %v15847_v62  ;;  %v15852_v29 = vld [vmem:[#allocation22_spill] sm:$0xff] }
 0x8b7   :  { %v8240_v23 = vadd.f32 %v8239_v59, %v8198_v51 }
 0x8b8   :  { %v8108_v5 = vadd.f32 %v8107_v34, %v8066_v46  ;;  %v14651_v15 = vpop.f32.mrb[16].mxu1  ;;  %v15853_v46 = vld [vmem:[#allocation23_spill] sm:$0xff] }
 0x8b9   :  { %v8241_v50 = vadd.f32 %v8240_v23, %v8199_v44  ;;  %v14654_v41 = vpop.f32.mrb[17].mxu1  ;;  %v8161_v45 = vmul.f32 %v14651_v15, %v14651_v15  ;;  %v8070_v51 = vmul.f32 %v14651_v15, %v15852_v29 }
 0x8ba   :  { %v8068_v22 = vmul.f32 %v14654_v41, %v15850_v48  ;;  %v8109_v37 = vadd.f32 %v8108_v5, %v8067_v0  ;;  %v8159_v42 = vmul.f32 %v14654_v41, %v14654_v41  ;;  %v14660_v27 = vpop.f32.mrb[18].mxu1 }
 0x8bb   :  { %v8242_v6 = vadd.f32 %v8241_v50, %v8200_v28  ;;  %v14663_v36 = vpop.f32.mrb[19].mxu1  ;;  %v8162_v59 = vmul.f32 %v14660_v27, %v14660_v27  ;;  %v8071_v34 = vmul.f32 %v14660_v27, %v15853_v46  ;;  %v8204_v52 = vmul.f32 %v8161_v45, %v15852_v29  ;;  %v15854_v28 = vld [vmem:[#allocation24_spill] sm:$0xff] }
 0x8bc   :  { %v8110_v26 = vadd.f32 %v8109_v37, %v8068_v22  ;;  %v8202_v47 = vmul.f32 %v8159_v42, %v15850_v48  ;;  %v8069_v54 = vmul.f32 %v14663_v36, %v15851_v57  ;;  %v8160_v13 = vmul.f32 %v14663_v36, %v14663_v36 }
 0x8bd   :  { %v8243_v17 = vadd.f32 %v8242_v6, %v8201_v39  ;;  %v8205_v39 = vmul.f32 %v8162_v59, %v15853_v46 }
 0x8be   :  { %v8111_v31 = vadd.f32 %v8110_v26, %v8069_v54  ;;  %v8203_v3 = vmul.f32 %v8160_v13, %v15851_v57  ;;  %v15855_v13 = vld [vmem:[#allocation25_spill] sm:$0xff] }
 0x8bf   :  { %v8244_v20 = vadd.f32 %v8243_v17, %v8202_v47 }
 0x8c0   :  { %v8112_v44 = vadd.f32 %v8111_v31, %v8070_v51  ;;  %v14679_v23 = vpop.f32.mrb[20].mxu1 }
 0x8c1   :  { %v8245_v0 = vadd.f32 %v8244_v20, %v8203_v3  ;;  %v14682_v5 = vpop.f32.mrb[21].mxu1  ;;  %v8165_v51 = vmul.f32 %v14679_v23, %v14679_v23  ;;  %v15856_v3 = vld [vmem:[#allocation26_spill] sm:$0xff] }
 0x8c2   :  { %v8072_v50 = vmul.f32 %v14682_v5, %v15854_v28  ;;  %v8113_v22 = vadd.f32 %v8112_v44, %v8071_v34  ;;  %v8163_v37 = vmul.f32 %v14682_v5, %v14682_v5  ;;  %v14688_v42 = vpop.f32.mrb[22].mxu1  ;;  %v8074_v20 = vmul.f32 %v14679_v23, %v15856_v3 }
 0x8c3   :  { %v8246_v6 = vadd.f32 %v8245_v0, %v8204_v52  ;;  %v14691_v26 = vpop.f32.mrb[23].mxu1  ;;  %v8166_v52 = vmul.f32 %v14688_v42, %v14688_v42  ;;  %v15857_v0 = vld [vmem:[#allocation27_spill] sm:$0xff]  ;;  %v8208_v24 = vmul.f32 %v8165_v51, %v15856_v3 }
 0x8c4   :  { %v8114_v47 = vadd.f32 %v8113_v22, %v8072_v50  ;;  %v8206_v54 = vmul.f32 %v8163_v37, %v15854_v28  ;;  %v8073_v45 = vmul.f32 %v14691_v26, %v15855_v13  ;;  %v8164_v17 = vmul.f32 %v14691_v26, %v14691_v26 }
 0x8c5   :  { %v8247_v31 = vadd.f32 %v8246_v6, %v8205_v39  ;;  %v8075_v50 = vmul.f32 %v14688_v42, %v15857_v0  ;;  %v15858_v6 = vld [vmem:[#allocation28_spill] sm:$0xff] }
 0x8c6   :  { %v8115_v59 = vadd.f32 %v8114_v47, %v8073_v45  ;;  %v8207_v34 = vmul.f32 %v8164_v17, %v15855_v13 }
 0x8c7   :  { %v8248_v44 = vadd.f32 %v8247_v31, %v8206_v54  ;;  %v8209_v31 = vmul.f32 %v8166_v52, %v15857_v0 }
 0x8c8   :  { %v8116_v22 = vadd.f32 %v8115_v59, %v8074_v20  ;;  %v14707_v37 = vpop.f32.mrb[24].mxu1 }
 0x8c9   :  { %v8249_v32 = vadd.f32 %v8248_v44, %v8207_v34  ;;  %v14710_v39 = vpop.f32.mrb[25].mxu1  ;;  %v15859_v34 = vld [vmem:[#allocation29_spill] sm:$0xff]  ;;  %v8078_v1 = vmul.f32 %v14707_v37, %v15860_v12 }
 0x8ca   :  { %v8076_v47 = vmul.f32 %v14710_v39, %v15858_v6  ;;  %v8117_v45 = vadd.f32 %v8116_v22, %v8075_v50  ;;  %v8167_v54 = vmul.f32 %v14710_v39, %v14710_v39  ;;  %v14716_v17 = vpop.f32.mrb[26].mxu1  ;;  %v8169_v50 = vmul.f32 %v14707_v37, %v14707_v37 }
 0x8cb   :  { %v8250_v56 = vadd.f32 %v8249_v32, %v8208_v24  ;;  %v14719_v20 = vpop.f32.mrb[27].mxu1 }
 0x8cc   :  { %v8118_v59 = vadd.f32 %v8117_v45, %v8076_v47  ;;  %v8210_v51 = vmul.f32 %v8167_v54, %v15858_v6  ;;  %v8077_v44 = vmul.f32 %v14719_v20, %v15859_v34  ;;  %v8168_v62 = vmul.f32 %v14719_v20, %v14719_v20  ;;  %v15861_v45 = vld [vmem:[#allocation31_spill] sm:$0xff] }
 0x8cd   :  { %v8251_v22 = vadd.f32 %v8250_v56, %v8209_v31  ;;  %v8170_v47 = vmul.f32 %v14716_v17, %v14716_v17  ;;  %v8079_v54 = vmul.f32 %v14716_v17, %v15861_v45  ;;  %v8212_v6 = vmul.f32 %v8169_v50, %v15860_v12  ;;  %v15862_v31 = vld [vmem:[#allocation32_spill] sm:$0xff] }
 0x8ce   :  { %v8119_v52 = vadd.f32 %v8118_v59, %v8077_v44  ;;  %v8211_v24 = vmul.f32 %v8168_v62, %v15859_v34 }
 0x8cf   :  { %v8252_v32 = vadd.f32 %v8251_v22, %v8210_v51  ;;  %v8213_v22 = vmul.f32 %v8170_v47, %v15861_v45 }
 0x8d0   :  { %v8120_v4 = vadd.f32 %v8119_v52, %v8078_v1  ;;  %v14735_v10 = vpop.f32.mrb[28].mxu1 }
 0x8d1   :  { %v8253_v18 = vadd.f32 %v8252_v32, %v8211_v24  ;;  %v14738_v56 = vpop.f32.mrb[29].mxu1  ;;  %v15863_v24 = vld [vmem:[#allocation33_spill] sm:$0xff]  ;;  %v8082_v3 = vmul.f32 %v14735_v10, %v15864_v60 }
 0x8d2   :  { %v8080_v59 = vmul.f32 %v14738_v56, %v15862_v31  ;;  %v8121_v44 = vadd.f32 %v8120_v4, %v8079_v54  ;;  %v8171_v62 = vmul.f32 %v14738_v56, %v14738_v56  ;;  %v14744_v51 = vpop.f32.mrb[30].mxu1  ;;  %v8173_v4 = vmul.f32 %v14735_v10, %v14735_v10 }
 0x8d3   :  { %v8254_v34 = vadd.f32 %v8253_v18, %v8212_v6  ;;  %v14747_v1 = vpop.f32.mrb[31].mxu1 }
 0x8d4   :  { %v8122_v52 = vadd.f32 %v8121_v44, %v8080_v59  ;;  %v8214_v50 = vmul.f32 %v8171_v62, %v15862_v31  ;;  %v8081_v32 = vmul.f32 %v14747_v1, %v15863_v24  ;;  %v8172_v12 = vmul.f32 %v14747_v1, %v14747_v1  ;;  %v15865_v44 = vld [vmem:[#allocation35_spill] sm:$0xff] }
 0x8d5   :  { %v8255_v54 = vadd.f32 %v8254_v34, %v8213_v22  ;;  %v8174_v59 = vmul.f32 %v14744_v51, %v14744_v51  ;;  %v8083_v62 = vmul.f32 %v14744_v51, %v15865_v44  ;;  %v8216_v0 = vmul.f32 %v8173_v4, %v15864_v60  ;;  %v15866_v22 = vld [vmem:[#allocation36_spill] sm:$0xff] }
 0x8d6   :  { %v8123_v47 = vadd.f32 %v8122_v52, %v8081_v32  ;;  %v8215_v18 = vmul.f32 %v8172_v12, %v15863_v24 }
 0x8d7   :  { %v8256_v6 = vadd.f32 %v8255_v54, %v8214_v50  ;;  %v8217_v54 = vmul.f32 %v8174_v59, %v15865_v44 }
 0x8d8   :  { %v8124_v31 = vadd.f32 %v8123_v47, %v8082_v3  ;;  %v14763_v45 = vpop.f32.mrb[32].mxu1 }
 0x8d9   :  { %v8257_v61 = vadd.f32 %v8256_v6, %v8215_v18  ;;  %v14766_v34 = vpop.f32.mrb[33].mxu1  ;;  %v15867_v18 = vld [vmem:[#allocation38_spill] sm:$0xff]  ;;  %v8086_v28 = vmul.f32 %v14763_v45, %v15868_v38 }
 0x8da   :  { %v8084_v52 = vmul.f32 %v14766_v34, %v15866_v22  ;;  %v8125_v32 = vadd.f32 %v8124_v31, %v8083_v62  ;;  %v8175_v12 = vmul.f32 %v14766_v34, %v14766_v34  ;;  %v14772_v50 = vpop.f32.mrb[34].mxu1  ;;  %v8177_v31 = vmul.f32 %v14763_v45, %v14763_v45 }
 0x8db   :  { %v8258_v24 = vadd.f32 %v8257_v61, %v8216_v0  ;;  %v14775_v3 = vpop.f32.mrb[35].mxu1 }
 0x8dc   :  { %v8126_v47 = vadd.f32 %v8125_v32, %v8084_v52  ;;  %v8218_v4 = vmul.f32 %v8175_v12, %v15866_v22  ;;  %v8085_v6 = vmul.f32 %v14775_v3, %v15867_v18  ;;  %v8176_v60 = vmul.f32 %v14775_v3, %v14775_v3  ;;  %v15869_v32 = vld [vmem:[#allocation40_spill] sm:$0xff] }
 0x8dd   :  { %v8259_v62 = vadd.f32 %v8258_v24, %v8217_v54  ;;  %v8178_v52 = vmul.f32 %v14772_v50, %v14772_v50  ;;  %v8087_v12 = vmul.f32 %v14772_v50, %v15869_v32  ;;  %v8220_v13 = vmul.f32 %v8177_v31, %v15868_v38  ;;  %v15872_v54 = vld [vmem:[#allocation41_spill] sm:$0xff] }
 0x8de   :  { %v8127_v59 = vadd.f32 %v8126_v47, %v8085_v6  ;;  %v8219_v61 = vmul.f32 %v8176_v60, %v15867_v18 }
 0x8df   :  { %v8260_v0 = vadd.f32 %v8259_v62, %v8218_v4  ;;  %v8221_v62 = vmul.f32 %v8178_v52, %v15869_v32 }
 0x8e0   :  { %v8128_v44 = vadd.f32 %v8127_v59, %v8086_v28  ;;  %v14791_v22 = vpop.f32.mrb[36].mxu1 }
 0x8e1   :  { %15870 = vst [vmem:[#allocation45_spill] sm:$0xff] %v14791_v22  ;;  %v8261_v53 = vadd.f32 %v8260_v0, %v8219_v61  ;;  %v14794_v24 = vpop.f32.mrb[37].mxu1  ;;  %v15875_v61 = vld [vmem:[#allocation42_spill] sm:$0xff]  ;;  %v8090_v29 = vmul.f32 %v14791_v22, %v15876_v49 }
 0x8e2   :  { %15871 = vst [vmem:[#allocation47_spill] sm:$0xff] %v14794_v24  ;;  %v8088_v47 = vmul.f32 %v14794_v24, %v15872_v54  ;;  %v8129_v6 = vadd.f32 %v8128_v44, %v8087_v12  ;;  %v8179_v60 = vmul.f32 %v14794_v24, %v14794_v24  ;;  %v14800_v4 = vpop.f32.mrb[38].mxu1  ;;  %v8181_v44 = vmul.f32 %v14791_v22, %v14791_v22 }
 0x8e3   :  { %15873 = vst [vmem:[#allocation43_spill] sm:$0xff] %v14800_v4  ;;  %v8262_v18 = vadd.f32 %v8261_v53, %v8220_v13  ;;  %v14803_v28 = vpop.f32.mrb[39].mxu1 }
 0x8e4   :  { %15874 = vst [vmem:[#allocation46_spill] sm:$0xff] %v14803_v28  ;;  %v8130_v59 = vadd.f32 %v8129_v6, %v8088_v47  ;;  %v8222_v31 = vmul.f32 %v8179_v60, %v15872_v54  ;;  %v8089_v0 = vmul.f32 %v14803_v28, %v15875_v61  ;;  %v8180_v38 = vmul.f32 %v14803_v28, %v14803_v28  ;;  %v15877_v6 = vld [vmem:[#allocation48_spill] sm:$0xff] }
 0x8e5   :  { %v8263_v12 = vadd.f32 %v8262_v18, %v8221_v62  ;;  %v8182_v47 = vmul.f32 %v14800_v4, %v14800_v4  ;;  %v8091_v60 = vmul.f32 %v14800_v4, %v15877_v6  ;;  %v8224_v46 = vmul.f32 %v8181_v44, %v15876_v49  ;;  %v15880_v62 = vld [vmem:[#allocation49_spill] sm:$0xff]  ;;  %v15881_v44 = vld [vmem:[#allocation52_spill] sm:$0xff] }
 0x8e6   :  { %v8131_v52 = vadd.f32 %v8130_v59, %v8089_v0  ;;  %v8223_v53 = vmul.f32 %v8180_v38, %v15875_v61  ;;  %v15882_v49 = vld [vmem:[#allocation53_spill] sm:$0xff] }
 0x8e7   :  { %v8264_v13 = vadd.f32 %v8263_v12, %v8222_v31  ;;  %v8225_v12 = vmul.f32 %v8182_v47, %v15877_v6 }
 0x8e8   :  { %v8132_v54 = vadd.f32 %v8131_v52, %v8090_v29  ;;  %v14819_v32 = vpop.f32.mrb[40].mxu1 }
 0x8e9   :  { %15878 = vst [vmem:[#allocation51_spill] sm:$0xff] %v14819_v32  ;;  %v8265_v14 = vadd.f32 %v8264_v13, %v8223_v53  ;;  %v14822_v18 = vpop.f32.mrb[41].mxu1 }
 0x8ea   :  { %15879 = vst [vmem:[#allocation50_spill] sm:$0xff] %v14822_v18  ;;  %v8092_v59 = vmul.f32 %v14822_v18, %v15880_v62  ;;  %v8133_v0 = vadd.f32 %v8132_v54, %v8091_v60  ;;  %v8183_v38 = vmul.f32 %v14822_v18, %v14822_v18  ;;  %v10904_v31 = vpop.f32.mrb[42].mxu1  ;;  %v8185_v54 = vmul.f32 %v14819_v32, %v14819_v32 }
 0x8eb   :  { %v8266_v61 = vadd.f32 %v8265_v14, %v8224_v46  ;;  %v14829_v40 = vpop.f32.mrb[43].mxu1  ;;  %v8094_v31 = vmul.f32 %v14819_v32, %v15882_v49 }
 0x8ec   :  { %v8134_v29 = vadd.f32 %v8133_v0, %v8092_v59  ;;  %v8226_v52 = vmul.f32 %v8183_v38, %v15880_v62  ;;  %v8093_v53 = vmul.f32 %v14829_v40, %v15881_v44  ;;  %v8184_v13 = vmul.f32 %v14829_v40, %v14829_v40 }
 0x8ed   :  { %v8267_v60 = vadd.f32 %v8266_v61, %v8225_v12  ;;  %v8228_v0 = vmul.f32 %v8185_v54, %v15882_v49 }
 0x8ee   :  { %v8135_v47 = vadd.f32 %v8134_v29, %v8093_v53  ;;  %v8227_v14 = vmul.f32 %v8184_v13, %v15881_v44 }
 0x8ef   :  { %v8268_v46 = vadd.f32 %v8267_v60, %v8226_v52 }
 0x8f0   :  { %v8136_v59 = vadd.f32 %v8135_v47, %v8094_v31 }
 0x8f1   :  { %v8269_v38 = vadd.f32 %v8268_v46, %v8227_v14 }
 0x8f2   :  { %v8137_v62 = vrot.slane %v8136_v59, 4 }
 0x8f3   :  { %v8270_v6 = vadd.f32 %v8269_v38, %v8228_v0 }
 0x8f4   :  { %v8138_v48 = vadd.f32 %v8137_v62, %v8136_v59 }
 0x8f5   :  { %v8271_v57 = vrot.slane %v8270_v6, 4 }
 0x8f6   :  { %v8139_v18 = vrot.slane %v8138_v48, 2 }
 0x8f7   :  { %v8272_v4 = vadd.f32 %v8271_v57, %v8270_v6 }
 0x8f8   :  { %v8140_v22 = vadd.f32 %v8139_v18, %v8138_v48 }
 0x8f9   :  { %v8273_v28 = vrot.slane %v8272_v4, 2 }
 0x8fa   :  { %v8141_v61 = vrot.slane %v8140_v22, 1 }
 0x8fb   :  { %v8274_v12 = vadd.f32 %v8273_v28, %v8272_v4 }
 0x8fc   :  { %v8142_v24 = vadd.f32 %v8141_v61, %v8140_v22 }
 0x8fd   :  { %v8275_v32 = vrot.slane %v8274_v12, 1 }
 0x8fe   :  { %v14842_v29 = vmul.f32 0.004132231, %v8142_v24 }
 0x8ff   :  { %v8276_v53 = vadd.f32 %v8275_v32, %v8274_v12 }
 0x900   :  { %v8279_v52 = vmul.f32 %v14842_v29, %v14842_v29  ;;  %v8322_v13 = vsub.f32 %v14829_v40, %v14842_v29  ;;  %v8281_v62 = vsub.f32 %v14543_v16, %v14842_v29  ;;  %v8282_v48 = vsub.f32 %v14549_v58, %v14842_v29 }
 0x901   :  { %v8278_v57 = vmul.f32 0.004132231, %v8276_v53  ;;  %v8283_v22 = vsub.f32 %v14541_v25, %v14842_v29  ;;  %v8284_v24 = vsub.f32 %v14547_v35, %v14842_v29  ;;  %v8285_v32 = vsub.f32 %v14571_v63, %v14842_v29 }
 0x902   :  { %v8286_v4 = vsub.f32 %v14579_v30, %v14842_v29  ;;  %v8287_v40 = vsub.f32 %v14568_v9, %v14842_v29  ;;  %v8288_v16 = vsub.f32 %v14577_v55, %v14842_v29  ;;  %v8289_v58 = vsub.f32 %v14598_v43, %v14842_v29 }
 0x903   :  { %v8280_v28 = vsub.f32 %v8278_v57, %v8279_v52  ;;  %v8290_v25 = vsub.f32 %v14607_v11, %v14842_v29  ;;  %v8291_v35 = vsub.f32 %v14595_v33, %v14842_v29  ;;  %v8292_v63 = vsub.f32 %v14604_v8, %v14842_v29 }
 0x904   :  { %v8293_v30 = vsub.f32 %v14626_v19, %v14842_v29  ;;  %v8294_v9 = vsub.f32 %v14635_v21, %v14842_v29  ;;  %v8295_v55 = vsub.f32 %v14623_v7, %v14842_v29  ;;  %v8296_v43 = vsub.f32 %v14632_v2, %v14842_v29 }
 0x905   :  { %v8324_v6 = vadd.f32 1e-05, %v8280_v28  ;;  %v8297_v11 = vsub.f32 %v14654_v41, %v14842_v29  ;;  %v8298_v33 = vsub.f32 %v14663_v36, %v14842_v29  ;;  %v8299_v8 = vsub.f32 %v14651_v15, %v14842_v29 }
 0x906   :  { %v8300_v19 = vsub.f32 %v14660_v27, %v14842_v29  ;;  %v8301_v21 = vsub.f32 %v14682_v5, %v14842_v29  ;;  %v8302_v7 = vsub.f32 %v14691_v26, %v14842_v29  ;;  %v8303_v2 = vsub.f32 %v14679_v23, %v14842_v29 }
 0x907   :  { %12005 = vrsqrt.f32 %v8324_v6  ;;  %v8304_v41 = vsub.f32 %v14688_v42, %v14842_v29  ;;  %v8305_v36 = vsub.f32 %v14710_v39, %v14842_v29  ;;  %v8306_v15 = vsub.f32 %v14719_v20, %v14842_v29 }
 0x908   :  { %v8307_v27 = vsub.f32 %v14707_v37, %v14842_v29  ;;  %v8308_v5 = vsub.f32 %v14716_v17, %v14842_v29  ;;  %v8309_v26 = vsub.f32 %v14738_v56, %v14842_v29  ;;  %v8310_v23 = vsub.f32 %v14747_v1, %v14842_v29  ;;  %v15883_v1 = vld [vmem:[#allocation47_spill] sm:$0xff] }
 0x909   :  { %v8311_v42 = vsub.f32 %v14735_v10, %v14842_v29  ;;  %v8312_v39 = vsub.f32 %v14744_v51, %v14842_v29  ;;  %v8313_v20 = vsub.f32 %v14766_v34, %v14842_v29  ;;  %v8314_v37 = vsub.f32 %v14775_v3, %v14842_v29  ;;  %v15884_v10 = vld [vmem:[#allocation46_spill] sm:$0xff]  ;;  %v15885_v51 = vld [vmem:[#allocation45_spill] sm:$0xff]  ;;  %v15886_v34 = vld [vmem:[#allocation43_spill] sm:$0xff] }
 0x90a   :  { %v8315_v17 = vsub.f32 %v14763_v45, %v14842_v29  ;;  %v8316_v56 = vsub.f32 %v14772_v50, %v14842_v29  ;;  %v8317_v18 = vsub.f32 %v15883_v1, %v14842_v29  ;;  %v8318_v54 = vsub.f32 %v15884_v10, %v14842_v29  ;;  %v15887_v3 = vld [vmem:[#allocation50_spill] sm:$0xff]  ;;  %v15888_v45 = vld [vmem:[#allocation51_spill] sm:$0xff] }
 0x90b   :  { %v8319_v60 = vsub.f32 %v15885_v51, %v14842_v29  ;;  %v8320_v31 = vsub.f32 %v15886_v34, %v14842_v29  ;;  %v8321_v47 = vsub.f32 %v15887_v3, %v14842_v29  ;;  %v8323_v14 = vsub.f32 %v15888_v45, %v14842_v29  ;;  %v8474_v29 = vld [vmem:[%s15548_s5 + $0x88] sm:$0xff]  ;;  %v15891_v3 = vld [vmem:[#allocation12_spill] sm:$0xff] }
 0x90c   :  { %v15892_v45 = vld [vmem:[#allocation4_spill] sm:$0xff] }
 0x911   :  { %v12006_v46 = vpop.eup %12005 }
 0x912   :  { %v14932_v50 = vmul.f32 %v12006_v46, %v8322_v13  ;;  %v8343_v59 = vmul.f32 %v12006_v46, %v8298_v33  ;;  %v8326_v0 = vmul.f32 %v12006_v46, %v8281_v62  ;;  %v8327_v38 = vmul.f32 %v12006_v46, %v8282_v48 }
 0x913   :  { %v14934_v61 = vmul.f32 %v12006_v46, %v8283_v22  ;;  %v14936_v12 = vmul.f32 %v12006_v46, %v8284_v24  ;;  %v14938_v53 = vmul.f32 %v12006_v46, %v8285_v32  ;;  %v14940_v52 = vmul.f32 %v12006_v46, %v8286_v4  ;;  %v15889_v24 = vld [vmem:[#allocation21_spill] sm:$0xff] }
 0x914   :  { %v8386_v57 = vmax.f32 %v8343_v59, 0.0  ;;  %v14942_v28 = vmul.f32 %v12006_v46, %v8287_v40  ;;  %v14944_v6 = vmul.f32 %v12006_v46, %v8288_v16  ;;  %v14949_v13 = vmul.f32 %v12006_v46, %v8289_v58 }
 0x915   :  { %v14951_v62 = vmul.f32 %v12006_v46, %v8290_v25  ;;  %v14953_v48 = vmul.f32 %v12006_v46, %v8291_v35  ;;  %v14955_v22 = vmul.f32 %v12006_v46, %v8292_v63  ;;  %v14958_v4 = vmul.f32 %v12006_v46, %v8293_v30 }
 0x916   :  { %v8429_v32 = vmul.f32 %v8386_v57, %v15889_v24  ;;  %v14960_v40 = vmul.f32 %v12006_v46, %v8294_v9  ;;  %v14962_v16 = vmul.f32 %v12006_v46, %v8295_v55  ;;  %v14964_v33 = vmul.f32 %v12006_v46, %v8296_v43  ;;  %v9210_v57 = vld [vmem:[%s15548_s5 + $0x1e0] sm:$0xff] }
 0x917   :  { %v8342_v1 = vmul.f32 %v12006_v46, %v8297_v11  ;;  %v8344_v10 = vmul.f32 %v12006_v46, %v8299_v8  ;;  %v8345_v58 = vmul.f32 %v12006_v46, %v8300_v19  ;;  %v14966_v25 = vmul.f32 %v12006_v46, %v8301_v21 }
 0x918   :  { %v8517_v51 = vmul.f32 %v8474_v29, %v8429_v32  ;;  %v14968_v35 = vmul.f32 %v12006_v46, %v8302_v7  ;;  %v14970_v63 = vmul.f32 %v12006_v46, %v8303_v2  ;;  %v14972_v34 = vmul.f32 %v12006_v46, %v8304_v41 }
 0x919   :  { %v14974_v30 = vmul.f32 %v12006_v46, %v8305_v36  ;;  %v14976_v9 = vmul.f32 %v12006_v46, %v8306_v15  ;;  %v14978_v55 = vmul.f32 %v12006_v46, %v8307_v27  ;;  %v14980_v43 = vmul.f32 %v12006_v46, %v8308_v5 }
 0x91a   :  { %8577 = vadd.xlane.f32.xlu0 %v8517_v51  ;;  %v14982_v11 = vmul.f32 %v12006_v46, %v8309_v26  ;;  %v14984_v8 = vmul.f32 %v12006_v46, %v8310_v23  ;;  %v14986_v19 = vmul.f32 %v12006_v46, %v8311_v42  ;;  %v14988_v21 = vmul.f32 %v12006_v46, %v8312_v39  ;;  %v9194_v51 = vld [vmem:[%s15548_s5 + $0x160] sm:$0xff] }
 0x91b   :  { %v14990_v7 = vmul.f32 %v12006_v46, %v8313_v20  ;;  %v14992_v2 = vmul.f32 %v12006_v46, %v8314_v37  ;;  %v14994_v41 = vmul.f32 %v12006_v46, %v8315_v17  ;;  %v14996_v36 = vmul.f32 %v12006_v46, %v8316_v56  ;;  %v8473_v20 = vld [vmem:[%s15548_s5 + $0x80] sm:$0xff]  ;;  %v15890_v37 = vld [vmem:[#allocation20_spill] sm:$0xff] }
 0x91c   :  { %v14998_v15 = vmul.f32 %v12006_v46, %v8317_v18  ;;  %v15000_v27 = vmul.f32 %v12006_v46, %v8318_v54  ;;  %v15002_v5 = vmul.f32 %v12006_v46, %v8319_v60  ;;  %v15004_v26 = vmul.f32 %v12006_v46, %v8320_v31  ;;  %v8458_v60 = vld [vmem:[%s15548_s5 + $0x8] sm:$0xff]  ;;  %v8457_v31 = vld [vmem:[%s15548_s5] sm:$0xff] }
 0x91d   :  { %v15006_v23 = vmul.f32 %v12006_v46, %v8321_v47  ;;  %v15008_v42 = vmul.f32 %v12006_v46, %v8323_v14  ;;  %v8385_v39 = vmax.f32 %v8342_v1, 0.0  ;;  %v8370_v18 = vmax.f32 %v8327_v38, 0.0 }
 0x91e   :  { %v8369_v54 = vmax.f32 %v8326_v0, 0.0  ;;  %v9209_v0 = vld [vmem:[%s15548_s5 + $0x1d8] sm:$0xff]  ;;  %v8388_v38 = vmax.f32 %v8345_v58, 0.0  ;;  %v8734_v29 = vmul.f32 %v9210_v57, %v8429_v32  ;;  %v8387_v1 = vmax.f32 %v8344_v10, 0.0  ;;  %v15894_v58 = vld [vmem:[#allocation22_spill] sm:$0xff] }
 0x91f   :  { %v8428_v17 = vmul.f32 %v8385_v39, %v15890_v37  ;;  %v8413_v47 = vmul.f32 %v8370_v18, %v15891_v3  ;;  %v9193_v39 = vld [vmem:[%s15548_s5 + $0x158] sm:$0xff]  ;;  %v15893_v37 = vld [vmem:[#allocation23_spill] sm:$0xff]  ;;  %v8371_v10 = vmax.f32 %v14934_v61, 0.0  ;;  %v15895_v3 = vld [vmem:[#allocation6_spill] sm:$0xff] }
 0x920   :  { %v8412_v14 = vmul.f32 %v8369_v54, %v15892_v45  ;;  %v8430_v32 = vmul.f32 %v8387_v1, %v15894_v58  ;;  %v8460_v61 = vld [vmem:[%s15548_s5 + $0x18] sm:$0xff] }
 0x921   :  { %v8516_v56 = vmul.f32 %v8473_v20, %v8428_v17  ;;  %v8501_v46 = vmul.f32 %v8458_v60, %v8413_v47  ;;  %v8733_v24 = vmul.f32 %v9209_v0, %v8428_v17  ;;  %v8372_v20 = vmax.f32 %v14936_v12, 0.0  ;;  %v8476_v17 = vld [vmem:[%s15548_s5 + $0x98] sm:$0xff]  ;;  %v8475_v60 = vld [vmem:[%s15548_s5 + $0x90] sm:$0xff] }
 0x922   :  { %v8500_v59 = vmul.f32 %v8457_v31, %v8412_v14  ;;  %v8718_v18 = vmul.f32 %v9194_v51, %v8413_v47  ;;  %v8717_v54 = vmul.f32 %v9193_v39, %v8412_v14  ;;  %v8518_v12 = vmul.f32 %v8475_v60, %v8430_v32  ;;  %v15896_v47 = vld [vmem:[#allocation5_spill] sm:$0xff]  ;;  %v9212_v0 = vld [vmem:[%s15548_s5 + $0x1f0] sm:$0xff] }
 0x923   :  { %8575 = vadd.xlane.f32.xlu1 %v8516_v56  ;;  %v8431_v56 = vmul.f32 %v8388_v38, %v15893_v37  ;;  %v8415_v45 = vmul.f32 %v8372_v20, %v15895_v3  ;;  %v8414_v14 = vmul.f32 %v8371_v10, %v15896_v47  ;;  %v9211_v38 = vld [vmem:[%s15548_s5 + $0x1e8] sm:$0xff]  ;;  %v8389_v51 = vmax.f32 %v14966_v25, 0.0  ;;  %v9196_v39 = vld [vmem:[%s15548_s5 + $0x170] sm:$0xff]  ;;  %v8461_v47 = vld [vmem:[%s15548_s5 + $0x20] sm:$0xff] }
 0x924   :  { %8543 = vadd.xlane.f32.xlu0 %v8500_v59  ;;  %v8735_v1 = vmul.f32 %v9211_v38, %v8430_v32  ;;  %v9195_v20 = vld [vmem:[%s15548_s5 + $0x168] sm:$0xff]  ;;  %v8373_v37 = vmax.f32 %v14938_v53, 0.0  ;;  %v15898_v32 = vld [vmem:[#allocation24_spill] sm:$0xff] }
 0x925   :  { %v8519_v31 = vmul.f32 %v8476_v17, %v8431_v56  ;;  %v8503_v59 = vmul.f32 %v8460_v61, %v8415_v45  ;;  %v8432_v25 = vmul.f32 %v8389_v51, %v15898_v32  ;;  %v8478_v10 = vld [vmem:[%s15548_s5 + $0xa8] sm:$0xff]  ;;  %v8477_v17 = vld [vmem:[%s15548_s5 + $0xa0] sm:$0xff]  ;;  %v8375_v51 = vmax.f32 %v14942_v28, 0.0 }
 0x926   :  { %v15903_v32 = vld [vmem:[#allocation10_spill] sm:$0xff] }
 0x927   :  { %8545 = vadd.xlane.f32.xlu1 %v8501_v46  ;;  %v8459_v46 = vld [vmem:[%s15548_s5 + $0x10] sm:$0xff]  ;;  %v8520_v53 = vmul.f32 %v8477_v17, %v8432_v25  ;;  %v8464_v17 = vld [vmem:[%s15548_s5 + $0x38] sm:$0xff] }
 0x928   :  { %8792 = vadd.xlane.f32.xlu0 %v8733_v24  ;;  %v8502_v57 = vmul.f32 %v8459_v46, %v8414_v14  ;;  %v8736_v24 = vmul.f32 %v9212_v0, %v8431_v56  ;;  %v15897_v56 = vld [vmem:[#allocation25_spill] sm:$0xff]  ;;  %v9214_v46 = vld [vmem:[%s15548_s5 + $0x200] sm:$0xff]  ;;  %v8392_v0 = vmax.f32 %v14972_v34, 0.0 }
 0x92b   :  { %8794 = vadd.xlane.f32.xlu1 %v8734_v29  ;;  %v8390_v29 = vmax.f32 %v14968_v35, 0.0  ;;  %v8719_v35 = vmul.f32 %v9195_v20, %v8414_v14 }
 0x92c   :  { %8760 = vadd.xlane.f32.xlu0 %v8717_v54  ;;  %v8720_v54 = vmul.f32 %v9196_v39, %v8415_v45  ;;  %v8462_v45 = vld [vmem:[%s15548_s5 + $0x28] sm:$0xff]  ;;  %v8376_v39 = vmax.f32 %v14944_v6, 0.0 }
 0x92d   :  { %v8433_v58 = vmul.f32 %v8390_v29, %v15897_v56  ;;  %v8479_v56 = vld [vmem:[%s15548_s5 + $0xb0] sm:$0xff] }
 0x92e   :  { %v8419_v6 = vmul.f32 %v8376_v39, %v15903_v32 }
 0x92f   :  { %8762 = vadd.xlane.f32.xlu1 %v8718_v18  ;;  %v8374_v18 = vmax.f32 %v14940_v52, 0.0  ;;  %v8521_v60 = vmul.f32 %v8478_v10, %v8433_v58  ;;  %v8738_v38 = vmul.f32 %v9214_v46, %v8433_v58  ;;  %v9199_v46 = vld [vmem:[%s15548_s5 + $0x188] sm:$0xff] }
 0x930   :  { %8579 = vadd.xlane.f32.xlu0 %v8518_v12  ;;  %v15900_v12 = vld [vmem:[#allocation7_spill] sm:$0xff] }
 0x931   :  { %v8416_v3 = vmul.f32 %v8373_v37, %v15900_v12  ;;  %v15901_v37 = vld [vmem:[#allocation27_spill] sm:$0xff] }
 0x932   :  { %v8435_v34 = vmul.f32 %v8392_v0, %v15901_v37  ;;  %v9215_v12 = vld [vmem:[%s15548_s5 + $0x208] sm:$0xff] }
 0x933   :  { %8581 = vadd.xlane.f32.xlu1 %v8519_v31  ;;  %v15899_v31 = vld [vmem:[#allocation8_spill] sm:$0xff]  ;;  %v8504_v61 = vmul.f32 %v8461_v47, %v8416_v3 }
 0x934   :  { %8547 = vadd.xlane.f32.xlu0 %v8502_v57  ;;  %v8417_v52 = vmul.f32 %v8374_v18, %v15899_v31  ;;  %v8391_v57 = vmax.f32 %v14970_v63, 0.0  ;;  %v15902_v18 = vld [vmem:[#allocation26_spill] sm:$0xff] }
 0x936   :  { %v8505_v14 = vmul.f32 %v8462_v45, %v8417_v52  ;;  %v8394_v45 = vmax.f32 %v14976_v9, 0.0 }
 0x937   :  { %8549 = vadd.xlane.f32.xlu1 %v8503_v59  ;;  %v9213_v59 = vld [vmem:[%s15548_s5 + $0x1f8] sm:$0xff] }
 0x938   :  { %8796 = vadd.xlane.f32.xlu0 %v8735_v1  ;;  %v8737_v29 = vmul.f32 %v9213_v59, %v8432_v25  ;;  %v9197_v1 = vld [vmem:[%s15548_s5 + $0x178] sm:$0xff]  ;;  %v8401_v59 = vmax.f32 %v14990_v7, 0.0  ;;  %v8377_v7 = vmax.f32 %v14949_v13, 0.0 }
 0x939   :  { %v8721_v63 = vmul.f32 %v9197_v1, %v8416_v3  ;;  %v15904_v25 = vld [vmem:[#allocation9_spill] sm:$0xff]  ;;  %v8393_v3 = vmax.f32 %v14974_v30, 0.0  ;;  %v8482_v1 = vld [vmem:[%s15548_s5 + $0xc8] sm:$0xff] }
 0x93a   :  { %v8418_v10 = vmul.f32 %v8375_v51, %v15904_v25  ;;  %v8481_v51 = vld [vmem:[%s15548_s5 + $0xc0] sm:$0xff] }
 0x93b   :  { %8798 = vadd.xlane.f32.xlu1 %v8736_v24  ;;  %v9198_v24 = vld [vmem:[%s15548_s5 + $0x180] sm:$0xff] }
 0x93c   :  { %8764 = vadd.xlane.f32.xlu0 %v8719_v35  ;;  %v8722_v20 = vmul.f32 %v9198_v24, %v8417_v52  ;;  %v8480_v35 = vld [vmem:[%s15548_s5 + $0xb8] sm:$0xff]  ;;  %v9216_v52 = vld [vmem:[%s15548_s5 + $0x210] sm:$0xff]  ;;  %v8723_v30 = vmul.f32 %v9199_v46, %v8418_v10  ;;  %v8465_v25 = vld [vmem:[%s15548_s5 + $0x40] sm:$0xff] }
 0x93d   :  { %v8523_v58 = vmul.f32 %v8480_v35, %v8435_v34  ;;  %v8740_v47 = vmul.f32 %v9216_v52, %v8435_v34  ;;  %v15908_v34 = vld [vmem:[#allocation36_spill] sm:$0xff]  ;;  %v8489_v35 = vld [vmem:[%s15548_s5 + $0x100] sm:$0xff] }
 0x93e   :  { %v9202_v46 = vld [vmem:[%s15548_s5 + $0x1a0] sm:$0xff] }
 0x93f   :  { %8766 = vadd.xlane.f32.xlu1 %v8720_v54  ;;  %v8434_v54 = vmul.f32 %v8391_v57, %v15902_v18  ;;  %v8402_v57 = vmax.f32 %v14992_v2, 0.0  ;;  %v8378_v2 = vmax.f32 %v14951_v62, 0.0  ;;  %v8444_v18 = vmul.f32 %v8401_v59, %v15908_v34  ;;  %v9201_v59 = vld [vmem:[%s15548_s5 + $0x198] sm:$0xff]  ;;  %v8491_v34 = vld [vmem:[%s15548_s5 + $0x110] sm:$0xff] }
 0x940   :  { %8583 = vadd.xlane.f32.xlu0 %v8520_v53  ;;  %v8507_v53 = vmul.f32 %v8464_v17, %v8419_v6 }
 0x941   :  { %v8522_v28 = vmul.f32 %v8479_v56, %v8434_v54  ;;  %v8532_v13 = vmul.f32 %v8489_v35, %v8444_v18  ;;  %v15916_v35 = vld [vmem:[#allocation14_spill] sm:$0xff] }
 0x943   :  { %8585 = vadd.xlane.f32.xlu1 %v8521_v60  ;;  %v8463_v60 = vld [vmem:[%s15548_s5 + $0x30] sm:$0xff] }
 0x944   :  { %8551 = vadd.xlane.f32.xlu0 %v8504_v61  ;;  %v8506_v31 = vmul.f32 %v8463_v60, %v8418_v10  ;;  %v9200_v61 = vld [vmem:[%s15548_s5 + $0x190] sm:$0xff]  ;;  %v9218_v60 = vld [vmem:[%s15548_s5 + $0x220] sm:$0xff] }
 0x945   :  { %v8724_v0 = vmul.f32 %v9200_v61, %v8419_v6  ;;  %v8466_v6 = vld [vmem:[%s15548_s5 + $0x48] sm:$0xff] }
 0x947   :  { %8553 = vadd.xlane.f32.xlu1 %v8505_v14  ;;  %v8739_v14 = vmul.f32 %v9215_v12, %v8434_v54  ;;  %v8490_v54 = vld [vmem:[%s15548_s5 + $0x108] sm:$0xff]  ;;  %v9226_v12 = vld [vmem:[%s15548_s5 + $0x260] sm:$0xff] }
 0x948   :  { %8800 = vadd.xlane.f32.xlu0 %v8737_v29  ;;  %v15906_v29 = vld [vmem:[#allocation28_spill] sm:$0xff] }
 0x949   :  { %v8436_v24 = vmul.f32 %v8393_v3, %v15906_v29  ;;  %v9225_v3 = vld [vmem:[%s15548_s5 + $0x258] sm:$0xff] }
 0x94a   :  { %v8749_v61 = vmul.f32 %v9225_v3, %v8444_v18 }
 0x94b   :  { %8802 = vadd.xlane.f32.xlu1 %v8738_v38  ;;  %v15905_v38 = vld [vmem:[#allocation29_spill] sm:$0xff] }
 0x94c   :  { %8768 = vadd.xlane.f32.xlu0 %v8721_v63  ;;  %v8437_v9 = vmul.f32 %v8394_v45, %v15905_v38  ;;  %v15907_v63 = vld [vmem:[#allocation38_spill] sm:$0xff]  ;;  %v8395_v45 = vmax.f32 %v14978_v55, 0.0  ;;  %v15911_v38 = vld [vmem:[#allocation31_spill] sm:$0xff] }
 0x94d   :  { %v8445_v37 = vmul.f32 %v8402_v57, %v15907_v63  ;;  %v8403_v57 = vmax.f32 %v14994_v41, 0.0  ;;  %v8379_v41 = vmax.f32 %v14953_v48, 0.0 }
 0x94e   :  { %v8525_v39 = vmul.f32 %v8482_v1, %v8437_v9  ;;  %v8483_v1 = vld [vmem:[%s15548_s5 + $0xd0] sm:$0xff] }
 0x94f   :  { %8770 = vadd.xlane.f32.xlu1 %v8722_v20  ;;  %v8524_v20 = vmul.f32 %v8481_v51, %v8436_v24  ;;  %v8533_v56 = vmul.f32 %v8490_v54, %v8445_v37  ;;  %v15915_v54 = vld [vmem:[#allocation15_spill] sm:$0xff] }
 0x950   :  { %8587 = vadd.xlane.f32.xlu0 %v8522_v28  ;;  %v15910_v28 = vld [vmem:[#allocation11_spill] sm:$0xff] }
 0x951   :  { %v8420_v32 = vmul.f32 %v8377_v7, %v15910_v28 }
 0x953   :  { %8589 = vadd.xlane.f32.xlu1 %v8523_v58  ;;  %v15909_v58 = vld [vmem:[#allocation13_spill] sm:$0xff]  ;;  %v8508_v17 = vmul.f32 %v8465_v25, %v8420_v32  ;;  %v8725_v55 = vmul.f32 %v9201_v59, %v8420_v32  ;;  %v9220_v32 = vld [vmem:[%s15548_s5 + $0x230] sm:$0xff]  ;;  %v12043_v25 = vmov 0.0|0.0  }
 0x954   :  { %8555 = vadd.xlane.f32.xlu0 %v8506_v31  ;;  %v8421_v62 = vmul.f32 %v8378_v2, %v15909_v58  ;;  %v8742_v31 = vmul.f32 %v9218_v60, %v8437_v9  ;;  %v15912_v9 = vld [vmem:[#allocation30_spill] sm:$0xff]  ;;  %v15913_v2 = vld [vmem:[#allocation40_spill] sm:$0xff]  ;;  %10962 = vmatprep.subr.bf16.mxu1 %v12043_v25  ;;  %v15917_v59 = vld [vmem:[#allocation33_spill] sm:$0xff] }
 0x955   :  { %v8438_v29 = vmul.f32 %v8395_v45, %v15912_v9  ;;  %v8467_v58 = vld [vmem:[%s15548_s5 + $0x50] sm:$0xff]  ;;  %v15919_v9 = vld [vmem:[#allocation42_spill] sm:$0xff] }
 0x956   :  { %v8509_v10 = vmul.f32 %v8466_v6, %v8421_v62  ;;  %v9219_v6 = vld [vmem:[%s15548_s5 + $0x228] sm:$0xff]  ;;  %v9228_v60 = vld [vmem:[%s15548_s5 + $0x270] sm:$0xff] }
 0x957   :  { %8557 = vadd.xlane.f32.xlu1 %v8507_v53  ;;  %v9217_v53 = vld [vmem:[%s15548_s5 + $0x218] sm:$0xff]  ;;  %v8526_v7 = vmul.f32 %v8483_v1, %v8438_v29  ;;  %v9204_v45 = vld [vmem:[%s15548_s5 + $0x1b0] sm:$0xff] }
 0x958   :  { %8804 = vadd.xlane.f32.xlu0 %v8739_v14  ;;  %v8741_v52 = vmul.f32 %v9217_v53, %v8436_v24  ;;  %v8750_v14 = vmul.f32 %v9226_v12, %v8445_v37  ;;  %v8484_v24 = vld [vmem:[%s15548_s5 + $0xd8] sm:$0xff]  ;;  %v9227_v53 = vld [vmem:[%s15548_s5 + $0x268] sm:$0xff] }
 0x959   :  { %v8492_v37 = vld [vmem:[%s15548_s5 + $0x118] sm:$0xff] }
 0x95b   :  { %8806 = vadd.xlane.f32.xlu1 %v8740_v47  ;;  %v8396_v47 = vmax.f32 %v14980_v43, 0.0 }
 0x95c   :  { %8772 = vadd.xlane.f32.xlu0 %v8723_v30  ;;  %v8726_v30 = vmul.f32 %v9202_v46, %v8421_v62 }
 0x95d   :  { %v8439_v43 = vmul.f32 %v8396_v47, %v15911_v38  ;;  %v9203_v47 = vld [vmem:[%s15548_s5 + $0x1a8] sm:$0xff] }
 0x95f   :  { %8774 = vadd.xlane.f32.xlu1 %v8724_v0  ;;  %v8404_v0 = vmax.f32 %v14996_v36, 0.0  ;;  %v8380_v36 = vmax.f32 %v14955_v22, 0.0  ;;  %v8527_v51 = vmul.f32 %v8484_v24, %v8439_v43  ;;  %v15920_v24 = vld [vmem:[#allocation41_spill] sm:$0xff] }
 0x960   :  { %8591 = vadd.xlane.f32.xlu0 %v8524_v20  ;;  %v15914_v20 = vld [vmem:[#allocation39_spill] sm:$0xff] }
 0x961   :  { %v8446_v63 = vmul.f32 %v8403_v57, %v15914_v20  ;;  %v8423_v22 = vmul.f32 %v8380_v36, %v15915_v54  ;;  %v15918_v57 = vld [vmem:[#allocation32_spill] sm:$0xff]  ;;  %v8493_v36 = vld [vmem:[%s15548_s5 + $0x120] sm:$0xff]  ;;  %v8470_v20 = vld [vmem:[%s15548_s5 + $0x68] sm:$0xff] }
 0x963   :  { %8593 = vadd.xlane.f32.xlu1 %v8525_v39  ;;  %v8447_v39 = vmul.f32 %v8404_v0, %v15913_v2  ;;  %v8534_v48 = vmul.f32 %v8491_v34, %v8446_v63  ;;  %v8751_v3 = vmul.f32 %v9227_v53, %v8446_v63  ;;  %v8728_v46 = vmul.f32 %v9204_v45, %v8423_v22  ;;  %v15922_v2 = vld [vmem:[#allocation16_spill] sm:$0xff]  ;;  %v8469_v63 = vld [vmem:[%s15548_s5 + $0x60] sm:$0xff]  ;;  %v15923_v53 = vld [vmem:[#allocation35_spill] sm:$0xff] }
 0x964   :  { %8607 = vadd.xlane.f32.xlu0 %v8532_v13  ;;  %v8468_v13 = vld [vmem:[%s15548_s5 + $0x58] sm:$0xff] }
 0x965   :  { %v8535_v18 = vmul.f32 %v8492_v37, %v8447_v39  ;;  %v8511_v62 = vmul.f32 %v8468_v13, %v8423_v22  ;;  %v8752_v12 = vmul.f32 %v9228_v60, %v8447_v39  ;;  %v8399_v13 = vmax.f32 %v14986_v19, 0.0 }
 0x967   :  { %8609 = vadd.xlane.f32.xlu1 %v8533_v56  ;;  %v8422_v56 = vmul.f32 %v8379_v41, %v15916_v35  ;;  %v8494_v41 = vld [vmem:[%s15548_s5 + $0x128] sm:$0xff]  ;;  %v9230_v35 = vld [vmem:[%s15548_s5 + $0x280] sm:$0xff] }
 0x968   :  { %8559 = vadd.xlane.f32.xlu0 %v8508_v17  ;;  %v8743_v17 = vmul.f32 %v9219_v6, %v8438_v29  ;;  %v9205_v6 = vld [vmem:[%s15548_s5 + $0x1b8] sm:$0xff] }
 0x969   :  { %v8510_v28 = vmul.f32 %v8467_v58, %v8422_v56  ;;  %v8400_v58 = vmax.f32 %v14988_v21, 0.0 }
 0x96b   :  { %8561 = vadd.xlane.f32.xlu1 %v8509_v10  ;;  %v8744_v10 = vmul.f32 %v9220_v32, %v8439_v43  ;;  %v9206_v32 = vld [vmem:[%s15548_s5 + $0x1c0] sm:$0xff]  ;;  %v8443_v21 = vmul.f32 %v8400_v58, %v15923_v53  ;;  %v15929_v53 = vld [vmem:[#allocation49_spill] sm:$0xff] }
 0x96c   :  { %8808 = vadd.xlane.f32.xlu0 %v8741_v52  ;;  %v8398_v52 = vmax.f32 %v14984_v8, 0.0 }
 0x96e   :  { %v8441_v8 = vmul.f32 %v8398_v52, %v15917_v59  ;;  %v8496_v59 = vld [vmem:[%s15548_s5 + $0x138] sm:$0xff] }
 0x96f   :  { %8810 = vadd.xlane.f32.xlu1 %v8742_v31  ;;  %v8397_v31 = vmax.f32 %v14982_v11, 0.0  ;;  %v8727_v11 = vmul.f32 %v9203_v47, %v8422_v56  ;;  %v9229_v56 = vld [vmem:[%s15548_s5 + $0x278] sm:$0xff] }
 0x970   :  { %8824 = vadd.xlane.f32.xlu0 %v8749_v61  ;;  %v8406_v61 = vmax.f32 %v15000_v27, 0.0  ;;  %v8382_v27 = vmax.f32 %v14960_v40, 0.0 }
 0x971   :  { %v8440_v0 = vmul.f32 %v8397_v31, %v15918_v57  ;;  %v15924_v31 = vld [vmem:[#allocation34_spill] sm:$0xff]  ;;  %v8455_v57 = vlaneseq }
 0x972   :  { %v8449_v29 = vmul.f32 %v8406_v61, %v15919_v9  ;;  %v8442_v52 = vmul.f32 %v8399_v13, %v15924_v31  ;;  %v8471_v9 = vld [vmem:[%s15548_s5 + $0x70] sm:$0xff]  ;;  %v9207_v13 = vld [vmem:[%s15548_s5 + $0x1c8] sm:$0xff] }
 0x973   :  { %8826 = vadd.xlane.f32.xlu1 %v8750_v14  ;;  %v8405_v14 = vmax.f32 %v14998_v15, 0.0  ;;  %v8381_v15 = vmax.f32 %v14958_v4, 0.0 }
 0x974   :  { %8776 = vadd.xlane.f32.xlu0 %v8725_v55  ;;  %v8485_v55 = vld [vmem:[%s15548_s5 + $0xe0] sm:$0xff] }
 0x975   :  { %v8528_v43 = vmul.f32 %v8485_v55, %v8440_v0  ;;  %v8448_v1 = vmul.f32 %v8405_v14, %v15920_v24  ;;  %v8424_v39 = vmul.f32 %v8381_v15, %v15922_v2  ;;  %v15925_v14 = vld [vmem:[#allocation48_spill] sm:$0xff]  ;;  %v15928_v55 = vld [vmem:[#allocation18_spill] sm:$0xff] }
 0x976   :  { %v9232_v2 = vld [vmem:[%s15548_s5 + $0x290] sm:$0xff] }
 0x977   :  { %8778 = vadd.xlane.f32.xlu1 %v8726_v30  ;;  %v8486_v30 = vld [vmem:[%s15548_s5 + $0xe8] sm:$0xff]  ;;  %v8536_v4 = vmul.f32 %v8493_v36, %v8448_v1  ;;  %v8512_v34 = vmul.f32 %v8469_v63, %v8424_v39  ;;  %v8729_v19 = vmul.f32 %v9205_v6, %v8424_v39  ;;  %v8409_v63 = vmax.f32 %v15006_v23, 0.0 }
 0x978   :  { %8595 = vadd.xlane.f32.xlu0 %v8526_v7  ;;  %v8529_v38 = vmul.f32 %v8486_v30, %v8441_v8  ;;  %v15921_v7 = vld [vmem:[#allocation17_spill] sm:$0xff]  ;;  %v9223_v36 = vld [vmem:[%s15548_s5 + $0x248] sm:$0xff] }
 0x979   :  { %v8425_v40 = vmul.f32 %v8382_v27, %v15921_v7  ;;  %v9231_v39 = vld [vmem:[%s15548_s5 + $0x288] sm:$0xff] }
 0x97b   :  { %8597 = vadd.xlane.f32.xlu1 %v8527_v51  ;;  %v8537_v51 = vmul.f32 %v8494_v41, %v8449_v29  ;;  %v8513_v37 = vmul.f32 %v8470_v20, %v8425_v40  ;;  %v8730_v60 = vmul.f32 %v9206_v32, %v8425_v40  ;;  %v9224_v41 = vld [vmem:[%s15548_s5 + $0x250] sm:$0xff]  ;;  %v8747_v40 = vmul.f32 %v9223_v36, %v8442_v52 }
 0x97c   :  { %8611 = vadd.xlane.f32.xlu0 %v8534_v48  ;;  %v9221_v48 = vld [vmem:[%s15548_s5 + $0x238] sm:$0xff]  ;;  %v8748_v7 = vmul.f32 %v9224_v41, %v8443_v21  ;;  %v8410_v20 = vmax.f32 %v14932_v50, 0.0  ;;  %v9208_v50 = vld [vmem:[%s15548_s5 + $0x1d0] sm:$0xff] }
 0x97d   :  { %v8745_v22 = vmul.f32 %v9221_v48, %v8440_v0 }
 0x97f   :  { %8613 = vadd.xlane.f32.xlu1 %v8535_v18  ;;  %v9222_v18 = vld [vmem:[%s15548_s5 + $0x240] sm:$0xff] }
 0x980   :  { %8563 = vadd.xlane.f32.xlu0 %v8510_v28  ;;  %v8746_v54 = vmul.f32 %v9222_v18, %v8441_v8  ;;  %v8753_v28 = vmul.f32 %v9229_v56, %v8448_v1  ;;  %v8495_v8 = vld [vmem:[%s15548_s5 + $0x130] sm:$0xff] }
 0x983   :  { %8565 = vadd.xlane.f32.xlu1 %v8511_v62  ;;  %v8754_v62 = vmul.f32 %v9230_v35, %v8449_v29  ;;  %v15303_v29 = vand.u32 127, %v8455_v57  ;;  %v8499_v57 = vld [vmem:[%s15548_s5 + $0x150] sm:$0xff] }
 0x984   :  { %8812 = vadd.xlane.f32.xlu0 %v8743_v17  ;;  %v8408_v17 = vmax.f32 %v15004_v26, 0.0  ;;  %v8384_v26 = vmax.f32 %v14964_v33, 0.0  ;;  %v15927_v33 = vld [vmem:[#allocation19_spill] sm:$0xff] }
 0x985   :  { %vm8629_vm6 = vcmp.eq.s32.totalorder %v15303_v29, 0  ;;  %vm8846_vm7 = vcmp.eq.s32.totalorder %v15303_v29, 1 }
 0x986   :  { %v8451_v61 = vmul.f32 %v8408_v17, %v15925_v14  ;;  %v8427_v30 = vmul.f32 %v8384_v26, %v15927_v33  ;;  %v9233_v14 = vld [vmem:[%s15548_s5 + $0x298] sm:$0xff] }
 0x987   :  { %8814 = vadd.xlane.f32.xlu1 %v8744_v10  ;;  %v8407_v10 = vmax.f32 %v15002_v5, 0.0  ;;  %v8383_v5 = vmax.f32 %v14962_v16, 0.0 }
 0x988   :  { %8828 = vadd.xlane.f32.xlu0 %v8751_v3  ;;  %v8487_v3 = vld [vmem:[%s15548_s5 + $0xf0] sm:$0xff]  ;;  %v8539_v16 = vmul.f32 %v8496_v59, %v8451_v61  ;;  %v8756_v35 = vmul.f32 %v9232_v2, %v8451_v61  ;;  %v8732_v6 = vmul.f32 %v9208_v50, %v8427_v30 }
 0x989   :  { %v8530_v47 = vmul.f32 %v8487_v3, %v8442_v52  ;;  %v8426_v15 = vmul.f32 %v8383_v5, %v15928_v55  ;;  %v8498_v52 = vld [vmem:[%s15548_s5 + $0x148] sm:$0xff]  ;;  %v8411_v5 = vmax.f32 %v15008_v42, 0.0 }
 0x98a   :  { %v9235_v42 = vld [vmem:[%s15548_s5 + $0x2a8] sm:$0xff] }
 0x98b   :  { %8830 = vadd.xlane.f32.xlu1 %v8752_v12  ;;  %v8488_v12 = vld [vmem:[%s15548_s5 + $0xf8] sm:$0xff]  ;;  %v8514_v1 = vmul.f32 %v8471_v9, %v8426_v15 }
 0x98c   :  { %8780 = vadd.xlane.f32.xlu0 %v8727_v11  ;;  %v8531_v45 = vmul.f32 %v8488_v12, %v8443_v21  ;;  %v8452_v21 = vmul.f32 %v8409_v63, %v15929_v53  ;;  %v8497_v12 = vld [vmem:[%s15548_s5 + $0x140] sm:$0xff] }
 0x98e   :  { %v8757_v59 = vmul.f32 %v9233_v14, %v8452_v21 }
 0x98f   :  { %8782 = vadd.xlane.f32.xlu1 %v8728_v46  ;;  %v15926_v46 = vld [vmem:[#allocation44_spill] sm:$0xff] }
 0x990   :  { %8599 = vadd.xlane.f32.xlu0 %v8528_v43  ;;  %v8450_v11 = vmul.f32 %v8407_v10, %v15926_v46  ;;  %v8472_v43 = vld [vmem:[%s15548_s5 + $0x78] sm:$0xff]  ;;  %v8453_v10 = vmul.f32 %v8410_v20, %v15881_v44 }
 0x991   :  { %v8515_v24 = vmul.f32 %v8472_v43, %v8427_v30 }
 0x992   :  { %v8538_v0 = vmul.f32 %v8495_v8, %v8450_v11  ;;  %v8755_v56 = vmul.f32 %v9231_v39, %v8450_v11  ;;  %v8541_v26 = vmul.f32 %v8498_v52, %v8453_v10  ;;  %v8454_v8 = vmul.f32 %v8411_v5, %v15882_v49 }
 0x993   :  { %8601 = vadd.xlane.f32.xlu1 %v8529_v38 }
 0x994   :  { %8615 = vadd.xlane.f32.xlu0 %v8536_v4 }
 0x997   :  { %8617 = vadd.xlane.f32.xlu1 %v8537_v51 }
 0x998   :  { %8567 = vadd.xlane.f32.xlu0 %v8512_v34 }
 0x99b   :  { %8569 = vadd.xlane.f32.xlu1 %v8513_v37 }
 0x99c   :  { %8816 = vadd.xlane.f32.xlu0 %v8745_v22 }
 0x99f   :  { %8818 = vadd.xlane.f32.xlu1 %v8746_v54 }
 0x9a0   :  { %8832 = vadd.xlane.f32.xlu0 %v8753_v28 }
 0x9a3   :  { %8834 = vadd.xlane.f32.xlu1 %v8754_v62 }
 0x9a4   :  { %8784 = vadd.xlane.f32.xlu0 %v8729_v19  ;;  %v8731_v19 = vmul.f32 %v9207_v13, %v8426_v15  ;;  %v8759_v15 = vmul.f32 %v9235_v42, %v8454_v8  ;;  %v8891_v13 = vld [vmem:[%s15549_s2 + $0x8] sm:$0xff] }
 0x9a5   :  { %8968 = vmatprep.mubr.f32.mxu0 %v8891_v13 }
 0x9a7   :  { %8786 = vadd.xlane.f32.xlu1 %v8730_v60  ;;  %v8578_v27 = vpop.xlane.xlu0 %8577 }
 0x9a8   :  { %8603 = vadd.xlane.f32.xlu0 %v8530_v47  ;;  %v8647_v37 = vsel %vm8629_vm6, %v8578_v27, 0.0  ;;  %v9234_v47 = vld [vmem:[%s15548_s5 + $0x2a0] sm:$0xff]  ;;  %v8542_v27 = vmul.f32 %v8499_v57, %v8454_v8 }
 0x9a9   :  { %v8758_v11 = vmul.f32 %v9234_v47, %v8453_v10 }
 0x9ab   :  { %8605 = vadd.xlane.f32.xlu1 %v8531_v45  ;;  %v8540_v45 = vmul.f32 %v8497_v12, %v8452_v21 }
 0x9ac   :  { %8619 = vadd.xlane.f32.xlu0 %v8538_v0 }
 0x9af   :  { %8621 = vadd.xlane.f32.xlu1 %v8539_v16 }
 0x9b0   :  { %v8576_v38 = vpop.xlane.xlu1 %8575  ;;  %8571 = vadd.xlane.f32.xlu0 %v8514_v1 }
 0x9b1   :  { %v8544_v4 = vpop.xlane.xlu0 %8543  ;;  %v8646_v34 = vsel %vm8629_vm6, %v8576_v38, 0.0 }
 0x9b2   :  { %v8630_v62 = vsel %vm8629_vm6, %v8544_v4, 0.0 }
 0x9b3   :  { %8573 = vadd.xlane.f32.xlu1 %v8515_v24 }
 0x9b4   :  { %v8546_v51 = vpop.xlane.xlu1 %8545  ;;  %8820 = vadd.xlane.f32.xlu0 %v8747_v40 }
 0x9b5   :  { %v8793_v48 = vpop.xlane.xlu0 %8792  ;;  %v8631_v58 = vsel %vm8629_vm6, %v8546_v51, 0.0 }
 0x9b6   :  { %v8863_v22 = vsel %vm8846_vm7, %v8793_v48, %v8646_v34 }
 0x9b7   :  { %8822 = vadd.xlane.f32.xlu1 %v8748_v7 }
 0x9b8   :  { %v8795_v18 = vpop.xlane.xlu1 %8794  ;;  %8836 = vadd.xlane.f32.xlu0 %v8755_v56 }
 0x9b9   :  { %v8864_v54 = vsel %vm8846_vm7, %v8795_v18, %v8647_v37  ;;  %v8761_v32 = vpop.xlane.xlu0 %8760 }
 0x9ba   :  { %v10930_v23 = vpack.c.bf16 %v8864_v54, %v8863_v22  ;;  %v8847_v60 = vsel %vm8846_vm7, %v8761_v32, %v8630_v62 }
 0x9bb   :  { %8838 = vadd.xlane.f32.xlu1 %v8756_v35 }
 0x9bc   :  { %v8763_v28 = vpop.xlane.xlu1 %8762  ;;  %10931 = vmatprep.subr.bf16.mxu0 %v10930_v23  ;;  %8788 = vadd.xlane.f32.xlu0 %v8731_v19 }
 0x9bd   :  { %v8848_v17 = vsel %vm8846_vm7, %v8763_v28, %v8631_v58  ;;  %v8580_v3 = vpop.xlane.xlu0 %8579  ;;  %v15400_v58 = vld [vmem:[#allocation2] sm:$0xff] }
 0x9be   :  { %v10932_v31 = vpack.c.bf16 %v8848_v17, %v8847_v60  ;;  %v8648_v0 = vsel %vm8629_vm6, %v8580_v3, 0.0  ;;  %10927 = vmatprep.mubr.msk.f32.mxu1 %vm12044_vm8, %v15400_v58 }
 0x9bf   :  { %8790 = vadd.xlane.f32.xlu1 %v8732_v6 }
 0x9c0   :  { %v8582_v44 = vpop.xlane.xlu1 %8581  ;;  %10933 = vmatpush3.bf16.msra.mxu0 %v10932_v31  ;;  %8623 = vadd.xlane.f32.xlu0 %v8540_v45 }
 0x9c1   :  { %v8548_v46 = vpop.xlane.xlu0 %8547  ;;  %v8649_v16 = vsel %vm8629_vm6, %v8582_v44, 0.0 }
 0x9c2   :  { %v8632_v9 = vsel %vm8629_vm6, %v8548_v46, 0.0 }
 0x9c3   :  { %8625 = vadd.xlane.f32.xlu1 %v8541_v26 }
 0x9c4   :  { %v8550_v61 = vpop.xlane.xlu1 %8549  ;;  %8840 = vadd.xlane.f32.xlu0 %v8757_v59 }
 0x9c5   :  { %v8797_v30 = vpop.xlane.xlu0 %8796  ;;  %v8633_v43 = vsel %vm8629_vm6, %v8550_v61, 0.0 }
 0x9c6   :  { %v8865_v55 = vsel %vm8846_vm7, %v8797_v30, %v8648_v0 }
 0x9c7   :  { %8842 = vadd.xlane.f32.xlu1 %v8758_v11 }
 0x9c8   :  { %v8799_v33 = vpop.xlane.xlu1 %8798  ;;  %8627 = vadd.xlane.f32.xlu0 %v8542_v27 }
 0x9c9   :  { %v8866_v49 = vsel %vm8846_vm7, %v8799_v33, %v8649_v16  ;;  %v8765_v1 = vpop.xlane.xlu0 %8764 }
 0x9ca   :  { %v10934_v38 = vpack.c.bf16 %v8866_v49, %v8865_v55  ;;  %v8849_v36 = vsel %vm8846_vm7, %v8765_v1, %v8632_v9 }
 0x9cb   :  { %8844 = vadd.xlane.f32.xlu1 %v8759_v15 }
 0x9cc   :  { %v8767_v24 = vpop.xlane.xlu1 %8766  ;;  %10935 = vmatprep.subr.bf16.mxu0 %v10934_v38 }
 0x9cd   :  { %v8850_v41 = vsel %vm8846_vm7, %v8767_v24, %v8633_v43  ;;  %v8584_v7 = vpop.xlane.xlu0 %8583 }
 0x9ce   :  { %v10936_v51 = vpack.c.bf16 %v8850_v41, %v8849_v36  ;;  %v8650_v20 = vsel %vm8629_vm6, %v8584_v7, 0.0 }
 0x9d0   :  { %v8586_v4 = vpop.xlane.xlu1 %8585  ;;  %10937 = vmatpush3.bf16.msra.mxu0 %v10936_v51 }
 0x9d1   :  { %v8552_v2 = vpop.xlane.xlu0 %8551  ;;  %v8651_v39 = vsel %vm8629_vm6, %v8586_v4, 0.0 }
 0x9d2   :  { %v8634_v22 = vsel %vm8629_vm6, %v8552_v2, 0.0 }
 0x9d4   :  { %v8554_v40 = vpop.xlane.xlu1 %8553 }
 0x9d5   :  { %v8801_v37 = vpop.xlane.xlu0 %8800  ;;  %v8635_v54 = vsel %vm8629_vm6, %v8554_v40, 0.0 }
 0x9d6   :  { %v8867_v18 = vsel %vm8846_vm7, %v8801_v37, %v8650_v20 }
 0x9d8   :  { %v8803_v63 = vpop.xlane.xlu1 %8802 }
 0x9d9   :  { %v8868_v34 = vsel %vm8846_vm7, %v8803_v63, %v8651_v39  ;;  %v8769_v56 = vpop.xlane.xlu0 %8768 }
 0x9da   :  { %v10938_v48 = vpack.c.bf16 %v8868_v34, %v8867_v18  ;;  %v8851_v23 = vsel %vm8846_vm7, %v8769_v56, %v8634_v22 }
 0x9dc   :  { %v8771_v35 = vpop.xlane.xlu1 %8770  ;;  %10939 = vmatprep.subr.bf16.mxu0 %v10938_v48 }
 0x9dd   :  { %v8852_v50 = vsel %vm8846_vm7, %v8771_v35, %v8635_v54  ;;  %v8588_v32 = vpop.xlane.xlu0 %8587 }
 0x9de   :  { %v10940_v62 = vpack.c.bf16 %v8852_v50, %v8851_v23  ;;  %v8652_v60 = vsel %vm8629_vm6, %v8588_v32, 0.0 }
 0x9e0   :  { %v8590_v28 = vpop.xlane.xlu1 %8589  ;;  %10941 = vmatpush3.bf16.msra.mxu0 %v10940_v62 }
 0x9e1   :  { %v8556_v10 = vpop.xlane.xlu0 %8555  ;;  %v8653_v17 = vsel %vm8629_vm6, %v8590_v28, 0.0 }
 0x9e2   :  { %v8636_v44 = vsel %vm8629_vm6, %v8556_v10, 0.0 }
 0x9e4   :  { %v8558_v6 = vpop.xlane.xlu1 %8557 }
 0x9e5   :  { %v8805_v53 = vpop.xlane.xlu0 %8804  ;;  %v8637_v12 = vsel %vm8629_vm6, %v8558_v6, 0.0 }
 0x9e6   :  { %v8869_v31 = vsel %vm8846_vm7, %v8805_v53, %v8652_v60 }
 0x9e8   :  { %v8807_v19 = vpop.xlane.xlu1 %8806 }
 0x9e9   :  { %v8870_v21 = vsel %vm8846_vm7, %v8807_v19, %v8653_v17  ;;  %v8773_v5 = vpop.xlane.xlu0 %8772 }
 0x9ea   :  { %v10942_v52 = vpack.c.bf16 %v8870_v21, %v8869_v31  ;;  %v8853_v45 = vsel %vm8846_vm7, %v8773_v5, %v8636_v44 }
 0x9ec   :  { %v8775_v3 = vpop.xlane.xlu1 %8774  ;;  %10943 = vmatprep.subr.bf16.mxu0 %v10942_v52 }
 0x9ed   :  { %v8854_v26 = vsel %vm8846_vm7, %v8775_v3, %v8637_v12  ;;  %v8592_v61 = vpop.xlane.xlu0 %8591 }
 0x9ee   :  { %v10944_v47 = vpack.c.bf16 %v8854_v26, %v8853_v45  ;;  %v8654_v57 = vsel %vm8629_vm6, %v8592_v61, 0.0 }
 0x9f0   :  { %v8594_v14 = vpop.xlane.xlu1 %8593  ;;  %10945 = vmatpush3.bf16.msra.mxu0 %v10944_v47 }
 0x9f1   :  { %v8608_v11 = vpop.xlane.xlu0 %8607  ;;  %v8655_v42 = vsel %vm8629_vm6, %v8594_v14, 0.0 }
 0x9f2   :  { %v8662_v15 = vsel %vm8629_vm6, %v8608_v11, 0.0 }
 0x9f4   :  { %v8610_v46 = vpop.xlane.xlu1 %8609 }
 0x9f5   :  { %v8560_v8 = vpop.xlane.xlu0 %8559  ;;  %v8663_v55 = vsel %vm8629_vm6, %v8610_v46, 0.0 }
 0x9f6   :  { %v8638_v41 = vsel %vm8629_vm6, %v8560_v8, 0.0 }
 0x9f8   :  { %v8562_v59 = vpop.xlane.xlu1 %8561 }
 0x9f9   :  { %v8809_v0 = vpop.xlane.xlu0 %8808  ;;  %v8639_v1 = vsel %vm8629_vm6, %v8562_v59, 0.0 }
 0x9fa   :  { %v8871_v30 = vsel %vm8846_vm7, %v8809_v0, %v8654_v57 }
 0x9fc   :  { %v8811_v16 = vpop.xlane.xlu1 %8810 }
 0x9fd   :  { %v8872_v33 = vsel %vm8846_vm7, %v8811_v16, %v8655_v42  ;;  %v8825_v38 = vpop.xlane.xlu0 %8824 }
 0x9fe   :  { %v10946_v49 = vpack.c.bf16 %v8872_v33, %v8871_v30  ;;  %v8879_v9 = vsel %vm8846_vm7, %v8825_v38, %v8662_v15 }
 0xa00   :  { %v8827_v27 = vpop.xlane.xlu1 %8826  ;;  %10947 = vmatprep.subr.bf16.mxu0 %v10946_v49 }
 0xa01   :  { %v8880_v43 = vsel %vm8846_vm7, %v8827_v27, %v8663_v55  ;;  %v8777_v51 = vpop.xlane.xlu0 %8776 }
 0xa02   :  { %v10963_v24 = vpack.c.bf16 %v8880_v43, %v8879_v9  ;;  %v8855_v7 = vsel %vm8846_vm7, %v8777_v51, %v8638_v41 }
 0xa04   :  { %v8779_v36 = vpop.xlane.xlu1 %8778  ;;  %10964 = vmatpush3.bf16.msra.mxu1 %v10963_v24 }
 0xa05   :  { %v8856_v4 = vsel %vm8846_vm7, %v8779_v36, %v8639_v1  ;;  %10965 = vmatprep.subr.bf16.mxu1 %v12043_v25  ;;  %v8596_v39 = vpop.xlane.xlu0 %8595 }
 0xa06   :  { %v10948_v40 = vpack.c.bf16 %v8856_v4, %v8855_v7  ;;  %v8656_v48 = vsel %vm8629_vm6, %v8596_v39, 0.0 }
 0xa08   :  { %v8598_v2 = vpop.xlane.xlu1 %8597  ;;  %10949 = vmatpush3.bf16.msra.mxu0 %v10948_v40 }
 0xa09   :  { %v8612_v63 = vpop.xlane.xlu0 %8611  ;;  %v8657_v18 = vsel %vm8629_vm6, %v8598_v2, 0.0 }
 0xa0a   :  { %v8664_v13 = vsel %vm8629_vm6, %v8612_v63, 0.0 }
 0xa0c   :  { %v8614_v20 = vpop.xlane.xlu1 %8613 }
 0xa0d   :  { %v8564_v34 = vpop.xlane.xlu0 %8563  ;;  %v8665_v23 = vsel %vm8629_vm6, %v8614_v20, 0.0 }
 0xa0e   :  { %v8640_v60 = vsel %vm8629_vm6, %v8564_v34, 0.0 }
 0xa10   :  { %v8566_v37 = vpop.xlane.xlu1 %8565 }
 0xa11   :  { %v8813_v22 = vpop.xlane.xlu0 %8812  ;;  %v8641_v17 = vsel %vm8629_vm6, %v8566_v37, 0.0 }
 0xa12   :  { %v8873_v56 = vsel %vm8846_vm7, %v8813_v22, %v8656_v48 }
 0xa14   :  { %v8815_v54 = vpop.xlane.xlu1 %8814 }
 0xa15   :  { %v8874_v35 = vsel %vm8846_vm7, %v8815_v54, %v8657_v18  ;;  %v8829_v28 = vpop.xlane.xlu0 %8828 }
 0xa16   :  { %v10950_v50 = vpack.c.bf16 %v8874_v35, %v8873_v56  ;;  %v8881_v6 = vsel %vm8846_vm7, %v8829_v28, %v8664_v13 }
 0xa18   :  { %v8831_v62 = vpop.xlane.xlu1 %8830  ;;  %10951 = vmatprep.subr.bf16.mxu0 %v10950_v50 }
 0xa19   :  { %v8882_v32 = vsel %vm8846_vm7, %v8831_v62, %v8665_v23  ;;  %v8781_v53 = vpop.xlane.xlu0 %8780 }
 0xa1a   :  { %v10966_v10 = vpack.c.bf16 %v8882_v32, %v8881_v6  ;;  %v8857_v31 = vsel %vm8846_vm7, %v8781_v53, %v8640_v60 }
 0xa1c   :  { %v8783_v19 = vpop.xlane.xlu1 %8782  ;;  %10967 = vmatpush3.bf16.msra.mxu1 %v10966_v10 }
 0xa1d   :  { %v8858_v21 = vsel %vm8846_vm7, %v8783_v19, %v8641_v17  ;;  %10968 = vmatprep.subr.bf16.mxu1 %v12043_v25  ;;  %v8600_v44 = vpop.xlane.xlu0 %8599  ;;  %v8890_v19 = vld [vmem:[%s15549_s2] sm:$0xff] }
 0xa1e   :  { %v10952_v52 = vpack.c.bf16 %v8858_v21, %v8857_v31  ;;  %v8658_v14 = vsel %vm8629_vm6, %v8600_v44, 0.0 }
 0xa20   :  { %v8602_v12 = vpop.xlane.xlu1 %8601  ;;  %10953 = vmatpush3.bf16.msra.mxu0 %v10952_v52 }
 0xa21   :  { %v8616_v5 = vpop.xlane.xlu0 %8615  ;;  %v8659_v47 = vsel %vm8629_vm6, %v8602_v12, 0.0 }
 0xa22   :  { %v8666_v57 = vsel %vm8629_vm6, %v8616_v5, 0.0 }
 0xa24   :  { %v8618_v3 = vpop.xlane.xlu1 %8617 }
 0xa25   :  { %v8568_v45 = vpop.xlane.xlu0 %8567  ;;  %v8667_v42 = vsel %vm8629_vm6, %v8618_v3, 0.0 }
 0xa26   :  { %v8642_v15 = vsel %vm8629_vm6, %v8568_v45, 0.0 }
 0xa28   :  { %v8570_v26 = vpop.xlane.xlu1 %8569 }
 0xa29   :  { %v8817_v46 = vpop.xlane.xlu0 %8816  ;;  %v8643_v55 = vsel %vm8629_vm6, %v8570_v26, 0.0 }
 0xa2a   :  { %v8875_v59 = vsel %vm8846_vm7, %v8817_v46, %v8658_v14 }
 0xa2c   :  { %v8819_v61 = vpop.xlane.xlu1 %8818 }
 0xa2d   :  { %v8876_v11 = vsel %vm8846_vm7, %v8819_v61, %v8659_v47  ;;  %v8833_v0 = vpop.xlane.xlu0 %8832  ;;  %v8892_v47 = vld [vmem:[%s15549_s2 + $0x10] sm:$0xff] }
 0xa2e   :  { %v10954_v8 = vpack.c.bf16 %v8876_v11, %v8875_v59  ;;  %v8883_v30 = vsel %vm8846_vm7, %v8833_v0, %v8666_v57  ;;  %v9236_v11 = vld [vmem:[%s15550_s6] ss:$0 sm:$0xff] }
 0xa30   :  { %v8835_v16 = vpop.xlane.xlu1 %8834  ;;  %10955 = vmatprep.subr.bf16.mxu0 %v10954_v8 }
 0xa31   :  { %v8884_v33 = vsel %vm8846_vm7, %v8835_v16, %v8667_v42  ;;  %v8785_v38 = vpop.xlane.xlu0 %8784 }
 0xa32   :  { %v10969_v49 = vpack.c.bf16 %v8884_v33, %v8883_v30  ;;  %v8859_v9 = vsel %vm8846_vm7, %v8785_v38, %v8642_v15 }
 0xa34   :  { %v8787_v27 = vpop.xlane.xlu1 %8786  ;;  %10970 = vmatpush3.bf16.msra.mxu1 %v10969_v49 }
 0xa35   :  { %v8860_v43 = vsel %vm8846_vm7, %v8787_v27, %v8643_v55  ;;  %10971 = vmatprep.subr.bf16.mxu1 %v12043_v25  ;;  %v8604_v41 = vpop.xlane.xlu0 %8603 }
 0xa36   :  { %v10956_v24 = vpack.c.bf16 %v8860_v43, %v8859_v9  ;;  %v8660_v2 = vsel %vm8629_vm6, %v8604_v41, 0.0 }
 0xa38   :  { %v8606_v1 = vpop.xlane.xlu1 %8605  ;;  %10957 = vmatpush3.bf16.msra.mxu0 %v10956_v24 }
 0xa39   :  { %v8620_v51 = vpop.xlane.xlu0 %8619  ;;  %v8661_v40 = vsel %vm8629_vm6, %v8606_v1, 0.0 }
 0xa3a   :  { %v8668_v48 = vsel %vm8629_vm6, %v8620_v51, 0.0 }
 0xa3c   :  { %v8622_v36 = vpop.xlane.xlu1 %8621 }
 0xa3d   :  { %v8572_v7 = vpop.xlane.xlu0 %8571  ;;  %v8669_v18 = vsel %vm8629_vm6, %v8622_v36, 0.0 }
 0xa3e   :  { %v8644_v13 = vsel %vm8629_vm6, %v8572_v7, 0.0 }
 0xa40   :  { %v8574_v4 = vpop.xlane.xlu1 %8573 }
 0xa41   :  { %v8821_v20 = vpop.xlane.xlu0 %8820  ;;  %v8645_v23 = vsel %vm8629_vm6, %v8574_v4, 0.0 }
 0xa42   :  { %v8877_v37 = vsel %vm8846_vm7, %v8821_v20, %v8660_v2 }
 0xa44   :  { %v8823_v39 = vpop.xlane.xlu1 %8822 }
 0xa45   :  { %v8878_v63 = vsel %vm8846_vm7, %v8823_v39, %v8661_v40  ;;  %v8837_v22 = vpop.xlane.xlu0 %8836 }
 0xa46   :  { %v10958_v34 = vpack.c.bf16 %v8878_v63, %v8877_v37  ;;  %v8885_v56 = vsel %vm8846_vm7, %v8837_v22, %v8668_v48 }
 0xa48   :  { %v8839_v54 = vpop.xlane.xlu1 %8838  ;;  %10959 = vmatprep.subr.bf16.mxu0 %v10958_v34 }
 0xa49   :  { %v8886_v35 = vsel %vm8846_vm7, %v8839_v54, %v8669_v18  ;;  %v8789_v28 = vpop.xlane.xlu0 %8788 }
 0xa4a   :  { %v10972_v50 = vpack.c.bf16 %v8886_v35, %v8885_v56  ;;  %v8861_v6 = vsel %vm8846_vm7, %v8789_v28, %v8644_v13 }
 0xa4c   :  { %v8791_v62 = vpop.xlane.xlu1 %8790  ;;  %10973 = vmatpush3.bf16.msra.mxu1 %v10972_v50 }
 0xa4d   :  { %v8862_v32 = vsel %vm8846_vm7, %v8791_v62, %v8645_v23  ;;  %10974 = vmatprep.subr.bf16.mxu1 %v12043_v25  ;;  %v8624_v60 = vpop.xlane.xlu0 %8623 }
 0xa4e   :  { %v10960_v10 = vpack.c.bf16 %v8862_v32, %v8861_v6  ;;  %v8670_v21 = vsel %vm8629_vm6, %v8624_v60, 0.0 }
 0xa50   :  { %v8626_v17 = vpop.xlane.xlu1 %8625  ;;  %10961 = vmatpush3.bf16.msra.mxu0 %v10960_v10 }
 0xa51   :  { %v8671_v53 = vsel %vm8629_vm6, %v8626_v17, 0.0  ;;  %v8841_v52 = vpop.xlane.xlu0 %8840 }
 0xa52   :  { %v8887_v12 = vsel %vm8846_vm7, %v8841_v52, %v8670_v21 }
 0xa53   :  { %8969 = vmatmul.mubr.f32.vlgmr.msra.gmra.mrb[44].mxu0 %v8890_v19 }
 0xa54   :  { %v8843_v31 = vpop.xlane.xlu1 %8842 }
 0xa55   :  { %v8888_v25 = vsel %vm8846_vm7, %v8843_v31, %v8671_v53  ;;  %v8628_v5 = vpop.xlane.xlu0 %8627 }
 0xa56   :  { %v10975_v44 = vpack.c.bf16 %v8888_v25, %v8887_v12  ;;  %v8672_v26 = vsel %vm8629_vm6, %v8628_v5, 0.0 }
 0xa58   :  { %v8845_v3 = vpop.xlane.xlu1 %8844  ;;  %10976 = vmatpush3.bf16.msra.mxu1 %v10975_v44 }
 0xa59   :  { %10925 = vmatprep.subr.mxu1 %v15400_v58  ;;  %v8889_v45 = vsel %vm8846_vm7, %v8845_v3, %v8672_v26 }
 0xa5c   :  { %10926 = vmatpush3.msra.mxu1 %v8889_v45 }
 0xa5d   :  { %10928 = vmatmul.mubr.msk.f32.vlgmr.msra.gmra.mrb[44].mxu1 %vm8900_vm9, %v8892_v47 }
 0xb26   :  { %v9810_v14 = vpop.f32.mrb[44].mxu0 }
 0xb27   :  { %v9811_v61 = vpop.f32.mrb[45].mxu0 }
 0xb28   :  { %v9812_v46 = vadd.f32 %v9811_v61, %v9810_v14 }
 0xb2a   :  { %v8971_v59 = vadd.f32 %v9812_v46, %v9236_v11 }
 0xb30   :  { %v9040_v8 = vpop.f32.mrb[44].mxu1 }
 0xb31   :  { %v9041_v58 = vadd.f32 %v9040_v8, %v8971_v59  ;;  %v10929_v42 = vpop.f32.mrb[45].mxu1 }
 0xb33   :  { %9044 = vst [vmem:[%s15551_s7] sm:$0xff] %v9041_v58 }

</bundles_post_ra>
